<compile_context>
chip_gen: v5e
topology: v5e:2x2
jax: 0.10.0
libtpu: 0.0.40
codegen_flags: <defaults>
</compile_context>

<pallas_src>
import numpy as np
import jax
import jax.numpy as jnp
from jax.experimental import pallas as pl
from jax.experimental.pallas import tpu as pltpu

NN1, NN2, NN3, NN4 = 90, 66, 48, 24
LANE = 128                       # lane tile width; hidden states padded to one tile
BP = 8                           # batch padded to a full sublane tile


def _round_up(n, m):
    return ((n + m - 1) // m) * m


GN1 = _round_up(4 * NN1, LANE)   # 384
GN2 = _round_up(4 * NN2, LANE)   # 384
GN3 = _round_up(4 * NN3, LANE)   # 256
GN4 = _round_up(4 * NN4, LANE)   # 128


def _sig(v):
    # sigmoid(x) == 0.5*tanh(0.5*x) + 0.5 : single EUP pass per tile.
    return 0.5 * jnp.tanh(0.5 * v) + 0.5


def deep_lstm_kernel(x_ref,                         # (seq*BP, IN_PAD)
                     w_ih1_ref, w_hh1_ref, b1_ref,  # (IN_PAD,GN1) (LANE,GN1) (1,GN1)
                     w_cat2_ref, b2_ref,            # (2*LANE,GN2) (BP,GN2)
                     w_cat3_ref, b3_ref,            # (LANE,GN3)   (BP,GN3)
                     w_cat4_ref, b4_ref,            # (LANE,GN4)   (BP,GN4)
                     w_fc_ref, b_fc_ref,            # (LANE,OUT_PAD) (1,OUT_PAD)
                     out_ref,                       # (BP, OUT_PAD)
                     g1_ref):                       # VMEM scratch (seq*BP, GN1)
    seq = x_ref.shape[0] // BP

    # Layer-1 input projection for all timesteps in one batched MXU pass (+ bias).
    g1_ref[...] = (jnp.dot(x_ref[...], w_ih1_ref[...],
                           preferred_element_type=jnp.float32)
                   + b1_ref[...])

    # Biases for layers 2-4 arrive pre-broadcast to (BP, GN_l) from the wrapper.
    b2 = b2_ref[...]
    b3 = b3_ref[...]
    b4 = b4_ref[...]

    def gate_tile(gates, off, gn):
        # Return a (BP, LANE) tile whose first H lanes hold the gate that starts
        # at column `off` in the tightly-packed gate array.  Lanes beyond H hold
        # neighbouring-gate junk (bounded, never reaches real weight rows).
        if off == 0:
            return gates[:, :LANE]
        if off + LANE <= gn:
            return gates[:, off:off + LANE]          # static unaligned lane slice
        return jnp.concatenate([gates[:, off:], gates[:, :off + LANE - gn]], axis=1)

    def gate_math(gates, c, H, gn):
        # Gate column order (i, f, o, g), packed at offsets 0/H/2H/3H.
        i = _sig(gate_tile(gates, 0, gn))
        f = _sig(gate_tile(gates, H, gn))
        o = _sig(gate_tile(gates, 2 * H, gn))
        g = jnp.tanh(gate_tile(gates, 3 * H, gn))
        c_new = f * c + i * g
        h_new = o * jnp.tanh(c_new)
        # (BP, LANE); lanes >= H contain bounded junk that only ever multiplies
        # zero weight rows downstream.
        return h_new, c_new

    def cell(hx, c, w_cat_ref, b, H, gn):
        gates = jnp.dot(hx, w_cat_ref[...],
                        preferred_element_type=jnp.float32) + b
        return gate_math(gates, c, H, gn)

    zeros = jnp.zeros((BP, LANE), jnp.float32)
    h1 = c1 = h2 = c2 = h3 = c3 = h4 = c4 = zeros

    # seq is small & static: fully unroll with static slices so the scheduler can
    # wavefront-pipeline layer l @ t+1 against layers l+1..4 @ t.
    for t in range(seq):
        # ---- layer 1: K = 128, N = 384 ----
        g1_t = g1_ref[t * BP:(t + 1) * BP, :]           # sublane-aligned slice
        gates1 = g1_t + jnp.dot(h1, w_hh1_ref[...],
                                preferred_element_type=jnp.float32)
        h1, c1 = gate_math(gates1, c1, NN1, GN1)

        # ---- layer 2: K = 256 (aligned [h1 | h2] concat), N = 384 ----
        hx2 = jnp.concatenate([h1, h2], axis=1)
        h2, c2 = cell(hx2, c2, w_cat2_ref, b2, NN2, GN2)

        # ---- layer 3: K packed to 128 ([h2(66) | h3(48..62)]), N = 256 ----
        hx3 = jnp.concatenate([h2[:, :NN2], h3[:, :LANE - NN2]], axis=1)
        h3, c3 = cell(hx3, c3, w_cat3_ref, b3, NN3, GN3)

        # ---- layer 4: K packed to 128 ([h3(48) | h4(24..80)]), N = 128 ----
        hx4 = jnp.concatenate([h3[:, :NN3], h4[:, :LANE - NN3]], axis=1)
        h4, c4 = cell(hx4, c4, w_cat4_ref, b4, NN4, GN4)

    out_ref[...] = (jnp.dot(h4, w_fc_ref[...], preferred_element_type=jnp.float32)
                    + b_fc_ref[...])


def deep_lstm_net(x, kparams):
    """x: (batch, seq, input_dim) float32 -> (batch, output_dim) float32."""
    batch, seq, input_dim = x.shape
    assert batch <= BP, "kernel packs the batch into one sublane tile"
    out_dim = kparams["out_dim"]
    in_pad = kparams["w_ih1"].shape[0]
    out_pad = kparams["w_fc"].shape[1]

    # (batch, seq, in) -> (seq, batch, in); pad batch->BP, lanes->in_pad; flatten
    # to a 2D slab whose row index is t*BP + b so timestep t is a sublane block.
    x_t = jnp.transpose(x, (1, 0, 2)).astype(jnp.float32)
    x_p = jnp.zeros((seq, BP, in_pad), jnp.float32).at[:, :batch, :input_dim].set(x_t)
    x2d = x_p.reshape(seq * BP, in_pad)

    args = [x2d,
            kparams["w_ih1"], kparams["w_hh1"], kparams["b1"],
            kparams["w_cat2"], kparams["b2"],
            kparams["w_cat3"], kparams["b3"],
            kparams["w_cat4"], kparams["b4"],
            kparams["w_fc"], kparams["b_fc"]]

    vmem = pl.BlockSpec(memory_space=pltpu.MemorySpace.VMEM)
    out = pl.pallas_call(
        deep_lstm_kernel,
        out_shape=jax.ShapeDtypeStruct((BP, out_pad), jnp.float32),
        in_specs=[vmem] * len(args),
        out_specs=vmem,
        scratch_shapes=[pltpu.VMEM((seq * BP, GN1), jnp.float32)],
    )(*args)
    return out[:batch, :out_dim]


def prepare_kernel_params(p, input_dim, output_dim):
    """Host-side weight prep: reorder gates (i,f,g,o)->(i,f,o,g), pack gate
    columns tightly at offsets 0/H/2H/3H inside round_up(4H,128) lanes, fuse
    [w_ih; w_hh] (K=256 for layer 2, K=128 packed for layers 3/4) and
    pre-broadcast their biases to (BP, GN_l)."""
    in_pad = _round_up(max(input_dim, 1), LANE)
    out_pad = _round_up(max(output_dim, 1), LANE)
    src_order = (0, 1, 3, 2)   # dest gate block k <- torch gate (i, f, g, o)

    def pack_w(w, H, rows_pad, gn):
        w = np.asarray(w, np.float32)
        din = w.shape[0]
        out = np.zeros((rows_pad, gn), np.float32)
        for k, s in enumerate(src_order):
            out[:din, k * H:(k + 1) * H] = w[:, s * H:(s + 1) * H]
        return out

    def pack_b(b, H, gn):
        b = np.asarray(b, np.float32).reshape(-1)
        out = np.zeros((1, gn), np.float32)
        for k, s in enumerate(src_order):
            out[0, k * H:(k + 1) * H] = b[s * H:(s + 1) * H]
        return out

    kp = {"out_dim": output_dim}
    kp["w_ih1"] = jnp.asarray(pack_w(p["w_ih1"], NN1, in_pad, GN1))
    kp["w_hh1"] = jnp.asarray(pack_w(p["w_hh1"], NN1, LANE, GN1))
    kp["b1"] = jnp.asarray(pack_b(p["b1"], NN1, GN1))

    # (layer, din, H, K_pad, hh_row_offset, gate_width)
    fused = [(2, NN1, NN2, 2 * LANE, LANE, GN2),   # [h1 | h2]  -> rows 0..90 / 128..194
             (3, NN2, NN3, LANE,     NN2,  GN3),   # [h2 | h3]  -> rows 0..66 / 66..114
             (4, NN3, NN4, LANE,     NN3,  GN4)]   # [h3 | h4]  -> rows 0..48 / 48..72
    for li, din, H, kpad, off, gn in fused:
        w = np.zeros((kpad, gn), np.float32)
        w[:din, :] = pack_w(p[f"w_ih{li}"], H, din, gn)
        w[off:off + H, :] = pack_w(p[f"w_hh{li}"], H, H, gn)
        kp[f"w_cat{li}"] = jnp.asarray(w)
        kp[f"b{li}"] = jnp.asarray(
            np.broadcast_to(pack_b(p[f"b{li}"], H, gn), (BP, gn)).copy())

    w_fc = np.zeros((LANE, out_pad), np.float32)
    w_fc[:NN4, :output_dim] = np.asarray(p["w_fc"], np.float32)
    b_fc = np.zeros((1, out_pad), np.float32)
    b_fc[0, :output_dim] = np.asarray(p["b_fc"], np.float32).reshape(-1)
    kp["w_fc"] = jnp.asarray(w_fc)
    kp["b_fc"] = jnp.asarray(b_fc)
    return kp


def init_params(key, input_dim, output_dim):
    """Deterministic init mimicking PyTorch's uniform(-1/sqrt(H), 1/sqrt(H)).
    Weights in right-multiply form, PyTorch gate order (i, f, g, o)."""
    layer_dims = [(input_dim, NN1), (NN1, NN2), (NN2, NN3), (NN3, NN4)]
    params = {}
    keys = jax.random.split(key, 3 * len(layer_dims) + 2)
    ki = 0
    for li, (din, H) in enumerate(layer_dims, start=1):
        bound = 1.0 / np.sqrt(H)
        params[f"w_ih{li}"] = jax.random.uniform(
            keys[ki], (din, 4 * H), jnp.float32, -bound, bound); ki += 1
        params[f"w_hh{li}"] = jax.random.uniform(
            keys[ki], (H, 4 * H), jnp.float32, -bound, bound); ki += 1
        # combined bias = b_ih + b_hh  (single deterministic draw here)
        params[f"b{li}"] = jax.random.uniform(
            keys[ki], (1, 4 * H), jnp.float32, -bound, bound); ki += 1
    bound = 1.0 / np.sqrt(NN4)
    params["w_fc"] = jax.random.uniform(
        keys[ki], (NN4, output_dim), jnp.float32, -bound, bound); ki += 1
    params["b_fc"] = jax.random.uniform(
        keys[ki], (1, output_dim), jnp.float32, -bound, bound); ki += 1
    return params


def reference_forward(x, p):
    """Pure numpy reference (float64) mirroring the PyTorch forward pass."""
    def sigmoid(v):
        return 1.0 / (1.0 + np.exp(-v))

    batch, seq, _ = x.shape
    sizes = (NN1, NN2, NN3, NN4)
    hs = [np.zeros((batch, H), np.float64) for H in sizes]
    cs = [np.zeros((batch, H), np.float64) for H in sizes]
    for t in range(seq):
        inp = x[:, t, :]
        for li, H in enumerate(sizes):
            w_ih = p[f"w_ih{li + 1}"]
            w_hh = p[f"w_hh{li + 1}"]
            b = p[f"b{li + 1}"]
            gates = inp @ w_ih + hs[li] @ w_hh + b
            i = sigmoid(gates[:, 0 * H:1 * H])
            f = sigmoid(gates[:, 1 * H:2 * H])
            g = np.tanh(gates[:, 2 * H:3 * H])
            o = sigmoid(gates[:, 3 * H:4 * H])
            cs[li] = f * cs[li] + i * g
            hs[li] = o * np.tanh(cs[li])
            inp = hs[li]
    return hs[3] @ p["w_fc"] + p["b_fc"]


if __name__ == "__main__":
    batch, seq, input_dim, output_dim = 2, 8, 16, 4

    key = jax.random.PRNGKey(0)
    kx, kp = jax.random.split(key)
    x = jax.random.normal(kx, (batch, seq, input_dim), jnp.float32)
    params = init_params(kp, input_dim, output_dim)
    kparams = prepare_kernel_params(params, input_dim, output_dim)

    out = deep_lstm_net(x, kparams)
    out = jax.block_until_ready(out)

    ref = reference_forward(
        np.asarray(x, np.float64),
        {k: np.asarray(v, np.float64) for k, v in params.items()},
    )
    assert out.shape == (batch, output_dim)
    assert np.allclose(np.asarray(out, np.float64), ref, atol=5e-3, rtol=5e-3), (
        "mismatch vs reference: max abs err = "
        f"{np.max(np.abs(np.asarray(out, np.float64) - ref))}"
    )
    print("KERNEL_OK")
</pallas_src>

<mosaic_0001>
module attributes {stable_mosaic.version = 11 : i64} {
  func.func @deep_lstm_kernel(%arg0: memref<64x128xf32, #tpu.memory_space<vmem>>, %arg1: memref<128x384xf32, #tpu.memory_space<vmem>>, %arg2: memref<128x384xf32, #tpu.memory_space<vmem>>, %arg3: memref<1x384xf32, #tpu.memory_space<vmem>>, %arg4: memref<256x384xf32, #tpu.memory_space<vmem>>, %arg5: memref<8x384xf32, #tpu.memory_space<vmem>>, %arg6: memref<128x256xf32, #tpu.memory_space<vmem>>, %arg7: memref<8x256xf32, #tpu.memory_space<vmem>>, %arg8: memref<128x128xf32, #tpu.memory_space<vmem>>, %arg9: memref<8x128xf32, #tpu.memory_space<vmem>>, %arg10: memref<128x128xf32, #tpu.memory_space<vmem>>, %arg11: memref<1x128xf32, #tpu.memory_space<vmem>>, %arg12: memref<8x128xf32, #tpu.memory_space<vmem>>, %arg13: memref<64x384xf32, #tpu.memory_space<vmem>>) attributes {dimension_semantics = [], scalar_prefetch = 0 : i64, scratch_operands = 1 : i64, tpu.core_type = #tpu.core_type<tc>} {
    %c0 = arith.constant 0 : index
    %c0_0 = arith.constant 0 : index
    %0 = vector.load %arg0[%c0, %c0_0] : memref<64x128xf32, #tpu.memory_space<vmem>>, vector<64x128xf32>
    %c0_1 = arith.constant 0 : index
    %c0_2 = arith.constant 0 : index
    %1 = vector.load %arg1[%c0_1, %c0_2] : memref<128x384xf32, #tpu.memory_space<vmem>>, vector<128x384xf32>
    %cst = arith.constant dense<0.000000e+00> : vector<64x384xf32>
    %2 = tpu.matmul %0, %1, %cst {dimension_numbers = #tpu.dot_dimension_numbers<[1], [0], [0], [1], [0, 0, 1, 1], [], []>} : vector<64x128xf32>, vector<128x384xf32>, vector<64x384xf32> -> vector<64x384xf32>
    %c0_3 = arith.constant 0 : index
    %c0_4 = arith.constant 0 : index
    %3 = vector.load %arg3[%c0_3, %c0_4] : memref<1x384xf32, #tpu.memory_space<vmem>>, vector<1x384xf32>
    %4 = vector.broadcast %3 : vector<1x384xf32> to vector<64x384xf32>
    %5 = arith.addf %2, %4 : vector<64x384xf32>
    %c0_5 = arith.constant 0 : index
    %c0_6 = arith.constant 0 : index
    %6 = vector.load %arg13[%c0_5, %c0_6] : memref<64x384xf32, #tpu.memory_space<vmem>>, vector<64x384xf32>
    tpu.vector_store %arg13[%c0_5, %c0_6], %5 {strides = array<i32>} : memref<64x384xf32, #tpu.memory_space<vmem>>, vector<64x384xf32>,
    %c0_7 = arith.constant 0 : index
    %c0_8 = arith.constant 0 : index
    %7 = vector.load %arg5[%c0_7, %c0_8] : memref<8x384xf32, #tpu.memory_space<vmem>>, vector<8x384xf32>
    %c0_9 = arith.constant 0 : index
    %c0_10 = arith.constant 0 : index
    %8 = vector.load %arg7[%c0_9, %c0_10] : memref<8x256xf32, #tpu.memory_space<vmem>>, vector<8x256xf32>
    %c0_11 = arith.constant 0 : index
    %c0_12 = arith.constant 0 : index
    %9 = vector.load %arg9[%c0_11, %c0_12] : memref<8x128xf32, #tpu.memory_space<vmem>>, vector<8x128xf32>
    %cst_13 = arith.constant 0.000000e+00 : f32
    %10 = vector.broadcast %cst_13 : f32 to vector<8x128xf32>
    %c0_14 = arith.constant 0 : index
    %c0_15 = arith.constant 0 : index
    %11 = vector.load %arg13[%c0_14, %c0_15] : memref<64x384xf32, #tpu.memory_space<vmem>>, vector<8x384xf32>
    %c0_16 = arith.constant 0 : index
    %c0_17 = arith.constant 0 : index
    %12 = vector.load %arg2[%c0_16, %c0_17] : memref<128x384xf32, #tpu.memory_space<vmem>>, vector<128x384xf32>
    %cst_18 = arith.constant dense<0.000000e+00> : vector<8x384xf32>
    %13 = tpu.matmul %10, %12, %cst_18 {dimension_numbers = #tpu.dot_dimension_numbers<[1], [0], [0], [1], [0, 0, 1, 1], [], []>} : vector<8x128xf32>, vector<128x384xf32>, vector<8x384xf32> -> vector<8x384xf32>
    %14 = arith.addf %11, %13 : vector<8x384xf32>
    %15 = vector.extract_strided_slice %14 {offsets = [0, 0], sizes = [8, 128], strides = [1, 1]} : vector<8x384xf32> to vector<8x128xf32>
    %cst_19 = arith.constant 5.000000e-01 : f32
    %16 = vector.broadcast %cst_19 : f32 to vector<8x128xf32>
    %17 = arith.mulf %16, %15 : vector<8x128xf32>
    %18 = math.tanh %17 : vector<8x128xf32>
    %cst_20 = arith.constant 5.000000e-01 : f32
    %19 = vector.broadcast %cst_20 : f32 to vector<8x128xf32>
    %20 = arith.mulf %19, %18 : vector<8x128xf32>
    %cst_21 = arith.constant 5.000000e-01 : f32
    %21 = vector.broadcast %cst_21 : f32 to vector<8x128xf32>
    %22 = arith.addf %20, %21 : vector<8x128xf32>
    %23 = vector.extract_strided_slice %14 {offsets = [0, 90], sizes = [8, 128], strides = [1, 1]} : vector<8x384xf32> to vector<8x128xf32>
    %cst_22 = arith.constant 5.000000e-01 : f32
    %24 = vector.broadcast %cst_22 : f32 to vector<8x128xf32>
    %25 = arith.mulf %24, %23 : vector<8x128xf32>
    %26 = math.tanh %25 : vector<8x128xf32>
    %cst_23 = arith.constant 5.000000e-01 : f32
    %27 = vector.broadcast %cst_23 : f32 to vector<8x128xf32>
    %28 = arith.mulf %27, %26 : vector<8x128xf32>
    %cst_24 = arith.constant 5.000000e-01 : f32
    %29 = vector.broadcast %cst_24 : f32 to vector<8x128xf32>
    %30 = arith.addf %28, %29 : vector<8x128xf32>
    %31 = vector.extract_strided_slice %14 {offsets = [0, 180], sizes = [8, 128], strides = [1, 1]} : vector<8x384xf32> to vector<8x128xf32>
    %cst_25 = arith.constant 5.000000e-01 : f32
    %32 = vector.broadcast %cst_25 : f32 to vector<8x128xf32>
    %33 = arith.mulf %32, %31 : vector<8x128xf32>
    %34 = math.tanh %33 : vector<8x128xf32>
    %cst_26 = arith.constant 5.000000e-01 : f32
    %35 = vector.broadcast %cst_26 : f32 to vector<8x128xf32>
    %36 = arith.mulf %35, %34 : vector<8x128xf32>
    %cst_27 = arith.constant 5.000000e-01 : f32
    %37 = vector.broadcast %cst_27 : f32 to vector<8x128xf32>
    %38 = arith.addf %36, %37 : vector<8x128xf32>
    %39 = vector.extract_strided_slice %14 {offsets = [0, 270], sizes = [8, 114], strides = [1, 1]} : vector<8x384xf32> to vector<8x114xf32>
    %40 = vector.extract_strided_slice %14 {offsets = [0, 0], sizes = [8, 14], strides = [1, 1]} : vector<8x384xf32> to vector<8x14xf32>
    %41 = tpu.concatenate %39, %40 in 1 : vector<8x114xf32>, vector<8x14xf32> -> vector<8x128xf32>
    %42 = math.tanh %41 : vector<8x128xf32>
    %43 = arith.mulf %30, %10 : vector<8x128xf32>
    %44 = arith.mulf %22, %42 : vector<8x128xf32>
    %45 = arith.addf %43, %44 : vector<8x128xf32>
    %46 = math.tanh %45 : vector<8x128xf32>
    %47 = arith.mulf %38, %46 : vector<8x128xf32>
    %48 = tpu.concatenate %47, %10 in 1 : vector<8x128xf32>, vector<8x128xf32> -> vector<8x256xf32>
    %c0_28 = arith.constant 0 : index
    %c0_29 = arith.constant 0 : index
    %49 = vector.load %arg4[%c0_28, %c0_29] : memref<256x384xf32, #tpu.memory_space<vmem>>, vector<256x384xf32>
    %cst_30 = arith.constant dense<0.000000e+00> : vector<8x384xf32>
    %50 = tpu.matmul %48, %49, %cst_30 {dimension_numbers = #tpu.dot_dimension_numbers<[1], [0], [0], [1], [0, 0, 1, 1], [], []>} : vector<8x256xf32>, vector<256x384xf32>, vector<8x384xf32> -> vector<8x384xf32>
    %51 = arith.addf %50, %7 : vector<8x384xf32>
    %52 = vector.extract_strided_slice %51 {offsets = [0, 0], sizes = [8, 128], strides = [1, 1]} : vector<8x384xf32> to vector<8x128xf32>
    %cst_31 = arith.constant 5.000000e-01 : f32
    %53 = vector.broadcast %cst_31 : f32 to vector<8x128xf32>
    %54 = arith.mulf %53, %52 : vector<8x128xf32>
    %55 = math.tanh %54 : vector<8x128xf32>
    %cst_32 = arith.constant 5.000000e-01 : f32
    %56 = vector.broadcast %cst_32 : f32 to vector<8x128xf32>
    %57 = arith.mulf %56, %55 : vector<8x128xf32>
    %cst_33 = arith.constant 5.000000e-01 : f32
    %58 = vector.broadcast %cst_33 : f32 to vector<8x128xf32>
    %59 = arith.addf %57, %58 : vector<8x128xf32>
    %60 = vector.extract_strided_slice %51 {offsets = [0, 66], sizes = [8, 128], strides = [1, 1]} : vector<8x384xf32> to vector<8x128xf32>
    %cst_34 = arith.constant 5.000000e-01 : f32
    %61 = vector.broadcast %cst_34 : f32 to vector<8x128xf32>
    %62 = arith.mulf %61, %60 : vector<8x128xf32>
    %63 = math.tanh %62 : vector<8x128xf32>
    %cst_35 = arith.constant 5.000000e-01 : f32
    %64 = vector.broadcast %cst_35 : f32 to vector<8x128xf32>
    %65 = arith.mulf %64, %63 : vector<8x128xf32>
    %cst_36 = arith.constant 5.000000e-01 : f32
    %66 = vector.broadcast %cst_36 : f32 to vector<8x128xf32>
    %67 = arith.addf %65, %66 : vector<8x128xf32>
    %68 = vector.extract_strided_slice %51 {offsets = [0, 132], sizes = [8, 128], strides = [1, 1]} : vector<8x384xf32> to vector<8x128xf32>
    %cst_37 = arith.constant 5.000000e-01 : f32
    %69 = vector.broadcast %cst_37 : f32 to vector<8x128xf32>
    %70 = arith.mulf %69, %68 : vector<8x128xf32>
    %71 = math.tanh %70 : vector<8x128xf32>
    %cst_38 = arith.constant 5.000000e-01 : f32
    %72 = vector.broadcast %cst_38 : f32 to vector<8x128xf32>
    %73 = arith.mulf %72, %71 : vector<8x128xf32>
    %cst_39 = arith.constant 5.000000e-01 : f32
    %74 = vector.broadcast %cst_39 : f32 to vector<8x128xf32>
    %75 = arith.addf %73, %74 : vector<8x128xf32>
    %76 = vector.extract_strided_slice %51 {offsets = [0, 198], sizes = [8, 128], strides = [1, 1]} : vector<8x384xf32> to vector<8x128xf32>
    %77 = math.tanh %76 : vector<8x128xf32>
    %78 = arith.mulf %67, %10 : vector<8x128xf32>
    %79 = arith.mulf %59, %77 : vector<8x128xf32>
    %80 = arith.addf %78, %79 : vector<8x128xf32>
    %81 = math.tanh %80 : vector<8x128xf32>
    %82 = arith.mulf %75, %81 : vector<8x128xf32>
    %83 = vector.extract_strided_slice %82 {offsets = [0, 0], sizes = [8, 66], strides = [1, 1]} : vector<8x128xf32> to vector<8x66xf32>
    %84 = vector.extract_strided_slice %10 {offsets = [0, 0], sizes = [8, 62], strides = [1, 1]} : vector<8x128xf32> to vector<8x62xf32>
    %85 = tpu.concatenate %83, %84 in 1 : vector<8x66xf32>, vector<8x62xf32> -> vector<8x128xf32>
    %c0_40 = arith.constant 0 : index
    %c0_41 = arith.constant 0 : index
    %86 = vector.load %arg6[%c0_40, %c0_41] : memref<128x256xf32, #tpu.memory_space<vmem>>, vector<128x256xf32>
    %cst_42 = arith.constant dense<0.000000e+00> : vector<8x256xf32>
    %87 = tpu.matmul %85, %86, %cst_42 {dimension_numbers = #tpu.dot_dimension_numbers<[1], [0], [0], [1], [0, 0, 1, 1], [], []>} : vector<8x128xf32>, vector<128x256xf32>, vector<8x256xf32> -> vector<8x256xf32>
    %88 = arith.addf %87, %8 : vector<8x256xf32>
    %89 = vector.extract_strided_slice %88 {offsets = [0, 0], sizes = [8, 128], strides = [1, 1]} : vector<8x256xf32> to vector<8x128xf32>
    %cst_43 = arith.constant 5.000000e-01 : f32
    %90 = vector.broadcast %cst_43 : f32 to vector<8x128xf32>
    %91 = arith.mulf %90, %89 : vector<8x128xf32>
    %92 = math.tanh %91 : vector<8x128xf32>
    %cst_44 = arith.constant 5.000000e-01 : f32
    %93 = vector.broadcast %cst_44 : f32 to vector<8x128xf32>
    %94 = arith.mulf %93, %92 : vector<8x128xf32>
    %cst_45 = arith.constant 5.000000e-01 : f32
    %95 = vector.broadcast %cst_45 : f32 to vector<8x128xf32>
    %96 = arith.addf %94, %95 : vector<8x128xf32>
    %97 = vector.extract_strided_slice %88 {offsets = [0, 48], sizes = [8, 128], strides = [1, 1]} : vector<8x256xf32> to vector<8x128xf32>
    %cst_46 = arith.constant 5.000000e-01 : f32
    %98 = vector.broadcast %cst_46 : f32 to vector<8x128xf32>
    %99 = arith.mulf %98, %97 : vector<8x128xf32>
    %100 = math.tanh %99 : vector<8x128xf32>
    %cst_47 = arith.constant 5.000000e-01 : f32
    %101 = vector.broadcast %cst_47 : f32 to vector<8x128xf32>
    %102 = arith.mulf %101, %100 : vector<8x128xf32>
    %cst_48 = arith.constant 5.000000e-01 : f32
    %103 = vector.broadcast %cst_48 : f32 to vector<8x128xf32>
    %104 = arith.addf %102, %103 : vector<8x128xf32>
    %105 = vector.extract_strided_slice %88 {offsets = [0, 96], sizes = [8, 128], strides = [1, 1]} : vector<8x256xf32> to vector<8x128xf32>
    %cst_49 = arith.constant 5.000000e-01 : f32
    %106 = vector.broadcast %cst_49 : f32 to vector<8x128xf32>
    %107 = arith.mulf %106, %105 : vector<8x128xf32>
    %108 = math.tanh %107 : vector<8x128xf32>
    %cst_50 = arith.constant 5.000000e-01 : f32
    %109 = vector.broadcast %cst_50 : f32 to vector<8x128xf32>
    %110 = arith.mulf %109, %108 : vector<8x128xf32>
    %cst_51 = arith.constant 5.000000e-01 : f32
    %111 = vector.broadcast %cst_51 : f32 to vector<8x128xf32>
    %112 = arith.addf %110, %111 : vector<8x128xf32>
    %113 = vector.extract_strided_slice %88 {offsets = [0, 144], sizes = [8, 112], strides = [1, 1]} : vector<8x256xf32> to vector<8x112xf32>
    %114 = vector.extract_strided_slice %88 {offsets = [0, 0], sizes = [8, 16], strides = [1, 1]} : vector<8x256xf32> to vector<8x16xf32>
    %115 = tpu.concatenate %113, %114 in 1 : vector<8x112xf32>, vector<8x16xf32> -> vector<8x128xf32>
    %116 = math.tanh %115 : vector<8x128xf32>
    %117 = arith.mulf %104, %10 : vector<8x128xf32>
    %118 = arith.mulf %96, %116 : vector<8x128xf32>
    %119 = arith.addf %117, %118 : vector<8x128xf32>
    %120 = math.tanh %119 : vector<8x128xf32>
    %121 = arith.mulf %112, %120 : vector<8x128xf32>
    %122 = vector.extract_strided_slice %121 {offsets = [0, 0], sizes = [8, 48], strides = [1, 1]} : vector<8x128xf32> to vector<8x48xf32>
    %123 = vector.extract_strided_slice %10 {offsets = [0, 0], sizes = [8, 80], strides = [1, 1]} : vector<8x128xf32> to vector<8x80xf32>
    %124 = tpu.concatenate %122, %123 in 1 : vector<8x48xf32>, vector<8x80xf32> -> vector<8x128xf32>
    %c0_52 = arith.constant 0 : index
    %c0_53 = arith.constant 0 : index
    %125 = vector.load %arg8[%c0_52, %c0_53] : memref<128x128xf32, #tpu.memory_space<vmem>>, vector<128x128xf32>
    %cst_54 = arith.constant dense<0.000000e+00> : vector<8x128xf32>
    %126 = tpu.matmul %124, %125, %cst_54 {dimension_numbers = #tpu.dot_dimension_numbers<[1], [0], [0], [1], [0, 0, 1, 1], [], []>} : vector<8x128xf32>, vector<128x128xf32>, vector<8x128xf32> -> vector<8x128xf32>
    %127 = arith.addf %126, %9 : vector<8x128xf32>
    %cst_55 = arith.constant 5.000000e-01 : f32
    %128 = vector.broadcast %cst_55 : f32 to vector<8x128xf32>
    %129 = arith.mulf %128, %127 : vector<8x128xf32>
    %130 = math.tanh %129 : vector<8x128xf32>
    %cst_56 = arith.constant 5.000000e-01 : f32
    %131 = vector.broadcast %cst_56 : f32 to vector<8x128xf32>
    %132 = arith.mulf %131, %130 : vector<8x128xf32>
    %cst_57 = arith.constant 5.000000e-01 : f32
    %133 = vector.broadcast %cst_57 : f32 to vector<8x128xf32>
    %134 = arith.addf %132, %133 : vector<8x128xf32>
    %135 = vector.extract_strided_slice %127 {offsets = [0, 24], sizes = [8, 104], strides = [1, 1]} : vector<8x128xf32> to vector<8x104xf32>
    %136 = vector.extract_strided_slice %127 {offsets = [0, 0], sizes = [8, 24], strides = [1, 1]} : vector<8x128xf32> to vector<8x24xf32>
    %137 = tpu.concatenate %135, %136 in 1 : vector<8x104xf32>, vector<8x24xf32> -> vector<8x128xf32>
    %cst_58 = arith.constant 5.000000e-01 : f32
    %138 = vector.broadcast %cst_58 : f32 to vector<8x128xf32>
    %139 = arith.mulf %138, %137 : vector<8x128xf32>
    %140 = math.tanh %139 : vector<8x128xf32>
    %cst_59 = arith.constant 5.000000e-01 : f32
    %141 = vector.broadcast %cst_59 : f32 to vector<8x128xf32>
    %142 = arith.mulf %141, %140 : vector<8x128xf32>
    %cst_60 = arith.constant 5.000000e-01 : f32
    %143 = vector.broadcast %cst_60 : f32 to vector<8x128xf32>
    %144 = arith.addf %142, %143 : vector<8x128xf32>
    %145 = vector.extract_strided_slice %127 {offsets = [0, 48], sizes = [8, 80], strides = [1, 1]} : vector<8x128xf32> to vector<8x80xf32>
    %146 = vector.extract_strided_slice %127 {offsets = [0, 0], sizes = [8, 48], strides = [1, 1]} : vector<8x128xf32> to vector<8x48xf32>
    %147 = tpu.concatenate %145, %146 in 1 : vector<8x80xf32>, vector<8x48xf32> -> vector<8x128xf32>
    %cst_61 = arith.constant 5.000000e-01 : f32
    %148 = vector.broadcast %cst_61 : f32 to vector<8x128xf32>
    %149 = arith.mulf %148, %147 : vector<8x128xf32>
    %150 = math.tanh %149 : vector<8x128xf32>
    %cst_62 = arith.constant 5.000000e-01 : f32
    %151 = vector.broadcast %cst_62 : f32 to vector<8x128xf32>
    %152 = arith.mulf %151, %150 : vector<8x128xf32>
    %cst_63 = arith.constant 5.000000e-01 : f32
    %153 = vector.broadcast %cst_63 : f32 to vector<8x128xf32>
    %154 = arith.addf %152, %153 : vector<8x128xf32>
    %155 = vector.extract_strided_slice %127 {offsets = [0, 72], sizes = [8, 56], strides = [1, 1]} : vector<8x128xf32> to vector<8x56xf32>
    %156 = vector.extract_strided_slice %127 {offsets = [0, 0], sizes = [8, 72], strides = [1, 1]} : vector<8x128xf32> to vector<8x72xf32>
    %157 = tpu.concatenate %155, %156 in 1 : vector<8x56xf32>, vector<8x72xf32> -> vector<8x128xf32>
    %158 = math.tanh %157 : vector<8x128xf32>
    %159 = arith.mulf %144, %10 : vector<8x128xf32>
    %160 = arith.mulf %134, %158 : vector<8x128xf32>
    %161 = arith.addf %159, %160 : vector<8x128xf32>
    %162 = math.tanh %161 : vector<8x128xf32>
    %163 = arith.mulf %154, %162 : vector<8x128xf32>
    %c8 = arith.constant 8 : index
    %c0_64 = arith.constant 0 : index
    %164 = vector.load %arg13[%c8, %c0_64] : memref<64x384xf32, #tpu.memory_space<vmem>>, vector<8x384xf32>
    %c0_65 = arith.constant 0 : index
    %c0_66 = arith.constant 0 : index
    %165 = vector.load %arg2[%c0_65, %c0_66] : memref<128x384xf32, #tpu.memory_space<vmem>>, vector<128x384xf32>
    %cst_67 = arith.constant dense<0.000000e+00> : vector<8x384xf32>
    %166 = tpu.matmul %47, %165, %cst_67 {dimension_numbers = #tpu.dot_dimension_numbers<[1], [0], [0], [1], [0, 0, 1, 1], [], []>} : vector<8x128xf32>, vector<128x384xf32>, vector<8x384xf32> -> vector<8x384xf32>
    %167 = arith.addf %164, %166 : vector<8x384xf32>
    %168 = vector.extract_strided_slice %167 {offsets = [0, 0], sizes = [8, 128], strides = [1, 1]} : vector<8x384xf32> to vector<8x128xf32>
    %cst_68 = arith.constant 5.000000e-01 : f32
    %169 = vector.broadcast %cst_68 : f32 to vector<8x128xf32>
    %170 = arith.mulf %169, %168 : vector<8x128xf32>
    %171 = math.tanh %170 : vector<8x128xf32>
    %cst_69 = arith.constant 5.000000e-01 : f32
    %172 = vector.broadcast %cst_69 : f32 to vector<8x128xf32>
    %173 = arith.mulf %172, %171 : vector<8x128xf32>
    %cst_70 = arith.constant 5.000000e-01 : f32
    %174 = vector.broadcast %cst_70 : f32 to vector<8x128xf32>
    %175 = arith.addf %173, %174 : vector<8x128xf32>
    %176 = vector.extract_strided_slice %167 {offsets = [0, 90], sizes = [8, 128], strides = [1, 1]} : vector<8x384xf32> to vector<8x128xf32>
    %cst_71 = arith.constant 5.000000e-01 : f32
    %177 = vector.broadcast %cst_71 : f32 to vector<8x128xf32>
    %178 = arith.mulf %177, %176 : vector<8x128xf32>
    %179 = math.tanh %178 : vector<8x128xf32>
    %cst_72 = arith.constant 5.000000e-01 : f32
    %180 = vector.broadcast %cst_72 : f32 to vector<8x128xf32>
    %181 = arith.mulf %180, %179 : vector<8x128xf32>
    %cst_73 = arith.constant 5.000000e-01 : f32
    %182 = vector.broadcast %cst_73 : f32 to vector<8x128xf32>
    %183 = arith.addf %181, %182 : vector<8x128xf32>
    %184 = vector.extract_strided_slice %167 {offsets = [0, 180], sizes = [8, 128], strides = [1, 1]} : vector<8x384xf32> to vector<8x128xf32>
    %cst_74 = arith.constant 5.000000e-01 : f32
    %185 = vector.broadcast %cst_74 : f32 to vector<8x128xf32>
    %186 = arith.mulf %185, %184 : vector<8x128xf32>
    %187 = math.tanh %186 : vector<8x128xf32>
    %cst_75 = arith.constant 5.000000e-01 : f32
    %188 = vector.broadcast %cst_75 : f32 to vector<8x128xf32>
    %189 = arith.mulf %188, %187 : vector<8x128xf32>
    %cst_76 = arith.constant 5.000000e-01 : f32
    %190 = vector.broadcast %cst_76 : f32 to vector<8x128xf32>
    %191 = arith.addf %189, %190 : vector<8x128xf32>
    %192 = vector.extract_strided_slice %167 {offsets = [0, 270], sizes = [8, 114], strides = [1, 1]} : vector<8x384xf32> to vector<8x114xf32>
    %193 = vector.extract_strided_slice %167 {offsets = [0, 0], sizes = [8, 14], strides = [1, 1]} : vector<8x384xf32> to vector<8x14xf32>
    %194 = tpu.concatenate %192, %193 in 1 : vector<8x114xf32>, vector<8x14xf32> -> vector<8x128xf32>
    %195 = math.tanh %194 : vector<8x128xf32>
    %196 = arith.mulf %183, %45 : vector<8x128xf32>
    %197 = arith.mulf %175, %195 : vector<8x128xf32>
    %198 = arith.addf %196, %197 : vector<8x128xf32>
    %199 = math.tanh %198 : vector<8x128xf32>
    %200 = arith.mulf %191, %199 : vector<8x128xf32>
    %201 = tpu.concatenate %200, %82 in 1 : vector<8x128xf32>, vector<8x128xf32> -> vector<8x256xf32>
    %c0_77 = arith.constant 0 : index
    %c0_78 = arith.constant 0 : index
    %202 = vector.load %arg4[%c0_77, %c0_78] : memref<256x384xf32, #tpu.memory_space<vmem>>, vector<256x384xf32>
    %cst_79 = arith.constant dense<0.000000e+00> : vector<8x384xf32>
    %203 = tpu.matmul %201, %202, %cst_79 {dimension_numbers = #tpu.dot_dimension_numbers<[1], [0], [0], [1], [0, 0, 1, 1], [], []>} : vector<8x256xf32>, vector<256x384xf32>, vector<8x384xf32> -> vector<8x384xf32>
    %204 = arith.addf %203, %7 : vector<8x384xf32>
    %205 = vector.extract_strided_slice %204 {offsets = [0, 0], sizes = [8, 128], strides = [1, 1]} : vector<8x384xf32> to vector<8x128xf32>
    %cst_80 = arith.constant 5.000000e-01 : f32
    %206 = vector.broadcast %cst_80 : f32 to vector<8x128xf32>
    %207 = arith.mulf %206, %205 : vector<8x128xf32>
    %208 = math.tanh %207 : vector<8x128xf32>
    %cst_81 = arith.constant 5.000000e-01 : f32
    %209 = vector.broadcast %cst_81 : f32 to vector<8x128xf32>
    %210 = arith.mulf %209, %208 : vector<8x128xf32>
    %cst_82 = arith.constant 5.000000e-01 : f32
    %211 = vector.broadcast %cst_82 : f32 to vector<8x128xf32>
    %212 = arith.addf %210, %211 : vector<8x128xf32>
    %213 = vector.extract_strided_slice %204 {offsets = [0, 66], sizes = [8, 128], strides = [1, 1]} : vector<8x384xf32> to vector<8x128xf32>
    %cst_83 = arith.constant 5.000000e-01 : f32
    %214 = vector.broadcast %cst_83 : f32 to vector<8x128xf32>
    %215 = arith.mulf %214, %213 : vector<8x128xf32>
    %216 = math.tanh %215 : vector<8x128xf32>
    %cst_84 = arith.constant 5.000000e-01 : f32
    %217 = vector.broadcast %cst_84 : f32 to vector<8x128xf32>
    %218 = arith.mulf %217, %216 : vector<8x128xf32>
    %cst_85 = arith.constant 5.000000e-01 : f32
    %219 = vector.broadcast %cst_85 : f32 to vector<8x128xf32>
    %220 = arith.addf %218, %219 : vector<8x128xf32>
    %221 = vector.extract_strided_slice %204 {offsets = [0, 132], sizes = [8, 128], strides = [1, 1]} : vector<8x384xf32> to vector<8x128xf32>
    %cst_86 = arith.constant 5.000000e-01 : f32
    %222 = vector.broadcast %cst_86 : f32 to vector<8x128xf32>
    %223 = arith.mulf %222, %221 : vector<8x128xf32>
    %224 = math.tanh %223 : vector<8x128xf32>
    %cst_87 = arith.constant 5.000000e-01 : f32
    %225 = vector.broadcast %cst_87 : f32 to vector<8x128xf32>
    %226 = arith.mulf %225, %224 : vector<8x128xf32>
    %cst_88 = arith.constant 5.000000e-01 : f32
    %227 = vector.broadcast %cst_88 : f32 to vector<8x128xf32>
    %228 = arith.addf %226, %227 : vector<8x128xf32>
    %229 = vector.extract_strided_slice %204 {offsets = [0, 198], sizes = [8, 128], strides = [1, 1]} : vector<8x384xf32> to vector<8x128xf32>
    %230 = math.tanh %229 : vector<8x128xf32>
    %231 = arith.mulf %220, %80 : vector<8x128xf32>
    %232 = arith.mulf %212, %230 : vector<8x128xf32>
    %233 = arith.addf %231, %232 : vector<8x128xf32>
    %234 = math.tanh %233 : vector<8x128xf32>
    %235 = arith.mulf %228, %234 : vector<8x128xf32>
    %236 = vector.extract_strided_slice %235 {offsets = [0, 0], sizes = [8, 66], strides = [1, 1]} : vector<8x128xf32> to vector<8x66xf32>
    %237 = vector.extract_strided_slice %121 {offsets = [0, 0], sizes = [8, 62], strides = [1, 1]} : vector<8x128xf32> to vector<8x62xf32>
    %238 = tpu.concatenate %236, %237 in 1 : vector<8x66xf32>, vector<8x62xf32> -> vector<8x128xf32>
    %c0_89 = arith.constant 0 : index
    %c0_90 = arith.constant 0 : index
    %239 = vector.load %arg6[%c0_89, %c0_90] : memref<128x256xf32, #tpu.memory_space<vmem>>, vector<128x256xf32>
    %cst_91 = arith.constant dense<0.000000e+00> : vector<8x256xf32>
    %240 = tpu.matmul %238, %239, %cst_91 {dimension_numbers = #tpu.dot_dimension_numbers<[1], [0], [0], [1], [0, 0, 1, 1], [], []>} : vector<8x128xf32>, vector<128x256xf32>, vector<8x256xf32> -> vector<8x256xf32>
    %241 = arith.addf %240, %8 : vector<8x256xf32>
    %242 = vector.extract_strided_slice %241 {offsets = [0, 0], sizes = [8, 128], strides = [1, 1]} : vector<8x256xf32> to vector<8x128xf32>
    %cst_92 = arith.constant 5.000000e-01 : f32
    %243 = vector.broadcast %cst_92 : f32 to vector<8x128xf32>
    %244 = arith.mulf %243, %242 : vector<8x128xf32>
    %245 = math.tanh %244 : vector<8x128xf32>
    %cst_93 = arith.constant 5.000000e-01 : f32
    %246 = vector.broadcast %cst_93 : f32 to vector<8x128xf32>
    %247 = arith.mulf %246, %245 : vector<8x128xf32>
    %cst_94 = arith.constant 5.000000e-01 : f32
    %248 = vector.broadcast %cst_94 : f32 to vector<8x128xf32>
    %249 = arith.addf %247, %248 : vector<8x128xf32>
    %250 = vector.extract_strided_slice %241 {offsets = [0, 48], sizes = [8, 128], strides = [1, 1]} : vector<8x256xf32> to vector<8x128xf32>
    %cst_95 = arith.constant 5.000000e-01 : f32
    %251 = vector.broadcast %cst_95 : f32 to vector<8x128xf32>
    %252 = arith.mulf %251, %250 : vector<8x128xf32>
    %253 = math.tanh %252 : vector<8x128xf32>
    %cst_96 = arith.constant 5.000000e-01 : f32
    %254 = vector.broadcast %cst_96 : f32 to vector<8x128xf32>
    %255 = arith.mulf %254, %253 : vector<8x128xf32>
    %cst_97 = arith.constant 5.000000e-01 : f32
    %256 = vector.broadcast %cst_97 : f32 to vector<8x128xf32>
    %257 = arith.addf %255, %256 : vector<8x128xf32>
    %258 = vector.extract_strided_slice %241 {offsets = [0, 96], sizes = [8, 128], strides = [1, 1]} : vector<8x256xf32> to vector<8x128xf32>
    %cst_98 = arith.constant 5.000000e-01 : f32
    %259 = vector.broadcast %cst_98 : f32 to vector<8x128xf32>
    %260 = arith.mulf %259, %258 : vector<8x128xf32>
    %261 = math.tanh %260 : vector<8x128xf32>
    %cst_99 = arith.constant 5.000000e-01 : f32
    %262 = vector.broadcast %cst_99 : f32 to vector<8x128xf32>
    %263 = arith.mulf %262, %261 : vector<8x128xf32>
    %cst_100 = arith.constant 5.000000e-01 : f32
    %264 = vector.broadcast %cst_100 : f32 to vector<8x128xf32>
    %265 = arith.addf %263, %264 : vector<8x128xf32>
    %266 = vector.extract_strided_slice %241 {offsets = [0, 144], sizes = [8, 112], strides = [1, 1]} : vector<8x256xf32> to vector<8x112xf32>
    %267 = vector.extract_strided_slice %241 {offsets = [0, 0], sizes = [8, 16], strides = [1, 1]} : vector<8x256xf32> to vector<8x16xf32>
    %268 = tpu.concatenate %266, %267 in 1 : vector<8x112xf32>, vector<8x16xf32> -> vector<8x128xf32>
    %269 = math.tanh %268 : vector<8x128xf32>
    %270 = arith.mulf %257, %119 : vector<8x128xf32>
    %271 = arith.mulf %249, %269 : vector<8x128xf32>
    %272 = arith.addf %270, %271 : vector<8x128xf32>
    %273 = math.tanh %272 : vector<8x128xf32>
    %274 = arith.mulf %265, %273 : vector<8x128xf32>
    %275 = vector.extract_strided_slice %274 {offsets = [0, 0], sizes = [8, 48], strides = [1, 1]} : vector<8x128xf32> to vector<8x48xf32>
    %276 = vector.extract_strided_slice %163 {offsets = [0, 0], sizes = [8, 80], strides = [1, 1]} : vector<8x128xf32> to vector<8x80xf32>
    %277 = tpu.concatenate %275, %276 in 1 : vector<8x48xf32>, vector<8x80xf32> -> vector<8x128xf32>
    %c0_101 = arith.constant 0 : index
    %c0_102 = arith.constant 0 : index
    %278 = vector.load %arg8[%c0_101, %c0_102] : memref<128x128xf32, #tpu.memory_space<vmem>>, vector<128x128xf32>
    %cst_103 = arith.constant dense<0.000000e+00> : vector<8x128xf32>
    %279 = tpu.matmul %277, %278, %cst_103 {dimension_numbers = #tpu.dot_dimension_numbers<[1], [0], [0], [1], [0, 0, 1, 1], [], []>} : vector<8x128xf32>, vector<128x128xf32>, vector<8x128xf32> -> vector<8x128xf32>
    %280 = arith.addf %279, %9 : vector<8x128xf32>
    %cst_104 = arith.constant 5.000000e-01 : f32
    %281 = vector.broadcast %cst_104 : f32 to vector<8x128xf32>
    %282 = arith.mulf %281, %280 : vector<8x128xf32>
    %283 = math.tanh %282 : vector<8x128xf32>
    %cst_105 = arith.constant 5.000000e-01 : f32
    %284 = vector.broadcast %cst_105 : f32 to vector<8x128xf32>
    %285 = arith.mulf %284, %283 : vector<8x128xf32>
    %cst_106 = arith.constant 5.000000e-01 : f32
    %286 = vector.broadcast %cst_106 : f32 to vector<8x128xf32>
    %287 = arith.addf %285, %286 : vector<8x128xf32>
    %288 = vector.extract_strided_slice %280 {offsets = [0, 24], sizes = [8, 104], strides = [1, 1]} : vector<8x128xf32> to vector<8x104xf32>
    %289 = vector.extract_strided_slice %280 {offsets = [0, 0], sizes = [8, 24], strides = [1, 1]} : vector<8x128xf32> to vector<8x24xf32>
    %290 = tpu.concatenate %288, %289 in 1 : vector<8x104xf32>, vector<8x24xf32> -> vector<8x128xf32>
    %cst_107 = arith.constant 5.000000e-01 : f32
    %291 = vector.broadcast %cst_107 : f32 to vector<8x128xf32>
    %292 = arith.mulf %291, %290 : vector<8x128xf32>
    %293 = math.tanh %292 : vector<8x128xf32>
    %cst_108 = arith.constant 5.000000e-01 : f32
    %294 = vector.broadcast %cst_108 : f32 to vector<8x128xf32>
    %295 = arith.mulf %294, %293 : vector<8x128xf32>
    %cst_109 = arith.constant 5.000000e-01 : f32
    %296 = vector.broadcast %cst_109 : f32 to vector<8x128xf32>
    %297 = arith.addf %295, %296 : vector<8x128xf32>
    %298 = vector.extract_strided_slice %280 {offsets = [0, 48], sizes = [8, 80], strides = [1, 1]} : vector<8x128xf32> to vector<8x80xf32>
    %299 = vector.extract_strided_slice %280 {offsets = [0, 0], sizes = [8, 48], strides = [1, 1]} : vector<8x128xf32> to vector<8x48xf32>
    %300 = tpu.concatenate %298, %299 in 1 : vector<8x80xf32>, vector<8x48xf32> -> vector<8x128xf32>
    %cst_110 = arith.constant 5.000000e-01 : f32
    %301 = vector.broadcast %cst_110 : f32 to vector<8x128xf32>
    %302 = arith.mulf %301, %300 : vector<8x128xf32>
    %303 = math.tanh %302 : vector<8x128xf32>
    %cst_111 = arith.constant 5.000000e-01 : f32
    %304 = vector.broadcast %cst_111 : f32 to vector<8x128xf32>
    %305 = arith.mulf %304, %303 : vector<8x128xf32>
    %cst_112 = arith.constant 5.000000e-01 : f32
    %306 = vector.broadcast %cst_112 : f32 to vector<8x128xf32>
    %307 = arith.addf %305, %306 : vector<8x128xf32>
    %308 = vector.extract_strided_slice %280 {offsets = [0, 72], sizes = [8, 56], strides = [1, 1]} : vector<8x128xf32> to vector<8x56xf32>
    %309 = vector.extract_strided_slice %280 {offsets = [0, 0], sizes = [8, 72], strides = [1, 1]} : vector<8x128xf32> to vector<8x72xf32>
    %310 = tpu.concatenate %308, %309 in 1 : vector<8x56xf32>, vector<8x72xf32> -> vector<8x128xf32>
    %311 = math.tanh %310 : vector<8x128xf32>
    %312 = arith.mulf %297, %161 : vector<8x128xf32>
    %313 = arith.mulf %287, %311 : vector<8x128xf32>
    %314 = arith.addf %312, %313 : vector<8x128xf32>
    %315 = math.tanh %314 : vector<8x128xf32>
    %316 = arith.mulf %307, %315 : vector<8x128xf32>
    %c16 = arith.constant 16 : index
    %c0_113 = arith.constant 0 : index
    %317 = vector.load %arg13[%c16, %c0_113] : memref<64x384xf32, #tpu.memory_space<vmem>>, vector<8x384xf32>
    %c0_114 = arith.constant 0 : index
    %c0_115 = arith.constant 0 : index
    %318 = vector.load %arg2[%c0_114, %c0_115] : memref<128x384xf32, #tpu.memory_space<vmem>>, vector<128x384xf32>
    %cst_116 = arith.constant dense<0.000000e+00> : vector<8x384xf32>
    %319 = tpu.matmul %200, %318, %cst_116 {dimension_numbers = #tpu.dot_dimension_numbers<[1], [0], [0], [1], [0, 0, 1, 1], [], []>} : vector<8x128xf32>, vector<128x384xf32>, vector<8x384xf32> -> vector<8x384xf32>
    %320 = arith.addf %317, %319 : vector<8x384xf32>
    %321 = vector.extract_strided_slice %320 {offsets = [0, 0], sizes = [8, 128], strides = [1, 1]} : vector<8x384xf32> to vector<8x128xf32>
    %cst_117 = arith.constant 5.000000e-01 : f32
    %322 = vector.broadcast %cst_117 : f32 to vector<8x128xf32>
    %323 = arith.mulf %322, %321 : vector<8x128xf32>
    %324 = math.tanh %323 : vector<8x128xf32>
    %cst_118 = arith.constant 5.000000e-01 : f32
    %325 = vector.broadcast %cst_118 : f32 to vector<8x128xf32>
    %326 = arith.mulf %325, %324 : vector<8x128xf32>
    %cst_119 = arith.constant 5.000000e-01 : f32
    %327 = vector.broadcast %cst_119 : f32 to vector<8x128xf32>
    %328 = arith.addf %326, %327 : vector<8x128xf32>
    %329 = vector.extract_strided_slice %320 {offsets = [0, 90], sizes = [8, 128], strides = [1, 1]} : vector<8x384xf32> to vector<8x128xf32>
    %cst_120 = arith.constant 5.000000e-01 : f32
    %330 = vector.broadcast %cst_120 : f32 to vector<8x128xf32>
    %331 = arith.mulf %330, %329 : vector<8x128xf32>
    %332 = math.tanh %331 : vector<8x128xf32>
    %cst_121 = arith.constant 5.000000e-01 : f32
    %333 = vector.broadcast %cst_121 : f32 to vector<8x128xf32>
    %334 = arith.mulf %333, %332 : vector<8x128xf32>
    %cst_122 = arith.constant 5.000000e-01 : f32
    %335 = vector.broadcast %cst_122 : f32 to vector<8x128xf32>
    %336 = arith.addf %334, %335 : vector<8x128xf32>
    %337 = vector.extract_strided_slice %320 {offsets = [0, 180], sizes = [8, 128], strides = [1, 1]} : vector<8x384xf32> to vector<8x128xf32>
    %cst_123 = arith.constant 5.000000e-01 : f32
    %338 = vector.broadcast %cst_123 : f32 to vector<8x128xf32>
    %339 = arith.mulf %338, %337 : vector<8x128xf32>
    %340 = math.tanh %339 : vector<8x128xf32>
    %cst_124 = arith.constant 5.000000e-01 : f32
    %341 = vector.broadcast %cst_124 : f32 to vector<8x128xf32>
    %342 = arith.mulf %341, %340 : vector<8x128xf32>
    %cst_125 = arith.constant 5.000000e-01 : f32
    %343 = vector.broadcast %cst_125 : f32 to vector<8x128xf32>
    %344 = arith.addf %342, %343 : vector<8x128xf32>
    %345 = vector.extract_strided_slice %320 {offsets = [0, 270], sizes = [8, 114], strides = [1, 1]} : vector<8x384xf32> to vector<8x114xf32>
    %346 = vector.extract_strided_slice %320 {offsets = [0, 0], sizes = [8, 14], strides = [1, 1]} : vector<8x384xf32> to vector<8x14xf32>
    %347 = tpu.concatenate %345, %346 in 1 : vector<8x114xf32>, vector<8x14xf32> -> vector<8x128xf32>
    %348 = math.tanh %347 : vector<8x128xf32>
    %349 = arith.mulf %336, %198 : vector<8x128xf32>
    %350 = arith.mulf %328, %348 : vector<8x128xf32>
    %351 = arith.addf %349, %350 : vector<8x128xf32>
    %352 = math.tanh %351 : vector<8x128xf32>
    %353 = arith.mulf %344, %352 : vector<8x128xf32>
    %354 = tpu.concatenate %353, %235 in 1 : vector<8x128xf32>, vector<8x128xf32> -> vector<8x256xf32>
    %c0_126 = arith.constant 0 : index
    %c0_127 = arith.constant 0 : index
    %355 = vector.load %arg4[%c0_126, %c0_127] : memref<256x384xf32, #tpu.memory_space<vmem>>, vector<256x384xf32>
    %cst_128 = arith.constant dense<0.000000e+00> : vector<8x384xf32>
    %356 = tpu.matmul %354, %355, %cst_128 {dimension_numbers = #tpu.dot_dimension_numbers<[1], [0], [0], [1], [0, 0, 1, 1], [], []>} : vector<8x256xf32>, vector<256x384xf32>, vector<8x384xf32> -> vector<8x384xf32>
    %357 = arith.addf %356, %7 : vector<8x384xf32>
    %358 = vector.extract_strided_slice %357 {offsets = [0, 0], sizes = [8, 128], strides = [1, 1]} : vector<8x384xf32> to vector<8x128xf32>
    %cst_129 = arith.constant 5.000000e-01 : f32
    %359 = vector.broadcast %cst_129 : f32 to vector<8x128xf32>
    %360 = arith.mulf %359, %358 : vector<8x128xf32>
    %361 = math.tanh %360 : vector<8x128xf32>
    %cst_130 = arith.constant 5.000000e-01 : f32
    %362 = vector.broadcast %cst_130 : f32 to vector<8x128xf32>
    %363 = arith.mulf %362, %361 : vector<8x128xf32>
    %cst_131 = arith.constant 5.000000e-01 : f32
    %364 = vector.broadcast %cst_131 : f32 to vector<8x128xf32>
    %365 = arith.addf %363, %364 : vector<8x128xf32>
    %366 = vector.extract_strided_slice %357 {offsets = [0, 66], sizes = [8, 128], strides = [1, 1]} : vector<8x384xf32> to vector<8x128xf32>
    %cst_132 = arith.constant 5.000000e-01 : f32
    %367 = vector.broadcast %cst_132 : f32 to vector<8x128xf32>
    %368 = arith.mulf %367, %366 : vector<8x128xf32>
    %369 = math.tanh %368 : vector<8x128xf32>
    %cst_133 = arith.constant 5.000000e-01 : f32
    %370 = vector.broadcast %cst_133 : f32 to vector<8x128xf32>
    %371 = arith.mulf %370, %369 : vector<8x128xf32>
    %cst_134 = arith.constant 5.000000e-01 : f32
    %372 = vector.broadcast %cst_134 : f32 to vector<8x128xf32>
    %373 = arith.addf %371, %372 : vector<8x128xf32>
    %374 = vector.extract_strided_slice %357 {offsets = [0, 132], sizes = [8, 128], strides = [1, 1]} : vector<8x384xf32> to vector<8x128xf32>
    %cst_135 = arith.constant 5.000000e-01 : f32
    %375 = vector.broadcast %cst_135 : f32 to vector<8x128xf32>
    %376 = arith.mulf %375, %374 : vector<8x128xf32>
    %377 = math.tanh %376 : vector<8x128xf32>
    %cst_136 = arith.constant 5.000000e-01 : f32
    %378 = vector.broadcast %cst_136 : f32 to vector<8x128xf32>
    %379 = arith.mulf %378, %377 : vector<8x128xf32>
    %cst_137 = arith.constant 5.000000e-01 : f32
    %380 = vector.broadcast %cst_137 : f32 to vector<8x128xf32>
    %381 = arith.addf %379, %380 : vector<8x128xf32>
    %382 = vector.extract_strided_slice %357 {offsets = [0, 198], sizes = [8, 128], strides = [1, 1]} : vector<8x384xf32> to vector<8x128xf32>
    %383 = math.tanh %382 : vector<8x128xf32>
    %384 = arith.mulf %373, %233 : vector<8x128xf32>
    %385 = arith.mulf %365, %383 : vector<8x128xf32>
    %386 = arith.addf %384, %385 : vector<8x128xf32>
    %387 = math.tanh %386 : vector<8x128xf32>
    %388 = arith.mulf %381, %387 : vector<8x128xf32>
    %389 = vector.extract_strided_slice %388 {offsets = [0, 0], sizes = [8, 66], strides = [1, 1]} : vector<8x128xf32> to vector<8x66xf32>
    %390 = vector.extract_strided_slice %274 {offsets = [0, 0], sizes = [8, 62], strides = [1, 1]} : vector<8x128xf32> to vector<8x62xf32>
    %391 = tpu.concatenate %389, %390 in 1 : vector<8x66xf32>, vector<8x62xf32> -> vector<8x128xf32>
    %c0_138 = arith.constant 0 : index
    %c0_139 = arith.constant 0 : index
    %392 = vector.load %arg6[%c0_138, %c0_139] : memref<128x256xf32, #tpu.memory_space<vmem>>, vector<128x256xf32>
    %cst_140 = arith.constant dense<0.000000e+00> : vector<8x256xf32>
    %393 = tpu.matmul %391, %392, %cst_140 {dimension_numbers = #tpu.dot_dimension_numbers<[1], [0], [0], [1], [0, 0, 1, 1], [], []>} : vector<8x128xf32>, vector<128x256xf32>, vector<8x256xf32> -> vector<8x256xf32>
    %394 = arith.addf %393, %8 : vector<8x256xf32>
    %395 = vector.extract_strided_slice %394 {offsets = [0, 0], sizes = [8, 128], strides = [1, 1]} : vector<8x256xf32> to vector<8x128xf32>
    %cst_141 = arith.constant 5.000000e-01 : f32
    %396 = vector.broadcast %cst_141 : f32 to vector<8x128xf32>
    %397 = arith.mulf %396, %395 : vector<8x128xf32>
    %398 = math.tanh %397 : vector<8x128xf32>
    %cst_142 = arith.constant 5.000000e-01 : f32
    %399 = vector.broadcast %cst_142 : f32 to vector<8x128xf32>
    %400 = arith.mulf %399, %398 : vector<8x128xf32>
    %cst_143 = arith.constant 5.000000e-01 : f32
    %401 = vector.broadcast %cst_143 : f32 to vector<8x128xf32>
    %402 = arith.addf %400, %401 : vector<8x128xf32>
    %403 = vector.extract_strided_slice %394 {offsets = [0, 48], sizes = [8, 128], strides = [1, 1]} : vector<8x256xf32> to vector<8x128xf32>
    %cst_144 = arith.constant 5.000000e-01 : f32
    %404 = vector.broadcast %cst_144 : f32 to vector<8x128xf32>
    %405 = arith.mulf %404, %403 : vector<8x128xf32>
    %406 = math.tanh %405 : vector<8x128xf32>
    %cst_145 = arith.constant 5.000000e-01 : f32
    %407 = vector.broadcast %cst_145 : f32 to vector<8x128xf32>
    %408 = arith.mulf %407, %406 : vector<8x128xf32>
    %cst_146 = arith.constant 5.000000e-01 : f32
    %409 = vector.broadcast %cst_146 : f32 to vector<8x128xf32>
    %410 = arith.addf %408, %409 : vector<8x128xf32>
    %411 = vector.extract_strided_slice %394 {offsets = [0, 96], sizes = [8, 128], strides = [1, 1]} : vector<8x256xf32> to vector<8x128xf32>
    %cst_147 = arith.constant 5.000000e-01 : f32
    %412 = vector.broadcast %cst_147 : f32 to vector<8x128xf32>
    %413 = arith.mulf %412, %411 : vector<8x128xf32>
    %414 = math.tanh %413 : vector<8x128xf32>
    %cst_148 = arith.constant 5.000000e-01 : f32
    %415 = vector.broadcast %cst_148 : f32 to vector<8x128xf32>
    %416 = arith.mulf %415, %414 : vector<8x128xf32>
    %cst_149 = arith.constant 5.000000e-01 : f32
    %417 = vector.broadcast %cst_149 : f32 to vector<8x128xf32>
    %418 = arith.addf %416, %417 : vector<8x128xf32>
    %419 = vector.extract_strided_slice %394 {offsets = [0, 144], sizes = [8, 112], strides = [1, 1]} : vector<8x256xf32> to vector<8x112xf32>
    %420 = vector.extract_strided_slice %394 {offsets = [0, 0], sizes = [8, 16], strides = [1, 1]} : vector<8x256xf32> to vector<8x16xf32>
    %421 = tpu.concatenate %419, %420 in 1 : vector<8x112xf32>, vector<8x16xf32> -> vector<8x128xf32>
    %422 = math.tanh %421 : vector<8x128xf32>
    %423 = arith.mulf %410, %272 : vector<8x128xf32>
    %424 = arith.mulf %402, %422 : vector<8x128xf32>
    %425 = arith.addf %423, %424 : vector<8x128xf32>
    %426 = math.tanh %425 : vector<8x128xf32>
    %427 = arith.mulf %418, %426 : vector<8x128xf32>
    %428 = vector.extract_strided_slice %427 {offsets = [0, 0], sizes = [8, 48], strides = [1, 1]} : vector<8x128xf32> to vector<8x48xf32>
    %429 = vector.extract_strided_slice %316 {offsets = [0, 0], sizes = [8, 80], strides = [1, 1]} : vector<8x128xf32> to vector<8x80xf32>
    %430 = tpu.concatenate %428, %429 in 1 : vector<8x48xf32>, vector<8x80xf32> -> vector<8x128xf32>
    %c0_150 = arith.constant 0 : index
    %c0_151 = arith.constant 0 : index
    %431 = vector.load %arg8[%c0_150, %c0_151] : memref<128x128xf32, #tpu.memory_space<vmem>>, vector<128x128xf32>
    %cst_152 = arith.constant dense<0.000000e+00> : vector<8x128xf32>
    %432 = tpu.matmul %430, %431, %cst_152 {dimension_numbers = #tpu.dot_dimension_numbers<[1], [0], [0], [1], [0, 0, 1, 1], [], []>} : vector<8x128xf32>, vector<128x128xf32>, vector<8x128xf32> -> vector<8x128xf32>
    %433 = arith.addf %432, %9 : vector<8x128xf32>
    %cst_153 = arith.constant 5.000000e-01 : f32
    %434 = vector.broadcast %cst_153 : f32 to vector<8x128xf32>
    %435 = arith.mulf %434, %433 : vector<8x128xf32>
    %436 = math.tanh %435 : vector<8x128xf32>
    %cst_154 = arith.constant 5.000000e-01 : f32
    %437 = vector.broadcast %cst_154 : f32 to vector<8x128xf32>
    %438 = arith.mulf %437, %436 : vector<8x128xf32>
    %cst_155 = arith.constant 5.000000e-01 : f32
    %439 = vector.broadcast %cst_155 : f32 to vector<8x128xf32>
    %440 = arith.addf %438, %439 : vector<8x128xf32>
    %441 = vector.extract_strided_slice %433 {offsets = [0, 24], sizes = [8, 104], strides = [1, 1]} : vector<8x128xf32> to vector<8x104xf32>
    %442 = vector.extract_strided_slice %433 {offsets = [0, 0], sizes = [8, 24], strides = [1, 1]} : vector<8x128xf32> to vector<8x24xf32>
    %443 = tpu.concatenate %441, %442 in 1 : vector<8x104xf32>, vector<8x24xf32> -> vector<8x128xf32>
    %cst_156 = arith.constant 5.000000e-01 : f32
    %444 = vector.broadcast %cst_156 : f32 to vector<8x128xf32>
    %445 = arith.mulf %444, %443 : vector<8x128xf32>
    %446 = math.tanh %445 : vector<8x128xf32>
    %cst_157 = arith.constant 5.000000e-01 : f32
    %447 = vector.broadcast %cst_157 : f32 to vector<8x128xf32>
    %448 = arith.mulf %447, %446 : vector<8x128xf32>
    %cst_158 = arith.constant 5.000000e-01 : f32
    %449 = vector.broadcast %cst_158 : f32 to vector<8x128xf32>
    %450 = arith.addf %448, %449 : vector<8x128xf32>
    %451 = vector.extract_strided_slice %433 {offsets = [0, 48], sizes = [8, 80], strides = [1, 1]} : vector<8x128xf32> to vector<8x80xf32>
    %452 = vector.extract_strided_slice %433 {offsets = [0, 0], sizes = [8, 48], strides = [1, 1]} : vector<8x128xf32> to vector<8x48xf32>
    %453 = tpu.concatenate %451, %452 in 1 : vector<8x80xf32>, vector<8x48xf32> -> vector<8x128xf32>
    %cst_159 = arith.constant 5.000000e-01 : f32
    %454 = vector.broadcast %cst_159 : f32 to vector<8x128xf32>
    %455 = arith.mulf %454, %453 : vector<8x128xf32>
    %456 = math.tanh %455 : vector<8x128xf32>
    %cst_160 = arith.constant 5.000000e-01 : f32
    %457 = vector.broadcast %cst_160 : f32 to vector<8x128xf32>
    %458 = arith.mulf %457, %456 : vector<8x128xf32>
    %cst_161 = arith.constant 5.000000e-01 : f32
    %459 = vector.broadcast %cst_161 : f32 to vector<8x128xf32>
    %460 = arith.addf %458, %459 : vector<8x128xf32>
    %461 = vector.extract_strided_slice %433 {offsets = [0, 72], sizes = [8, 56], strides = [1, 1]} : vector<8x128xf32> to vector<8x56xf32>
    %462 = vector.extract_strided_slice %433 {offsets = [0, 0], sizes = [8, 72], strides = [1, 1]} : vector<8x128xf32> to vector<8x72xf32>
    %463 = tpu.concatenate %461, %462 in 1 : vector<8x56xf32>, vector<8x72xf32> -> vector<8x128xf32>
    %464 = math.tanh %463 : vector<8x128xf32>
    %465 = arith.mulf %450, %314 : vector<8x128xf32>
    %466 = arith.mulf %440, %464 : vector<8x128xf32>
    %467 = arith.addf %465, %466 : vector<8x128xf32>
    %468 = math.tanh %467 : vector<8x128xf32>
    %469 = arith.mulf %460, %468 : vector<8x128xf32>
    %c24 = arith.constant 24 : index
    %c0_162 = arith.constant 0 : index
    %470 = vector.load %arg13[%c24, %c0_162] : memref<64x384xf32, #tpu.memory_space<vmem>>, vector<8x384xf32>
    %c0_163 = arith.constant 0 : index
    %c0_164 = arith.constant 0 : index
    %471 = vector.load %arg2[%c0_163, %c0_164] : memref<128x384xf32, #tpu.memory_space<vmem>>, vector<128x384xf32>
    %cst_165 = arith.constant dense<0.000000e+00> : vector<8x384xf32>
    %472 = tpu.matmul %353, %471, %cst_165 {dimension_numbers = #tpu.dot_dimension_numbers<[1], [0], [0], [1], [0, 0, 1, 1], [], []>} : vector<8x128xf32>, vector<128x384xf32>, vector<8x384xf32> -> vector<8x384xf32>
    %473 = arith.addf %470, %472 : vector<8x384xf32>
    %474 = vector.extract_strided_slice %473 {offsets = [0, 0], sizes = [8, 128], strides = [1, 1]} : vector<8x384xf32> to vector<8x128xf32>
    %cst_166 = arith.constant 5.000000e-01 : f32
    %475 = vector.broadcast %cst_166 : f32 to vector<8x128xf32>
    %476 = arith.mulf %475, %474 : vector<8x128xf32>
    %477 = math.tanh %476 : vector<8x128xf32>
    %cst_167 = arith.constant 5.000000e-01 : f32
    %478 = vector.broadcast %cst_167 : f32 to vector<8x128xf32>
    %479 = arith.mulf %478, %477 : vector<8x128xf32>
    %cst_168 = arith.constant 5.000000e-01 : f32
    %480 = vector.broadcast %cst_168 : f32 to vector<8x128xf32>
    %481 = arith.addf %479, %480 : vector<8x128xf32>
    %482 = vector.extract_strided_slice %473 {offsets = [0, 90], sizes = [8, 128], strides = [1, 1]} : vector<8x384xf32> to vector<8x128xf32>
    %cst_169 = arith.constant 5.000000e-01 : f32
    %483 = vector.broadcast %cst_169 : f32 to vector<8x128xf32>
    %484 = arith.mulf %483, %482 : vector<8x128xf32>
    %485 = math.tanh %484 : vector<8x128xf32>
    %cst_170 = arith.constant 5.000000e-01 : f32
    %486 = vector.broadcast %cst_170 : f32 to vector<8x128xf32>
    %487 = arith.mulf %486, %485 : vector<8x128xf32>
    %cst_171 = arith.constant 5.000000e-01 : f32
    %488 = vector.broadcast %cst_171 : f32 to vector<8x128xf32>
    %489 = arith.addf %487, %488 : vector<8x128xf32>
    %490 = vector.extract_strided_slice %473 {offsets = [0, 180], sizes = [8, 128], strides = [1, 1]} : vector<8x384xf32> to vector<8x128xf32>
    %cst_172 = arith.constant 5.000000e-01 : f32
    %491 = vector.broadcast %cst_172 : f32 to vector<8x128xf32>
    %492 = arith.mulf %491, %490 : vector<8x128xf32>
    %493 = math.tanh %492 : vector<8x128xf32>
    %cst_173 = arith.constant 5.000000e-01 : f32
    %494 = vector.broadcast %cst_173 : f32 to vector<8x128xf32>
    %495 = arith.mulf %494, %493 : vector<8x128xf32>
    %cst_174 = arith.constant 5.000000e-01 : f32
    %496 = vector.broadcast %cst_174 : f32 to vector<8x128xf32>
    %497 = arith.addf %495, %496 : vector<8x128xf32>
    %498 = vector.extract_strided_slice %473 {offsets = [0, 270], sizes = [8, 114], strides = [1, 1]} : vector<8x384xf32> to vector<8x114xf32>
    %499 = vector.extract_strided_slice %473 {offsets = [0, 0], sizes = [8, 14], strides = [1, 1]} : vector<8x384xf32> to vector<8x14xf32>
    %500 = tpu.concatenate %498, %499 in 1 : vector<8x114xf32>, vector<8x14xf32> -> vector<8x128xf32>
    %501 = math.tanh %500 : vector<8x128xf32>
    %502 = arith.mulf %489, %351 : vector<8x128xf32>
    %503 = arith.mulf %481, %501 : vector<8x128xf32>
    %504 = arith.addf %502, %503 : vector<8x128xf32>
    %505 = math.tanh %504 : vector<8x128xf32>
    %506 = arith.mulf %497, %505 : vector<8x128xf32>
    %507 = tpu.concatenate %506, %388 in 1 : vector<8x128xf32>, vector<8x128xf32> -> vector<8x256xf32>
    %c0_175 = arith.constant 0 : index
    %c0_176 = arith.constant 0 : index
    %508 = vector.load %arg4[%c0_175, %c0_176] : memref<256x384xf32, #tpu.memory_space<vmem>>, vector<256x384xf32>
    %cst_177 = arith.constant dense<0.000000e+00> : vector<8x384xf32>
    %509 = tpu.matmul %507, %508, %cst_177 {dimension_numbers = #tpu.dot_dimension_numbers<[1], [0], [0], [1], [0, 0, 1, 1], [], []>} : vector<8x256xf32>, vector<256x384xf32>, vector<8x384xf32> -> vector<8x384xf32>
    %510 = arith.addf %509, %7 : vector<8x384xf32>
    %511 = vector.extract_strided_slice %510 {offsets = [0, 0], sizes = [8, 128], strides = [1, 1]} : vector<8x384xf32> to vector<8x128xf32>
    %cst_178 = arith.constant 5.000000e-01 : f32
    %512 = vector.broadcast %cst_178 : f32 to vector<8x128xf32>
    %513 = arith.mulf %512, %511 : vector<8x128xf32>
    %514 = math.tanh %513 : vector<8x128xf32>
    %cst_179 = arith.constant 5.000000e-01 : f32
    %515 = vector.broadcast %cst_179 : f32 to vector<8x128xf32>
    %516 = arith.mulf %515, %514 : vector<8x128xf32>
    %cst_180 = arith.constant 5.000000e-01 : f32
    %517 = vector.broadcast %cst_180 : f32 to vector<8x128xf32>
    %518 = arith.addf %516, %517 : vector<8x128xf32>
    %519 = vector.extract_strided_slice %510 {offsets = [0, 66], sizes = [8, 128], strides = [1, 1]} : vector<8x384xf32> to vector<8x128xf32>
    %cst_181 = arith.constant 5.000000e-01 : f32
    %520 = vector.broadcast %cst_181 : f32 to vector<8x128xf32>
    %521 = arith.mulf %520, %519 : vector<8x128xf32>
    %522 = math.tanh %521 : vector<8x128xf32>
    %cst_182 = arith.constant 5.000000e-01 : f32
    %523 = vector.broadcast %cst_182 : f32 to vector<8x128xf32>
    %524 = arith.mulf %523, %522 : vector<8x128xf32>
    %cst_183 = arith.constant 5.000000e-01 : f32
    %525 = vector.broadcast %cst_183 : f32 to vector<8x128xf32>
    %526 = arith.addf %524, %525 : vector<8x128xf32>
    %527 = vector.extract_strided_slice %510 {offsets = [0, 132], sizes = [8, 128], strides = [1, 1]} : vector<8x384xf32> to vector<8x128xf32>
    %cst_184 = arith.constant 5.000000e-01 : f32
    %528 = vector.broadcast %cst_184 : f32 to vector<8x128xf32>
    %529 = arith.mulf %528, %527 : vector<8x128xf32>
    %530 = math.tanh %529 : vector<8x128xf32>
    %cst_185 = arith.constant 5.000000e-01 : f32
    %531 = vector.broadcast %cst_185 : f32 to vector<8x128xf32>
    %532 = arith.mulf %531, %530 : vector<8x128xf32>
    %cst_186 = arith.constant 5.000000e-01 : f32
    %533 = vector.broadcast %cst_186 : f32 to vector<8x128xf32>
    %534 = arith.addf %532, %533 : vector<8x128xf32>
    %535 = vector.extract_strided_slice %510 {offsets = [0, 198], sizes = [8, 128], strides = [1, 1]} : vector<8x384xf32> to vector<8x128xf32>
    %536 = math.tanh %535 : vector<8x128xf32>
    %537 = arith.mulf %526, %386 : vector<8x128xf32>
    %538 = arith.mulf %518, %536 : vector<8x128xf32>
    %539 = arith.addf %537, %538 : vector<8x128xf32>
    %540 = math.tanh %539 : vector<8x128xf32>
    %541 = arith.mulf %534, %540 : vector<8x128xf32>
    %542 = vector.extract_strided_slice %541 {offsets = [0, 0], sizes = [8, 66], strides = [1, 1]} : vector<8x128xf32> to vector<8x66xf32>
    %543 = vector.extract_strided_slice %427 {offsets = [0, 0], sizes = [8, 62], strides = [1, 1]} : vector<8x128xf32> to vector<8x62xf32>
    %544 = tpu.concatenate %542, %543 in 1 : vector<8x66xf32>, vector<8x62xf32> -> vector<8x128xf32>
    %c0_187 = arith.constant 0 : index
    %c0_188 = arith.constant 0 : index
    %545 = vector.load %arg6[%c0_187, %c0_188] : memref<128x256xf32, #tpu.memory_space<vmem>>, vector<128x256xf32>
    %cst_189 = arith.constant dense<0.000000e+00> : vector<8x256xf32>
    %546 = tpu.matmul %544, %545, %cst_189 {dimension_numbers = #tpu.dot_dimension_numbers<[1], [0], [0], [1], [0, 0, 1, 1], [], []>} : vector<8x128xf32>, vector<128x256xf32>, vector<8x256xf32> -> vector<8x256xf32>
    %547 = arith.addf %546, %8 : vector<8x256xf32>
    %548 = vector.extract_strided_slice %547 {offsets = [0, 0], sizes = [8, 128], strides = [1, 1]} : vector<8x256xf32> to vector<8x128xf32>
    %cst_190 = arith.constant 5.000000e-01 : f32
    %549 = vector.broadcast %cst_190 : f32 to vector<8x128xf32>
    %550 = arith.mulf %549, %548 : vector<8x128xf32>
    %551 = math.tanh %550 : vector<8x128xf32>
    %cst_191 = arith.constant 5.000000e-01 : f32
    %552 = vector.broadcast %cst_191 : f32 to vector<8x128xf32>
    %553 = arith.mulf %552, %551 : vector<8x128xf32>
    %cst_192 = arith.constant 5.000000e-01 : f32
    %554 = vector.broadcast %cst_192 : f32 to vector<8x128xf32>
    %555 = arith.addf %553, %554 : vector<8x128xf32>
    %556 = vector.extract_strided_slice %547 {offsets = [0, 48], sizes = [8, 128], strides = [1, 1]} : vector<8x256xf32> to vector<8x128xf32>
    %cst_193 = arith.constant 5.000000e-01 : f32
    %557 = vector.broadcast %cst_193 : f32 to vector<8x128xf32>
    %558 = arith.mulf %557, %556 : vector<8x128xf32>
    %559 = math.tanh %558 : vector<8x128xf32>
    %cst_194 = arith.constant 5.000000e-01 : f32
    %560 = vector.broadcast %cst_194 : f32 to vector<8x128xf32>
    %561 = arith.mulf %560, %559 : vector<8x128xf32>
    %cst_195 = arith.constant 5.000000e-01 : f32
    %562 = vector.broadcast %cst_195 : f32 to vector<8x128xf32>
    %563 = arith.addf %561, %562 : vector<8x128xf32>
    %564 = vector.extract_strided_slice %547 {offsets = [0, 96], sizes = [8, 128], strides = [1, 1]} : vector<8x256xf32> to vector<8x128xf32>
    %cst_196 = arith.constant 5.000000e-01 : f32
    %565 = vector.broadcast %cst_196 : f32 to vector<8x128xf32>
    %566 = arith.mulf %565, %564 : vector<8x128xf32>
    %567 = math.tanh %566 : vector<8x128xf32>
    %cst_197 = arith.constant 5.000000e-01 : f32
    %568 = vector.broadcast %cst_197 : f32 to vector<8x128xf32>
    %569 = arith.mulf %568, %567 : vector<8x128xf32>
    %cst_198 = arith.constant 5.000000e-01 : f32
    %570 = vector.broadcast %cst_198 : f32 to vector<8x128xf32>
    %571 = arith.addf %569, %570 : vector<8x128xf32>
    %572 = vector.extract_strided_slice %547 {offsets = [0, 144], sizes = [8, 112], strides = [1, 1]} : vector<8x256xf32> to vector<8x112xf32>
    %573 = vector.extract_strided_slice %547 {offsets = [0, 0], sizes = [8, 16], strides = [1, 1]} : vector<8x256xf32> to vector<8x16xf32>
    %574 = tpu.concatenate %572, %573 in 1 : vector<8x112xf32>, vector<8x16xf32> -> vector<8x128xf32>
    %575 = math.tanh %574 : vector<8x128xf32>
    %576 = arith.mulf %563, %425 : vector<8x128xf32>
    %577 = arith.mulf %555, %575 : vector<8x128xf32>
    %578 = arith.addf %576, %577 : vector<8x128xf32>
    %579 = math.tanh %578 : vector<8x128xf32>
    %580 = arith.mulf %571, %579 : vector<8x128xf32>
    %581 = vector.extract_strided_slice %580 {offsets = [0, 0], sizes = [8, 48], strides = [1, 1]} : vector<8x128xf32> to vector<8x48xf32>
    %582 = vector.extract_strided_slice %469 {offsets = [0, 0], sizes = [8, 80], strides = [1, 1]} : vector<8x128xf32> to vector<8x80xf32>
    %583 = tpu.concatenate %581, %582 in 1 : vector<8x48xf32>, vector<8x80xf32> -> vector<8x128xf32>
    %c0_199 = arith.constant 0 : index
    %c0_200 = arith.constant 0 : index
    %584 = vector.load %arg8[%c0_199, %c0_200] : memref<128x128xf32, #tpu.memory_space<vmem>>, vector<128x128xf32>
    %cst_201 = arith.constant dense<0.000000e+00> : vector<8x128xf32>
    %585 = tpu.matmul %583, %584, %cst_201 {dimension_numbers = #tpu.dot_dimension_numbers<[1], [0], [0], [1], [0, 0, 1, 1], [], []>} : vector<8x128xf32>, vector<128x128xf32>, vector<8x128xf32> -> vector<8x128xf32>
    %586 = arith.addf %585, %9 : vector<8x128xf32>
    %cst_202 = arith.constant 5.000000e-01 : f32
    %587 = vector.broadcast %cst_202 : f32 to vector<8x128xf32>
    %588 = arith.mulf %587, %586 : vector<8x128xf32>
    %589 = math.tanh %588 : vector<8x128xf32>
    %cst_203 = arith.constant 5.000000e-01 : f32
    %590 = vector.broadcast %cst_203 : f32 to vector<8x128xf32>
    %591 = arith.mulf %590, %589 : vector<8x128xf32>
    %cst_204 = arith.constant 5.000000e-01 : f32
    %592 = vector.broadcast %cst_204 : f32 to vector<8x128xf32>
    %593 = arith.addf %591, %592 : vector<8x128xf32>
    %594 = vector.extract_strided_slice %586 {offsets = [0, 24], sizes = [8, 104], strides = [1, 1]} : vector<8x128xf32> to vector<8x104xf32>
    %595 = vector.extract_strided_slice %586 {offsets = [0, 0], sizes = [8, 24], strides = [1, 1]} : vector<8x128xf32> to vector<8x24xf32>
    %596 = tpu.concatenate %594, %595 in 1 : vector<8x104xf32>, vector<8x24xf32> -> vector<8x128xf32>
    %cst_205 = arith.constant 5.000000e-01 : f32
    %597 = vector.broadcast %cst_205 : f32 to vector<8x128xf32>
    %598 = arith.mulf %597, %596 : vector<8x128xf32>
    %599 = math.tanh %598 : vector<8x128xf32>
    %cst_206 = arith.constant 5.000000e-01 : f32
    %600 = vector.broadcast %cst_206 : f32 to vector<8x128xf32>
    %601 = arith.mulf %600, %599 : vector<8x128xf32>
    %cst_207 = arith.constant 5.000000e-01 : f32
    %602 = vector.broadcast %cst_207 : f32 to vector<8x128xf32>
    %603 = arith.addf %601, %602 : vector<8x128xf32>
    %604 = vector.extract_strided_slice %586 {offsets = [0, 48], sizes = [8, 80], strides = [1, 1]} : vector<8x128xf32> to vector<8x80xf32>
    %605 = vector.extract_strided_slice %586 {offsets = [0, 0], sizes = [8, 48], strides = [1, 1]} : vector<8x128xf32> to vector<8x48xf32>
    %606 = tpu.concatenate %604, %605 in 1 : vector<8x80xf32>, vector<8x48xf32> -> vector<8x128xf32>
    %cst_208 = arith.constant 5.000000e-01 : f32
    %607 = vector.broadcast %cst_208 : f32 to vector<8x128xf32>
    %608 = arith.mulf %607, %606 : vector<8x128xf32>
    %609 = math.tanh %608 : vector<8x128xf32>
    %cst_209 = arith.constant 5.000000e-01 : f32
    %610 = vector.broadcast %cst_209 : f32 to vector<8x128xf32>
    %611 = arith.mulf %610, %609 : vector<8x128xf32>
    %cst_210 = arith.constant 5.000000e-01 : f32
    %612 = vector.broadcast %cst_210 : f32 to vector<8x128xf32>
    %613 = arith.addf %611, %612 : vector<8x128xf32>
    %614 = vector.extract_strided_slice %586 {offsets = [0, 72], sizes = [8, 56], strides = [1, 1]} : vector<8x128xf32> to vector<8x56xf32>
    %615 = vector.extract_strided_slice %586 {offsets = [0, 0], sizes = [8, 72], strides = [1, 1]} : vector<8x128xf32> to vector<8x72xf32>
    %616 = tpu.concatenate %614, %615 in 1 : vector<8x56xf32>, vector<8x72xf32> -> vector<8x128xf32>
    %617 = math.tanh %616 : vector<8x128xf32>
    %618 = arith.mulf %603, %467 : vector<8x128xf32>
    %619 = arith.mulf %593, %617 : vector<8x128xf32>
    %620 = arith.addf %618, %619 : vector<8x128xf32>
    %621 = math.tanh %620 : vector<8x128xf32>
    %622 = arith.mulf %613, %621 : vector<8x128xf32>
    %c32 = arith.constant 32 : index
    %c0_211 = arith.constant 0 : index
    %623 = vector.load %arg13[%c32, %c0_211] : memref<64x384xf32, #tpu.memory_space<vmem>>, vector<8x384xf32>
    %c0_212 = arith.constant 0 : index
    %c0_213 = arith.constant 0 : index
    %624 = vector.load %arg2[%c0_212, %c0_213] : memref<128x384xf32, #tpu.memory_space<vmem>>, vector<128x384xf32>
    %cst_214 = arith.constant dense<0.000000e+00> : vector<8x384xf32>
    %625 = tpu.matmul %506, %624, %cst_214 {dimension_numbers = #tpu.dot_dimension_numbers<[1], [0], [0], [1], [0, 0, 1, 1], [], []>} : vector<8x128xf32>, vector<128x384xf32>, vector<8x384xf32> -> vector<8x384xf32>
    %626 = arith.addf %623, %625 : vector<8x384xf32>
    %627 = vector.extract_strided_slice %626 {offsets = [0, 0], sizes = [8, 128], strides = [1, 1]} : vector<8x384xf32> to vector<8x128xf32>
    %cst_215 = arith.constant 5.000000e-01 : f32
    %628 = vector.broadcast %cst_215 : f32 to vector<8x128xf32>
    %629 = arith.mulf %628, %627 : vector<8x128xf32>
    %630 = math.tanh %629 : vector<8x128xf32>
    %cst_216 = arith.constant 5.000000e-01 : f32
    %631 = vector.broadcast %cst_216 : f32 to vector<8x128xf32>
    %632 = arith.mulf %631, %630 : vector<8x128xf32>
    %cst_217 = arith.constant 5.000000e-01 : f32
    %633 = vector.broadcast %cst_217 : f32 to vector<8x128xf32>
    %634 = arith.addf %632, %633 : vector<8x128xf32>
    %635 = vector.extract_strided_slice %626 {offsets = [0, 90], sizes = [8, 128], strides = [1, 1]} : vector<8x384xf32> to vector<8x128xf32>
    %cst_218 = arith.constant 5.000000e-01 : f32
    %636 = vector.broadcast %cst_218 : f32 to vector<8x128xf32>
    %637 = arith.mulf %636, %635 : vector<8x128xf32>
    %638 = math.tanh %637 : vector<8x128xf32>
    %cst_219 = arith.constant 5.000000e-01 : f32
    %639 = vector.broadcast %cst_219 : f32 to vector<8x128xf32>
    %640 = arith.mulf %639, %638 : vector<8x128xf32>
    %cst_220 = arith.constant 5.000000e-01 : f32
    %641 = vector.broadcast %cst_220 : f32 to vector<8x128xf32>
    %642 = arith.addf %640, %641 : vector<8x128xf32>
    %643 = vector.extract_strided_slice %626 {offsets = [0, 180], sizes = [8, 128], strides = [1, 1]} : vector<8x384xf32> to vector<8x128xf32>
    %cst_221 = arith.constant 5.000000e-01 : f32
    %644 = vector.broadcast %cst_221 : f32 to vector<8x128xf32>
    %645 = arith.mulf %644, %643 : vector<8x128xf32>
    %646 = math.tanh %645 : vector<8x128xf32>
    %cst_222 = arith.constant 5.000000e-01 : f32
    %647 = vector.broadcast %cst_222 : f32 to vector<8x128xf32>
    %648 = arith.mulf %647, %646 : vector<8x128xf32>
    %cst_223 = arith.constant 5.000000e-01 : f32
    %649 = vector.broadcast %cst_223 : f32 to vector<8x128xf32>
    %650 = arith.addf %648, %649 : vector<8x128xf32>
    %651 = vector.extract_strided_slice %626 {offsets = [0, 270], sizes = [8, 114], strides = [1, 1]} : vector<8x384xf32> to vector<8x114xf32>
    %652 = vector.extract_strided_slice %626 {offsets = [0, 0], sizes = [8, 14], strides = [1, 1]} : vector<8x384xf32> to vector<8x14xf32>
    %653 = tpu.concatenate %651, %652 in 1 : vector<8x114xf32>, vector<8x14xf32> -> vector<8x128xf32>
    %654 = math.tanh %653 : vector<8x128xf32>
    %655 = arith.mulf %642, %504 : vector<8x128xf32>
    %656 = arith.mulf %634, %654 : vector<8x128xf32>
    %657 = arith.addf %655, %656 : vector<8x128xf32>
    %658 = math.tanh %657 : vector<8x128xf32>
    %659 = arith.mulf %650, %658 : vector<8x128xf32>
    %660 = tpu.concatenate %659, %541 in 1 : vector<8x128xf32>, vector<8x128xf32> -> vector<8x256xf32>
    %c0_224 = arith.constant 0 : index
    %c0_225 = arith.constant 0 : index
    %661 = vector.load %arg4[%c0_224, %c0_225] : memref<256x384xf32, #tpu.memory_space<vmem>>, vector<256x384xf32>
    %cst_226 = arith.constant dense<0.000000e+00> : vector<8x384xf32>
    %662 = tpu.matmul %660, %661, %cst_226 {dimension_numbers = #tpu.dot_dimension_numbers<[1], [0], [0], [1], [0, 0, 1, 1], [], []>} : vector<8x256xf32>, vector<256x384xf32>, vector<8x384xf32> -> vector<8x384xf32>
    %663 = arith.addf %662, %7 : vector<8x384xf32>
    %664 = vector.extract_strided_slice %663 {offsets = [0, 0], sizes = [8, 128], strides = [1, 1]} : vector<8x384xf32> to vector<8x128xf32>
    %cst_227 = arith.constant 5.000000e-01 : f32
    %665 = vector.broadcast %cst_227 : f32 to vector<8x128xf32>
    %666 = arith.mulf %665, %664 : vector<8x128xf32>
    %667 = math.tanh %666 : vector<8x128xf32>
    %cst_228 = arith.constant 5.000000e-01 : f32
    %668 = vector.broadcast %cst_228 : f32 to vector<8x128xf32>
    %669 = arith.mulf %668, %667 : vector<8x128xf32>
    %cst_229 = arith.constant 5.000000e-01 : f32
    %670 = vector.broadcast %cst_229 : f32 to vector<8x128xf32>
    %671 = arith.addf %669, %670 : vector<8x128xf32>
    %672 = vector.extract_strided_slice %663 {offsets = [0, 66], sizes = [8, 128], strides = [1, 1]} : vector<8x384xf32> to vector<8x128xf32>
    %cst_230 = arith.constant 5.000000e-01 : f32
    %673 = vector.broadcast %cst_230 : f32 to vector<8x128xf32>
    %674 = arith.mulf %673, %672 : vector<8x128xf32>
    %675 = math.tanh %674 : vector<8x128xf32>
    %cst_231 = arith.constant 5.000000e-01 : f32
    %676 = vector.broadcast %cst_231 : f32 to vector<8x128xf32>
    %677 = arith.mulf %676, %675 : vector<8x128xf32>
    %cst_232 = arith.constant 5.000000e-01 : f32
    %678 = vector.broadcast %cst_232 : f32 to vector<8x128xf32>
    %679 = arith.addf %677, %678 : vector<8x128xf32>
    %680 = vector.extract_strided_slice %663 {offsets = [0, 132], sizes = [8, 128], strides = [1, 1]} : vector<8x384xf32> to vector<8x128xf32>
    %cst_233 = arith.constant 5.000000e-01 : f32
    %681 = vector.broadcast %cst_233 : f32 to vector<8x128xf32>
    %682 = arith.mulf %681, %680 : vector<8x128xf32>
    %683 = math.tanh %682 : vector<8x128xf32>
    %cst_234 = arith.constant 5.000000e-01 : f32
    %684 = vector.broadcast %cst_234 : f32 to vector<8x128xf32>
    %685 = arith.mulf %684, %683 : vector<8x128xf32>
    %cst_235 = arith.constant 5.000000e-01 : f32
    %686 = vector.broadcast %cst_235 : f32 to vector<8x128xf32>
    %687 = arith.addf %685, %686 : vector<8x128xf32>
    %688 = vector.extract_strided_slice %663 {offsets = [0, 198], sizes = [8, 128], strides = [1, 1]} : vector<8x384xf32> to vector<8x128xf32>
    %689 = math.tanh %688 : vector<8x128xf32>
    %690 = arith.mulf %679, %539 : vector<8x128xf32>
    %691 = arith.mulf %671, %689 : vector<8x128xf32>
    %692 = arith.addf %690, %691 : vector<8x128xf32>
    %693 = math.tanh %692 : vector<8x128xf32>
    %694 = arith.mulf %687, %693 : vector<8x128xf32>
    %695 = vector.extract_strided_slice %694 {offsets = [0, 0], sizes = [8, 66], strides = [1, 1]} : vector<8x128xf32> to vector<8x66xf32>
    %696 = vector.extract_strided_slice %580 {offsets = [0, 0], sizes = [8, 62], strides = [1, 1]} : vector<8x128xf32> to vector<8x62xf32>
    %697 = tpu.concatenate %695, %696 in 1 : vector<8x66xf32>, vector<8x62xf32> -> vector<8x128xf32>
    %c0_236 = arith.constant 0 : index
    %c0_237 = arith.constant 0 : index
    %698 = vector.load %arg6[%c0_236, %c0_237] : memref<128x256xf32, #tpu.memory_space<vmem>>, vector<128x256xf32>
    %cst_238 = arith.constant dense<0.000000e+00> : vector<8x256xf32>
    %699 = tpu.matmul %697, %698, %cst_238 {dimension_numbers = #tpu.dot_dimension_numbers<[1], [0], [0], [1], [0, 0, 1, 1], [], []>} : vector<8x128xf32>, vector<128x256xf32>, vector<8x256xf32> -> vector<8x256xf32>
    %700 = arith.addf %699, %8 : vector<8x256xf32>
    %701 = vector.extract_strided_slice %700 {offsets = [0, 0], sizes = [8, 128], strides = [1, 1]} : vector<8x256xf32> to vector<8x128xf32>
    %cst_239 = arith.constant 5.000000e-01 : f32
    %702 = vector.broadcast %cst_239 : f32 to vector<8x128xf32>
    %703 = arith.mulf %702, %701 : vector<8x128xf32>
    %704 = math.tanh %703 : vector<8x128xf32>
    %cst_240 = arith.constant 5.000000e-01 : f32
    %705 = vector.broadcast %cst_240 : f32 to vector<8x128xf32>
    %706 = arith.mulf %705, %704 : vector<8x128xf32>
    %cst_241 = arith.constant 5.000000e-01 : f32
    %707 = vector.broadcast %cst_241 : f32 to vector<8x128xf32>
    %708 = arith.addf %706, %707 : vector<8x128xf32>
    %709 = vector.extract_strided_slice %700 {offsets = [0, 48], sizes = [8, 128], strides = [1, 1]} : vector<8x256xf32> to vector<8x128xf32>
    %cst_242 = arith.constant 5.000000e-01 : f32
    %710 = vector.broadcast %cst_242 : f32 to vector<8x128xf32>
    %711 = arith.mulf %710, %709 : vector<8x128xf32>
    %712 = math.tanh %711 : vector<8x128xf32>
    %cst_243 = arith.constant 5.000000e-01 : f32
    %713 = vector.broadcast %cst_243 : f32 to vector<8x128xf32>
    %714 = arith.mulf %713, %712 : vector<8x128xf32>
    %cst_244 = arith.constant 5.000000e-01 : f32
    %715 = vector.broadcast %cst_244 : f32 to vector<8x128xf32>
    %716 = arith.addf %714, %715 : vector<8x128xf32>
    %717 = vector.extract_strided_slice %700 {offsets = [0, 96], sizes = [8, 128], strides = [1, 1]} : vector<8x256xf32> to vector<8x128xf32>
    %cst_245 = arith.constant 5.000000e-01 : f32
    %718 = vector.broadcast %cst_245 : f32 to vector<8x128xf32>
    %719 = arith.mulf %718, %717 : vector<8x128xf32>
    %720 = math.tanh %719 : vector<8x128xf32>
    %cst_246 = arith.constant 5.000000e-01 : f32
    %721 = vector.broadcast %cst_246 : f32 to vector<8x128xf32>
    %722 = arith.mulf %721, %720 : vector<8x128xf32>
    %cst_247 = arith.constant 5.000000e-01 : f32
    %723 = vector.broadcast %cst_247 : f32 to vector<8x128xf32>
    %724 = arith.addf %722, %723 : vector<8x128xf32>
    %725 = vector.extract_strided_slice %700 {offsets = [0, 144], sizes = [8, 112], strides = [1, 1]} : vector<8x256xf32> to vector<8x112xf32>
    %726 = vector.extract_strided_slice %700 {offsets = [0, 0], sizes = [8, 16], strides = [1, 1]} : vector<8x256xf32> to vector<8x16xf32>
    %727 = tpu.concatenate %725, %726 in 1 : vector<8x112xf32>, vector<8x16xf32> -> vector<8x128xf32>
    %728 = math.tanh %727 : vector<8x128xf32>
    %729 = arith.mulf %716, %578 : vector<8x128xf32>
    %730 = arith.mulf %708, %728 : vector<8x128xf32>
    %731 = arith.addf %729, %730 : vector<8x128xf32>
    %732 = math.tanh %731 : vector<8x128xf32>
    %733 = arith.mulf %724, %732 : vector<8x128xf32>
    %734 = vector.extract_strided_slice %733 {offsets = [0, 0], sizes = [8, 48], strides = [1, 1]} : vector<8x128xf32> to vector<8x48xf32>
    %735 = vector.extract_strided_slice %622 {offsets = [0, 0], sizes = [8, 80], strides = [1, 1]} : vector<8x128xf32> to vector<8x80xf32>
    %736 = tpu.concatenate %734, %735 in 1 : vector<8x48xf32>, vector<8x80xf32> -> vector<8x128xf32>
    %c0_248 = arith.constant 0 : index
    %c0_249 = arith.constant 0 : index
    %737 = vector.load %arg8[%c0_248, %c0_249] : memref<128x128xf32, #tpu.memory_space<vmem>>, vector<128x128xf32>
    %cst_250 = arith.constant dense<0.000000e+00> : vector<8x128xf32>
    %738 = tpu.matmul %736, %737, %cst_250 {dimension_numbers = #tpu.dot_dimension_numbers<[1], [0], [0], [1], [0, 0, 1, 1], [], []>} : vector<8x128xf32>, vector<128x128xf32>, vector<8x128xf32> -> vector<8x128xf32>
    %739 = arith.addf %738, %9 : vector<8x128xf32>
    %cst_251 = arith.constant 5.000000e-01 : f32
    %740 = vector.broadcast %cst_251 : f32 to vector<8x128xf32>
    %741 = arith.mulf %740, %739 : vector<8x128xf32>
    %742 = math.tanh %741 : vector<8x128xf32>
    %cst_252 = arith.constant 5.000000e-01 : f32
    %743 = vector.broadcast %cst_252 : f32 to vector<8x128xf32>
    %744 = arith.mulf %743, %742 : vector<8x128xf32>
    %cst_253 = arith.constant 5.000000e-01 : f32
    %745 = vector.broadcast %cst_253 : f32 to vector<8x128xf32>
    %746 = arith.addf %744, %745 : vector<8x128xf32>
    %747 = vector.extract_strided_slice %739 {offsets = [0, 24], sizes = [8, 104], strides = [1, 1]} : vector<8x128xf32> to vector<8x104xf32>
    %748 = vector.extract_strided_slice %739 {offsets = [0, 0], sizes = [8, 24], strides = [1, 1]} : vector<8x128xf32> to vector<8x24xf32>
    %749 = tpu.concatenate %747, %748 in 1 : vector<8x104xf32>, vector<8x24xf32> -> vector<8x128xf32>
    %cst_254 = arith.constant 5.000000e-01 : f32
    %750 = vector.broadcast %cst_254 : f32 to vector<8x128xf32>
    %751 = arith.mulf %750, %749 : vector<8x128xf32>
    %752 = math.tanh %751 : vector<8x128xf32>
    %cst_255 = arith.constant 5.000000e-01 : f32
    %753 = vector.broadcast %cst_255 : f32 to vector<8x128xf32>
    %754 = arith.mulf %753, %752 : vector<8x128xf32>
    %cst_256 = arith.constant 5.000000e-01 : f32
    %755 = vector.broadcast %cst_256 : f32 to vector<8x128xf32>
    %756 = arith.addf %754, %755 : vector<8x128xf32>
    %757 = vector.extract_strided_slice %739 {offsets = [0, 48], sizes = [8, 80], strides = [1, 1]} : vector<8x128xf32> to vector<8x80xf32>
    %758 = vector.extract_strided_slice %739 {offsets = [0, 0], sizes = [8, 48], strides = [1, 1]} : vector<8x128xf32> to vector<8x48xf32>
    %759 = tpu.concatenate %757, %758 in 1 : vector<8x80xf32>, vector<8x48xf32> -> vector<8x128xf32>
    %cst_257 = arith.constant 5.000000e-01 : f32
    %760 = vector.broadcast %cst_257 : f32 to vector<8x128xf32>
    %761 = arith.mulf %760, %759 : vector<8x128xf32>
    %762 = math.tanh %761 : vector<8x128xf32>
    %cst_258 = arith.constant 5.000000e-01 : f32
    %763 = vector.broadcast %cst_258 : f32 to vector<8x128xf32>
    %764 = arith.mulf %763, %762 : vector<8x128xf32>
    %cst_259 = arith.constant 5.000000e-01 : f32
    %765 = vector.broadcast %cst_259 : f32 to vector<8x128xf32>
    %766 = arith.addf %764, %765 : vector<8x128xf32>
    %767 = vector.extract_strided_slice %739 {offsets = [0, 72], sizes = [8, 56], strides = [1, 1]} : vector<8x128xf32> to vector<8x56xf32>
    %768 = vector.extract_strided_slice %739 {offsets = [0, 0], sizes = [8, 72], strides = [1, 1]} : vector<8x128xf32> to vector<8x72xf32>
    %769 = tpu.concatenate %767, %768 in 1 : vector<8x56xf32>, vector<8x72xf32> -> vector<8x128xf32>
    %770 = math.tanh %769 : vector<8x128xf32>
    %771 = arith.mulf %756, %620 : vector<8x128xf32>
    %772 = arith.mulf %746, %770 : vector<8x128xf32>
    %773 = arith.addf %771, %772 : vector<8x128xf32>
    %774 = math.tanh %773 : vector<8x128xf32>
    %775 = arith.mulf %766, %774 : vector<8x128xf32>
    %c40 = arith.constant 40 : index
    %c0_260 = arith.constant 0 : index
    %776 = vector.load %arg13[%c40, %c0_260] : memref<64x384xf32, #tpu.memory_space<vmem>>, vector<8x384xf32>
    %c0_261 = arith.constant 0 : index
    %c0_262 = arith.constant 0 : index
    %777 = vector.load %arg2[%c0_261, %c0_262] : memref<128x384xf32, #tpu.memory_space<vmem>>, vector<128x384xf32>
    %cst_263 = arith.constant dense<0.000000e+00> : vector<8x384xf32>
    %778 = tpu.matmul %659, %777, %cst_263 {dimension_numbers = #tpu.dot_dimension_numbers<[1], [0], [0], [1], [0, 0, 1, 1], [], []>} : vector<8x128xf32>, vector<128x384xf32>, vector<8x384xf32> -> vector<8x384xf32>
    %779 = arith.addf %776, %778 : vector<8x384xf32>
    %780 = vector.extract_strided_slice %779 {offsets = [0, 0], sizes = [8, 128], strides = [1, 1]} : vector<8x384xf32> to vector<8x128xf32>
    %cst_264 = arith.constant 5.000000e-01 : f32
    %781 = vector.broadcast %cst_264 : f32 to vector<8x128xf32>
    %782 = arith.mulf %781, %780 : vector<8x128xf32>
    %783 = math.tanh %782 : vector<8x128xf32>
    %cst_265 = arith.constant 5.000000e-01 : f32
    %784 = vector.broadcast %cst_265 : f32 to vector<8x128xf32>
    %785 = arith.mulf %784, %783 : vector<8x128xf32>
    %cst_266 = arith.constant 5.000000e-01 : f32
    %786 = vector.broadcast %cst_266 : f32 to vector<8x128xf32>
    %787 = arith.addf %785, %786 : vector<8x128xf32>
    %788 = vector.extract_strided_slice %779 {offsets = [0, 90], sizes = [8, 128], strides = [1, 1]} : vector<8x384xf32> to vector<8x128xf32>
    %cst_267 = arith.constant 5.000000e-01 : f32
    %789 = vector.broadcast %cst_267 : f32 to vector<8x128xf32>
    %790 = arith.mulf %789, %788 : vector<8x128xf32>
    %791 = math.tanh %790 : vector<8x128xf32>
    %cst_268 = arith.constant 5.000000e-01 : f32
    %792 = vector.broadcast %cst_268 : f32 to vector<8x128xf32>
    %793 = arith.mulf %792, %791 : vector<8x128xf32>
    %cst_269 = arith.constant 5.000000e-01 : f32
    %794 = vector.broadcast %cst_269 : f32 to vector<8x128xf32>
    %795 = arith.addf %793, %794 : vector<8x128xf32>
    %796 = vector.extract_strided_slice %779 {offsets = [0, 180], sizes = [8, 128], strides = [1, 1]} : vector<8x384xf32> to vector<8x128xf32>
    %cst_270 = arith.constant 5.000000e-01 : f32
    %797 = vector.broadcast %cst_270 : f32 to vector<8x128xf32>
    %798 = arith.mulf %797, %796 : vector<8x128xf32>
    %799 = math.tanh %798 : vector<8x128xf32>
    %cst_271 = arith.constant 5.000000e-01 : f32
    %800 = vector.broadcast %cst_271 : f32 to vector<8x128xf32>
    %801 = arith.mulf %800, %799 : vector<8x128xf32>
    %cst_272 = arith.constant 5.000000e-01 : f32
    %802 = vector.broadcast %cst_272 : f32 to vector<8x128xf32>
    %803 = arith.addf %801, %802 : vector<8x128xf32>
    %804 = vector.extract_strided_slice %779 {offsets = [0, 270], sizes = [8, 114], strides = [1, 1]} : vector<8x384xf32> to vector<8x114xf32>
    %805 = vector.extract_strided_slice %779 {offsets = [0, 0], sizes = [8, 14], strides = [1, 1]} : vector<8x384xf32> to vector<8x14xf32>
    %806 = tpu.concatenate %804, %805 in 1 : vector<8x114xf32>, vector<8x14xf32> -> vector<8x128xf32>
    %807 = math.tanh %806 : vector<8x128xf32>
    %808 = arith.mulf %795, %657 : vector<8x128xf32>
    %809 = arith.mulf %787, %807 : vector<8x128xf32>
    %810 = arith.addf %808, %809 : vector<8x128xf32>
    %811 = math.tanh %810 : vector<8x128xf32>
    %812 = arith.mulf %803, %811 : vector<8x128xf32>
    %813 = tpu.concatenate %812, %694 in 1 : vector<8x128xf32>, vector<8x128xf32> -> vector<8x256xf32>
    %c0_273 = arith.constant 0 : index
    %c0_274 = arith.constant 0 : index
    %814 = vector.load %arg4[%c0_273, %c0_274] : memref<256x384xf32, #tpu.memory_space<vmem>>, vector<256x384xf32>
    %cst_275 = arith.constant dense<0.000000e+00> : vector<8x384xf32>
    %815 = tpu.matmul %813, %814, %cst_275 {dimension_numbers = #tpu.dot_dimension_numbers<[1], [0], [0], [1], [0, 0, 1, 1], [], []>} : vector<8x256xf32>, vector<256x384xf32>, vector<8x384xf32> -> vector<8x384xf32>
    %816 = arith.addf %815, %7 : vector<8x384xf32>
    %817 = vector.extract_strided_slice %816 {offsets = [0, 0], sizes = [8, 128], strides = [1, 1]} : vector<8x384xf32> to vector<8x128xf32>
    %cst_276 = arith.constant 5.000000e-01 : f32
    %818 = vector.broadcast %cst_276 : f32 to vector<8x128xf32>
    %819 = arith.mulf %818, %817 : vector<8x128xf32>
    %820 = math.tanh %819 : vector<8x128xf32>
    %cst_277 = arith.constant 5.000000e-01 : f32
    %821 = vector.broadcast %cst_277 : f32 to vector<8x128xf32>
    %822 = arith.mulf %821, %820 : vector<8x128xf32>
    %cst_278 = arith.constant 5.000000e-01 : f32
    %823 = vector.broadcast %cst_278 : f32 to vector<8x128xf32>
    %824 = arith.addf %822, %823 : vector<8x128xf32>
    %825 = vector.extract_strided_slice %816 {offsets = [0, 66], sizes = [8, 128], strides = [1, 1]} : vector<8x384xf32> to vector<8x128xf32>
    %cst_279 = arith.constant 5.000000e-01 : f32
    %826 = vector.broadcast %cst_279 : f32 to vector<8x128xf32>
    %827 = arith.mulf %826, %825 : vector<8x128xf32>
    %828 = math.tanh %827 : vector<8x128xf32>
    %cst_280 = arith.constant 5.000000e-01 : f32
    %829 = vector.broadcast %cst_280 : f32 to vector<8x128xf32>
    %830 = arith.mulf %829, %828 : vector<8x128xf32>
    %cst_281 = arith.constant 5.000000e-01 : f32
    %831 = vector.broadcast %cst_281 : f32 to vector<8x128xf32>
    %832 = arith.addf %830, %831 : vector<8x128xf32>
    %833 = vector.extract_strided_slice %816 {offsets = [0, 132], sizes = [8, 128], strides = [1, 1]} : vector<8x384xf32> to vector<8x128xf32>
    %cst_282 = arith.constant 5.000000e-01 : f32
    %834 = vector.broadcast %cst_282 : f32 to vector<8x128xf32>
    %835 = arith.mulf %834, %833 : vector<8x128xf32>
    %836 = math.tanh %835 : vector<8x128xf32>
    %cst_283 = arith.constant 5.000000e-01 : f32
    %837 = vector.broadcast %cst_283 : f32 to vector<8x128xf32>
    %838 = arith.mulf %837, %836 : vector<8x128xf32>
    %cst_284 = arith.constant 5.000000e-01 : f32
    %839 = vector.broadcast %cst_284 : f32 to vector<8x128xf32>
    %840 = arith.addf %838, %839 : vector<8x128xf32>
    %841 = vector.extract_strided_slice %816 {offsets = [0, 198], sizes = [8, 128], strides = [1, 1]} : vector<8x384xf32> to vector<8x128xf32>
    %842 = math.tanh %841 : vector<8x128xf32>
    %843 = arith.mulf %832, %692 : vector<8x128xf32>
    %844 = arith.mulf %824, %842 : vector<8x128xf32>
    %845 = arith.addf %843, %844 : vector<8x128xf32>
    %846 = math.tanh %845 : vector<8x128xf32>
    %847 = arith.mulf %840, %846 : vector<8x128xf32>
    %848 = vector.extract_strided_slice %847 {offsets = [0, 0], sizes = [8, 66], strides = [1, 1]} : vector<8x128xf32> to vector<8x66xf32>
    %849 = vector.extract_strided_slice %733 {offsets = [0, 0], sizes = [8, 62], strides = [1, 1]} : vector<8x128xf32> to vector<8x62xf32>
    %850 = tpu.concatenate %848, %849 in 1 : vector<8x66xf32>, vector<8x62xf32> -> vector<8x128xf32>
    %c0_285 = arith.constant 0 : index
    %c0_286 = arith.constant 0 : index
    %851 = vector.load %arg6[%c0_285, %c0_286] : memref<128x256xf32, #tpu.memory_space<vmem>>, vector<128x256xf32>
    %cst_287 = arith.constant dense<0.000000e+00> : vector<8x256xf32>
    %852 = tpu.matmul %850, %851, %cst_287 {dimension_numbers = #tpu.dot_dimension_numbers<[1], [0], [0], [1], [0, 0, 1, 1], [], []>} : vector<8x128xf32>, vector<128x256xf32>, vector<8x256xf32> -> vector<8x256xf32>
    %853 = arith.addf %852, %8 : vector<8x256xf32>
    %854 = vector.extract_strided_slice %853 {offsets = [0, 0], sizes = [8, 128], strides = [1, 1]} : vector<8x256xf32> to vector<8x128xf32>
    %cst_288 = arith.constant 5.000000e-01 : f32
    %855 = vector.broadcast %cst_288 : f32 to vector<8x128xf32>
    %856 = arith.mulf %855, %854 : vector<8x128xf32>
    %857 = math.tanh %856 : vector<8x128xf32>
    %cst_289 = arith.constant 5.000000e-01 : f32
    %858 = vector.broadcast %cst_289 : f32 to vector<8x128xf32>
    %859 = arith.mulf %858, %857 : vector<8x128xf32>
    %cst_290 = arith.constant 5.000000e-01 : f32
    %860 = vector.broadcast %cst_290 : f32 to vector<8x128xf32>
    %861 = arith.addf %859, %860 : vector<8x128xf32>
    %862 = vector.extract_strided_slice %853 {offsets = [0, 48], sizes = [8, 128], strides = [1, 1]} : vector<8x256xf32> to vector<8x128xf32>
    %cst_291 = arith.constant 5.000000e-01 : f32
    %863 = vector.broadcast %cst_291 : f32 to vector<8x128xf32>
    %864 = arith.mulf %863, %862 : vector<8x128xf32>
    %865 = math.tanh %864 : vector<8x128xf32>
    %cst_292 = arith.constant 5.000000e-01 : f32
    %866 = vector.broadcast %cst_292 : f32 to vector<8x128xf32>
    %867 = arith.mulf %866, %865 : vector<8x128xf32>
    %cst_293 = arith.constant 5.000000e-01 : f32
    %868 = vector.broadcast %cst_293 : f32 to vector<8x128xf32>
    %869 = arith.addf %867, %868 : vector<8x128xf32>
    %870 = vector.extract_strided_slice %853 {offsets = [0, 96], sizes = [8, 128], strides = [1, 1]} : vector<8x256xf32> to vector<8x128xf32>
    %cst_294 = arith.constant 5.000000e-01 : f32
    %871 = vector.broadcast %cst_294 : f32 to vector<8x128xf32>
    %872 = arith.mulf %871, %870 : vector<8x128xf32>
    %873 = math.tanh %872 : vector<8x128xf32>
    %cst_295 = arith.constant 5.000000e-01 : f32
    %874 = vector.broadcast %cst_295 : f32 to vector<8x128xf32>
    %875 = arith.mulf %874, %873 : vector<8x128xf32>
    %cst_296 = arith.constant 5.000000e-01 : f32
    %876 = vector.broadcast %cst_296 : f32 to vector<8x128xf32>
    %877 = arith.addf %875, %876 : vector<8x128xf32>
    %878 = vector.extract_strided_slice %853 {offsets = [0, 144], sizes = [8, 112], strides = [1, 1]} : vector<8x256xf32> to vector<8x112xf32>
    %879 = vector.extract_strided_slice %853 {offsets = [0, 0], sizes = [8, 16], strides = [1, 1]} : vector<8x256xf32> to vector<8x16xf32>
    %880 = tpu.concatenate %878, %879 in 1 : vector<8x112xf32>, vector<8x16xf32> -> vector<8x128xf32>
    %881 = math.tanh %880 : vector<8x128xf32>
    %882 = arith.mulf %869, %731 : vector<8x128xf32>
    %883 = arith.mulf %861, %881 : vector<8x128xf32>
    %884 = arith.addf %882, %883 : vector<8x128xf32>
    %885 = math.tanh %884 : vector<8x128xf32>
    %886 = arith.mulf %877, %885 : vector<8x128xf32>
    %887 = vector.extract_strided_slice %886 {offsets = [0, 0], sizes = [8, 48], strides = [1, 1]} : vector<8x128xf32> to vector<8x48xf32>
    %888 = vector.extract_strided_slice %775 {offsets = [0, 0], sizes = [8, 80], strides = [1, 1]} : vector<8x128xf32> to vector<8x80xf32>
    %889 = tpu.concatenate %887, %888 in 1 : vector<8x48xf32>, vector<8x80xf32> -> vector<8x128xf32>
    %c0_297 = arith.constant 0 : index
    %c0_298 = arith.constant 0 : index
    %890 = vector.load %arg8[%c0_297, %c0_298] : memref<128x128xf32, #tpu.memory_space<vmem>>, vector<128x128xf32>
    %cst_299 = arith.constant dense<0.000000e+00> : vector<8x128xf32>
    %891 = tpu.matmul %889, %890, %cst_299 {dimension_numbers = #tpu.dot_dimension_numbers<[1], [0], [0], [1], [0, 0, 1, 1], [], []>} : vector<8x128xf32>, vector<128x128xf32>, vector<8x128xf32> -> vector<8x128xf32>
    %892 = arith.addf %891, %9 : vector<8x128xf32>
    %cst_300 = arith.constant 5.000000e-01 : f32
    %893 = vector.broadcast %cst_300 : f32 to vector<8x128xf32>
    %894 = arith.mulf %893, %892 : vector<8x128xf32>
    %895 = math.tanh %894 : vector<8x128xf32>
    %cst_301 = arith.constant 5.000000e-01 : f32
    %896 = vector.broadcast %cst_301 : f32 to vector<8x128xf32>
    %897 = arith.mulf %896, %895 : vector<8x128xf32>
    %cst_302 = arith.constant 5.000000e-01 : f32
    %898 = vector.broadcast %cst_302 : f32 to vector<8x128xf32>
    %899 = arith.addf %897, %898 : vector<8x128xf32>
    %900 = vector.extract_strided_slice %892 {offsets = [0, 24], sizes = [8, 104], strides = [1, 1]} : vector<8x128xf32> to vector<8x104xf32>
    %901 = vector.extract_strided_slice %892 {offsets = [0, 0], sizes = [8, 24], strides = [1, 1]} : vector<8x128xf32> to vector<8x24xf32>
    %902 = tpu.concatenate %900, %901 in 1 : vector<8x104xf32>, vector<8x24xf32> -> vector<8x128xf32>
    %cst_303 = arith.constant 5.000000e-01 : f32
    %903 = vector.broadcast %cst_303 : f32 to vector<8x128xf32>
    %904 = arith.mulf %903, %902 : vector<8x128xf32>
    %905 = math.tanh %904 : vector<8x128xf32>
    %cst_304 = arith.constant 5.000000e-01 : f32
    %906 = vector.broadcast %cst_304 : f32 to vector<8x128xf32>
    %907 = arith.mulf %906, %905 : vector<8x128xf32>
    %cst_305 = arith.constant 5.000000e-01 : f32
    %908 = vector.broadcast %cst_305 : f32 to vector<8x128xf32>
    %909 = arith.addf %907, %908 : vector<8x128xf32>
    %910 = vector.extract_strided_slice %892 {offsets = [0, 48], sizes = [8, 80], strides = [1, 1]} : vector<8x128xf32> to vector<8x80xf32>
    %911 = vector.extract_strided_slice %892 {offsets = [0, 0], sizes = [8, 48], strides = [1, 1]} : vector<8x128xf32> to vector<8x48xf32>
    %912 = tpu.concatenate %910, %911 in 1 : vector<8x80xf32>, vector<8x48xf32> -> vector<8x128xf32>
    %cst_306 = arith.constant 5.000000e-01 : f32
    %913 = vector.broadcast %cst_306 : f32 to vector<8x128xf32>
    %914 = arith.mulf %913, %912 : vector<8x128xf32>
    %915 = math.tanh %914 : vector<8x128xf32>
    %cst_307 = arith.constant 5.000000e-01 : f32
    %916 = vector.broadcast %cst_307 : f32 to vector<8x128xf32>
    %917 = arith.mulf %916, %915 : vector<8x128xf32>
    %cst_308 = arith.constant 5.000000e-01 : f32
    %918 = vector.broadcast %cst_308 : f32 to vector<8x128xf32>
    %919 = arith.addf %917, %918 : vector<8x128xf32>
    %920 = vector.extract_strided_slice %892 {offsets = [0, 72], sizes = [8, 56], strides = [1, 1]} : vector<8x128xf32> to vector<8x56xf32>
    %921 = vector.extract_strided_slice %892 {offsets = [0, 0], sizes = [8, 72], strides = [1, 1]} : vector<8x128xf32> to vector<8x72xf32>
    %922 = tpu.concatenate %920, %921 in 1 : vector<8x56xf32>, vector<8x72xf32> -> vector<8x128xf32>
    %923 = math.tanh %922 : vector<8x128xf32>
    %924 = arith.mulf %909, %773 : vector<8x128xf32>
    %925 = arith.mulf %899, %923 : vector<8x128xf32>
    %926 = arith.addf %924, %925 : vector<8x128xf32>
    %927 = math.tanh %926 : vector<8x128xf32>
    %928 = arith.mulf %919, %927 : vector<8x128xf32>
    %c48 = arith.constant 48 : index
    %c0_309 = arith.constant 0 : index
    %929 = vector.load %arg13[%c48, %c0_309] : memref<64x384xf32, #tpu.memory_space<vmem>>, vector<8x384xf32>
    %c0_310 = arith.constant 0 : index
    %c0_311 = arith.constant 0 : index
    %930 = vector.load %arg2[%c0_310, %c0_311] : memref<128x384xf32, #tpu.memory_space<vmem>>, vector<128x384xf32>
    %cst_312 = arith.constant dense<0.000000e+00> : vector<8x384xf32>
    %931 = tpu.matmul %812, %930, %cst_312 {dimension_numbers = #tpu.dot_dimension_numbers<[1], [0], [0], [1], [0, 0, 1, 1], [], []>} : vector<8x128xf32>, vector<128x384xf32>, vector<8x384xf32> -> vector<8x384xf32>
    %932 = arith.addf %929, %931 : vector<8x384xf32>
    %933 = vector.extract_strided_slice %932 {offsets = [0, 0], sizes = [8, 128], strides = [1, 1]} : vector<8x384xf32> to vector<8x128xf32>
    %cst_313 = arith.constant 5.000000e-01 : f32
    %934 = vector.broadcast %cst_313 : f32 to vector<8x128xf32>
    %935 = arith.mulf %934, %933 : vector<8x128xf32>
    %936 = math.tanh %935 : vector<8x128xf32>
    %cst_314 = arith.constant 5.000000e-01 : f32
    %937 = vector.broadcast %cst_314 : f32 to vector<8x128xf32>
    %938 = arith.mulf %937, %936 : vector<8x128xf32>
    %cst_315 = arith.constant 5.000000e-01 : f32
    %939 = vector.broadcast %cst_315 : f32 to vector<8x128xf32>
    %940 = arith.addf %938, %939 : vector<8x128xf32>
    %941 = vector.extract_strided_slice %932 {offsets = [0, 90], sizes = [8, 128], strides = [1, 1]} : vector<8x384xf32> to vector<8x128xf32>
    %cst_316 = arith.constant 5.000000e-01 : f32
    %942 = vector.broadcast %cst_316 : f32 to vector<8x128xf32>
    %943 = arith.mulf %942, %941 : vector<8x128xf32>
    %944 = math.tanh %943 : vector<8x128xf32>
    %cst_317 = arith.constant 5.000000e-01 : f32
    %945 = vector.broadcast %cst_317 : f32 to vector<8x128xf32>
    %946 = arith.mulf %945, %944 : vector<8x128xf32>
    %cst_318 = arith.constant 5.000000e-01 : f32
    %947 = vector.broadcast %cst_318 : f32 to vector<8x128xf32>
    %948 = arith.addf %946, %947 : vector<8x128xf32>
    %949 = vector.extract_strided_slice %932 {offsets = [0, 180], sizes = [8, 128], strides = [1, 1]} : vector<8x384xf32> to vector<8x128xf32>
    %cst_319 = arith.constant 5.000000e-01 : f32
    %950 = vector.broadcast %cst_319 : f32 to vector<8x128xf32>
    %951 = arith.mulf %950, %949 : vector<8x128xf32>
    %952 = math.tanh %951 : vector<8x128xf32>
    %cst_320 = arith.constant 5.000000e-01 : f32
    %953 = vector.broadcast %cst_320 : f32 to vector<8x128xf32>
    %954 = arith.mulf %953, %952 : vector<8x128xf32>
    %cst_321 = arith.constant 5.000000e-01 : f32
    %955 = vector.broadcast %cst_321 : f32 to vector<8x128xf32>
    %956 = arith.addf %954, %955 : vector<8x128xf32>
    %957 = vector.extract_strided_slice %932 {offsets = [0, 270], sizes = [8, 114], strides = [1, 1]} : vector<8x384xf32> to vector<8x114xf32>
    %958 = vector.extract_strided_slice %932 {offsets = [0, 0], sizes = [8, 14], strides = [1, 1]} : vector<8x384xf32> to vector<8x14xf32>
    %959 = tpu.concatenate %957, %958 in 1 : vector<8x114xf32>, vector<8x14xf32> -> vector<8x128xf32>
    %960 = math.tanh %959 : vector<8x128xf32>
    %961 = arith.mulf %948, %810 : vector<8x128xf32>
    %962 = arith.mulf %940, %960 : vector<8x128xf32>
    %963 = arith.addf %961, %962 : vector<8x128xf32>
    %964 = math.tanh %963 : vector<8x128xf32>
    %965 = arith.mulf %956, %964 : vector<8x128xf32>
    %966 = tpu.concatenate %965, %847 in 1 : vector<8x128xf32>, vector<8x128xf32> -> vector<8x256xf32>
    %c0_322 = arith.constant 0 : index
    %c0_323 = arith.constant 0 : index
    %967 = vector.load %arg4[%c0_322, %c0_323] : memref<256x384xf32, #tpu.memory_space<vmem>>, vector<256x384xf32>
    %cst_324 = arith.constant dense<0.000000e+00> : vector<8x384xf32>
    %968 = tpu.matmul %966, %967, %cst_324 {dimension_numbers = #tpu.dot_dimension_numbers<[1], [0], [0], [1], [0, 0, 1, 1], [], []>} : vector<8x256xf32>, vector<256x384xf32>, vector<8x384xf32> -> vector<8x384xf32>
    %969 = arith.addf %968, %7 : vector<8x384xf32>
    %970 = vector.extract_strided_slice %969 {offsets = [0, 0], sizes = [8, 128], strides = [1, 1]} : vector<8x384xf32> to vector<8x128xf32>
    %cst_325 = arith.constant 5.000000e-01 : f32
    %971 = vector.broadcast %cst_325 : f32 to vector<8x128xf32>
    %972 = arith.mulf %971, %970 : vector<8x128xf32>
    %973 = math.tanh %972 : vector<8x128xf32>
    %cst_326 = arith.constant 5.000000e-01 : f32
    %974 = vector.broadcast %cst_326 : f32 to vector<8x128xf32>
    %975 = arith.mulf %974, %973 : vector<8x128xf32>
    %cst_327 = arith.constant 5.000000e-01 : f32
    %976 = vector.broadcast %cst_327 : f32 to vector<8x128xf32>
    %977 = arith.addf %975, %976 : vector<8x128xf32>
    %978 = vector.extract_strided_slice %969 {offsets = [0, 66], sizes = [8, 128], strides = [1, 1]} : vector<8x384xf32> to vector<8x128xf32>
    %cst_328 = arith.constant 5.000000e-01 : f32
    %979 = vector.broadcast %cst_328 : f32 to vector<8x128xf32>
    %980 = arith.mulf %979, %978 : vector<8x128xf32>
    %981 = math.tanh %980 : vector<8x128xf32>
    %cst_329 = arith.constant 5.000000e-01 : f32
    %982 = vector.broadcast %cst_329 : f32 to vector<8x128xf32>
    %983 = arith.mulf %982, %981 : vector<8x128xf32>
    %cst_330 = arith.constant 5.000000e-01 : f32
    %984 = vector.broadcast %cst_330 : f32 to vector<8x128xf32>
    %985 = arith.addf %983, %984 : vector<8x128xf32>
    %986 = vector.extract_strided_slice %969 {offsets = [0, 132], sizes = [8, 128], strides = [1, 1]} : vector<8x384xf32> to vector<8x128xf32>
    %cst_331 = arith.constant 5.000000e-01 : f32
    %987 = vector.broadcast %cst_331 : f32 to vector<8x128xf32>
    %988 = arith.mulf %987, %986 : vector<8x128xf32>
    %989 = math.tanh %988 : vector<8x128xf32>
    %cst_332 = arith.constant 5.000000e-01 : f32
    %990 = vector.broadcast %cst_332 : f32 to vector<8x128xf32>
    %991 = arith.mulf %990, %989 : vector<8x128xf32>
    %cst_333 = arith.constant 5.000000e-01 : f32
    %992 = vector.broadcast %cst_333 : f32 to vector<8x128xf32>
    %993 = arith.addf %991, %992 : vector<8x128xf32>
    %994 = vector.extract_strided_slice %969 {offsets = [0, 198], sizes = [8, 128], strides = [1, 1]} : vector<8x384xf32> to vector<8x128xf32>
    %995 = math.tanh %994 : vector<8x128xf32>
    %996 = arith.mulf %985, %845 : vector<8x128xf32>
    %997 = arith.mulf %977, %995 : vector<8x128xf32>
    %998 = arith.addf %996, %997 : vector<8x128xf32>
    %999 = math.tanh %998 : vector<8x128xf32>
    %1000 = arith.mulf %993, %999 : vector<8x128xf32>
    %1001 = vector.extract_strided_slice %1000 {offsets = [0, 0], sizes = [8, 66], strides = [1, 1]} : vector<8x128xf32> to vector<8x66xf32>
    %1002 = vector.extract_strided_slice %886 {offsets = [0, 0], sizes = [8, 62], strides = [1, 1]} : vector<8x128xf32> to vector<8x62xf32>
    %1003 = tpu.concatenate %1001, %1002 in 1 : vector<8x66xf32>, vector<8x62xf32> -> vector<8x128xf32>
    %c0_334 = arith.constant 0 : index
    %c0_335 = arith.constant 0 : index
    %1004 = vector.load %arg6[%c0_334, %c0_335] : memref<128x256xf32, #tpu.memory_space<vmem>>, vector<128x256xf32>
    %cst_336 = arith.constant dense<0.000000e+00> : vector<8x256xf32>
    %1005 = tpu.matmul %1003, %1004, %cst_336 {dimension_numbers = #tpu.dot_dimension_numbers<[1], [0], [0], [1], [0, 0, 1, 1], [], []>} : vector<8x128xf32>, vector<128x256xf32>, vector<8x256xf32> -> vector<8x256xf32>
    %1006 = arith.addf %1005, %8 : vector<8x256xf32>
    %1007 = vector.extract_strided_slice %1006 {offsets = [0, 0], sizes = [8, 128], strides = [1, 1]} : vector<8x256xf32> to vector<8x128xf32>
    %cst_337 = arith.constant 5.000000e-01 : f32
    %1008 = vector.broadcast %cst_337 : f32 to vector<8x128xf32>
    %1009 = arith.mulf %1008, %1007 : vector<8x128xf32>
    %1010 = math.tanh %1009 : vector<8x128xf32>
    %cst_338 = arith.constant 5.000000e-01 : f32
    %1011 = vector.broadcast %cst_338 : f32 to vector<8x128xf32>
    %1012 = arith.mulf %1011, %1010 : vector<8x128xf32>
    %cst_339 = arith.constant 5.000000e-01 : f32
    %1013 = vector.broadcast %cst_339 : f32 to vector<8x128xf32>
    %1014 = arith.addf %1012, %1013 : vector<8x128xf32>
    %1015 = vector.extract_strided_slice %1006 {offsets = [0, 48], sizes = [8, 128], strides = [1, 1]} : vector<8x256xf32> to vector<8x128xf32>
    %cst_340 = arith.constant 5.000000e-01 : f32
    %1016 = vector.broadcast %cst_340 : f32 to vector<8x128xf32>
    %1017 = arith.mulf %1016, %1015 : vector<8x128xf32>
    %1018 = math.tanh %1017 : vector<8x128xf32>
    %cst_341 = arith.constant 5.000000e-01 : f32
    %1019 = vector.broadcast %cst_341 : f32 to vector<8x128xf32>
    %1020 = arith.mulf %1019, %1018 : vector<8x128xf32>
    %cst_342 = arith.constant 5.000000e-01 : f32
    %1021 = vector.broadcast %cst_342 : f32 to vector<8x128xf32>
    %1022 = arith.addf %1020, %1021 : vector<8x128xf32>
    %1023 = vector.extract_strided_slice %1006 {offsets = [0, 96], sizes = [8, 128], strides = [1, 1]} : vector<8x256xf32> to vector<8x128xf32>
    %cst_343 = arith.constant 5.000000e-01 : f32
    %1024 = vector.broadcast %cst_343 : f32 to vector<8x128xf32>
    %1025 = arith.mulf %1024, %1023 : vector<8x128xf32>
    %1026 = math.tanh %1025 : vector<8x128xf32>
    %cst_344 = arith.constant 5.000000e-01 : f32
    %1027 = vector.broadcast %cst_344 : f32 to vector<8x128xf32>
    %1028 = arith.mulf %1027, %1026 : vector<8x128xf32>
    %cst_345 = arith.constant 5.000000e-01 : f32
    %1029 = vector.broadcast %cst_345 : f32 to vector<8x128xf32>
    %1030 = arith.addf %1028, %1029 : vector<8x128xf32>
    %1031 = vector.extract_strided_slice %1006 {offsets = [0, 144], sizes = [8, 112], strides = [1, 1]} : vector<8x256xf32> to vector<8x112xf32>
    %1032 = vector.extract_strided_slice %1006 {offsets = [0, 0], sizes = [8, 16], strides = [1, 1]} : vector<8x256xf32> to vector<8x16xf32>
    %1033 = tpu.concatenate %1031, %1032 in 1 : vector<8x112xf32>, vector<8x16xf32> -> vector<8x128xf32>
    %1034 = math.tanh %1033 : vector<8x128xf32>
    %1035 = arith.mulf %1022, %884 : vector<8x128xf32>
    %1036 = arith.mulf %1014, %1034 : vector<8x128xf32>
    %1037 = arith.addf %1035, %1036 : vector<8x128xf32>
    %1038 = math.tanh %1037 : vector<8x128xf32>
    %1039 = arith.mulf %1030, %1038 : vector<8x128xf32>
    %1040 = vector.extract_strided_slice %1039 {offsets = [0, 0], sizes = [8, 48], strides = [1, 1]} : vector<8x128xf32> to vector<8x48xf32>
    %1041 = vector.extract_strided_slice %928 {offsets = [0, 0], sizes = [8, 80], strides = [1, 1]} : vector<8x128xf32> to vector<8x80xf32>
    %1042 = tpu.concatenate %1040, %1041 in 1 : vector<8x48xf32>, vector<8x80xf32> -> vector<8x128xf32>
    %c0_346 = arith.constant 0 : index
    %c0_347 = arith.constant 0 : index
    %1043 = vector.load %arg8[%c0_346, %c0_347] : memref<128x128xf32, #tpu.memory_space<vmem>>, vector<128x128xf32>
    %cst_348 = arith.constant dense<0.000000e+00> : vector<8x128xf32>
    %1044 = tpu.matmul %1042, %1043, %cst_348 {dimension_numbers = #tpu.dot_dimension_numbers<[1], [0], [0], [1], [0, 0, 1, 1], [], []>} : vector<8x128xf32>, vector<128x128xf32>, vector<8x128xf32> -> vector<8x128xf32>
    %1045 = arith.addf %1044, %9 : vector<8x128xf32>
    %cst_349 = arith.constant 5.000000e-01 : f32
    %1046 = vector.broadcast %cst_349 : f32 to vector<8x128xf32>
    %1047 = arith.mulf %1046, %1045 : vector<8x128xf32>
    %1048 = math.tanh %1047 : vector<8x128xf32>
    %cst_350 = arith.constant 5.000000e-01 : f32
    %1049 = vector.broadcast %cst_350 : f32 to vector<8x128xf32>
    %1050 = arith.mulf %1049, %1048 : vector<8x128xf32>
    %cst_351 = arith.constant 5.000000e-01 : f32
    %1051 = vector.broadcast %cst_351 : f32 to vector<8x128xf32>
    %1052 = arith.addf %1050, %1051 : vector<8x128xf32>
    %1053 = vector.extract_strided_slice %1045 {offsets = [0, 24], sizes = [8, 104], strides = [1, 1]} : vector<8x128xf32> to vector<8x104xf32>
    %1054 = vector.extract_strided_slice %1045 {offsets = [0, 0], sizes = [8, 24], strides = [1, 1]} : vector<8x128xf32> to vector<8x24xf32>
    %1055 = tpu.concatenate %1053, %1054 in 1 : vector<8x104xf32>, vector<8x24xf32> -> vector<8x128xf32>
    %cst_352 = arith.constant 5.000000e-01 : f32
    %1056 = vector.broadcast %cst_352 : f32 to vector<8x128xf32>
    %1057 = arith.mulf %1056, %1055 : vector<8x128xf32>
    %1058 = math.tanh %1057 : vector<8x128xf32>
    %cst_353 = arith.constant 5.000000e-01 : f32
    %1059 = vector.broadcast %cst_353 : f32 to vector<8x128xf32>
    %1060 = arith.mulf %1059, %1058 : vector<8x128xf32>
    %cst_354 = arith.constant 5.000000e-01 : f32
    %1061 = vector.broadcast %cst_354 : f32 to vector<8x128xf32>
    %1062 = arith.addf %1060, %1061 : vector<8x128xf32>
    %1063 = vector.extract_strided_slice %1045 {offsets = [0, 48], sizes = [8, 80], strides = [1, 1]} : vector<8x128xf32> to vector<8x80xf32>
    %1064 = vector.extract_strided_slice %1045 {offsets = [0, 0], sizes = [8, 48], strides = [1, 1]} : vector<8x128xf32> to vector<8x48xf32>
    %1065 = tpu.concatenate %1063, %1064 in 1 : vector<8x80xf32>, vector<8x48xf32> -> vector<8x128xf32>
    %cst_355 = arith.constant 5.000000e-01 : f32
    %1066 = vector.broadcast %cst_355 : f32 to vector<8x128xf32>
    %1067 = arith.mulf %1066, %1065 : vector<8x128xf32>
    %1068 = math.tanh %1067 : vector<8x128xf32>
    %cst_356 = arith.constant 5.000000e-01 : f32
    %1069 = vector.broadcast %cst_356 : f32 to vector<8x128xf32>
    %1070 = arith.mulf %1069, %1068 : vector<8x128xf32>
    %cst_357 = arith.constant 5.000000e-01 : f32
    %1071 = vector.broadcast %cst_357 : f32 to vector<8x128xf32>
    %1072 = arith.addf %1070, %1071 : vector<8x128xf32>
    %1073 = vector.extract_strided_slice %1045 {offsets = [0, 72], sizes = [8, 56], strides = [1, 1]} : vector<8x128xf32> to vector<8x56xf32>
    %1074 = vector.extract_strided_slice %1045 {offsets = [0, 0], sizes = [8, 72], strides = [1, 1]} : vector<8x128xf32> to vector<8x72xf32>
    %1075 = tpu.concatenate %1073, %1074 in 1 : vector<8x56xf32>, vector<8x72xf32> -> vector<8x128xf32>
    %1076 = math.tanh %1075 : vector<8x128xf32>
    %1077 = arith.mulf %1062, %926 : vector<8x128xf32>
    %1078 = arith.mulf %1052, %1076 : vector<8x128xf32>
    %1079 = arith.addf %1077, %1078 : vector<8x128xf32>
    %1080 = math.tanh %1079 : vector<8x128xf32>
    %1081 = arith.mulf %1072, %1080 : vector<8x128xf32>
    %c56 = arith.constant 56 : index
    %c0_358 = arith.constant 0 : index
    %1082 = vector.load %arg13[%c56, %c0_358] : memref<64x384xf32, #tpu.memory_space<vmem>>, vector<8x384xf32>
    %c0_359 = arith.constant 0 : index
    %c0_360 = arith.constant 0 : index
    %1083 = vector.load %arg2[%c0_359, %c0_360] : memref<128x384xf32, #tpu.memory_space<vmem>>, vector<128x384xf32>
    %cst_361 = arith.constant dense<0.000000e+00> : vector<8x384xf32>
    %1084 = tpu.matmul %965, %1083, %cst_361 {dimension_numbers = #tpu.dot_dimension_numbers<[1], [0], [0], [1], [0, 0, 1, 1], [], []>} : vector<8x128xf32>, vector<128x384xf32>, vector<8x384xf32> -> vector<8x384xf32>
    %1085 = arith.addf %1082, %1084 : vector<8x384xf32>
    %1086 = vector.extract_strided_slice %1085 {offsets = [0, 0], sizes = [8, 128], strides = [1, 1]} : vector<8x384xf32> to vector<8x128xf32>
    %cst_362 = arith.constant 5.000000e-01 : f32
    %1087 = vector.broadcast %cst_362 : f32 to vector<8x128xf32>
    %1088 = arith.mulf %1087, %1086 : vector<8x128xf32>
    %1089 = math.tanh %1088 : vector<8x128xf32>
    %cst_363 = arith.constant 5.000000e-01 : f32
    %1090 = vector.broadcast %cst_363 : f32 to vector<8x128xf32>
    %1091 = arith.mulf %1090, %1089 : vector<8x128xf32>
    %cst_364 = arith.constant 5.000000e-01 : f32
    %1092 = vector.broadcast %cst_364 : f32 to vector<8x128xf32>
    %1093 = arith.addf %1091, %1092 : vector<8x128xf32>
    %1094 = vector.extract_strided_slice %1085 {offsets = [0, 90], sizes = [8, 128], strides = [1, 1]} : vector<8x384xf32> to vector<8x128xf32>
    %cst_365 = arith.constant 5.000000e-01 : f32
    %1095 = vector.broadcast %cst_365 : f32 to vector<8x128xf32>
    %1096 = arith.mulf %1095, %1094 : vector<8x128xf32>
    %1097 = math.tanh %1096 : vector<8x128xf32>
    %cst_366 = arith.constant 5.000000e-01 : f32
    %1098 = vector.broadcast %cst_366 : f32 to vector<8x128xf32>
    %1099 = arith.mulf %1098, %1097 : vector<8x128xf32>
    %cst_367 = arith.constant 5.000000e-01 : f32
    %1100 = vector.broadcast %cst_367 : f32 to vector<8x128xf32>
    %1101 = arith.addf %1099, %1100 : vector<8x128xf32>
    %1102 = vector.extract_strided_slice %1085 {offsets = [0, 180], sizes = [8, 128], strides = [1, 1]} : vector<8x384xf32> to vector<8x128xf32>
    %cst_368 = arith.constant 5.000000e-01 : f32
    %1103 = vector.broadcast %cst_368 : f32 to vector<8x128xf32>
    %1104 = arith.mulf %1103, %1102 : vector<8x128xf32>
    %1105 = math.tanh %1104 : vector<8x128xf32>
    %cst_369 = arith.constant 5.000000e-01 : f32
    %1106 = vector.broadcast %cst_369 : f32 to vector<8x128xf32>
    %1107 = arith.mulf %1106, %1105 : vector<8x128xf32>
    %cst_370 = arith.constant 5.000000e-01 : f32
    %1108 = vector.broadcast %cst_370 : f32 to vector<8x128xf32>
    %1109 = arith.addf %1107, %1108 : vector<8x128xf32>
    %1110 = vector.extract_strided_slice %1085 {offsets = [0, 270], sizes = [8, 114], strides = [1, 1]} : vector<8x384xf32> to vector<8x114xf32>
    %1111 = vector.extract_strided_slice %1085 {offsets = [0, 0], sizes = [8, 14], strides = [1, 1]} : vector<8x384xf32> to vector<8x14xf32>
    %1112 = tpu.concatenate %1110, %1111 in 1 : vector<8x114xf32>, vector<8x14xf32> -> vector<8x128xf32>
    %1113 = math.tanh %1112 : vector<8x128xf32>
    %1114 = arith.mulf %1101, %963 : vector<8x128xf32>
    %1115 = arith.mulf %1093, %1113 : vector<8x128xf32>
    %1116 = arith.addf %1114, %1115 : vector<8x128xf32>
    %1117 = math.tanh %1116 : vector<8x128xf32>
    %1118 = arith.mulf %1109, %1117 : vector<8x128xf32>
    %1119 = tpu.concatenate %1118, %1000 in 1 : vector<8x128xf32>, vector<8x128xf32> -> vector<8x256xf32>
    %c0_371 = arith.constant 0 : index
    %c0_372 = arith.constant 0 : index
    %1120 = vector.load %arg4[%c0_371, %c0_372] : memref<256x384xf32, #tpu.memory_space<vmem>>, vector<256x384xf32>
    %cst_373 = arith.constant dense<0.000000e+00> : vector<8x384xf32>
    %1121 = tpu.matmul %1119, %1120, %cst_373 {dimension_numbers = #tpu.dot_dimension_numbers<[1], [0], [0], [1], [0, 0, 1, 1], [], []>} : vector<8x256xf32>, vector<256x384xf32>, vector<8x384xf32> -> vector<8x384xf32>
    %1122 = arith.addf %1121, %7 : vector<8x384xf32>
    %1123 = vector.extract_strided_slice %1122 {offsets = [0, 0], sizes = [8, 128], strides = [1, 1]} : vector<8x384xf32> to vector<8x128xf32>
    %cst_374 = arith.constant 5.000000e-01 : f32
    %1124 = vector.broadcast %cst_374 : f32 to vector<8x128xf32>
    %1125 = arith.mulf %1124, %1123 : vector<8x128xf32>
    %1126 = math.tanh %1125 : vector<8x128xf32>
    %cst_375 = arith.constant 5.000000e-01 : f32
    %1127 = vector.broadcast %cst_375 : f32 to vector<8x128xf32>
    %1128 = arith.mulf %1127, %1126 : vector<8x128xf32>
    %cst_376 = arith.constant 5.000000e-01 : f32
    %1129 = vector.broadcast %cst_376 : f32 to vector<8x128xf32>
    %1130 = arith.addf %1128, %1129 : vector<8x128xf32>
    %1131 = vector.extract_strided_slice %1122 {offsets = [0, 66], sizes = [8, 128], strides = [1, 1]} : vector<8x384xf32> to vector<8x128xf32>
    %cst_377 = arith.constant 5.000000e-01 : f32
    %1132 = vector.broadcast %cst_377 : f32 to vector<8x128xf32>
    %1133 = arith.mulf %1132, %1131 : vector<8x128xf32>
    %1134 = math.tanh %1133 : vector<8x128xf32>
    %cst_378 = arith.constant 5.000000e-01 : f32
    %1135 = vector.broadcast %cst_378 : f32 to vector<8x128xf32>
    %1136 = arith.mulf %1135, %1134 : vector<8x128xf32>
    %cst_379 = arith.constant 5.000000e-01 : f32
    %1137 = vector.broadcast %cst_379 : f32 to vector<8x128xf32>
    %1138 = arith.addf %1136, %1137 : vector<8x128xf32>
    %1139 = vector.extract_strided_slice %1122 {offsets = [0, 132], sizes = [8, 128], strides = [1, 1]} : vector<8x384xf32> to vector<8x128xf32>
    %cst_380 = arith.constant 5.000000e-01 : f32
    %1140 = vector.broadcast %cst_380 : f32 to vector<8x128xf32>
    %1141 = arith.mulf %1140, %1139 : vector<8x128xf32>
    %1142 = math.tanh %1141 : vector<8x128xf32>
    %cst_381 = arith.constant 5.000000e-01 : f32
    %1143 = vector.broadcast %cst_381 : f32 to vector<8x128xf32>
    %1144 = arith.mulf %1143, %1142 : vector<8x128xf32>
    %cst_382 = arith.constant 5.000000e-01 : f32
    %1145 = vector.broadcast %cst_382 : f32 to vector<8x128xf32>
    %1146 = arith.addf %1144, %1145 : vector<8x128xf32>
    %1147 = vector.extract_strided_slice %1122 {offsets = [0, 198], sizes = [8, 128], strides = [1, 1]} : vector<8x384xf32> to vector<8x128xf32>
    %1148 = math.tanh %1147 : vector<8x128xf32>
    %1149 = arith.mulf %1138, %998 : vector<8x128xf32>
    %1150 = arith.mulf %1130, %1148 : vector<8x128xf32>
    %1151 = arith.addf %1149, %1150 : vector<8x128xf32>
    %1152 = math.tanh %1151 : vector<8x128xf32>
    %1153 = arith.mulf %1146, %1152 : vector<8x128xf32>
    %1154 = vector.extract_strided_slice %1153 {offsets = [0, 0], sizes = [8, 66], strides = [1, 1]} : vector<8x128xf32> to vector<8x66xf32>
    %1155 = vector.extract_strided_slice %1039 {offsets = [0, 0], sizes = [8, 62], strides = [1, 1]} : vector<8x128xf32> to vector<8x62xf32>
    %1156 = tpu.concatenate %1154, %1155 in 1 : vector<8x66xf32>, vector<8x62xf32> -> vector<8x128xf32>
    %c0_383 = arith.constant 0 : index
    %c0_384 = arith.constant 0 : index
    %1157 = vector.load %arg6[%c0_383, %c0_384] : memref<128x256xf32, #tpu.memory_space<vmem>>, vector<128x256xf32>
    %cst_385 = arith.constant dense<0.000000e+00> : vector<8x256xf32>
    %1158 = tpu.matmul %1156, %1157, %cst_385 {dimension_numbers = #tpu.dot_dimension_numbers<[1], [0], [0], [1], [0, 0, 1, 1], [], []>} : vector<8x128xf32>, vector<128x256xf32>, vector<8x256xf32> -> vector<8x256xf32>
    %1159 = arith.addf %1158, %8 : vector<8x256xf32>
    %1160 = vector.extract_strided_slice %1159 {offsets = [0, 0], sizes = [8, 128], strides = [1, 1]} : vector<8x256xf32> to vector<8x128xf32>
    %cst_386 = arith.constant 5.000000e-01 : f32
    %1161 = vector.broadcast %cst_386 : f32 to vector<8x128xf32>
    %1162 = arith.mulf %1161, %1160 : vector<8x128xf32>
    %1163 = math.tanh %1162 : vector<8x128xf32>
    %cst_387 = arith.constant 5.000000e-01 : f32
    %1164 = vector.broadcast %cst_387 : f32 to vector<8x128xf32>
    %1165 = arith.mulf %1164, %1163 : vector<8x128xf32>
    %cst_388 = arith.constant 5.000000e-01 : f32
    %1166 = vector.broadcast %cst_388 : f32 to vector<8x128xf32>
    %1167 = arith.addf %1165, %1166 : vector<8x128xf32>
    %1168 = vector.extract_strided_slice %1159 {offsets = [0, 48], sizes = [8, 128], strides = [1, 1]} : vector<8x256xf32> to vector<8x128xf32>
    %cst_389 = arith.constant 5.000000e-01 : f32
    %1169 = vector.broadcast %cst_389 : f32 to vector<8x128xf32>
    %1170 = arith.mulf %1169, %1168 : vector<8x128xf32>
    %1171 = math.tanh %1170 : vector<8x128xf32>
    %cst_390 = arith.constant 5.000000e-01 : f32
    %1172 = vector.broadcast %cst_390 : f32 to vector<8x128xf32>
    %1173 = arith.mulf %1172, %1171 : vector<8x128xf32>
    %cst_391 = arith.constant 5.000000e-01 : f32
    %1174 = vector.broadcast %cst_391 : f32 to vector<8x128xf32>
    %1175 = arith.addf %1173, %1174 : vector<8x128xf32>
    %1176 = vector.extract_strided_slice %1159 {offsets = [0, 96], sizes = [8, 128], strides = [1, 1]} : vector<8x256xf32> to vector<8x128xf32>
    %cst_392 = arith.constant 5.000000e-01 : f32
    %1177 = vector.broadcast %cst_392 : f32 to vector<8x128xf32>
    %1178 = arith.mulf %1177, %1176 : vector<8x128xf32>
    %1179 = math.tanh %1178 : vector<8x128xf32>
    %cst_393 = arith.constant 5.000000e-01 : f32
    %1180 = vector.broadcast %cst_393 : f32 to vector<8x128xf32>
    %1181 = arith.mulf %1180, %1179 : vector<8x128xf32>
    %cst_394 = arith.constant 5.000000e-01 : f32
    %1182 = vector.broadcast %cst_394 : f32 to vector<8x128xf32>
    %1183 = arith.addf %1181, %1182 : vector<8x128xf32>
    %1184 = vector.extract_strided_slice %1159 {offsets = [0, 144], sizes = [8, 112], strides = [1, 1]} : vector<8x256xf32> to vector<8x112xf32>
    %1185 = vector.extract_strided_slice %1159 {offsets = [0, 0], sizes = [8, 16], strides = [1, 1]} : vector<8x256xf32> to vector<8x16xf32>
    %1186 = tpu.concatenate %1184, %1185 in 1 : vector<8x112xf32>, vector<8x16xf32> -> vector<8x128xf32>
    %1187 = math.tanh %1186 : vector<8x128xf32>
    %1188 = arith.mulf %1175, %1037 : vector<8x128xf32>
    %1189 = arith.mulf %1167, %1187 : vector<8x128xf32>
    %1190 = arith.addf %1188, %1189 : vector<8x128xf32>
    %1191 = math.tanh %1190 : vector<8x128xf32>
    %1192 = arith.mulf %1183, %1191 : vector<8x128xf32>
    %1193 = vector.extract_strided_slice %1192 {offsets = [0, 0], sizes = [8, 48], strides = [1, 1]} : vector<8x128xf32> to vector<8x48xf32>
    %1194 = vector.extract_strided_slice %1081 {offsets = [0, 0], sizes = [8, 80], strides = [1, 1]} : vector<8x128xf32> to vector<8x80xf32>
    %1195 = tpu.concatenate %1193, %1194 in 1 : vector<8x48xf32>, vector<8x80xf32> -> vector<8x128xf32>
    %c0_395 = arith.constant 0 : index
    %c0_396 = arith.constant 0 : index
    %1196 = vector.load %arg8[%c0_395, %c0_396] : memref<128x128xf32, #tpu.memory_space<vmem>>, vector<128x128xf32>
    %cst_397 = arith.constant dense<0.000000e+00> : vector<8x128xf32>
    %1197 = tpu.matmul %1195, %1196, %cst_397 {dimension_numbers = #tpu.dot_dimension_numbers<[1], [0], [0], [1], [0, 0, 1, 1], [], []>} : vector<8x128xf32>, vector<128x128xf32>, vector<8x128xf32> -> vector<8x128xf32>
    %1198 = arith.addf %1197, %9 : vector<8x128xf32>
    %cst_398 = arith.constant 5.000000e-01 : f32
    %1199 = vector.broadcast %cst_398 : f32 to vector<8x128xf32>
    %1200 = arith.mulf %1199, %1198 : vector<8x128xf32>
    %1201 = math.tanh %1200 : vector<8x128xf32>
    %cst_399 = arith.constant 5.000000e-01 : f32
    %1202 = vector.broadcast %cst_399 : f32 to vector<8x128xf32>
    %1203 = arith.mulf %1202, %1201 : vector<8x128xf32>
    %cst_400 = arith.constant 5.000000e-01 : f32
    %1204 = vector.broadcast %cst_400 : f32 to vector<8x128xf32>
    %1205 = arith.addf %1203, %1204 : vector<8x128xf32>
    %1206 = vector.extract_strided_slice %1198 {offsets = [0, 24], sizes = [8, 104], strides = [1, 1]} : vector<8x128xf32> to vector<8x104xf32>
    %1207 = vector.extract_strided_slice %1198 {offsets = [0, 0], sizes = [8, 24], strides = [1, 1]} : vector<8x128xf32> to vector<8x24xf32>
    %1208 = tpu.concatenate %1206, %1207 in 1 : vector<8x104xf32>, vector<8x24xf32> -> vector<8x128xf32>
    %cst_401 = arith.constant 5.000000e-01 : f32
    %1209 = vector.broadcast %cst_401 : f32 to vector<8x128xf32>
    %1210 = arith.mulf %1209, %1208 : vector<8x128xf32>
    %1211 = math.tanh %1210 : vector<8x128xf32>
    %cst_402 = arith.constant 5.000000e-01 : f32
    %1212 = vector.broadcast %cst_402 : f32 to vector<8x128xf32>
    %1213 = arith.mulf %1212, %1211 : vector<8x128xf32>
    %cst_403 = arith.constant 5.000000e-01 : f32
    %1214 = vector.broadcast %cst_403 : f32 to vector<8x128xf32>
    %1215 = arith.addf %1213, %1214 : vector<8x128xf32>
    %1216 = vector.extract_strided_slice %1198 {offsets = [0, 48], sizes = [8, 80], strides = [1, 1]} : vector<8x128xf32> to vector<8x80xf32>
    %1217 = vector.extract_strided_slice %1198 {offsets = [0, 0], sizes = [8, 48], strides = [1, 1]} : vector<8x128xf32> to vector<8x48xf32>
    %1218 = tpu.concatenate %1216, %1217 in 1 : vector<8x80xf32>, vector<8x48xf32> -> vector<8x128xf32>
    %cst_404 = arith.constant 5.000000e-01 : f32
    %1219 = vector.broadcast %cst_404 : f32 to vector<8x128xf32>
    %1220 = arith.mulf %1219, %1218 : vector<8x128xf32>
    %1221 = math.tanh %1220 : vector<8x128xf32>
    %cst_405 = arith.constant 5.000000e-01 : f32
    %1222 = vector.broadcast %cst_405 : f32 to vector<8x128xf32>
    %1223 = arith.mulf %1222, %1221 : vector<8x128xf32>
    %cst_406 = arith.constant 5.000000e-01 : f32
    %1224 = vector.broadcast %cst_406 : f32 to vector<8x128xf32>
    %1225 = arith.addf %1223, %1224 : vector<8x128xf32>
    %1226 = vector.extract_strided_slice %1198 {offsets = [0, 72], sizes = [8, 56], strides = [1, 1]} : vector<8x128xf32> to vector<8x56xf32>
    %1227 = vector.extract_strided_slice %1198 {offsets = [0, 0], sizes = [8, 72], strides = [1, 1]} : vector<8x128xf32> to vector<8x72xf32>
    %1228 = tpu.concatenate %1226, %1227 in 1 : vector<8x56xf32>, vector<8x72xf32> -> vector<8x128xf32>
    %1229 = math.tanh %1228 : vector<8x128xf32>
    %1230 = arith.mulf %1215, %1079 : vector<8x128xf32>
    %1231 = arith.mulf %1205, %1229 : vector<8x128xf32>
    %1232 = arith.addf %1230, %1231 : vector<8x128xf32>
    %1233 = math.tanh %1232 : vector<8x128xf32>
    %1234 = arith.mulf %1225, %1233 : vector<8x128xf32>
    %c0_407 = arith.constant 0 : index
    %c0_408 = arith.constant 0 : index
    %1235 = vector.load %arg10[%c0_407, %c0_408] : memref<128x128xf32, #tpu.memory_space<vmem>>, vector<128x128xf32>
    %cst_409 = arith.constant dense<0.000000e+00> : vector<8x128xf32>
    %1236 = tpu.matmul %1234, %1235, %cst_409 {dimension_numbers = #tpu.dot_dimension_numbers<[1], [0], [0], [1], [0, 0, 1, 1], [], []>} : vector<8x128xf32>, vector<128x128xf32>, vector<8x128xf32> -> vector<8x128xf32>
    %c0_410 = arith.constant 0 : index
    %c0_411 = arith.constant 0 : index
    %1237 = vector.load %arg11[%c0_410, %c0_411] : memref<1x128xf32, #tpu.memory_space<vmem>>, vector<1x128xf32>
    %1238 = vector.broadcast %1237 : vector<1x128xf32> to vector<8x128xf32>
    %1239 = arith.addf %1236, %1238 : vector<8x128xf32>
    %c0_412 = arith.constant 0 : index
    %c0_413 = arith.constant 0 : index
    %1240 = vector.load %arg12[%c0_412, %c0_413] : memref<8x128xf32, #tpu.memory_space<vmem>>, vector<8x128xf32>
    tpu.vector_store %arg12[%c0_412, %c0_413], %1239 {strides = array<i32>} : memref<8x128xf32, #tpu.memory_space<vmem>>, vector<8x128xf32>,
    return
  }
}

</mosaic_0001>

<bundles_post_ra>
// kernel: tpu_custom_call.1
= control target key start
LH: loop header
LB: loop body
LE: loop exit
PB: predicated region body
PF: predicated region fallthrough
CT: control target
= control target key end

     0   :  { %17 = vsyncpa [#allocation4], 0  ;;  %s9607_s0 = inlined_call_operand.hbm [shape: f32[64,128], index: 0, kind: input, shape index: {}]   ;;  %s9608_s1 = inlined_call_operand.hbm [shape: f32[128,384], index: 1, kind: input, shape index: {}]   ;;  %s9609_s2 = inlined_call_operand.hbm [shape: f32[128,384], index: 2, kind: input, shape index: {}]   ;;  %s9610_s3 = inlined_call_operand.hbm [shape: f32[1,384], index: 3, kind: input, shape index: {}]   ;;  %s9611_s4 = inlined_call_operand.hbm [shape: f32[256,384], index: 4, kind: input, shape index: {}]   ;;  %s9612_s5 = inlined_call_operand.hbm [shape: f32[8,384], index: 5, kind: input, shape index: {}]   ;;  %s9613_s6 = inlined_call_operand.hbm [shape: f32[128,256], index: 6, kind: input, shape index: {}]   ;;  %s9614_s7 = inlined_call_operand.hbm [shape: f32[8,256], index: 7, kind: input, shape index: {}]   ;;  %s9615_s8 = inlined_call_operand.hbm [shape: f32[128,128], index: 8, kind: input, shape index: {}]   ;;  %s9616_s9 = inlined_call_operand.vmem [shape: f32[8,128], index: 9, kind: input, shape index: {}]   ;;  %s9617_s10 = inlined_call_operand.hbm [shape: f32[128,128], index: 10, kind: input, shape index: {}]   ;;  %s9618_s11 = inlined_call_operand.vmem [shape: f32[1,128], index: 11, kind: input, shape index: {}]   ;;  %s9619_s12 = inlined_call_operand.hbm [shape: f32[8,128], index: 12, kind: output, shape index: {}]  }
   0x1   :  { %18 = vsyncpa [#allocation7], 0 }
   0x2   :  { %19 = vsyncpa [#allocation10], 0 }
   0x3   :  { %20 = vsyncpa [#allocation13], 0 }
   0x4   :  { %21 = vsyncpa [#allocation16], 0 }
   0x5   :  { %22 = vsyncpa [#allocation19], 0  ;;  %s41_s23 = sshll.u32 %s9608_s1, 4  ;;  %s42_s23 = int_to_ptr.hbm [resolvable:$true] %s41_s23 }
   0x6   :  { %23 = vsyncpa [#allocation5], 0  ;;  %s5605_s24 = smov [#allocation6]   ;;  %s68_s28 = sshll.u32 %s9610_s3, 4  ;;  %s69_s28 = int_to_ptr.hbm [resolvable:$true] %s68_s28 }
   0x7   :  { %s43_s25 = sshll.u32 %s5605_s24, 4  ;;  %s5606_s29 = smov 384   ;;  %s44_s25 = int_to_ptr.vmem [resolvable:$true] %s43_s25 }
   0x8   :  { %s5607_s30 = smov 24   ;;  %s5608_s13 = smov [#allocation9]  }
   0x9   :  { %49 = dma.hbm_to_vmem [thread:$0]  %s42_s23, 6144, %s44_s25, [#allocation7], %s5606_s29, %s5606_s29, %s5607_s30  }
   0xa   :  { %s70_s14 = sshll.u32 %s5608_s13, 4  ;;  %s92_s16 = sshll.u32 %s9612_s5, 4  ;;  %s71_s14 = int_to_ptr.vmem [resolvable:$true] %s70_s14  ;;  %s93_s16 = int_to_ptr.hbm [resolvable:$true] %s92_s16 }
   0xb   :  { %73 = dma.hbm_to_vmem [thread:$0]  %s69_s28, 48, %s71_s14, [#allocation10]  }
   0xc   :  { %s116_s3 = sshll.u32 %s9614_s7, 4  ;;  %s5609_s19 = smov [#allocation12]   ;;  %s117_s3 = int_to_ptr.hbm [resolvable:$true] %s116_s3 }
   0xd   :  { %s94_s20 = sshll.u32 %s5609_s19, 4  ;;  %s5610_s21 = smov [#allocation15]   ;;  %s95_s20 = int_to_ptr.vmem [resolvable:$true] %s94_s20 }
   0xe   :  { %97 = dma.hbm_to_vmem [thread:$0]  %s93_s16, 384, %s95_s20, [#allocation13]  }
   0xf   :  { %s118_s22 = sshll.u32 %s5610_s21, 4  ;;  %s28_s25 = sshll.u32 %s9607_s0, 4  ;;  %s119_s22 = int_to_ptr.vmem [resolvable:$true] %s118_s22  ;;  %s29_s25 = int_to_ptr.hbm [resolvable:$true] %s28_s25 }
  0x10   :  { %121 = dma.hbm_to_vmem [thread:$0]  %s117_s3, 256, %s119_s22, [#allocation16]  }
  0x11   :  { %s5611_s5 = smov [#allocation3]   ;;  %s54_s7 = sshll.u32 %s9609_s2, 4  ;;  %s55_s7 = int_to_ptr.hbm [resolvable:$true] %s54_s7 }
  0x12   :  { %s30_s26 = sshll.u32 %s5611_s5, 4  ;;  %s5612_s13 = smov 128   ;;  %s31_s26 = int_to_ptr.vmem [resolvable:$true] %s30_s26 }
  0x13   :  { %s5613_s14 = smov 8   ;;  %s5614_s15 = smov [#allocation8]  }
  0x14   :  { %36 = dma.hbm_to_vmem [thread:$0]  %s29_s25, 1024, %s31_s26, [#allocation4], %s5612_s13, %s5612_s13, %s5613_s14  }
  0x15   :  { %s56_s1 = sshll.u32 %s5614_s15, 4  ;;  %s78_s17 = sshll.u32 %s9611_s4, 4  ;;  %s57_s1 = int_to_ptr.vmem [resolvable:$true] %s56_s1  ;;  %s79_s17 = int_to_ptr.hbm [resolvable:$true] %s78_s17 }
  0x16   :  { %62 = dma.hbm_to_vmem [thread:$0]  %s55_s7, 6144, %s57_s1, [#allocation7], %s5606_s29, %s5606_s29, %s5607_s30  }
  0x17   :  { %s102_s3 = sshll.u32 %s9613_s6, 4  ;;  %s5615_s19 = smov [#allocation11]   ;;  %s103_s3 = int_to_ptr.hbm [resolvable:$true] %s102_s3 }
  0x18   :  { %s80_s20 = sshll.u32 %s5615_s19, 4  ;;  %s5616_s21 = smov [#allocation14]   ;;  %s81_s20 = int_to_ptr.vmem [resolvable:$true] %s80_s20 }
  0x19   :  { %86 = dma.hbm_to_vmem [thread:$0]  %s79_s17, 12288, %s81_s20, [#allocation10], %s5606_s29, %s5606_s29, %s5607_s30  }
  0x1a   :  { %s104_s4 = sshll.u32 %s5616_s21, 4  ;;  %s5617_s22 = smov 256   ;;  %s105_s4 = int_to_ptr.vmem [resolvable:$true] %s104_s4 }
  0x1b   :  { %s5618_s23 = smov 16   ;;  %s126_s5 = sshll.u32 %s9615_s8, 4  ;;  %s127_s5 = int_to_ptr.hbm [resolvable:$true] %s126_s5 }
  0x1c   :  { %110 = dma.hbm_to_vmem [thread:$0]  %s103_s3, 4096, %s105_s4, [#allocation13], %s5617_s22, %s5617_s22, %s5618_s23  }
  0x1d   :  { %s5619_s6 = smov [#allocation17]   ;;  %s141_s7 = sshll.u32 %s9617_s10, 4  ;;  %s142_s7 = int_to_ptr.hbm [resolvable:$true] %s141_s7 }
  0x1e   :  { %s128_s26 = sshll.u32 %s5619_s6, 4  ;;  %s5620_s29 = smov [#allocation18]   ;;  %s129_s26 = int_to_ptr.vmem [resolvable:$true] %s128_s26 }
  0x1f   :  { %134 = dma.hbm_to_vmem [thread:$0]  %s127_s5, 2048, %s129_s26, [#allocation16], %s5612_s13, %s5612_s13, %s5613_s14  }
  0x20   :  { %s143_s30 = sshll.u32 %s5620_s29, 4  ;;  %s144_s30 = int_to_ptr.vmem [resolvable:$true] %s143_s30 }
  0x21   :  { %149 = dma.hbm_to_vmem [thread:$0]  %s142_s7, 2048, %s144_s30, [#allocation19], %s5612_s13, %s5612_s13, %s5613_s14  }
  0x22   :  { %5591 = dma.done.wait [#allocation4], 1024  }
  0x23   :  { %5592 = vsyncadd [#allocation4], 4294966272 }
  0x24   :  { %5593 = dma.done.wait [#allocation7], 12288  }
  0x25   :  { %5594 = vsyncadd [#allocation7], 4294955008 }
  0x26   :  { %5595 = dma.done.wait [#allocation10], 12336  }
  0x27   :  { %5596 = vsyncadd [#allocation10], 4294954960 }
  0x28   :  { %5597 = dma.done.wait [#allocation13], 4480  }
  0x29   :  { %5598 = vsyncadd [#allocation13], 4294962816 }
  0x2a   :  { %5599 = dma.done.wait [#allocation16], 2304  }
  0x2b   :  { %5600 = vsyncadd [#allocation16], 4294964992 }
  0x2c   :  { %5601 = dma.done.wait [#allocation19], 2048  }
  0x2d   :  { %5602 = vsyncadd [#allocation19], 4294965248  ;;  %v245_v0 = vld [vmem:[#allocation6 + $0x168] sm:$0xff]  ;;  %v242_v2 = vld [vmem:[#allocation6 + $0x150] sm:$0xff]  ;;  %v9620_v38 = vmov 0.0   ;;  %s5622_s8 = smov 114  }
  0x2e   :  { %v5749_v1 = vld [vmem:[#allocation8 + $0x168] sm:$0xff]  ;;  %256 = vmatpush.msra.mxu0 %v245_v0  ;;  %v5752_v3 = vld [vmem:[#allocation8 + $0x150] sm:$0xff]  ;;  %v239_v4 = vld [vmem:[#allocation6 + $0x138] sm:$0xff]  ;;  %vm543_vm0 = vcmask 932864   ;;  %s5623_s10 = smov 90   ;;  %vm563_vm1 = vcmask 736256  }
  0x2f   :  { %460 = vmatpush.msra.mxu3 %v5749_v1  ;;  %v5754_v5 = vld [vmem:[#allocation8 + $0x138] sm:$0xff]  ;;  %v236_v6 = vld [vmem:[#allocation6 + $0x120] sm:$0xff]  ;;  %v233_v8 = vld [vmem:[#allocation6 + $0x108] sm:$0xff]  ;;  %s5624_s13 = smov 76   ;;  %vm575_vm2 = vcmask 621568   ;;  %s5625_s14 = smov 58  }
  0x30   :  { %257 = vmatpush.msra.mxu0 %v242_v2  ;;  %v5757_v7 = vld [vmem:[#allocation8 + $0x120] sm:$0xff]  ;;  %v5760_v9 = vld [vmem:[#allocation8 + $0x108] sm:$0xff]  ;;  %v230_v10 = vld [vmem:[#allocation6 + $0xf0] sm:$0xff]  ;;  %vm816_vm3 = vcmask 474112   ;;  %s5626_s15 = smov 66   ;;  %vm834_vm4 = vcmask 539648  }
  0x31   :  { %461 = vmatpush.msra.mxu3 %v5752_v3  ;;  %v5763_v11 = vld [vmem:[#allocation8 + $0xf0] sm:$0xff]  ;;  %v227_v12 = vld [vmem:[#allocation6 + $0xd8] sm:$0xff]  ;;  %v224_v14 = vld [vmem:[#allocation6 + $0xc0] sm:$0xff]  ;;  %s5627_s1 = smov 124   ;;  %s5628_s0 = smov 112   ;;  %vm933_vm5 = vcmask 916480  }
  0x32   :  { %258 = vmatpush.msra.mxu0 %v239_v4  ;;  %v5766_v13 = vld [vmem:[#allocation8 + $0xd8] sm:$0xff]  ;;  %v5769_v15 = vld [vmem:[#allocation8 + $0xc0] sm:$0xff]  ;;  %v221_v16 = vld [vmem:[#allocation6 + $0xa8] sm:$0xff]  ;;  %s5629_s16 = smov 48   ;;  %vm953_vm6 = vcmask 392192   ;;  %s5630_s17 = smov 32  }
  0x33   :  { %462 = vmatpush.msra.mxu3 %v5754_v5  ;;  %v5772_v17 = vld [vmem:[#allocation8 + $0xa8] sm:$0xff]  ;;  %v218_v18 = vld [vmem:[#allocation6 + $0x90] sm:$0xff]  ;;  %v215_v20 = vld [vmem:[#allocation6 + $0x78] sm:$0xff]  ;;  %vm1154_vm7 = vcmask 1014784   ;;  %vm965_vm8 = vcmask 261120   ;;  %s5631_s2 = smov 98  }
  0x34   :  { %259 = vmatpush.msra.mxu0 %v236_v6  ;;  %v5775_v19 = vld [vmem:[#allocation8 + $0x90] sm:$0xff]  ;;  %v5778_v21 = vld [vmem:[#allocation8 + $0x78] sm:$0xff]  ;;  %v212_v22 = vld [vmem:[#allocation6 + $0x60] sm:$0xff]  ;;  %vm1329_vm9 = vcmask 801792   ;;  %s5632_s19 = smov 104   ;;  %s5633_s20 = smov 56  }
  0x35   :  { %463 = vmatpush.msra.mxu3 %v5757_v7  ;;  %v5781_v23 = vld [vmem:[#allocation8 + $0x60] sm:$0xff]  ;;  %v209_v24 = vld [vmem:[#allocation6 + $0x48] sm:$0xff]  ;;  %v206_v26 = vld [vmem:[#allocation6 + $0x30] sm:$0xff]  ;;  %s5634_s21 = smov 80   ;;  %s5635_s26 = smov [#allocation20]  }
  0x36   :  { %260 = vmatpush.msra.mxu0 %v233_v8  ;;  %v5784_v25 = vld [vmem:[#allocation8 + $0x48] sm:$0xff]  ;;  %v5787_v27 = vld [vmem:[#allocation8 + $0x30] sm:$0xff]  ;;  %v247_v28 = vld [vmem:[#allocation6 + $0x178] sm:$0xff]  ;;  %s4148_s27 = sshll.u32 %s5635_s26, 4  ;;  %s4150_s29 = sshll.u32 %s9619_s12, 4  ;;  %s4149_s27 = int_to_ptr.vmem [resolvable:$true] %s4148_s27  ;;  %s4151_s29 = int_to_ptr.hbm [resolvable:$true] %s4150_s29 }
  0x37   :  { %464 = vmatpush.msra.mxu3 %v5760_v9  ;;  %v244_v29 = vld [vmem:[#allocation6 + $0x160] sm:$0xff]  ;;  %v203_v30 = vld [vmem:[#allocation6 + $0x18] sm:$0xff]  ;;  %338 = vmatpush.msra.mxu2 %v247_v28  ;;  %v241_v32 = vld [vmem:[#allocation6 + $0x148] sm:$0xff] }
  0x38   :  { %261 = vmatpush.msra.mxu0 %v230_v10  ;;  %v5790_v31 = vld [vmem:[#allocation8 + $0x18] sm:$0xff]  ;;  %v200_v33 = vld [vmem:[#allocation6] sm:$0xff]  ;;  %v238_v37 = vld [vmem:[#allocation6 + $0x130] sm:$0xff] }
  0x39   :  { %465 = vmatpush.msra.mxu3 %v5763_v11  ;;  %v5793_v34 = vld [vmem:[#allocation8] sm:$0xff]  ;;  %339 = vmatpush.msra.mxu2 %v244_v29  ;;  %v459_v36 = vld [vmem:[#allocation8 + $0x178] sm:$0xff]  ;;  %v453_v41 = vld [vmem:[#allocation8 + $0x148] sm:$0xff] }
  0x3a   :  { %262 = vmatpush.msra.mxu0 %v227_v12  ;;  %v5796_v35 = vld [vmem:[#allocation3] sm:$0xff]  ;;  %v235_v40 = vld [vmem:[#allocation6 + $0x118] sm:$0xff]  ;;  %v450_v43 = vld [vmem:[#allocation8 + $0x130] sm:$0xff] }
  0x3b   :  { %466 = vmatpush.msra.mxu3 %v5766_v13  ;;  %340 = vmatpush.msra.mxu2 %v241_v32  ;;  %v456_v39 = vld [vmem:[#allocation8 + $0x160] sm:$0xff]  ;;  %v229_v44 = vld [vmem:[#allocation6 + $0xe8] sm:$0xff]  ;;  %v447_v46 = vld [vmem:[#allocation8 + $0x118] sm:$0xff] }
  0x3c   :  { %263 = vmatpush.msra.mxu0 %v224_v14  ;;  %v232_v42 = vld [vmem:[#allocation6 + $0x100] sm:$0xff]  ;;  %v5801_v45 = vld [vmem:[#allocation3 + $0x8] sm:$0xff]  ;;  %v226_v47 = vld [vmem:[#allocation6 + $0xd0] sm:$0xff] }
  0x3d   :  { %467 = vmatpush.msra.mxu3 %v5769_v15  ;;  %341 = vmatpush.msra.mxu2 %v238_v37  ;;  %v444_v48 = vld [vmem:[#allocation8 + $0x100] sm:$0xff]  ;;  %v223_v49 = vld [vmem:[#allocation6 + $0xb8] sm:$0xff]  ;;  %v441_v50 = vld [vmem:[#allocation8 + $0xe8] sm:$0xff] }
  0x3e   :  { %264 = vmatpush.msra.mxu0 %v221_v16  ;;  %v220_v51 = vld [vmem:[#allocation6 + $0xa0] sm:$0xff]  ;;  %v438_v52 = vld [vmem:[#allocation8 + $0xd0] sm:$0xff]  ;;  %v217_v53 = vld [vmem:[#allocation6 + $0x88] sm:$0xff] }
  0x3f   :  { %468 = vmatpush.msra.mxu3 %v5772_v17  ;;  %342 = vmatpush.msra.mxu2 %v235_v40  ;;  %v5804_v54 = vld [vmem:[#allocation3 + $0x10] sm:$0xff]  ;;  %v435_v55 = vld [vmem:[#allocation8 + $0xb8] sm:$0xff]  ;;  %v432_v57 = vld [vmem:[#allocation8 + $0xa0] sm:$0xff] }
  0x40   :  { %265 = vmatpush.msra.mxu0 %v218_v18  ;;  %v214_v56 = vld [vmem:[#allocation6 + $0x70] sm:$0xff]  ;;  %v211_v58 = vld [vmem:[#allocation6 + $0x58] sm:$0xff]  ;;  %v429_v59 = vld [vmem:[#allocation8 + $0x88] sm:$0xff] }
  0x41   :  { %469 = vmatpush.msra.mxu3 %v5775_v19  ;;  %343 = vmatpush.msra.mxu2 %v232_v42  ;;  %v208_v60 = vld [vmem:[#allocation6 + $0x40] sm:$0xff]  ;;  %v426_v61 = vld [vmem:[#allocation8 + $0x70] sm:$0xff]  ;;  %v205_v62 = vld [vmem:[#allocation6 + $0x28] sm:$0xff] }
  0x42   :  { %266 = vmatpush.msra.mxu0 %v215_v20  ;;  %v5807_v63 = vld [vmem:[#allocation3 + $0x18] sm:$0xff]  ;;  %v202_v2 = vld [vmem:[#allocation6 + $0x10] sm:$0xff]  ;;  %v420_v4 = vld [vmem:[#allocation8 + $0x40] sm:$0xff] }
  0x43   :  { %470 = vmatpush.msra.mxu3 %v5778_v21  ;;  %344 = vmatpush.msra.mxu2 %v229_v44  ;;  %v423_v0 = vld [vmem:[#allocation8 + $0x58] sm:$0xff]  ;;  %v417_v6 = vld [vmem:[#allocation8 + $0x28] sm:$0xff]  ;;  %v414_v8 = vld [vmem:[#allocation8 + $0x10] sm:$0xff] }
  0x44   :  { %267 = vmatpush.msra.mxu0 %v212_v22  ;;  %v5811_v10 = vld [vmem:[#allocation3 + $0x20] sm:$0xff]  ;;  %v5815_v12 = vld [vmem:[#allocation3 + $0x28] sm:$0xff]  ;;  %v5819_v14 = vld [vmem:[#allocation3 + $0x30] sm:$0xff] }
  0x45   :  { %471 = vmatpush.msra.mxu3 %v5781_v23  ;;  %345 = vmatpush.msra.mxu2 %v226_v47  ;;  %v5823_v16 = vld [vmem:[#allocation3 + $0x38] sm:$0xff]  ;;  %v458_v29 = vld [vmem:[#allocation8 + $0x170] sm:$0xff]  ;;  %v452_v37 = vld [vmem:[#allocation8 + $0x140] sm:$0xff] }
  0x46   :  { %268 = vmatpush.msra.mxu0 %v209_v24  ;;  %v246_v32 = vld [vmem:[#allocation6 + $0x170] sm:$0xff]  ;;  %v449_v40 = vld [vmem:[#allocation8 + $0x128] sm:$0xff]  ;;  %v443_v44 = vld [vmem:[#allocation8 + $0xf8] sm:$0xff] }
  0x47   :  { %472 = vmatpush.msra.mxu3 %v5784_v25  ;;  %346 = vmatpush.msra.mxu2 %v223_v49  ;;  %v446_v42 = vld [vmem:[#allocation8 + $0x110] sm:$0xff]  ;;  %v5845_v47 = vld [vmem:[#allocation9] sm:$0x7] }
  0x48   :  { %269 = vmatpush.msra.mxu0 %v206_v26  ;;  %297 = vmatpush.msra.mxu1 %v246_v32  ;;  %v5849_v49 = vld [vmem:[#allocation8 + $0xe0] sm:$0xff] }
  0x49   :  { %473 = vmatpush.msra.mxu3 %v5787_v27  ;;  %347 = vmatpush.msra.mxu2 %v220_v51  ;;  %v5852_v51 = vperm.slane %v5845_v47, 2 }
  0x4a   :  { %270 = vmatpush.msra.mxu0 %v203_v30  ;;  %v455_v30 = vld [vmem:[#allocation8 + $0x158] sm:$0xff] }
  0x4b   :  { %474 = vmatpush.msra.mxu3 %v5790_v31  ;;  %348 = vmatpush.msra.mxu2 %v217_v53  ;;  %10053 = vst [vmem:[#allocation35_spill] sm:$0xff] %v5852_v51  ;;  %v5854_v53 = vld [vmem:[#allocation8 + $0xc8] sm:$0xff] }
  0x4c   :  { %271 = vmatpush.msra.mxu0 %v200_v33  ;;  %v243_v33 = vld [vmem:[#allocation6 + $0x158] sm:$0xff] }
  0x4d   :  { %475 = vmatpush.msra.mxu3 %v5793_v34  ;;  %272 = vmatmul.f32.vlgmr.msra.gmra.mxu0 %v5796_v35 }
  0x4e   :  { %476 = vmatmul.f32.vlgmr.msra.gmra.mxu3 %v9620_v38  ;;  %500 = vmatpush.msrb.mxu0 %v459_v36 }
  0x4f   :  { %349 = vmatpush.msra.mxu2 %v214_v56  ;;  %480 = vmatpush.msrb.mxu3 %v458_v29  ;;  %v5857_v56 = vld [vmem:[#allocation8 + $0xb0] sm:$0xff] }
  0x50   :  { %501 = vmatpush.msrb.mxu0 %v456_v39  ;;  %v240_v39 = vld [vmem:[#allocation6 + $0x140] sm:$0xff]  ;;  %298 = vmatpush.msra.mxu1 %v243_v33  ;;  %v5877_v29 = vld [vmem:[#allocation8 + $0x50] sm:$0xff]  ;;  %v5880_v33 = vld [vmem:[#allocation8 + $0x38] sm:$0xff] }
  0x51   :  { %350 = vmatpush.msra.mxu2 %v211_v58  ;;  %481 = vmatpush.msrb.mxu3 %v455_v30  ;;  %v210_v30 = vld [vmem:[#allocation6 + $0x50] sm:$0xff] }
  0x52   :  { %502 = vmatpush.msrb.mxu0 %v453_v41  ;;  %v237_v41 = vld [vmem:[#allocation6 + $0x128] sm:$0xff]  ;;  %299 = vmatpush.msra.mxu1 %v240_v39  ;;  %v207_v39 = vld [vmem:[#allocation6 + $0x38] sm:$0xff] }
  0x53   :  { %351 = vmatpush.msra.mxu2 %v208_v60  ;;  %482 = vmatpush.msrb.mxu3 %v452_v37  ;;  %v219_v60 = vld [vmem:[#allocation6 + $0x98] sm:$0xff] }
  0x54   :  { %503 = vmatpush.msrb.mxu0 %v450_v43  ;;  %v234_v43 = vld [vmem:[#allocation6 + $0x110] sm:$0xff]  ;;  %300 = vmatpush.msra.mxu1 %v237_v41 }
  0x55   :  { %275 = vmatmul.f32.gmra.mxu0 %v5801_v45  ;;  %352 = vmatpush.msra.mxu2 %v205_v62  ;;  %v5864_v62 = vld [vmem:[#allocation8 + $0x80] sm:$0xff] }
  0x56   :  { %504 = vmatpush.msrb.mxu0 %v447_v46  ;;  %483 = vmatpush.msrb.mxu3 %v449_v40  ;;  %v231_v46 = vld [vmem:[#allocation6 + $0xf8] sm:$0xff]  ;;  %v5885_v40 = vld [vmem:[#allocation8 + $0x20] sm:$0xff] }
  0x57   :  { %353 = vmatpush.msra.mxu2 %v202_v2  ;;  %301 = vmatpush.msra.mxu1 %v234_v43  ;;  %v216_v2 = vld [vmem:[#allocation6 + $0x80] sm:$0xff]  ;;  %10055 = vst [vmem:[#allocation37_spill] sm:$0xff] %v5885_v40  ;;  %v5888_v43 = vld [vmem:[#allocation8 + $0x8] sm:$0xff] }
  0x58   :  { %505 = vmatpush.msrb.mxu0 %v444_v48  ;;  %354 = vmatmul.f32.vlgmr.msra.gmra.mxu2 %v5796_v35  ;;  %10056 = vst [vmem:[#allocation38_spill] sm:$0xff] %v5888_v43 }
  0x59   :  { %484 = vmatpush.msrb.mxu3 %v446_v42  ;;  %302 = vmatpush.msra.mxu1 %v231_v46  ;;  %v204_v42 = vld [vmem:[#allocation6 + $0x20] sm:$0xff] }
  0x5a   :  { %506 = vmatpush.msrb.mxu0 %v441_v50  ;;  %v228_v50 = vld [vmem:[#allocation6 + $0xe0] sm:$0xff] }
  0x5b   :  { %485 = vmatpush.msrb.mxu3 %v443_v44  ;;  %303 = vmatpush.msra.mxu1 %v228_v50  ;;  %v201_v44 = vld [vmem:[#allocation6 + $0x8] sm:$0xff] }
  0x5c   :  { %507 = vmatpush.msrb.mxu0 %v438_v52 }
  0x5d   :  { %278 = vmatmul.f32.gmra.mxu0 %v5804_v54  ;;  %486 = vmatpush.msrb.mxu3 %v5849_v49 }
  0x5e   :  { %508 = vmatpush.msrb.mxu0 %v435_v55  ;;  %v225_v55 = vld [vmem:[#allocation6 + $0xc8] sm:$0xff] }
  0x5f   :  { %487 = vmatpush.msrb.mxu3 %v5854_v53  ;;  %304 = vmatpush.msra.mxu1 %v225_v55 }
  0x60   :  { %509 = vmatpush.msrb.mxu0 %v432_v57  ;;  %357 = vmatmul.f32.gmra.mxu2 %v5801_v45  ;;  %v222_v57 = vld [vmem:[#allocation6 + $0xb0] sm:$0xff] }
  0x61   :  { %488 = vmatpush.msrb.mxu3 %v5857_v56  ;;  %305 = vmatpush.msra.mxu1 %v222_v57 }
  0x62   :  { %510 = vmatpush.msrb.mxu0 %v429_v59  ;;  %v5861_v59 = vld [vmem:[#allocation8 + $0x98] sm:$0xff] }
  0x63   :  { %489 = vmatpush.msrb.mxu3 %v5861_v59  ;;  %306 = vmatpush.msra.mxu1 %v219_v60 }
  0x64   :  { %511 = vmatpush.msrb.mxu0 %v426_v61 }
  0x65   :  { %281 = vmatmul.f32.gmra.mxu0 %v5807_v63  ;;  %490 = vmatpush.msrb.mxu3 %v5864_v62 }
  0x66   :  { %512 = vmatpush.msrb.mxu0 %v423_v0  ;;  %307 = vmatpush.msra.mxu1 %v216_v2 }
  0x68   :  { %513 = vmatpush.msrb.mxu0 %v420_v4  ;;  %360 = vmatmul.f32.gmra.mxu2 %v5804_v54  ;;  %v5869_v4 = vld [vmem:[#allocation8 + $0x68] sm:$0xff] }
  0x69   :  { %491 = vmatpush.msrb.mxu3 %v5869_v4 }
  0x6a   :  { %514 = vmatpush.msrb.mxu0 %v417_v6  ;;  %v5872_v6 = vperm.slane %v5845_v47, 0 }
  0x6b   :  { %492 = vmatpush.msrb.mxu3 %v5877_v29 }
  0x6c   :  { %515 = vmatpush.msrb.mxu0 %v414_v8  ;;  %10054 = vst [vmem:[#allocation36_spill] sm:$0xff] %v5872_v6  ;;  %v213_v8 = vld [vmem:[#allocation6 + $0x68] sm:$0xff] }
  0x6d   :  { %284 = vmatmul.f32.gmra.mxu0 %v5811_v10  ;;  %308 = vmatpush.msra.mxu1 %v213_v8 }
  0x6e   :  { %493 = vmatpush.msrb.mxu3 %v5880_v33 }
  0x6f   :  { %309 = vmatpush.msra.mxu1 %v210_v30 }
  0x70   :  { %363 = vmatmul.f32.gmra.mxu2 %v5807_v63  ;;  %494 = vmatpush.msrb.mxu3 %v5885_v40  ;;  %v6079_v40 = vld [vmem:[#allocation11 + $0x218] sm:$0xff] }
  0x71   :  { %310 = vmatpush.msra.mxu1 %v207_v39 }
  0x72   :  { %495 = vmatpush.msrb.mxu3 %v5888_v43  ;;  %v6070_v43 = vld [vmem:[#allocation11 + $0x230] sm:$0xff] }
  0x73   :  { %311 = vmatpush.msra.mxu1 %v204_v42  ;;  %496 = vmatmul.f32.vlgmr.msrb.gmra.mxu3 %v9620_v38  ;;  %v5919_v42 = vld [vmem:[#allocation11 + $0x2e8] sm:$0xff] }
  0x74   :  { %694 = vmatpush.msrb.mxu2 %v5919_v42 }
  0x75   :  { %287 = vmatmul.f32.gmra.mxu0 %v5815_v12  ;;  %312 = vmatpush.msra.mxu1 %v201_v44  ;;  %v5921_v44 = vld [vmem:[#allocation11 + $0x2d0] sm:$0xff] }
  0x76   :  { %313 = vmatmul.f32.vlgmr.msra.gmra.mxu1 %v5796_v35  ;;  %695 = vmatpush.msrb.mxu2 %v5921_v44 }
  0x78   :  { %366 = vmatmul.f32.gmra.mxu2 %v5811_v10 }
  0x7d   :  { %290 = vmatmul.f32.gmra.mxu0 %v5819_v14 }
  0x7e   :  { %316 = vmatmul.f32.gmra.mxu1 %v5801_v45 }
  0x80   :  { %369 = vmatmul.f32.gmra.mxu2 %v5815_v12 }
  0x85   :  { %293 = vmatmul.f32.gmra.mxu0 %v5823_v16 }
  0x86   :  { %319 = vmatmul.f32.gmra.mxu1 %v5804_v54 }
  0x88   :  { %372 = vmatmul.f32.gmra.mxu2 %v5819_v14 }
  0x8d   :  { %516 = vmatmul.f32.vlgmr.msrb.gmra.mxu0 %v9620_v38  ;;  %v5966_v38 = vld [vmem:[#allocation11 + $0x180] sm:$0xff] }
  0x8e   :  { %322 = vmatmul.f32.gmra.mxu1 %v5807_v63 }
  0x90   :  { %375 = vmatmul.f32.gmra.mxu2 %v5823_v16 }
  0x96   :  { %325 = vmatmul.f32.gmra.mxu1 %v5811_v10  ;;  %v5905_v10 = vperm.slane %v5845_v47, 1 }
  0x98   :  { %10057 = vst [vmem:[#allocation39_spill] sm:$0xff] %v5905_v10 }
  0x9e   :  { %328 = vmatmul.f32.gmra.mxu1 %v5815_v12 }
  0xa6   :  { %331 = vmatmul.f32.gmra.mxu1 %v5819_v14 }
  0xae   :  { %334 = vmatmul.f32.gmra.mxu1 %v5823_v16 }
  0xca   :  { %v5831_v18 = vpop.f32.mrf.mxu0 }
  0xcb   :  { %v274_v37 = vadd.f32 %v5831_v18, %v5872_v6  ;;  %v6020_v6 = vld [vmem:[#allocation11 + $0x250] sm:$0xff] }
  0xd1   :  { %v477_v32 = vpop.f32.mrf.mxu3 }
  0xd2   :  { %v5833_v20 = vpop.f32.mrf.mxu0  ;;  %v520_v41 = vadd.f32 %v477_v32, %v274_v37 }
  0xd3   :  { %10046 = vst [vmem:[#allocation28_spill] sm:$0xff] %v5833_v20  ;;  %v6016_v20 = vld [vmem:[#allocation11 + $0x2c0] sm:$0xff] }
  0xd4   :  { %v523_v18 = vmul.f32 0.5, %v520_v41  ;;  %10070 = vst [vmem:[#allocation51_spill] sm:$0xff] %v6016_v20 }
  0xd6   :  { %4310 = vtanh.f32 %v523_v18  ;;  %v5924_v18 = vld [vmem:[#allocation11 + $0x2b8] sm:$0xff] }
  0xd7   :  { %696 = vmatpush.msrb.mxu2 %v5924_v18 }
  0xda   :  { %v5835_v22 = vpop.f32.mrf.mxu0 }
  0xdb   :  { %10047 = vst [vmem:[#allocation29_spill] sm:$0xff] %v5835_v22  ;;  %v355_v52 = vpop.f32.mrf.mxu2  ;;  %v6002_v22 = vld [vmem:[#allocation11 + $0x280] sm:$0xff] }
  0xdc   :  { %v356_v58 = vadd.f32 %v355_v52, %v5852_v51  ;;  %v4311_v50 = vpop.eup %4310  ;;  %v6014_v51 = vld [vmem:[#allocation11 + $0xe0] sm:$0xff] }
  0xdd   :  { %v525_v54 = vmul.f32 0.5, %v4311_v50  ;;  %v623_v50 = vld [vmem:[#allocation11 + $0x168] sm:$0xff]  ;;  %10069 = vst [vmem:[#allocation50_spill] sm:$0xff] %v6014_v51 }
  0xde   :  { %674 = vmatpush.msrb.mxu1 %v623_v50  ;;  %v599_v50 = vld [vmem:[#allocation11 + $0xa8] sm:$0xff] }
  0xdf   :  { %v526_v52 = vadd.f32 0.5, %v525_v54  ;;  %v617_v54 = vld [vmem:[#allocation11 + $0x138] sm:$0xff] }
  0xe1   :  { %v546_v30 = vmul.f32 0.0, %v526_v52 }
  0xe2   :  { %v5837_v24 = vpop.f32.mrf.mxu0 }
  0xe3   :  { %10048 = vst [vmem:[#allocation30_spill] sm:$0xff] %v5837_v24  ;;  %v5998_v24 = vld [vmem:[#allocation11 + $0x2f0] sm:$0xff] }
  0xe4   :  { %10066 = vst [vmem:[#allocation47_spill] sm:$0xff] %v5998_v24  ;;  %734 = vmatpush.msra.mxu0 %v5998_v24  ;;  %v6061_v24 = vld [vmem:[#allocation11 + $0x248] sm:$0xff] }
  0xe5   :  { %10079 = vst [vmem:[#allocation60_spill] sm:$0xff] %v6061_v24 }
  0xea   :  { %v5839_v26 = vpop.f32.mrf.mxu0 }
  0xeb   :  { %10049 = vst [vmem:[#allocation31_spill] sm:$0xff] %v5839_v26  ;;  %v5996_v26 = vld [vmem:[#allocation11 + $0x110] sm:$0xff] }
  0xec   :  { %10065 = vst [vmem:[#allocation46_spill] sm:$0xff] %v5996_v26 }
  0xf2   :  { %v5841_v28 = vpop.f32.mrf.mxu0 }
  0xf3   :  { %10050 = vst [vmem:[#allocation32_spill] sm:$0xff] %v5841_v28  ;;  %v314_v12 = vpop.f32.mrf.mxu1  ;;  %v5990_v28 = vld [vmem:[#allocation11 + $0x128] sm:$0xff] }
  0xf4   :  { %v315_v14 = vadd.f32 %v314_v12, %v5905_v10  ;;  %v5937_v12 = vld [vmem:[#allocation11 + $0x258] sm:$0xff]  ;;  %10064 = vst [vmem:[#allocation45_spill] sm:$0xff] %v5990_v28 }
  0xf5   :  { %v6007_v10 = vld [vmem:[#allocation11 + $0x2d8] sm:$0xff] }
  0xf6   :  { %v497_v16 = vpop.f32.mrf.mxu3  ;;  %10068 = vst [vmem:[#allocation49_spill] sm:$0xff] %v6007_v10  ;;  %735 = vmatpush.msra.mxu0 %v6007_v10  ;;  %v6043_v10 = vld [vmem:[#allocation11 + $0x278] sm:$0xff] }
  0xf7   :  { %v521_v57 = vadd.f32 %v497_v16, %v315_v14  ;;  %v5940_v14 = vld [vmem:[#allocation11 + $0x240] sm:$0xff]  ;;  %v611_v16 = vld [vmem:[#allocation11 + $0x108] sm:$0xff]  ;;  %10076 = vst [vmem:[#allocation57_spill] sm:$0xff] %v6043_v10 }
  0xf8   :  { %736 = vmatpush.msra.mxu0 %v6016_v20  ;;  %v6038_v20 = vld [vmem:[#allocation11 + $0x220] sm:$0xff] }
  0xfa   :  { %v5843_v36 = vpop.f32.mrf.mxu0 }
  0xfb   :  { %10051 = vst [vmem:[#allocation33_spill] sm:$0xff] %v5843_v36  ;;  %v5969_v36 = vld [vmem:[#allocation11 + $0x2f8] sm:$0xff] }
 0x102   :  { %v5847_v48 = vpop.f32.mrf.mxu0 }
 0x103   :  { %10052 = vst [vmem:[#allocation34_spill] sm:$0xff] %v5847_v48  ;;  %v590_v48 = vld [vmem:[#allocation11 + $0x60] sm:$0xff] }
 0x10a   :  { %v517_v61 = vpop.f32.mrf.mxu0 }
 0x10b   :  { %v5866_v0 = vadd.f32 %v517_v61, %v356_v58  ;;  %v527_v58 = vmul.f32 0.5, %v521_v57  ;;  %v5943_v57 = vld [vmem:[#allocation11 + $0x228] sm:$0xff] }
 0x10d   :  { %536 = vrot.lane.b32.xlu0 %v5866_v0, %s5622_s8 }
 0x115   :  { %540 = vrot.lane.b32.xlu0 %v520_v41, %s5622_s8 }
 0x17f   :  { %v537_v46 = vpop.permute.xlu0 %536 }
 0x187   :  { %v541_v35 = vpop.permute.xlu0 %540 }
 0x188   :  { %v544_v45 = vsel %vm543_vm0, %v537_v46, %v541_v35  ;;  %v5927_v46 = vld [vmem:[#allocation11 + $0x2a0] sm:$0xff]  ;;  %v5930_v35 = vld [vmem:[#allocation11 + $0x288] sm:$0xff] }
 0x189   :  { %4312 = vtanh.f32 %v544_v45  ;;  %v620_v45 = vld [vmem:[#allocation11 + $0x150] sm:$0xff]  ;;  %697 = vmatpush.msrb.mxu2 %v5927_v46 }
 0x18a   :  { %4314 = vtanh.f32 %v527_v58  ;;  %675 = vmatpush.msrb.mxu1 %v620_v45  ;;  %v608_v58 = vld [vmem:[#allocation11 + $0xf0] sm:$0xff] }
 0x18b   :  { %698 = vmatpush.msrb.mxu2 %v5930_v35  ;;  %v5958_v45 = vld [vmem:[#allocation11 + $0x1b0] sm:$0xff] }
 0x18c   :  { %676 = vmatpush.msrb.mxu1 %v617_v54  ;;  %v596_v54 = vld [vmem:[#allocation11 + $0x90] sm:$0xff] }
 0x18f   :  { %v4313_v63 = vpop.eup %4312 }
 0x190   :  { %v548_v55 = vmul.f32 %v4313_v63, %v526_v52  ;;  %v4315_v60 = vpop.eup %4314  ;;  %v5933_v52 = vld [vmem:[#allocation11 + $0x270] sm:$0xff]  ;;  %v531_v63 = vmul.f32 0.5, %v5866_v0 }
 0x191   :  { %v529_v61 = vmul.f32 0.5, %v4315_v60  ;;  %699 = vmatpush.msrb.mxu2 %v5933_v52  ;;  %v5946_v0 = vld [vmem:[#allocation11 + $0x210] sm:$0xff]  ;;  %v5949_v60 = vld [vmem:[#allocation11 + $0x1f8] sm:$0xff] }
 0x192   :  { %550 = vrot.lane.b32.xlu1 %v548_v55, %s5623_s10  ;;  %v614_v55 = vld [vmem:[#allocation11 + $0x120] sm:$0xff] }
 0x193   :  { %v5908_v2 = vadd.f32 0.5, %v529_v61  ;;  %677 = vmatpush.msrb.mxu1 %v614_v55  ;;  %700 = vmatpush.msrb.mxu2 %v5937_v12  ;;  %v605_v61 = vld [vmem:[#allocation11 + $0xd8] sm:$0xff] }
 0x195   :  { %v547_v8 = vmul.f32 0.0, %v5908_v2  ;;  %678 = vmatpush.msrb.mxu1 %v611_v16  ;;  %701 = vmatpush.msrb.mxu2 %v5940_v14 }
 0x197   :  { %702 = vmatpush.msrb.mxu2 %v5943_v57  ;;  %679 = vmatpush.msrb.mxu1 %v608_v58  ;;  %v5961_v58 = vld [vmem:[#allocation11 + $0x198] sm:$0xff] }
 0x199   :  { %703 = vmatpush.msrb.mxu2 %v5946_v0  ;;  %680 = vmatpush.msrb.mxu1 %v605_v61  ;;  %v593_v61 = vld [vmem:[#allocation11 + $0x78] sm:$0xff] }
 0x19b   :  { %704 = vmatpush.msrb.mxu2 %v5949_v60 }
 0x204   :  { %v551_v32 = vpop.permute.xlu1 %550 }
 0x205   :  { %v5911_v37 = vadd.f32 %v551_v32, %v546_v30  ;;  %v5913_v39 = vadd.f32 %v551_v32, %v547_v8  ;;  %v5952_v30 = vld [vmem:[#allocation11 + $0x1e0] sm:$0xff] }
 0x206   :  { %v602_v32 = vld [vmem:[#allocation11 + $0xc0] sm:$0xff]  ;;  %705 = vmatpush.msrb.mxu2 %v5952_v30 }
 0x207   :  { %10058 = vst [vmem:[#allocation40_spill] sm:$0xff] %v5911_v37  ;;  %4316 = vtanh.f32 %v5911_v37  ;;  %681 = vmatpush.msrb.mxu1 %v602_v32  ;;  %v6011_v37 = vld [vmem:[#allocation11 + $0x268] sm:$0xff] }
 0x208   :  { %10059 = vst [vmem:[#allocation41_spill] sm:$0xff] %v5913_v39  ;;  %4318 = vtanh.f32 %v5913_v39  ;;  %v6005_v39 = vld [vmem:[#allocation11 + $0xf8] sm:$0xff] }
 0x209   :  { %4320 = vtanh.f32 %v531_v63  ;;  %682 = vmatpush.msrb.mxu1 %v599_v50  ;;  %10067 = vst [vmem:[#allocation48_spill] sm:$0xff] %v6005_v39 }
 0x20b   :  { %683 = vmatpush.msrb.mxu1 %v596_v54  ;;  %v5971_v54 = vld [vmem:[#allocation11 + $0x170] sm:$0xff] }
 0x20c   :  { %10060 = vst [vmem:[#allocation42_spill] sm:$0xff] %v5971_v54  ;;  %714 = vmatpush.msra.mxu3 %v5971_v54  ;;  %v6052_v54 = vld [vmem:[#allocation11 + $0x260] sm:$0xff] }
 0x20d   :  { %v4317_v47 = vpop.eup %4316  ;;  %684 = vmatpush.msrb.mxu1 %v593_v61  ;;  %v584_v61 = vld [vmem:[#allocation11 + $0x30] sm:$0xff]  ;;  %10078 = vst [vmem:[#allocation59_spill] sm:$0xff] %v6052_v54 }
 0x20e   :  { %v4319_v41 = vpop.eup %4318  ;;  %559 = vrot.lane.b32.xlu1 %v4317_v47, %s5623_s10 }
 0x20f   :  { %561 = vrot.lane.b32.xlu2 %v4319_v41, %s5623_s10  ;;  %v4321_v8 = vpop.eup %4320  ;;  %v5955_v41 = vld [vmem:[#allocation11 + $0x1c8] sm:$0xff]  ;;  %685 = vmatpush.msrb.mxu1 %v590_v48  ;;  %v10062_v48 = vmov 0.0  }
 0x210   :  { %v533_v47 = vmul.f32 0.5, %v4321_v8  ;;  %706 = vmatpush.msrb.mxu2 %v5955_v41 }
 0x212   :  { %v534_v55 = vadd.f32 0.5, %v533_v47  ;;  %707 = vmatpush.msrb.mxu2 %v5958_v45 }
 0x214   :  { %708 = vmatpush.msrb.mxu2 %v5961_v58 }
 0x216   :  { %709 = vmatpush.msrb.mxu2 %v5966_v38 }
 0x217   :  { %710 = vmatmul.f32.vlgmr.msrb.gmra.mxu2 %v10062_v48 }
 0x218   :  { %774 = vmatpush.msra.mxu2 %v5969_v36 }
 0x269   :  { %v562_v63 = vpop.permute.xlu2 %561 }
 0x26a   :  { %v568_v32 = vmul.f32 %v562_v63, %v534_v55  ;;  %v5977_v55 = vld [vmem:[#allocation11 + $0x158] sm:$0xff] }
 0x26b   :  { %10061 = vst [vmem:[#allocation43_spill] sm:$0xff] %v5977_v55  ;;  %715 = vmatpush.msra.mxu3 %v5977_v55  ;;  %v6034_v55 = vld [vmem:[#allocation11 + $0x290] sm:$0xff] }
 0x26c   :  { %10074 = vst [vmem:[#allocation55_spill] sm:$0xff] %v6034_v55 }
 0x280   :  { %v560_v16 = vpop.permute.xlu1 %559 }
 0x281   :  { %v564_v8 = vsel %vm563_vm1, %v560_v16, %v562_v63  ;;  %v5974_v16 = vld [vmem:[#allocation11 + $0x2e0] sm:$0xff]  ;;  %v587_v63 = vld [vmem:[#allocation11 + $0x48] sm:$0xff] }
 0x282   :  { %v567_v50 = vmul.f32 %v564_v8, %v5908_v2  ;;  %v5981_v2 = vld [vmem:[#allocation11 + $0x2c8] sm:$0xff]  ;;  %686 = vmatpush.msrb.mxu1 %v587_v63  ;;  %v5984_v8 = vld [vmem:[#allocation11 + $0x140] sm:$0xff]  ;;  %775 = vmatpush.msra.mxu2 %v5974_v16 }
 0x283   :  { %10063 = vst [vmem:[#allocation44_spill] sm:$0xff] %v5984_v8  ;;  %716 = vmatpush.msra.mxu3 %v5984_v8  ;;  %v578_v63 = vld [vmem:[#allocation11] sm:$0xff]  ;;  %v6029_v8 = vld [vmem:[#allocation11 + $0x238] sm:$0xff] }
 0x284   :  { %v4199_v47 = vpack.i.bf16 %v568_v32, %v567_v50  ;;  %v5988_v32 = vld [vmem:[#allocation11 + $0x2b0] sm:$0xff]  ;;  %687 = vmatpush.msrb.mxu1 %v584_v61  ;;  %v581_v50 = vld [vmem:[#allocation11 + $0x18] sm:$0xff]  ;;  %776 = vmatpush.msra.mxu2 %v5981_v2 }
 0x285   :  { %717 = vmatpush.msra.mxu3 %v5990_v28  ;;  %v625_v61 = vld [vmem:[#allocation11 + $0x178] sm:$0xff]  ;;  %v6025_v28 = vld [vmem:[#allocation11 + $0x2a8] sm:$0xff] }
 0x286   :  { %4200 = vrot.lane.b32.xlu2 %v4199_v47, %s5624_s13  ;;  %v5993_v47 = vld [vmem:[#allocation11 + $0x298] sm:$0xff]  ;;  %688 = vmatpush.msrb.mxu1 %v581_v50  ;;  %v622_v50 = vld [vmem:[#allocation11 + $0x160] sm:$0xff]  ;;  %10072 = vst [vmem:[#allocation53_spill] sm:$0xff] %v6025_v28 }
 0x287   :  { %777 = vmatpush.msra.mxu2 %v5988_v32  ;;  %718 = vmatpush.msra.mxu3 %v5996_v26  ;;  %v6023_v26 = vld [vmem:[#allocation11 + $0xc8] sm:$0xff] }
 0x288   :  { %689 = vmatpush.msrb.mxu1 %v578_v63  ;;  %v619_v63 = vld [vmem:[#allocation11 + $0x148] sm:$0xff]  ;;  %10071 = vst [vmem:[#allocation52_spill] sm:$0xff] %v6023_v26  ;;  %737 = vmatpush.msra.mxu0 %v6025_v28 }
 0x289   :  { %778 = vmatpush.msra.mxu2 %v5993_v47  ;;  %719 = vmatpush.msra.mxu3 %v6005_v39  ;;  %v6032_v39 = vld [vmem:[#allocation11 + $0xb0] sm:$0xff]  ;;  %v6047_v28 = vld [vmem:[#allocation11 + $0x208] sm:$0xff] }
 0x28a   :  { %754 = vmatpush.msra.mxu1 %v625_v61  ;;  %v616_v61 = vld [vmem:[#allocation11 + $0x130] sm:$0xff]  ;;  %10073 = vst [vmem:[#allocation54_spill] sm:$0xff] %v6032_v39  ;;  %738 = vmatpush.msra.mxu0 %v6034_v55 }
 0x28b   :  { %779 = vmatpush.msra.mxu2 %v6002_v22  ;;  %720 = vmatpush.msra.mxu3 %v6014_v51  ;;  %v6041_v51 = vld [vmem:[#allocation11 + $0x98] sm:$0xff]  ;;  %v6056_v55 = vld [vmem:[#allocation11 + $0x1f0] sm:$0xff] }
 0x28c   :  { %755 = vmatpush.msra.mxu1 %v622_v50  ;;  %v613_v50 = vld [vmem:[#allocation11 + $0x118] sm:$0xff]  ;;  %10075 = vst [vmem:[#allocation56_spill] sm:$0xff] %v6041_v51  ;;  %739 = vmatpush.msra.mxu0 %v6043_v10 }
 0x28d   :  { %780 = vmatpush.msra.mxu2 %v6011_v37  ;;  %721 = vmatpush.msra.mxu3 %v6023_v26  ;;  %v6050_v26 = vld [vmem:[#allocation11 + $0x80] sm:$0xff]  ;;  %v6065_v10 = vld [vmem:[#allocation11 + $0x1d8] sm:$0xff] }
 0x28e   :  { %756 = vmatpush.msra.mxu1 %v619_v63  ;;  %v610_v63 = vld [vmem:[#allocation11 + $0x100] sm:$0xff]  ;;  %10077 = vst [vmem:[#allocation58_spill] sm:$0xff] %v6050_v26  ;;  %740 = vmatpush.msra.mxu0 %v6052_v54 }
 0x28f   :  { %781 = vmatpush.msra.mxu2 %v6020_v6  ;;  %722 = vmatpush.msra.mxu3 %v6032_v39  ;;  %v6059_v39 = vld [vmem:[#allocation11 + $0x68] sm:$0xff]  ;;  %v6074_v54 = vld [vmem:[#allocation11 + $0x1c0] sm:$0xff] }
 0x290   :  { %757 = vmatpush.msra.mxu1 %v616_v61  ;;  %v607_v61 = vld [vmem:[#allocation11 + $0xe8] sm:$0xff]  ;;  %741 = vmatpush.msra.mxu0 %v6061_v24 }
 0x291   :  { %782 = vmatpush.msra.mxu2 %v6029_v8  ;;  %723 = vmatpush.msra.mxu3 %v6041_v51  ;;  %v6068_v51 = vld [vmem:[#allocation11 + $0x50] sm:$0xff]  ;;  %v6083_v24 = vld [vmem:[#allocation11 + $0x1a8] sm:$0xff] }
 0x292   :  { %758 = vmatpush.msra.mxu1 %v613_v50  ;;  %v604_v50 = vld [vmem:[#allocation11 + $0xd0] sm:$0xff]  ;;  %742 = vmatpush.msra.mxu0 %v6070_v43 }
 0x293   :  { %783 = vmatpush.msra.mxu2 %v6038_v20  ;;  %724 = vmatpush.msra.mxu3 %v6050_v26  ;;  %v6077_v26 = vld [vmem:[#allocation11 + $0x38] sm:$0xff] }
 0x294   :  { %759 = vmatpush.msra.mxu1 %v610_v63  ;;  %v601_v63 = vld [vmem:[#allocation11 + $0xb8] sm:$0xff]  ;;  %743 = vmatpush.msra.mxu0 %v6079_v40 }
 0x295   :  { %784 = vmatpush.msra.mxu2 %v6047_v28  ;;  %725 = vmatpush.msra.mxu3 %v6059_v39 }
 0x296   :  { %760 = vmatpush.msra.mxu1 %v607_v61  ;;  %v598_v61 = vld [vmem:[#allocation11 + $0xa0] sm:$0xff] }
 0x297   :  { %785 = vmatpush.msra.mxu2 %v6056_v55  ;;  %726 = vmatpush.msra.mxu3 %v6068_v51 }
 0x298   :  { %761 = vmatpush.msra.mxu1 %v604_v50  ;;  %v6088_v50 = vld [vmem:[#allocation11 + $0x190] sm:$0xff] }
 0x299   :  { %786 = vmatpush.msra.mxu2 %v6065_v10  ;;  %727 = vmatpush.msra.mxu3 %v6077_v26 }
 0x29a   :  { %762 = vmatpush.msra.mxu1 %v601_v63 }
 0x29b   :  { %787 = vmatpush.msra.mxu2 %v6074_v54 }
 0x29c   :  { %763 = vmatpush.msra.mxu1 %v598_v61 }
 0x29d   :  { %788 = vmatpush.msra.mxu2 %v6083_v24 }
 0x29f   :  { %789 = vmatpush.msra.mxu2 %v6088_v50 }
 0x2a0   :  { %790 = vmatmul.f32.vlgmr.msra.gmra.mxu2 %v10062_v48 }
 0x2a1   :  { %1036 = vmatpush.msrb.mxu2 %v5749_v1  ;;  %v6107_v1 = vld [vmem:[#allocation11 + $0x20] sm:$0xff] }
 0x2a2   :  { %728 = vmatpush.msra.mxu3 %v6107_v1 }
 0x2a3   :  { %1037 = vmatpush.msrb.mxu2 %v5752_v3  ;;  %v6109_v3 = vld [vmem:[#allocation11 + $0x200] sm:$0xff] }
 0x2a4   :  { %744 = vmatpush.msra.mxu0 %v6109_v3 }
 0x2a5   :  { %1038 = vmatpush.msrb.mxu2 %v5754_v5  ;;  %v595_v5 = vld [vmem:[#allocation11 + $0x88] sm:$0xff] }
 0x2a6   :  { %764 = vmatpush.msra.mxu1 %v595_v5 }
 0x2a7   :  { %1039 = vmatpush.msrb.mxu2 %v5757_v7  ;;  %v6114_v7 = vld [vmem:[#allocation11 + $0x8] sm:$0xff] }
 0x2a8   :  { %729 = vmatpush.msra.mxu3 %v6114_v7 }
 0x2a9   :  { %1040 = vmatpush.msrb.mxu2 %v5760_v9  ;;  %v6116_v9 = vld [vmem:[#allocation11 + $0x1e8] sm:$0xff] }
 0x2aa   :  { %745 = vmatpush.msra.mxu0 %v6116_v9 }
 0x2ab   :  { %1041 = vmatpush.msrb.mxu2 %v5763_v11  ;;  %v592_v11 = vld [vmem:[#allocation11 + $0x70] sm:$0xff] }
 0x2ac   :  { %765 = vmatpush.msra.mxu1 %v592_v11 }
 0x2ad   :  { %1042 = vmatpush.msrb.mxu2 %v5766_v13  ;;  %v6121_v13 = vld [vmem:[#allocation11 + $0x1d0] sm:$0xff] }
 0x2ae   :  { %746 = vmatpush.msra.mxu0 %v6121_v13 }
 0x2af   :  { %1043 = vmatpush.msrb.mxu2 %v5769_v15  ;;  %v589_v15 = vld [vmem:[#allocation11 + $0x58] sm:$0xff] }
 0x2b0   :  { %766 = vmatpush.msra.mxu1 %v589_v15 }
 0x2b1   :  { %1044 = vmatpush.msrb.mxu2 %v5772_v17  ;;  %v6123_v17 = vld [vmem:[#allocation11 + $0x1b8] sm:$0xff] }
 0x2b2   :  { %747 = vmatpush.msra.mxu0 %v6123_v17 }
 0x2b3   :  { %1045 = vmatpush.msrb.mxu2 %v5775_v19  ;;  %v586_v19 = vld [vmem:[#allocation11 + $0x40] sm:$0xff] }
 0x2b4   :  { %767 = vmatpush.msra.mxu1 %v586_v19 }
 0x2b5   :  { %1046 = vmatpush.msrb.mxu2 %v5778_v21  ;;  %v6127_v21 = vld [vmem:[#allocation11 + $0x1a0] sm:$0xff] }
 0x2b6   :  { %748 = vmatpush.msra.mxu0 %v6127_v21 }
 0x2b7   :  { %1047 = vmatpush.msrb.mxu2 %v5781_v23  ;;  %v583_v23 = vld [vmem:[#allocation11 + $0x28] sm:$0xff] }
 0x2b8   :  { %768 = vmatpush.msra.mxu1 %v583_v23 }
 0x2b9   :  { %1048 = vmatpush.msrb.mxu2 %v5784_v25  ;;  %v6131_v25 = vld [vmem:[#allocation11 + $0x188] sm:$0xff] }
 0x2ba   :  { %749 = vmatpush.msra.mxu0 %v6131_v25 }
 0x2bb   :  { %1049 = vmatpush.msrb.mxu2 %v5787_v27  ;;  %v580_v27 = vld [vmem:[#allocation11 + $0x10] sm:$0xff]  ;;  %750 = vmatmul.f32.vlgmr.msra.gmra.mxu0 %v10062_v48 }
 0x2bc   :  { %769 = vmatpush.msra.mxu1 %v580_v27 }
 0x2bd   :  { %1050 = vmatpush.msrb.mxu2 %v5790_v31 }
 0x2bf   :  { %1051 = vmatpush.msrb.mxu2 %v5793_v34 }
 0x2c1   :  { %1177 = vmatpush.msra.mxu2 %v5919_v42 }
 0x2c3   :  { %1178 = vmatpush.msra.mxu2 %v5921_v44 }
 0x2c5   :  { %1179 = vmatpush.msra.mxu2 %v5924_v18 }
 0x2c7   :  { %1180 = vmatpush.msra.mxu2 %v5927_v46 }
 0x2c9   :  { %1181 = vmatpush.msra.mxu2 %v5930_v35 }
 0x2cb   :  { %1182 = vmatpush.msra.mxu2 %v5933_v52 }
 0x2cd   :  { %1183 = vmatpush.msra.mxu2 %v5937_v12 }
 0x2cf   :  { %1184 = vmatpush.msra.mxu2 %v5940_v14  ;;  %v403_v14 = vld [vmem:[#allocation12] sm:$0xff] }
 0x2d1   :  { %1185 = vmatpush.msra.mxu2 %v5943_v57 }
 0x2d3   :  { %1186 = vmatpush.msra.mxu2 %v5946_v0 }
 0x2d5   :  { %1187 = vmatpush.msra.mxu2 %v5949_v60 }
 0x2d7   :  { %1188 = vmatpush.msra.mxu2 %v5952_v30 }
 0x2d9   :  { %1189 = vmatpush.msra.mxu2 %v5955_v41  ;;  %v404_v41 = vld [vmem:[#allocation12 + $0x8] sm:$0xff] }
 0x2db   :  { %1190 = vmatpush.msra.mxu2 %v5958_v45 }
 0x2dd   :  { %1191 = vmatpush.msra.mxu2 %v5961_v58 }
 0x2df   :  { %1192 = vmatpush.msra.mxu2 %v5966_v38  ;;  %v6173_v38 = vpop.f32.mrf.mxu2 }
 0x2e0   :  { %v4201_v31 = vpop.permute.xlu2 %4200 }
 0x2e1   :  { %v4203_v34 = vunpack.i.h.bf16 %v4201_v31  ;;  %v4202_v42 = vunpack.i.l.bf16 %v4201_v31 }
 0x2e3   :  { %v6150_v44 = vsel %vm575_vm2, %v4202_v42, %v4203_v34 }
 0x2e4   :  { %690 = vmatmul.f32.vlgmr.msrb.gmra.mxu1 %v6150_v44  ;;  %730 = vmatmul.f32.vlgmr.msra.gmra.mxu3 %v6150_v44 }
 0x2e5   :  { %1052 = vmatmul.f32.vlgmr.msrb.gmra.mxu2 %v6150_v44 }
 0x2e6   :  { %1257 = vmatpush.msrb.mxu2 %v5969_v36 }
 0x2e7   :  { %v6177_v36 = vpop.f32.mrf.mxu2 }
 0x2e8   :  { %1258 = vmatpush.msrb.mxu2 %v5974_v16  ;;  %10080 = vst [vmem:[#allocation61_spill] sm:$0xff] %v6177_v36 }
 0x2ea   :  { %1259 = vmatpush.msrb.mxu2 %v5981_v2 }
 0x2ec   :  { %770 = vmatmul.f32.vlgmr.msra.gmra.mxu1 %v6150_v44  ;;  %1260 = vmatpush.msrb.mxu2 %v5988_v32 }
 0x2ee   :  { %1261 = vmatpush.msrb.mxu2 %v5993_v47 }
 0x2f0   :  { %1262 = vmatpush.msrb.mxu2 %v6002_v22  ;;  %v6175_v22 = vpop.f32.mrf.mxu1 }
 0x2f2   :  { %1263 = vmatpush.msrb.mxu2 %v6011_v37 }
 0x2f4   :  { %1264 = vmatpush.msrb.mxu2 %v6020_v6 }
 0x2f6   :  { %1265 = vmatpush.msrb.mxu2 %v6029_v8 }
 0x2f8   :  { %1266 = vmatpush.msrb.mxu2 %v6038_v20  ;;  %v6179_v6 = vpop.f32.mrf.mxu1  ;;  %v6181_v20 = vpop.f32.mrf.mxu2 }
 0x2f9   :  { %10081 = vst [vmem:[#allocation62_spill] sm:$0xff] %v6179_v6 }
 0x2fa   :  { %1267 = vmatpush.msrb.mxu2 %v6047_v28  ;;  %10082 = vst [vmem:[#allocation63_spill] sm:$0xff] %v6181_v20  ;;  %v6311_v20 = vld [vmem:[#allocation14 + $0x8] sm:$0xff] }
 0x2fc   :  { %1268 = vmatpush.msrb.mxu2 %v6056_v55 }
 0x2fe   :  { %1269 = vmatpush.msrb.mxu2 %v6065_v10 }
 0x300   :  { %1270 = vmatpush.msrb.mxu2 %v6074_v54  ;;  %v6183_v28 = vpop.f32.mrf.mxu1  ;;  %v6185_v37 = vpop.f32.mrf.mxu2  ;;  %v405_v54 = vld [vmem:[#allocation12 + $0x10] sm:$0xff] }
 0x301   :  { %10083 = vst [vmem:[#allocation64_spill] sm:$0xff] %v6183_v28  ;;  %v6309_v28 = vld [vmem:[#allocation14] sm:$0xff] }
 0x302   :  { %1271 = vmatpush.msrb.mxu2 %v6083_v24  ;;  %10084 = vst [vmem:[#allocation65_spill] sm:$0xff] %v6185_v37 }
 0x304   :  { %1272 = vmatpush.msrb.mxu2 %v6088_v50 }
 0x308   :  { %v6187_v10 = vpop.f32.mrf.mxu1  ;;  %v6189_v18 = vpop.f32.mrf.mxu2 }
 0x309   :  { %10085 = vst [vmem:[#allocation66_spill] sm:$0xff] %v6187_v10 }
 0x30a   :  { %10086 = vst [vmem:[#allocation67_spill] sm:$0xff] %v6189_v18  ;;  %v6303_v18 = vld [vmem:[#allocation14 + $0x18] sm:$0xff] }
 0x310   :  { %v6191_v24 = vpop.f32.mrf.mxu1  ;;  %v6193_v46 = vpop.f32.mrf.mxu2 }
 0x311   :  { %10087 = vst [vmem:[#allocation68_spill] sm:$0xff] %v6191_v24  ;;  %v6301_v24 = vld [vmem:[#allocation14 + $0x10] sm:$0xff] }
 0x312   :  { %10088 = vst [vmem:[#allocation69_spill] sm:$0xff] %v6193_v46  ;;  %v6297_v46 = vld [vmem:[#allocation14 + $0x28] sm:$0xff] }
 0x318   :  { %v6195_v35 = vpop.f32.mrf.mxu1  ;;  %v6197_v52 = vpop.f32.mrf.mxu2 }
 0x319   :  { %10089 = vst [vmem:[#allocation70_spill] sm:$0xff] %v6195_v35  ;;  %v6295_v35 = vld [vmem:[#allocation14 + $0x20] sm:$0xff] }
 0x31a   :  { %10090 = vst [vmem:[#allocation71_spill] sm:$0xff] %v6197_v52  ;;  %v6291_v52 = vld [vmem:[#allocation14 + $0x38] sm:$0xff] }
 0x320   :  { %v6199_v12 = vpop.f32.mrf.mxu1  ;;  %v711_v57 = vpop.f32.mrf.mxu2 }
 0x321   :  { %10091 = vst [vmem:[#allocation72_spill] sm:$0xff] %v6199_v12  ;;  %v6289_v12 = vld [vmem:[#allocation14 + $0x30] sm:$0xff] }
 0x328   :  { %v791_v8 = vpop.f32.mrf.mxu2 }
 0x338   :  { %v751_v58 = vpop.f32.mrf.mxu0 }
 0x361   :  { %v691_v0 = vpop.f32.mrf.mxu1 }
 0x362   :  { %v692_v60 = vadd.f32 %v691_v0, %v403_v14 }
 0x364   :  { %v712_v30 = vadd.f32 %v711_v57, %v692_v60 }
 0x366   :  { %v794_v61 = vmul.f32 0.5, %v712_v30 }
 0x367   :  { %v731_v45 = vpop.f32.mrf.mxu3 }
 0x368   :  { %v732_v16 = vadd.f32 %v731_v45, %v404_v41 }
 0x369   :  { %v771_v55 = vpop.f32.mrf.mxu1 }
 0x36a   :  { %v752_v2 = vadd.f32 %v751_v58, %v732_v16  ;;  %v772_v48 = vadd.f32 %v771_v55, %v405_v54  ;;  %v6219_v54 = vld [vmem:[#allocation14 + $0xf0] sm:$0xff]  ;;  %v6221_v16 = vld [vmem:[#allocation14 + $0xf8] sm:$0xff]  ;;  %v6223_v55 = vld [vmem:[#allocation14 + $0xe0] sm:$0xff] }
 0x36b   :  { %877 = vmatpush.msrb.mxu3 %v6219_v54  ;;  %897 = vmatpush.msrb.mxu0 %v6221_v16 }
 0x36c   :  { %4322 = vtanh.f32 %v752_v2  ;;  %v6201_v32 = vadd.f32 %v791_v8, %v772_v48  ;;  %v798_v31 = vmul.f32 0.5, %v752_v2  ;;  %v6227_v2 = vld [vmem:[#allocation14 + $0xe8] sm:$0xff]  ;;  %v6229_v48 = vld [vmem:[#allocation14 + $0xd0] sm:$0xff]  ;;  %v6231_v8 = vld [vmem:[#allocation14 + $0xd8] sm:$0xff] }
 0x36d   :  { %878 = vmatpush.msrb.mxu3 %v6223_v55  ;;  %898 = vmatpush.msrb.mxu0 %v6227_v2 }
 0x36e   :  { %4324 = vtanh.f32 %v6201_v32 }
 0x36f   :  { %4326 = vtanh.f32 %v794_v61  ;;  %879 = vmatpush.msrb.mxu3 %v6229_v48  ;;  %899 = vmatpush.msrb.mxu0 %v6231_v8  ;;  %v6241_v61 = vld [vmem:[#allocation14 + $0xb0] sm:$0xff] }
 0x370   :  { %4328 = vtanh.f32 %v798_v31  ;;  %v6265_v31 = vld [vmem:[#allocation14 + $0x70] sm:$0xff] }
 0x372   :  { %v4323_v47 = vpop.eup %4322 }
 0x373   :  { %812 = vrot.lane.b32.xlu0 %v4323_v47, %s5625_s14  ;;  %v6235_v47 = vld [vmem:[#allocation14 + $0xc0] sm:$0xff] }
 0x374   :  { %v4325_v63 = vpop.eup %4324  ;;  %880 = vmatpush.msrb.mxu3 %v6235_v47 }
 0x375   :  { %814 = vrot.lane.b32.xlu1 %v4325_v63, %s5625_s14  ;;  %v4327_v50 = vpop.eup %4326  ;;  %v6237_v63 = vld [vmem:[#allocation14 + $0xc8] sm:$0xff] }
 0x376   :  { %v796_v5 = vmul.f32 0.5, %v4327_v50  ;;  %v4329_v34 = vpop.eup %4328  ;;  %v6243_v50 = vld [vmem:[#allocation14 + $0xb8] sm:$0xff]  ;;  %900 = vmatpush.msrb.mxu0 %v6237_v63  ;;  %881 = vmatpush.msrb.mxu3 %v6241_v61 }
 0x377   :  { %v800_v42 = vmul.f32 0.5, %v4329_v34  ;;  %v6267_v34 = vld [vmem:[#allocation14 + $0x78] sm:$0xff] }
 0x378   :  { %v797_v19 = vadd.f32 0.5, %v796_v5  ;;  %v6247_v5 = vld [vmem:[#allocation14 + $0xa0] sm:$0xff]  ;;  %901 = vmatpush.msrb.mxu0 %v6243_v50 }
 0x379   :  { %v6208_v14 = vadd.f32 0.5, %v800_v42  ;;  %882 = vmatpush.msrb.mxu3 %v6247_v5  ;;  %v6271_v42 = vld [vmem:[#allocation14 + $0x60] sm:$0xff] }
 0x37a   :  { %v808_v0 = vmul.f32 0.0, %v797_v19 }
 0x37b   :  { %v809_v57 = vmul.f32 0.0, %v6208_v14 }
 0x3e5   :  { %v813_v11 = vpop.permute.xlu0 %812 }
 0x3e7   :  { %v815_v15 = vpop.permute.xlu1 %814 }
 0x3e8   :  { %v817_v23 = vsel %vm816_vm3, %v813_v11, %v815_v15  ;;  %v6249_v11 = vld [vmem:[#allocation14 + $0xa8] sm:$0xff]  ;;  %v6253_v15 = vld [vmem:[#allocation14 + $0x90] sm:$0xff] }
 0x3e9   :  { %v819_v27 = vmul.f32 %v817_v23, %v797_v19  ;;  %v6255_v19 = vld [vmem:[#allocation14 + $0x98] sm:$0xff]  ;;  %902 = vmatpush.msrb.mxu0 %v6249_v11  ;;  %v6259_v23 = vld [vmem:[#allocation14 + $0x80] sm:$0xff]  ;;  %883 = vmatpush.msrb.mxu3 %v6253_v15 }
 0x3eb   :  { %821 = vrot.lane.b32.xlu2 %v819_v27, %s5626_s15  ;;  %v6261_v27 = vld [vmem:[#allocation14 + $0x88] sm:$0xff]  ;;  %903 = vmatpush.msrb.mxu0 %v6255_v19 }
 0x3ec   :  { %884 = vmatpush.msrb.mxu3 %v6259_v23 }
 0x3ed   :  { %904 = vmatpush.msrb.mxu0 %v6261_v27 }
 0x3ee   :  { %885 = vmatpush.msrb.mxu3 %v6265_v31 }
 0x3ef   :  { %905 = vmatpush.msrb.mxu0 %v6267_v34 }
 0x3f0   :  { %886 = vmatpush.msrb.mxu3 %v6271_v42 }
 0x445   :  { %v822_v60 = vpop.permute.xlu2 %821 }
 0x446   :  { %v6211_v30 = vadd.f32 %v822_v60, %v808_v0  ;;  %v6213_v41 = vadd.f32 %v822_v60, %v809_v57  ;;  %v6273_v57 = vld [vmem:[#allocation14 + $0x68] sm:$0xff]  ;;  %v6277_v0 = vld [vmem:[#allocation14 + $0x50] sm:$0xff]  ;;  %v6279_v60 = vld [vmem:[#allocation14 + $0x58] sm:$0xff] }
 0x447   :  { %906 = vmatpush.msrb.mxu0 %v6273_v57  ;;  %887 = vmatpush.msrb.mxu3 %v6277_v0 }
 0x448   :  { %10092 = vst [vmem:[#allocation73_spill] sm:$0xff] %v6211_v30  ;;  %4330 = vtanh.f32 %v6211_v30  ;;  %v6321_v30 = vld [vmem:[#allocation8 + $0x170] sm:$0xff] }
 0x449   :  { %10093 = vst [vmem:[#allocation74_spill] sm:$0xff] %v6213_v41  ;;  %4332 = vtanh.f32 %v6213_v41  ;;  %907 = vmatpush.msrb.mxu0 %v6279_v60  ;;  %v6324_v41 = vld [vmem:[#allocation8 + $0x178] sm:$0xff] }
 0x44a   :  { %10094 = vst [vmem:[#allocation75_spill] sm:$0xff] %v6321_v30 }
 0x44b   :  { %10095 = vst [vmem:[#allocation76_spill] sm:$0xff] %v6324_v41 }
 0x44e   :  { %v4331_v45 = vpop.eup %4330 }
 0x44f   :  { %v4333_v58 = vpop.eup %4332  ;;  %830 = vrot.lane.b32.xlu0 %v4331_v45, %s5626_s15  ;;  %v6283_v45 = vld [vmem:[#allocation14 + $0x40] sm:$0xff] }
 0x450   :  { %832 = vrot.lane.b32.xlu1 %v4333_v58, %s5626_s15  ;;  %v6285_v58 = vld [vmem:[#allocation14 + $0x48] sm:$0xff]  ;;  %888 = vmatpush.msrb.mxu3 %v6283_v45 }
 0x451   :  { %908 = vmatpush.msrb.mxu0 %v6285_v58 }
 0x452   :  { %889 = vmatpush.msrb.mxu3 %v6289_v12 }
 0x453   :  { %909 = vmatpush.msrb.mxu0 %v6291_v52 }
 0x454   :  { %890 = vmatpush.msrb.mxu3 %v6295_v35 }
 0x455   :  { %910 = vmatpush.msrb.mxu0 %v6297_v46 }
 0x456   :  { %891 = vmatpush.msrb.mxu3 %v6301_v24 }
 0x457   :  { %911 = vmatpush.msrb.mxu0 %v6303_v18 }
 0x458   :  { %892 = vmatpush.msrb.mxu3 %v6309_v28 }
 0x459   :  { %912 = vmatpush.msrb.mxu0 %v6311_v20 }
 0x45a   :  { %1056 = vmatpush.msra.mxu3 %v6321_v30  ;;  %v6339_v30 = vld [vmem:[#allocation8 + $0x128] sm:$0xff] }
 0x45b   :  { %1076 = vmatpush.msra.mxu0 %v6324_v41  ;;  %10100 = vst [vmem:[#allocation81_spill] sm:$0xff] %v6339_v30  ;;  %v6342_v41 = vld [vmem:[#allocation8 + $0x130] sm:$0xff] }
 0x4c1   :  { %v831_v10 = vpop.permute.xlu0 %830 }
 0x4c2   :  { %v6307_v37 = vpop.permute.xlu1 %832 }
 0x4c3   :  { %v835_v6 = vsel %vm834_vm4, %v831_v10, %v6307_v37  ;;  %v6327_v10 = vld [vmem:[#allocation8 + $0x158] sm:$0xff] }
 0x4c4   :  { %v838_v36 = vmul.f32 %v835_v6, %v6208_v14  ;;  %10096 = vst [vmem:[#allocation77_spill] sm:$0xff] %v6327_v10  ;;  %1057 = vmatpush.msra.mxu3 %v6327_v10  ;;  %v6330_v6 = vld [vmem:[#allocation8 + $0x160] sm:$0xff]  ;;  %v6345_v10 = vld [vmem:[#allocation8 + $0x110] sm:$0xff] }
 0x4c5   :  { %10097 = vst [vmem:[#allocation78_spill] sm:$0xff] %v6330_v6  ;;  %1077 = vmatpush.msra.mxu0 %v6330_v6  ;;  %v6333_v14 = vld [vmem:[#allocation8 + $0x140] sm:$0xff]  ;;  %v6348_v6 = vld [vmem:[#allocation8 + $0x118] sm:$0xff] }
 0x4c6   :  { %841 = vrot.lane.b32.xlu2 %v838_v36, %s5627_s1  ;;  %10098 = vst [vmem:[#allocation79_spill] sm:$0xff] %v6333_v14  ;;  %1058 = vmatpush.msra.mxu3 %v6333_v14  ;;  %v6336_v36 = vld [vmem:[#allocation8 + $0x148] sm:$0xff]  ;;  %v6351_v14 = vld [vmem:[#allocation8 + $0xf8] sm:$0xff] }
 0x4c7   :  { %10099 = vst [vmem:[#allocation80_spill] sm:$0xff] %v6336_v36  ;;  %1078 = vmatpush.msra.mxu0 %v6336_v36  ;;  %v6354_v36 = vld [vmem:[#allocation8 + $0x100] sm:$0xff] }
 0x4c8   :  { %1059 = vmatpush.msra.mxu3 %v6339_v30  ;;  %10101 = vst [vmem:[#allocation82_spill] sm:$0xff] %v6345_v10  ;;  %v6358_v30 = vld [vmem:[#allocation8 + $0xe8] sm:$0xff] }
 0x4c9   :  { %1079 = vmatpush.msra.mxu0 %v6342_v41  ;;  %10102 = vst [vmem:[#allocation83_spill] sm:$0xff] %v6348_v6 }
 0x4ca   :  { %1060 = vmatpush.msra.mxu3 %v6345_v10  ;;  %10103 = vst [vmem:[#allocation84_spill] sm:$0xff] %v6351_v14  ;;  %v6362_v10 = vld [vmem:[#allocation8 + $0xd0] sm:$0xff] }
 0x4cb   :  { %1080 = vmatpush.msra.mxu0 %v6348_v6  ;;  %v6366_v6 = vld [vmem:[#allocation8 + $0xb8] sm:$0xff] }
 0x4cc   :  { %1061 = vmatpush.msra.mxu3 %v6351_v14  ;;  %10104 = vst [vmem:[#allocation85_spill] sm:$0xff] %v6366_v6  ;;  %v6370_v14 = vld [vmem:[#allocation8 + $0xa0] sm:$0xff] }
 0x4cd   :  { %1081 = vmatpush.msra.mxu0 %v6354_v36  ;;  %10105 = vst [vmem:[#allocation86_spill] sm:$0xff] %v6370_v14 }
 0x4ce   :  { %1062 = vmatpush.msra.mxu3 %v5849_v49  ;;  %v6374_v49 = vld [vmem:[#allocation8 + $0x88] sm:$0xff] }
 0x4cf   :  { %1082 = vmatpush.msra.mxu0 %v6358_v30  ;;  %10106 = vst [vmem:[#allocation87_spill] sm:$0xff] %v6374_v49 }
 0x4d0   :  { %1063 = vmatpush.msra.mxu3 %v5854_v53  ;;  %v6378_v53 = vld [vmem:[#allocation8 + $0x70] sm:$0xff] }
 0x4d1   :  { %1083 = vmatpush.msra.mxu0 %v6362_v10  ;;  %10107 = vst [vmem:[#allocation88_spill] sm:$0xff] %v6378_v53 }
 0x4d2   :  { %1064 = vmatpush.msra.mxu3 %v5857_v56  ;;  %v6382_v56 = vld [vmem:[#allocation8 + $0x58] sm:$0xff] }
 0x4d3   :  { %1084 = vmatpush.msra.mxu0 %v6366_v6  ;;  %10108 = vst [vmem:[#allocation89_spill] sm:$0xff] %v6382_v56  ;;  %v10122_v6 = vld [vmem:[#allocation55_spill] sm:$0xff] }
 0x4d4   :  { %1065 = vmatpush.msra.mxu3 %v5861_v59  ;;  %v6386_v59 = vld [vmem:[#allocation8 + $0x40] sm:$0xff] }
 0x4d5   :  { %1085 = vmatpush.msra.mxu0 %v6370_v14  ;;  %10109 = vst [vmem:[#allocation90_spill] sm:$0xff] %v6386_v59  ;;  %v10121_v14 = vld [vmem:[#allocation45_spill] sm:$0xff] }
 0x4d6   :  { %1066 = vmatpush.msra.mxu3 %v5864_v62  ;;  %v10110_v62 = vld [vmem:[#allocation37_spill] sm:$0xff] }
 0x4d7   :  { %1086 = vmatpush.msra.mxu0 %v6374_v49  ;;  %v6390_v49 = vld [vmem:[#allocation8 + $0x28] sm:$0xff] }
 0x4d8   :  { %1067 = vmatpush.msra.mxu3 %v5869_v4  ;;  %10111 = vst [vmem:[#allocation37_spill] sm:$0xff] %v6390_v49  ;;  %v10112_v4 = vld [vmem:[#allocation38_spill] sm:$0xff] }
 0x4d9   :  { %1087 = vmatpush.msra.mxu0 %v6378_v53  ;;  %v6394_v53 = vld [vmem:[#allocation8 + $0x10] sm:$0xff] }
 0x4da   :  { %1068 = vmatpush.msra.mxu3 %v5877_v29  ;;  %10113 = vst [vmem:[#allocation38_spill] sm:$0xff] %v6394_v53 }
 0x4db   :  { %1088 = vmatpush.msra.mxu0 %v6382_v56  ;;  %v10119_v56 = vld [vmem:[#allocation44_spill] sm:$0xff] }
 0x4dc   :  { %1069 = vmatpush.msra.mxu3 %v5880_v33  ;;  %v10114_v33 = vld [vmem:[#allocation47_spill] sm:$0xff] }
 0x4dd   :  { %1089 = vmatpush.msra.mxu0 %v6386_v59  ;;  %v10116_v59 = vld [vmem:[#allocation49_spill] sm:$0xff] }
 0x4de   :  { %1070 = vmatpush.msra.mxu3 %v10110_v62  ;;  %v10115_v62 = vld [vmem:[#allocation42_spill] sm:$0xff] }
 0x4df   :  { %1090 = vmatpush.msra.mxu0 %v6390_v49  ;;  %v10117_v49 = vld [vmem:[#allocation43_spill] sm:$0xff] }
 0x4e0   :  { %1071 = vmatpush.msra.mxu3 %v10112_v4  ;;  %v10118_v4 = vld [vmem:[#allocation51_spill] sm:$0xff] }
 0x4e1   :  { %1091 = vmatpush.msra.mxu0 %v6394_v53  ;;  %v10120_v53 = vld [vmem:[#allocation53_spill] sm:$0xff] }
 0x520   :  { %v6397_v29 = vpop.permute.xlu2 %841 }
 0x521   :  { %4165 = vmatmul.msk.f32.vlgmr.msrb.gmra.mxu3 %vm834_vm4, %v6397_v29  ;;  %4166 = vmatmul.msk.f32.vlgmr.msrb.gmra.mxu0 %vm834_vm4, %v6397_v29 }
 0x522   :  { %1217 = vmatpush.msrb.mxu0 %v10114_v33  ;;  %1197 = vmatpush.msrb.mxu3 %v10115_v62  ;;  %v10123_v33 = vld [vmem:[#allocation46_spill] sm:$0xff]  ;;  %v10124_v62 = vld [vmem:[#allocation57_spill] sm:$0xff] }
 0x524   :  { %1218 = vmatpush.msrb.mxu0 %v10116_v59  ;;  %1198 = vmatpush.msrb.mxu3 %v10117_v49  ;;  %v10125_v59 = vld [vmem:[#allocation48_spill] sm:$0xff]  ;;  %v10126_v49 = vld [vmem:[#allocation59_spill] sm:$0xff] }
 0x526   :  { %1219 = vmatpush.msrb.mxu0 %v10118_v4  ;;  %1199 = vmatpush.msrb.mxu3 %v10119_v56  ;;  %v10127_v4 = vld [vmem:[#allocation50_spill] sm:$0xff]  ;;  %v10128_v56 = vld [vmem:[#allocation60_spill] sm:$0xff] }
 0x528   :  { %1220 = vmatpush.msrb.mxu0 %v10120_v53  ;;  %1200 = vmatpush.msrb.mxu3 %v10121_v14  ;;  %v10129_v53 = vld [vmem:[#allocation52_spill] sm:$0xff]  ;;  %v10130_v14 = vld [vmem:[#allocation54_spill] sm:$0xff] }
 0x529   :  { %1072 = vmatmul.f32.vlgmr.msra.gmra.mxu3 %v6150_v44  ;;  %1092 = vmatmul.f32.vlgmr.msra.gmra.mxu0 %v6150_v44  ;;  %v10131_v44 = vld [vmem:[#allocation56_spill] sm:$0xff] }
 0x52a   :  { %1221 = vmatpush.msrb.mxu0 %v10122_v6  ;;  %1201 = vmatpush.msrb.mxu3 %v10123_v33  ;;  %v10132_v6 = vld [vmem:[#allocation58_spill] sm:$0xff] }
 0x52c   :  { %1222 = vmatpush.msrb.mxu0 %v10124_v62  ;;  %1202 = vmatpush.msrb.mxu3 %v10125_v59 }
 0x52e   :  { %1223 = vmatpush.msrb.mxu0 %v10126_v49  ;;  %1203 = vmatpush.msrb.mxu3 %v10127_v4 }
 0x530   :  { %1224 = vmatpush.msrb.mxu0 %v10128_v56  ;;  %1204 = vmatpush.msrb.mxu3 %v10129_v53 }
 0x532   :  { %1225 = vmatpush.msrb.mxu0 %v6070_v43  ;;  %1205 = vmatpush.msrb.mxu3 %v10130_v14  ;;  %v6473_v43 = vld [vmem:[#allocation15] sm:$0xff] }
 0x534   :  { %1226 = vmatpush.msrb.mxu0 %v6079_v40  ;;  %1206 = vmatpush.msrb.mxu3 %v10131_v44  ;;  %v802_v44 = vmul.f32 0.5, %v6201_v32 }
 0x536   :  { %1227 = vmatpush.msrb.mxu0 %v6109_v3  ;;  %1207 = vmatpush.msrb.mxu3 %v10132_v6  ;;  %v10133_v3 = vld [vmem:[#allocation36_spill] sm:$0xff]  ;;  %v10138_v6 = vld [vmem:[#allocation41_spill] sm:$0xff] }
 0x538   :  { %1228 = vmatpush.msrb.mxu0 %v6116_v9  ;;  %1208 = vmatpush.msrb.mxu3 %v6059_v39  ;;  %v1053_v39 = vpop.f32.mrf.mxu2 }
 0x53a   :  { %1229 = vmatpush.msrb.mxu0 %v6121_v13  ;;  %1209 = vmatpush.msrb.mxu3 %v6068_v51  ;;  %v10135_v13 = vld [vmem:[#allocation35_spill] sm:$0xff] }
 0x53c   :  { %1230 = vmatpush.msrb.mxu0 %v6123_v17  ;;  %1210 = vmatpush.msrb.mxu3 %v6077_v26  ;;  %v6469_v26 = vld [vmem:[#allocation15 + $0x8] sm:$0xff]  ;;  %v359_v17 = vadd.f32 %v6173_v38, %v10135_v13 }
 0x53e   :  { %1231 = vmatpush.msrb.mxu0 %v6127_v21  ;;  %1211 = vmatpush.msrb.mxu3 %v6107_v1 }
 0x540   :  { %1232 = vmatpush.msrb.mxu0 %v6131_v25  ;;  %1212 = vmatpush.msrb.mxu3 %v6114_v7  ;;  %v10134_v7 = vld [vmem:[#allocation28_spill] sm:$0xff] }
 0x541   :  { %v277_v9 = vadd.f32 %v10134_v7, %v10133_v3 }
 0x542   :  { %1333 = vmatpush.msra.mxu3 %v6219_v54  ;;  %1353 = vmatpush.msra.mxu0 %v6221_v16 }
 0x544   :  { %1334 = vmatpush.msra.mxu3 %v6223_v55  ;;  %1354 = vmatpush.msra.mxu0 %v6227_v2 }
 0x546   :  { %1335 = vmatpush.msra.mxu3 %v6229_v48  ;;  %1355 = vmatpush.msra.mxu0 %v6231_v8 }
 0x548   :  { %1336 = vmatpush.msra.mxu3 %v6235_v47  ;;  %1356 = vmatpush.msra.mxu0 %v6237_v63 }
 0x54a   :  { %1337 = vmatpush.msra.mxu3 %v6241_v61  ;;  %1357 = vmatpush.msra.mxu0 %v6243_v50 }
 0x54c   :  { %1338 = vmatpush.msra.mxu3 %v6247_v5  ;;  %1358 = vmatpush.msra.mxu0 %v6249_v11 }
 0x54e   :  { %1339 = vmatpush.msra.mxu3 %v6253_v15  ;;  %1359 = vmatpush.msra.mxu0 %v6255_v19  ;;  %v10136_v15 = vld [vmem:[#allocation40_spill] sm:$0xff] }
 0x550   :  { %1340 = vmatpush.msra.mxu3 %v6259_v23  ;;  %1360 = vmatpush.msra.mxu0 %v6261_v27  ;;  %v10137_v23 = vld [vmem:[#allocation39_spill] sm:$0xff] }
 0x551   :  { %v318_v27 = vadd.f32 %v6175_v22, %v10137_v23 }
 0x552   :  { %1341 = vmatpush.msra.mxu3 %v6265_v31  ;;  %1361 = vmatpush.msra.mxu0 %v6267_v34 }
 0x554   :  { %1342 = vmatpush.msra.mxu3 %v6271_v42  ;;  %1362 = vmatpush.msra.mxu0 %v6273_v57 }
 0x556   :  { %1343 = vmatpush.msra.mxu3 %v6277_v0  ;;  %1363 = vmatpush.msra.mxu0 %v6279_v60 }
 0x558   :  { %1344 = vmatpush.msra.mxu3 %v6283_v45  ;;  %1364 = vmatpush.msra.mxu0 %v6285_v58 }
 0x55a   :  { %1345 = vmatpush.msra.mxu3 %v6289_v12  ;;  %1365 = vmatpush.msra.mxu0 %v6291_v52 }
 0x55c   :  { %1346 = vmatpush.msra.mxu3 %v6295_v35  ;;  %1366 = vmatpush.msra.mxu0 %v6297_v46 }
 0x55e   :  { %1347 = vmatpush.msra.mxu3 %v6301_v24  ;;  %1367 = vmatpush.msra.mxu0 %v6303_v18 }
 0x560   :  { %1348 = vmatpush.msra.mxu3 %v6309_v28  ;;  %1368 = vmatpush.msra.mxu0 %v6311_v20  ;;  %v1096_v20 = vadd.f32 %v1053_v39, %v277_v9 }
 0x562   :  { %v1099_v24 = vmul.f32 0.5, %v1096_v20 }
 0x59e   :  { %v914_v51 = vpop.f32.mrf.mxu0 }
 0x59f   :  { %v915_v40 = vadd.f32 %v914_v51, %v6469_v26 }
 0x5a1   :  { %926 = vrot.lane.b32.xlu0 %v915_v40, %s5628_s0  ;;  %v921_v31 = vmul.f32 0.5, %v915_v40 }
 0x5a4   :  { %v894_v1 = vpop.f32.mrf.mxu3 }
 0x5a5   :  { %v895_v21 = vadd.f32 %v894_v1, %v6473_v43 }
 0x5a6   :  { %v1093_v25 = vpop.f32.mrf.mxu0 }
 0x5a7   :  { %v6480_v28 = vadd.f32 %v1093_v25, %v359_v17  ;;  %930 = vrot.lane.b32.xlu1 %v895_v21, %s5628_s0  ;;  %v917_v18 = vmul.f32 0.5, %v895_v21 }
 0x5a9   :  { %1112 = vrot.lane.b32.xlu2 %v6480_v28, %s5622_s8  ;;  %1116 = vrot.lane.b32.xlu0 %v1096_v20, %s5622_s8  ;;  %4334 = vtanh.f32 %v917_v18  ;;  %v1107_v25 = vmul.f32 0.5, %v6480_v28  ;;  %v6518_v20 = vld [vmem:[#allocation17 + $0x78] sm:$0xff]  ;;  %v6520_v18 = vld [vmem:[#allocation17 + $0x70] sm:$0xff] }
 0x5aa   :  { %4336 = vtanh.f32 %v1099_v24  ;;  %985 = vmatpush.msrb.mxu1 %v6518_v20  ;;  %v6523_v24 = vld [vmem:[#allocation17 + $0x68] sm:$0xff] }
 0x5ac   :  { %v1073_v11 = vpop.f32.mrf.mxu3  ;;  %986 = vmatpush.msrb.mxu1 %v6520_v18 }
 0x5ad   :  { %v1097_v57 = vadd.f32 %v1073_v11, %v318_v27 }
 0x5ae   :  { %987 = vmatpush.msrb.mxu1 %v6523_v24 }
 0x5af   :  { %v4335_v38 = vpop.eup %4334  ;;  %v1103_v0 = vmul.f32 0.5, %v1097_v57 }
 0x5b0   :  { %v4337_v12 = vpop.eup %4336  ;;  %v919_v55 = vmul.f32 0.5, %v4335_v38 }
 0x5b1   :  { %v1101_v48 = vmul.f32 0.5, %v4337_v12 }
 0x5b2   :  { %v6488_v8 = vadd.f32 0.5, %v919_v55 }
 0x5b3   :  { %v1102_v63 = vadd.f32 0.5, %v1101_v48  ;;  %v6706_v48 = vld [vmem:[#allocation11 + $0x288] sm:$0xff] }
 0x5b4   :  { %v936_v22 = vmul.f32 0.0, %v6488_v8  ;;  %10159 = vst [vmem:[#allocation55_spill] sm:$0xff] %v6706_v48 }
 0x5b5   :  { %v1121_v19 = vmul.f32 %v1102_v63, %v10136_v15 }
 0x603   :  { %v1113_v54 = vpop.permute.xlu2 %1112 }
 0x613   :  { %v927_v46 = vpop.permute.xlu0 %926 }
 0x619   :  { %v931_v35 = vpop.permute.xlu1 %930 }
 0x61a   :  { %v934_v52 = vsel %vm933_vm5, %v927_v46, %v931_v35  ;;  %v6526_v46 = vld [vmem:[#allocation17 + $0x60] sm:$0xff]  ;;  %v6529_v35 = vld [vmem:[#allocation17 + $0x58] sm:$0xff] }
 0x61b   :  { %4338 = vtanh.f32 %v934_v52  ;;  %v1117_v16 = vpop.permute.xlu0 %1116  ;;  %988 = vmatpush.msrb.mxu1 %v6526_v46 }
 0x61c   :  { %v1119_v2 = vsel %vm543_vm0, %v1113_v54, %v1117_v16  ;;  %v6536_v54 = vld [vmem:[#allocation17 + $0x50] sm:$0xff] }
 0x61d   :  { %4340 = vtanh.f32 %v1119_v2  ;;  %989 = vmatpush.msrb.mxu1 %v6529_v35  ;;  %v6543_v2 = vld [vmem:[#allocation17 + $0x48] sm:$0xff] }
 0x61f   :  { %990 = vmatpush.msrb.mxu1 %v6536_v54 }
 0x621   :  { %v4339_v47 = vpop.eup %4338  ;;  %991 = vmatpush.msrb.mxu1 %v6543_v2 }
 0x622   :  { %v938_v61 = vmul.f32 %v4339_v47, %v6488_v8 }
 0x623   :  { %v4341_v50 = vpop.eup %4340 }
 0x624   :  { %940 = vrot.lane.b32.xlu1 %v938_v61, %s5629_s16  ;;  %v1123_v5 = vmul.f32 %v4341_v50, %v1102_v63  ;;  %v6553_v50 = vld [vmem:[#allocation17 + $0x38] sm:$0xff] }
 0x626   :  { %1125 = vrot.lane.b32.xlu2 %v1123_v5, %s5623_s10 }
 0x680   :  { %v1126_v34 = vpop.permute.xlu2 %1125 }
 0x681   :  { %v6496_v42 = vadd.f32 %v1126_v34, %v1121_v19  ;;  %v6557_v19 = vld [vmem:[#allocation17 + $0x30] sm:$0xff] }
 0x683   :  { %4342 = vtanh.f32 %v6496_v42 }
 0x684   :  { %4344 = vtanh.f32 %v921_v31  ;;  %v6560_v31 = vld [vmem:[#allocation17 + $0x28] sm:$0xff] }
 0x685   :  { %4346 = vtanh.f32 %v1103_v0  ;;  %v6567_v0 = vld [vmem:[#allocation17 + $0x18] sm:$0xff] }
 0x689   :  { %v4343_v60 = vpop.eup %4342 }
 0x68a   :  { %v4345_v45 = vpop.eup %4344  ;;  %1134 = vrot.lane.b32.xlu2 %v4343_v60, %s5623_s10 }
 0x68b   :  { %v923_v58 = vmul.f32 0.5, %v4345_v45  ;;  %v4347_v33 = vpop.eup %4346  ;;  %v6572_v45 = vld [vmem:[#allocation17 + $0x10] sm:$0xff] }
 0x68c   :  { %v1105_v59 = vmul.f32 0.5, %v4347_v33  ;;  %v6578_v33 = vld [vmem:[#allocation17 + $0x8] sm:$0xff] }
 0x68d   :  { %v924_v62 = vadd.f32 0.5, %v923_v58  ;;  %v6575_v58 = vld [vmem:[#allocation8 + $0x168] sm:$0xff] }
 0x68e   :  { %v1106_v56 = vadd.f32 0.5, %v1105_v59  ;;  %v6582_v59 = vld [vmem:[#allocation8 + $0x150] sm:$0xff] }
 0x68f   :  { %v937_v49 = vmul.f32 0.0, %v924_v62 }
 0x690   :  { %v1122_v51 = vmul.f32 %v1106_v56, %v10138_v6  ;;  %v6600_v6 = vld [vmem:[#allocation8 + $0x108] sm:$0xff] }
 0x692   :  { %v6509_v40 = vadd.f32 %v1126_v34, %v1122_v51  ;;  %v6564_v34 = vld [vmem:[#allocation17 + $0x20] sm:$0xff]  ;;  %v6604_v51 = vld [vmem:[#allocation11 + $0x150] sm:$0xff] }
 0x696   :  { %v941_v4 = vpop.permute.xlu1 %940 }
 0x697   :  { %v6501_v53 = vadd.f32 %v941_v4, %v936_v22  ;;  %v6503_v14 = vadd.f32 %v941_v4, %v937_v49  ;;  %v10140_v49 = vld [vmem:[#allocation78_spill] sm:$0xff]  ;;  %v6589_v22 = vld [vmem:[#allocation8 + $0x138] sm:$0xff] }
 0x698   :  { %v10141_v4 = vld [vmem:[#allocation80_spill] sm:$0xff] }
 0x699   :  { %4348 = vtanh.f32 %v6501_v53 }
 0x69a   :  { %4350 = vtanh.f32 %v6503_v14 }
 0x69b   :  { %4352 = vtanh.f32 %v802_v44  ;;  %v6597_v44 = vld [vmem:[#allocation11 + $0x168] sm:$0xff] }
 0x69c   :  { %4354 = vtanh.f32 %v6509_v40 }
 0x69d   :  { %4356 = vtanh.f32 %v1107_v25  ;;  %v6635_v25 = vld [vmem:[#allocation8 + $0x90] sm:$0xff] }
 0x69f   :  { %v4349_v39 = vpop.eup %4348 }
 0x6a0   :  { %v4351_v1 = vpop.eup %4350  ;;  %949 = vrot.lane.b32.xlu0 %v4349_v39, %s5629_s16  ;;  %v6607_v39 = vld [vmem:[#allocation8 + $0xf0] sm:$0xff] }
 0x6a1   :  { %951 = vrot.lane.b32.xlu1 %v4351_v1, %s5629_s16  ;;  %v4353_v7 = vpop.eup %4352  ;;  %v10142_v1 = vld [vmem:[#allocation83_spill] sm:$0xff] }
 0x6a2   :  { %v4355_v9 = vpop.eup %4354  ;;  %v804_v17 = vmul.f32 0.5, %v4353_v7  ;;  %v6611_v7 = vld [vmem:[#allocation11 + $0x138] sm:$0xff] }
 0x6a4   :  { %v805_v21 = vadd.f32 0.5, %v804_v17  ;;  %v6621_v17 = vld [vmem:[#allocation8 + $0xc0] sm:$0xff] }
 0x6a6   :  { %v839_v32 = vmul.f32 %v6307_v37, %v805_v21  ;;  %v4357_v37 = vpop.eup %4356  ;;  %v6625_v21 = vld [vmem:[#allocation11 + $0x108] sm:$0xff] }
 0x6a7   :  { %v1109_v16 = vmul.f32 0.5, %v4357_v37  ;;  %v10143_v37 = vld [vmem:[#allocation85_spill] sm:$0xff] }
 0x6a8   :  { %1136 = vrot.lane.b32.xlu0 %v4355_v9, %s5623_s10  ;;  %v6614_v9 = vld [vmem:[#allocation8 + $0xd8] sm:$0xff] }
 0x6a9   :  { %v1110_v47 = vadd.f32 0.5, %v1109_v16  ;;  %v10145_v16 = vld [vmem:[#allocation87_spill] sm:$0xff] }
 0x6b0   :  { %1152 = vrot.lane.b32.xlu0 %v839_v32, %s5627_s1  ;;  %v6628_v32 = vld [vmem:[#allocation8 + $0xa8] sm:$0xff] }
 0x6e4   :  { %v1135_v63 = vpop.permute.xlu2 %1134 }
 0x712   :  { %v950_v38 = vpop.permute.xlu0 %949 }
 0x713   :  { %v952_v28 = vpop.permute.xlu1 %951  ;;  %v6532_v52 = vmul.f32 %v950_v38, %v6488_v8  ;;  %v6550_v8 = vld [vmem:[#allocation17 + $0x40] sm:$0xff] }
 0x714   :  { %v954_v12 = vsel %vm953_vm6, %v950_v38, %v952_v28  ;;  %992 = vmatpush.msrb.mxu1 %v6550_v8  ;;  %v6642_v38 = vld [vmem:[#allocation8 + $0x78] sm:$0xff]  ;;  %v10144_v28 = vld [vmem:[#allocation86_spill] sm:$0xff] }
 0x715   :  { %961 = vrot.lane.b32.xlu1 %v6532_v52, %s5630_s17  ;;  %v6540_v55 = vmul.f32 %v954_v12, %v924_v62  ;;  %v10139_v62 = vld [vmem:[#allocation76_spill] sm:$0xff]  ;;  %v6649_v12 = vld [vmem:[#allocation8 + $0x60] sm:$0xff] }
 0x716   :  { %993 = vmatpush.msrb.mxu1 %v6553_v50 }
 0x717   :  { %963 = vrot.lane.b32.xlu2 %v6540_v55, %s5630_s17 }
 0x718   :  { %994 = vmatpush.msrb.mxu1 %v6557_v19 }
 0x71a   :  { %v1137_v61 = vpop.permute.xlu0 %1136  ;;  %995 = vmatpush.msrb.mxu1 %v6560_v31 }
 0x71b   :  { %v1138_v5 = vsel %vm563_vm1, %v1135_v63, %v1137_v61  ;;  %v1142_v11 = vmul.f32 %v1137_v61, %v1110_v47  ;;  %v6653_v47 = vld [vmem:[#allocation11 + $0xa8] sm:$0xff]  ;;  %v10147_v61 = vld [vmem:[#allocation88_spill] sm:$0xff] }
 0x71c   :  { %v1141_v15 = vmul.f32 %v1138_v5, %v1106_v56  ;;  %996 = vmatpush.msrb.mxu1 %v6564_v34  ;;  %v6594_v56 = vld [vmem:[#allocation8 + $0x120] sm:$0xff]  ;;  %v6656_v63 = vld [vmem:[#allocation8 + $0x48] sm:$0xff]  ;;  %v6660_v5 = vld [vmem:[#allocation11 + $0x90] sm:$0xff] }
 0x71d   :  { %10146 = vst [vmem:[#allocation47_spill] sm:$0xff] %v6656_v63 }
 0x71e   :  { %v4204_v27 = vpack.i.bf16 %v1142_v11, %v1141_v15  ;;  %997 = vmatpush.msrb.mxu1 %v6567_v0  ;;  %v6663_v11 = vld [vmem:[#allocation8 + $0x30] sm:$0xff]  ;;  %v10149_v15 = vld [vmem:[#allocation89_spill] sm:$0xff] }
 0x71f   :  { %10148 = vst [vmem:[#allocation42_spill] sm:$0xff] %v6663_v11 }
 0x720   :  { %4205 = vrot.lane.b32.xlu1 %v4204_v27, %s5624_s13  ;;  %998 = vmatpush.msrb.mxu1 %v6572_v45  ;;  %v6667_v27 = vld [vmem:[#allocation11 + $0x78] sm:$0xff] }
 0x722   :  { %v1153_v57 = vpop.permute.xlu0 %1152  ;;  %999 = vmatpush.msrb.mxu1 %v6578_v33 }
 0x723   :  { %v1155_v60 = vsel %vm1154_vm7, %v6397_v29, %v1153_v57  ;;  %v6585_v29 = vld [vmem:[#allocation17] sm:$0xff]  ;;  %v6670_v57 = vld [vmem:[#allocation8 + $0x18] sm:$0xff] }
 0x724   :  { %1193 = vmatmul.f32.vlgmr.msra.gmra.mxu2 %v1155_v60  ;;  %1233 = vmatmul.f32.vlgmr.msrb.gmra.mxu0 %v1155_v60  ;;  %10150 = vst [vmem:[#allocation49_spill] sm:$0xff] %v6670_v57 }
 0x725   :  { %1477 = vmatpush.msra.mxu2 %v6575_v58  ;;  %1517 = vmatpush.msrb.mxu0 %v10139_v62  ;;  %v6674_v62 = vld [vmem:[#allocation11 + $0x60] sm:$0xff] }
 0x726   :  { %1000 = vmatpush.msrb.mxu1 %v6585_v29 }
 0x727   :  { %1478 = vmatpush.msra.mxu2 %v6582_v59  ;;  %1518 = vmatpush.msrb.mxu0 %v10140_v49  ;;  %v6677_v49 = vld [vmem:[#allocation8] sm:$0xff] }
 0x728   :  { %1157 = vmatpush.msra.mxu1 %v6597_v44  ;;  %10152 = vst [vmem:[#allocation43_spill] sm:$0xff] %v6677_v49 }
 0x729   :  { %1479 = vmatpush.msra.mxu2 %v6589_v22  ;;  %1519 = vmatpush.msrb.mxu0 %v10141_v4  ;;  %v10153_v4 = vld [vmem:[#allocation37_spill] sm:$0xff] }
 0x72a   :  { %1158 = vmatpush.msra.mxu1 %v6604_v51 }
 0x72b   :  { %1480 = vmatpush.msra.mxu2 %v6594_v56  ;;  %1520 = vmatpush.msrb.mxu0 %v6342_v41  ;;  %v6618_v41 = vld [vmem:[#allocation11 + $0x120] sm:$0xff] }
 0x72c   :  { %1273 = vmatmul.f32.vlgmr.msrb.gmra.mxu2 %v1155_v60  ;;  %1159 = vmatpush.msra.mxu1 %v6611_v7  ;;  %v10151_v60 = vld [vmem:[#allocation90_spill] sm:$0xff] }
 0x72d   :  { %1481 = vmatpush.msra.mxu2 %v6600_v6  ;;  %1521 = vmatpush.msrb.mxu0 %v10142_v1  ;;  %v6681_v1 = vld [vmem:[#allocation11 + $0x48] sm:$0xff] }
 0x72e   :  { %1160 = vmatpush.msra.mxu1 %v6618_v41 }
 0x72f   :  { %1482 = vmatpush.msra.mxu2 %v6607_v39  ;;  %1522 = vmatpush.msrb.mxu0 %v6354_v36  ;;  %v6632_v36 = vld [vmem:[#allocation11 + $0xf0] sm:$0xff] }
 0x730   :  { %1161 = vmatpush.msra.mxu1 %v6625_v21 }
 0x731   :  { %1483 = vmatpush.msra.mxu2 %v6614_v9  ;;  %1523 = vmatpush.msrb.mxu0 %v6358_v30  ;;  %v6639_v30 = vld [vmem:[#allocation11 + $0xd8] sm:$0xff] }
 0x732   :  { %1162 = vmatpush.msra.mxu1 %v6632_v36 }
 0x733   :  { %1484 = vmatpush.msra.mxu2 %v6621_v17  ;;  %1524 = vmatpush.msrb.mxu0 %v6362_v10  ;;  %v6646_v10 = vld [vmem:[#allocation11 + $0xc0] sm:$0xff] }
 0x734   :  { %1163 = vmatpush.msra.mxu1 %v6639_v30 }
 0x735   :  { %1485 = vmatpush.msra.mxu2 %v6628_v32  ;;  %1525 = vmatpush.msrb.mxu0 %v10143_v37  ;;  %v6684_v37 = vld [vmem:[#allocation11 + $0x2e8] sm:$0xff] }
 0x736   :  { %1164 = vmatpush.msra.mxu1 %v6646_v10  ;;  %10154 = vst [vmem:[#allocation51_spill] sm:$0xff] %v6684_v37 }
 0x737   :  { %1486 = vmatpush.msra.mxu2 %v6635_v25  ;;  %1526 = vmatpush.msrb.mxu0 %v10144_v28  ;;  %v10155_v28 = vld [vmem:[#allocation38_spill] sm:$0xff] }
 0x738   :  { %1165 = vmatpush.msra.mxu1 %v6653_v47 }
 0x739   :  { %1487 = vmatpush.msra.mxu2 %v6642_v38  ;;  %1527 = vmatpush.msrb.mxu0 %v10145_v16  ;;  %v6688_v16 = vld [vmem:[#allocation11 + $0x30] sm:$0xff] }
 0x73a   :  { %1166 = vmatpush.msra.mxu1 %v6660_v5 }
 0x73b   :  { %1488 = vmatpush.msra.mxu2 %v6649_v12  ;;  %1528 = vmatpush.msrb.mxu0 %v10147_v61  ;;  %v6691_v61 = vld [vmem:[#allocation11 + $0x2d0] sm:$0xff] }
 0x73c   :  { %1167 = vmatpush.msra.mxu1 %v6667_v27  ;;  %10156 = vst [vmem:[#allocation44_spill] sm:$0xff] %v6691_v61 }
 0x73d   :  { %1489 = vmatpush.msra.mxu2 %v6656_v63  ;;  %1529 = vmatpush.msrb.mxu0 %v10149_v15  ;;  %v6694_v15 = vld [vmem:[#allocation11 + $0x18] sm:$0xff]  ;;  %v6765_v63 = vld [vmem:[#allocation11 + $0xe8] sm:$0xff] }
 0x73e   :  { %1168 = vmatpush.msra.mxu1 %v6674_v62  ;;  %10176 = vst [vmem:[#allocation80_spill] sm:$0xff] %v6765_v63 }
 0x73f   :  { %1490 = vmatpush.msra.mxu2 %v6663_v11  ;;  %1530 = vmatpush.msrb.mxu0 %v10151_v60  ;;  %v6697_v60 = vld [vmem:[#allocation11 + $0x2b8] sm:$0xff] }
 0x740   :  { %1169 = vmatpush.msra.mxu1 %v6681_v1  ;;  %10157 = vst [vmem:[#allocation53_spill] sm:$0xff] %v6697_v60  ;;  %v6756_v11 = vld [vmem:[#allocation11 + $0x118] sm:$0xff] }
 0x741   :  { %1491 = vmatpush.msra.mxu2 %v6670_v57  ;;  %1531 = vmatpush.msrb.mxu0 %v10153_v4  ;;  %v6700_v4 = vld [vmem:[#allocation11] sm:$0xff]  ;;  %10174 = vst [vmem:[#allocation76_spill] sm:$0xff] %v6756_v11 }
 0x742   :  { %1170 = vmatpush.msra.mxu1 %v6688_v16 }
 0x743   :  { %1492 = vmatpush.msra.mxu2 %v6677_v49  ;;  %1532 = vmatpush.msrb.mxu0 %v10155_v28  ;;  %v6703_v28 = vld [vmem:[#allocation11 + $0x2a0] sm:$0xff]  ;;  %v6718_v49 = vld [vmem:[#allocation11 + $0x228] sm:$0xff] }
 0x744   :  { %1171 = vmatpush.msra.mxu1 %v6694_v15  ;;  %10158 = vst [vmem:[#allocation45_spill] sm:$0xff] %v6703_v28 }
 0x745   :  { %1617 = vmatpush.msrb.mxu2 %v6684_v37  ;;  %v6712_v37 = vld [vmem:[#allocation11 + $0x258] sm:$0xff]  ;;  %10163 = vst [vmem:[#allocation59_spill] sm:$0xff] %v6718_v49 }
 0x746   :  { %1172 = vmatpush.msra.mxu1 %v6700_v4  ;;  %10161 = vst [vmem:[#allocation57_spill] sm:$0xff] %v6712_v37 }
 0x747   :  { %1618 = vmatpush.msrb.mxu2 %v6691_v61  ;;  %v6709_v61 = vld [vmem:[#allocation11 + $0x270] sm:$0xff] }
 0x748   :  { %10160 = vst [vmem:[#allocation46_spill] sm:$0xff] %v6709_v61 }
 0x749   :  { %1619 = vmatpush.msrb.mxu2 %v6697_v60  ;;  %v6715_v60 = vld [vmem:[#allocation11 + $0x240] sm:$0xff] }
 0x74a   :  { %10162 = vst [vmem:[#allocation48_spill] sm:$0xff] %v6715_v60 }
 0x74b   :  { %1620 = vmatpush.msrb.mxu2 %v6703_v28  ;;  %v6721_v28 = vld [vmem:[#allocation11 + $0x210] sm:$0xff] }
 0x74c   :  { %10164 = vst [vmem:[#allocation50_spill] sm:$0xff] %v6721_v28 }
 0x74d   :  { %1621 = vmatpush.msrb.mxu2 %v6706_v48  ;;  %v6724_v48 = vld [vmem:[#allocation11 + $0x1f8] sm:$0xff] }
 0x74e   :  { %10165 = vst [vmem:[#allocation60_spill] sm:$0xff] %v6724_v48 }
 0x74f   :  { %1622 = vmatpush.msrb.mxu2 %v6709_v61  ;;  %v6727_v61 = vld [vmem:[#allocation11 + $0x1e0] sm:$0xff] }
 0x750   :  { %10166 = vst [vmem:[#allocation52_spill] sm:$0xff] %v6727_v61 }
 0x751   :  { %1623 = vmatpush.msrb.mxu2 %v6712_v37  ;;  %v6730_v37 = vld [vmem:[#allocation11 + $0x1c8] sm:$0xff] }
 0x752   :  { %10167 = vst [vmem:[#allocation54_spill] sm:$0xff] %v6730_v37 }
 0x753   :  { %1624 = vmatpush.msrb.mxu2 %v6715_v60  ;;  %v6733_v60 = vld [vmem:[#allocation11 + $0x1b0] sm:$0xff] }
 0x754   :  { %10168 = vst [vmem:[#allocation56_spill] sm:$0xff] %v6733_v60 }
 0x755   :  { %1625 = vmatpush.msrb.mxu2 %v6718_v49  ;;  %v6736_v49 = vld [vmem:[#allocation11 + $0x198] sm:$0xff] }
 0x756   :  { %10169 = vst [vmem:[#allocation58_spill] sm:$0xff] %v6736_v49 }
 0x757   :  { %1626 = vmatpush.msrb.mxu2 %v6721_v28  ;;  %v6739_v28 = vld [vmem:[#allocation11 + $0x180] sm:$0xff] }
 0x758   :  { %10170 = vst [vmem:[#allocation28_spill] sm:$0xff] %v6739_v28 }
 0x759   :  { %1627 = vmatpush.msrb.mxu2 %v6724_v48 }
 0x75b   :  { %1628 = vmatpush.msrb.mxu2 %v6727_v61 }
 0x75d   :  { %1629 = vmatpush.msrb.mxu2 %v6730_v37  ;;  %v6744_v37 = vld [vmem:[#allocation11 + $0x178] sm:$0xff] }
 0x75e   :  { %10171 = vst [vmem:[#allocation40_spill] sm:$0xff] %v6744_v37 }
 0x75f   :  { %1630 = vmatpush.msrb.mxu2 %v6733_v60  ;;  %v6747_v60 = vld [vmem:[#allocation11 + $0x160] sm:$0xff] }
 0x760   :  { %10172 = vst [vmem:[#allocation39_spill] sm:$0xff] %v6747_v60 }
 0x761   :  { %1631 = vmatpush.msrb.mxu2 %v6736_v49  ;;  %v6750_v49 = vld [vmem:[#allocation11 + $0x148] sm:$0xff] }
 0x763   :  { %1632 = vmatpush.msrb.mxu2 %v6739_v28  ;;  %v6753_v28 = vld [vmem:[#allocation11 + $0x130] sm:$0xff] }
 0x764   :  { %10173 = vst [vmem:[#allocation41_spill] sm:$0xff] %v6753_v28 }
 0x771   :  { %v964_v48 = vpop.permute.xlu2 %963 }
 0x787   :  { %v962_v57 = vpop.permute.xlu1 %961 }
 0x788   :  { %v966_v61 = vsel %vm965_vm8, %v962_v57, %v964_v48 }
 0x789   :  { %4167 = vmatmul.msk.f32.vlgmr.msrb.gmra.mxu1 %vm953_vm6, %v966_v61 }
 0x78a   :  { %1237 = vmatpush.msrb.mxu1 %v6744_v37  ;;  %v6759_v37 = vld [vmem:[#allocation11 + $0x100] sm:$0xff] }
 0x78b   :  { %10175 = vst [vmem:[#allocation78_spill] sm:$0xff] %v6759_v37 }
 0x78c   :  { %1238 = vmatpush.msrb.mxu1 %v6747_v60 }
 0x78e   :  { %1239 = vmatpush.msrb.mxu1 %v6750_v49 }
 0x790   :  { %1240 = vmatpush.msrb.mxu1 %v6753_v28  ;;  %v6785_v28 = vld [vmem:[#allocation11 + $0xa0] sm:$0xff] }
 0x791   :  { %10183 = vst [vmem:[#allocation88_spill] sm:$0xff] %v6785_v28 }
 0x792   :  { %1241 = vmatpush.msrb.mxu1 %v6756_v11  ;;  %v4206_v48 = vpop.permute.xlu1 %4205  ;;  %v6771_v11 = vld [vmem:[#allocation11 + $0xd0] sm:$0xff] }
 0x793   :  { %v4208_v57 = vunpack.i.h.bf16 %v4206_v48  ;;  %v4207_v61 = vunpack.i.l.bf16 %v4206_v48  ;;  %10177 = vst [vmem:[#allocation83_spill] sm:$0xff] %v6771_v11  ;;  %v10178_v48 = vld [vmem:[#allocation75_spill] sm:$0xff] }
 0x794   :  { %1242 = vmatpush.msrb.mxu1 %v6759_v37  ;;  %v6775_v37 = vld [vmem:[#allocation11 + $0x2f8] sm:$0xff] }
 0x795   :  { %v6763_v60 = vsel %vm575_vm2, %v4207_v61, %v4208_v57  ;;  %10179 = vst [vmem:[#allocation85_spill] sm:$0xff] %v6775_v37  ;;  %v6778_v57 = vld [vmem:[#allocation11 + $0xb8] sm:$0xff] }
 0x796   :  { %1243 = vmatpush.msrb.mxu1 %v6765_v63  ;;  %1213 = vmatmul.f32.vlgmr.msrb.gmra.mxu3 %v6763_v60  ;;  %10180 = vst [vmem:[#allocation86_spill] sm:$0xff] %v6778_v57  ;;  %v10181_v61 = vld [vmem:[#allocation77_spill] sm:$0xff]  ;;  %v6782_v63 = vld [vmem:[#allocation11 + $0x2e0] sm:$0xff] }
 0x797   :  { %1173 = vmatmul.f32.vlgmr.msra.gmra.mxu1 %v6763_v60  ;;  %1493 = vmatmul.f32.vlgmr.msra.gmra.mxu2 %v6763_v60  ;;  %10182 = vst [vmem:[#allocation87_spill] sm:$0xff] %v6782_v63 }
 0x798   :  { %1244 = vmatpush.msrb.mxu1 %v6771_v11  ;;  %1497 = vmatpush.msrb.mxu3 %v10178_v48  ;;  %v10184_v11 = vld [vmem:[#allocation79_spill] sm:$0xff] }
 0x799   :  { %1697 = vmatpush.msra.mxu2 %v6775_v37  ;;  %v6789_v48 = vld [vmem:[#allocation11 + $0x2c8] sm:$0xff] }
 0x79a   :  { %1245 = vmatpush.msrb.mxu1 %v6778_v57  ;;  %1498 = vmatpush.msrb.mxu3 %v10181_v61  ;;  %10185 = vst [vmem:[#allocation89_spill] sm:$0xff] %v6789_v48  ;;  %v6792_v37 = vld [vmem:[#allocation11 + $0x88] sm:$0xff]  ;;  %v10187_v57 = vld [vmem:[#allocation81_spill] sm:$0xff]  ;;  %v6796_v61 = vld [vmem:[#allocation11 + $0x2b0] sm:$0xff] }
 0x79b   :  { %1698 = vmatpush.msra.mxu2 %v6782_v63  ;;  %10186 = vst [vmem:[#allocation90_spill] sm:$0xff] %v6792_v37  ;;  %v6799_v63 = vld [vmem:[#allocation11 + $0x70] sm:$0xff] }
 0x79c   :  { %1246 = vmatpush.msrb.mxu1 %v6785_v28  ;;  %1499 = vmatpush.msrb.mxu3 %v10184_v11  ;;  %10188 = vst [vmem:[#allocation37_spill] sm:$0xff] %v6796_v61  ;;  %v10190_v28 = vld [vmem:[#allocation82_spill] sm:$0xff]  ;;  %v6803_v11 = vld [vmem:[#allocation11 + $0x298] sm:$0xff] }
 0x79d   :  { %1699 = vmatpush.msra.mxu2 %v6789_v48  ;;  %10189 = vst [vmem:[#allocation38_spill] sm:$0xff] %v6799_v63  ;;  %v6806_v48 = vld [vmem:[#allocation11 + $0x58] sm:$0xff] }
 0x79e   :  { %1247 = vmatpush.msrb.mxu1 %v6792_v37  ;;  %1500 = vmatpush.msrb.mxu3 %v10187_v57  ;;  %10191 = vst [vmem:[#allocation75_spill] sm:$0xff] %v6803_v11  ;;  %v10193_v37 = vld [vmem:[#allocation84_spill] sm:$0xff]  ;;  %v6810_v57 = vld [vmem:[#allocation11 + $0x280] sm:$0xff] }
 0x79f   :  { %1700 = vmatpush.msra.mxu2 %v6796_v61  ;;  %10192 = vst [vmem:[#allocation77_spill] sm:$0xff] %v6806_v48  ;;  %v6813_v61 = vld [vmem:[#allocation11 + $0x40] sm:$0xff] }
 0x7a0   :  { %1248 = vmatpush.msrb.mxu1 %v6799_v63  ;;  %1501 = vmatpush.msrb.mxu3 %v10190_v28  ;;  %10194 = vst [vmem:[#allocation79_spill] sm:$0xff] %v6813_v61  ;;  %v6816_v63 = vld [vmem:[#allocation8 + $0xe0] sm:$0xff]  ;;  %v6819_v28 = vld [vmem:[#allocation11 + $0x268] sm:$0xff] }
 0x7a1   :  { %1701 = vmatpush.msra.mxu2 %v6803_v11  ;;  %10195 = vst [vmem:[#allocation81_spill] sm:$0xff] %v6816_v63  ;;  %v6822_v11 = vld [vmem:[#allocation11 + $0x28] sm:$0xff] }
 0x7a2   :  { %1249 = vmatpush.msrb.mxu1 %v6806_v48  ;;  %1502 = vmatpush.msrb.mxu3 %v10193_v37  ;;  %10196 = vst [vmem:[#allocation82_spill] sm:$0xff] %v6819_v28  ;;  %v6825_v37 = vld [vmem:[#allocation8 + $0xc8] sm:$0xff]  ;;  %v6828_v48 = vld [vmem:[#allocation11 + $0x250] sm:$0xff] }
 0x7a3   :  { %1702 = vmatpush.msra.mxu2 %v6810_v57  ;;  %10197 = vst [vmem:[#allocation84_spill] sm:$0xff] %v6822_v11 }
 0x7a4   :  { %1250 = vmatpush.msrb.mxu1 %v6813_v61  ;;  %1503 = vmatpush.msrb.mxu3 %v6816_v63  ;;  %10198 = vst [vmem:[#allocation91_spill] sm:$0xff] %v6828_v48  ;;  %v6831_v61 = vld [vmem:[#allocation11 + $0x10] sm:$0xff] }
 0x7a5   :  { %1703 = vmatpush.msra.mxu2 %v6819_v28  ;;  %10199 = vst [vmem:[#allocation92_spill] sm:$0xff] %v6831_v61  ;;  %v6834_v63 = vld [vmem:[#allocation8 + $0xb0] sm:$0xff]  ;;  %v6838_v28 = vld [vmem:[#allocation11 + $0x238] sm:$0xff] }
 0x7a6   :  { %1251 = vmatpush.msrb.mxu1 %v6822_v11  ;;  %1504 = vmatpush.msrb.mxu3 %v6825_v37  ;;  %10200 = vst [vmem:[#allocation93_spill] sm:$0xff] %v6834_v63  ;;  %v6841_v11 = vld [vmem:[#allocation8 + $0x98] sm:$0xff] }
 0x7a7   :  { %1704 = vmatpush.msra.mxu2 %v6828_v48  ;;  %10201 = vst [vmem:[#allocation94_spill] sm:$0xff] %v6838_v28  ;;  %v6845_v48 = vld [vmem:[#allocation11 + $0x220] sm:$0xff] }
 0x7a8   :  { %1252 = vmatpush.msrb.mxu1 %v6831_v61  ;;  %1505 = vmatpush.msrb.mxu3 %v6834_v63  ;;  %10202 = vst [vmem:[#allocation95_spill] sm:$0xff] %v6845_v48  ;;  %v6848_v61 = vld [vmem:[#allocation8 + $0x80] sm:$0xff]  ;;  %v6852_v63 = vld [vmem:[#allocation11 + $0x208] sm:$0xff] }
 0x7a9   :  { %1253 = vmatmul.f32.vlgmr.msrb.gmra.mxu1 %v6763_v60  ;;  %1705 = vmatpush.msra.mxu2 %v6838_v28  ;;  %10203 = vst [vmem:[#allocation96_spill] sm:$0xff] %v6852_v63  ;;  %v6855_v28 = vld [vmem:[#allocation8 + $0x68] sm:$0xff] }
 0x7aa   :  { %1506 = vmatpush.msrb.mxu3 %v6841_v11  ;;  %1426 = vmatpush.msra.mxu1 %v6518_v20  ;;  %v6859_v20 = vld [vmem:[#allocation11 + $0x1f0] sm:$0xff] }
 0x7ab   :  { %1706 = vmatpush.msra.mxu2 %v6845_v48  ;;  %10204 = vst [vmem:[#allocation97_spill] sm:$0xff] %v6859_v20  ;;  %v6862_v48 = vld [vmem:[#allocation8 + $0x50] sm:$0xff] }
 0x7ac   :  { %1507 = vmatpush.msrb.mxu3 %v6848_v61  ;;  %1427 = vmatpush.msra.mxu1 %v6520_v18  ;;  %v6866_v18 = vld [vmem:[#allocation11 + $0x1d8] sm:$0xff] }
 0x7ad   :  { %1707 = vmatpush.msra.mxu2 %v6852_v63  ;;  %10205 = vst [vmem:[#allocation98_spill] sm:$0xff] %v6866_v18  ;;  %v6869_v63 = vld [vmem:[#allocation8 + $0x38] sm:$0xff] }
 0x7ae   :  { %1508 = vmatpush.msrb.mxu3 %v6855_v28  ;;  %1428 = vmatpush.msra.mxu1 %v6523_v24  ;;  %v6873_v24 = vld [vmem:[#allocation11 + $0x1c0] sm:$0xff] }
 0x7af   :  { %1708 = vmatpush.msra.mxu2 %v6859_v20  ;;  %v6876_v20 = vld [vmem:[#allocation8 + $0x20] sm:$0xff] }
 0x7b0   :  { %1509 = vmatpush.msrb.mxu3 %v6862_v48  ;;  %1429 = vmatpush.msra.mxu1 %v6526_v46  ;;  %v6880_v46 = vld [vmem:[#allocation11 + $0x1a8] sm:$0xff] }
 0x7b1   :  { %1709 = vmatpush.msra.mxu2 %v6866_v18  ;;  %v6883_v18 = vld [vmem:[#allocation8 + $0x8] sm:$0xff] }
 0x7b2   :  { %1510 = vmatpush.msrb.mxu3 %v6869_v63  ;;  %1430 = vmatpush.msra.mxu1 %v6529_v35  ;;  %v6887_v35 = vld [vmem:[#allocation11 + $0x190] sm:$0xff] }
 0x7b3   :  { %1710 = vmatpush.msra.mxu2 %v6873_v24 }
 0x7b4   :  { %1511 = vmatpush.msrb.mxu3 %v6876_v20  ;;  %1431 = vmatpush.msra.mxu1 %v6536_v54 }
 0x7b5   :  { %1711 = vmatpush.msra.mxu2 %v6880_v46 }
 0x7b6   :  { %1512 = vmatpush.msrb.mxu3 %v6883_v18  ;;  %1432 = vmatpush.msra.mxu1 %v6543_v2 }
 0x7b7   :  { %1712 = vmatpush.msra.mxu2 %v6887_v35 }
 0x7b8   :  { %1433 = vmatpush.msra.mxu1 %v6550_v8  ;;  %v6917_v8 = vld [vmem:[#allocation12 + $0x8] sm:$0xff] }
 0x7ba   :  { %1434 = vmatpush.msra.mxu1 %v6553_v50 }
 0x7bc   :  { %1435 = vmatpush.msra.mxu1 %v6557_v19  ;;  %v1234_v19 = vpop.f32.mrf.mxu0 }
 0x7be   :  { %1436 = vmatpush.msra.mxu1 %v6560_v31 }
 0x7c0   :  { %1437 = vmatpush.msra.mxu1 %v6564_v34  ;;  %v1194_v34 = vpop.f32.mrf.mxu2 }
 0x7c2   :  { %1438 = vmatpush.msra.mxu1 %v6567_v0 }
 0x7c4   :  { %1439 = vmatpush.msra.mxu1 %v6572_v45 }
 0x7c6   :  { %1440 = vmatpush.msra.mxu1 %v6578_v33 }
 0x7c8   :  { %1441 = vmatpush.msra.mxu1 %v6585_v29  ;;  %v6921_v29 = vld [vmem:[#allocation12 + $0x10] sm:$0xff] }
 0x7ca   :  { %1597 = vmatpush.msrb.mxu1 %v6597_v44 }
 0x7cc   :  { %1598 = vmatpush.msrb.mxu1 %v6604_v51  ;;  %v1274_v51 = vpop.f32.mrf.mxu2 }
 0x7ce   :  { %1599 = vmatpush.msrb.mxu1 %v6611_v7 }
 0x7d0   :  { %1600 = vmatpush.msrb.mxu1 %v6618_v41 }
 0x7d2   :  { %1601 = vmatpush.msrb.mxu1 %v6625_v21  ;;  %v6928_v21 = vld [vmem:[#allocation12] sm:$0xff] }
 0x7d4   :  { %1602 = vmatpush.msrb.mxu1 %v6632_v36 }
 0x7d6   :  { %1603 = vmatpush.msrb.mxu1 %v6639_v30 }
 0x7d8   :  { %1604 = vmatpush.msrb.mxu1 %v6646_v10 }
 0x7da   :  { %1605 = vmatpush.msrb.mxu1 %v6653_v47 }
 0x7dc   :  { %1606 = vmatpush.msrb.mxu1 %v6660_v5 }
 0x7de   :  { %1607 = vmatpush.msrb.mxu1 %v6667_v27 }
 0x7e0   :  { %1608 = vmatpush.msrb.mxu1 %v6674_v62 }
 0x7e2   :  { %1609 = vmatpush.msrb.mxu1 %v6681_v1 }
 0x7e4   :  { %1610 = vmatpush.msrb.mxu1 %v6688_v16 }
 0x7e6   :  { %1611 = vmatpush.msrb.mxu1 %v6694_v15 }
 0x7e8   :  { %1612 = vmatpush.msrb.mxu1 %v6700_v4  ;;  %v10206_v4 = vpack.i.bf16 %v6540_v55, %v6532_v52 }
 0x806   :  { %v6915_v54 = vpop.f32.mrf.mxu1 }
 0x814   :  { %v1174_v0 = vpop.f32.mrf.mxu1 }
 0x815   :  { %v1175_v36 = vadd.f32 %v6928_v21, %v1174_v0  ;;  %v10207_v0 = vld [vmem:[#allocation74_spill] sm:$0xff] }
 0x817   :  { %v1195_v30 = vadd.f32 %v1194_v34, %v1175_v36 }
 0x819   :  { %v1214_v2 = vpop.f32.mrf.mxu3  ;;  %v1277_v10 = vmul.f32 0.5, %v1195_v30 }
 0x81a   :  { %v1215_v50 = vadd.f32 %v6917_v8, %v1214_v2 }
 0x81c   :  { %v1235_v31 = vadd.f32 %v1234_v19, %v1215_v50 }
 0x81e   :  { %4358 = vtanh.f32 %v1235_v31  ;;  %v1281_v2 = vmul.f32 0.5, %v1235_v31 }
 0x824   :  { %v4359_v45 = vpop.eup %4358 }
 0x825   :  { %1295 = vrot.lane.b32.xlu2 %v4359_v45, %s5625_s14 }
 0x826   :  { %v1254_v33 = vpop.f32.mrf.mxu1 }
 0x827   :  { %v1255_v44 = vadd.f32 %v6921_v29, %v1254_v33  ;;  %v10208_v33 = vld [vmem:[#allocation73_spill] sm:$0xff] }
 0x829   :  { %v6924_v7 = vadd.f32 %v1274_v51, %v1255_v44 }
 0x82b   :  { %4360 = vtanh.f32 %v6924_v7 }
 0x82c   :  { %4362 = vtanh.f32 %v1277_v10 }
 0x82d   :  { %4364 = vtanh.f32 %v1281_v2  ;;  %v6960_v2 = vld [vmem:[#allocation11 + $0x170] sm:$0xff] }
 0x831   :  { %v4361_v41 = vpop.eup %4360 }
 0x832   :  { %1297 = vrot.lane.b32.xlu0 %v4361_v41, %s5625_s14  ;;  %v4363_v47 = vpop.eup %4362 }
 0x833   :  { %v1279_v5 = vmul.f32 0.5, %v4363_v47  ;;  %v4365_v50 = vpop.eup %4364 }
 0x834   :  { %v1283_v19 = vmul.f32 0.5, %v4365_v50  ;;  %v6963_v50 = vld [vmem:[#allocation11 + $0x2d8] sm:$0xff] }
 0x835   :  { %v1280_v1 = vadd.f32 0.5, %v1279_v5 }
 0x836   :  { %v1284_v34 = vadd.f32 0.5, %v1283_v19  ;;  %v6966_v19 = vld [vmem:[#allocation11 + $0x158] sm:$0xff] }
 0x837   :  { %v1291_v44 = vmul.f32 %v1280_v1, %v10208_v33  ;;  %v6978_v33 = vld [vmem:[#allocation11 + $0x128] sm:$0xff] }
 0x838   :  { %v1292_v45 = vmul.f32 %v1284_v34, %v10207_v0  ;;  %v6972_v0 = vld [vmem:[#allocation11 + $0x140] sm:$0xff]  ;;  %10209 = vst [vmem:[#allocation74_spill] sm:$0xff] %v6978_v33 }
 0x87f   :  { %v1296_v27 = vpop.permute.xlu2 %1295 }
 0x8a4   :  { %v1298_v62 = vpop.permute.xlu0 %1297 }
 0x8a5   :  { %v1299_v16 = vsel %vm816_vm3, %v1296_v27, %v1298_v62 }
 0x8a6   :  { %v1301_v15 = vmul.f32 %v1299_v16, %v1280_v1 }
 0x8a8   :  { %1303 = vrot.lane.b32.xlu1 %v1301_v15, %s5626_s15 }
 0x8b0   :  { %4210 = vrot.lane.b32.xlu1 %v10206_v4, %s5631_s2  ;;  %v6957_v4 = vld [vmem:[#allocation11 + $0x2f0] sm:$0xff] }
 0x91a   :  { %v1304_v51 = vpop.permute.xlu1 %1303 }
 0x91b   :  { %v6939_v41 = vadd.f32 %v1304_v51, %v1291_v44  ;;  %v6941_v36 = vadd.f32 %v1304_v51, %v1292_v45  ;;  %v6975_v45 = vld [vmem:[#allocation11 + $0x2a8] sm:$0xff]  ;;  %v6983_v44 = vld [vmem:[#allocation11 + $0x290] sm:$0xff] }
 0x91c   :  { %10210 = vst [vmem:[#allocation73_spill] sm:$0xff] %v6983_v44  ;;  %v6986_v51 = vld [vmem:[#allocation11 + $0x110] sm:$0xff] }
 0x91d   :  { %4366 = vtanh.f32 %v6939_v41  ;;  %10211 = vst [vmem:[#allocation99_spill] sm:$0xff] %v6986_v51 }
 0x91e   :  { %4368 = vtanh.f32 %v6941_v36 }
 0x922   :  { %v4211_v5 = vpop.permute.xlu1 %4210 }
 0x923   :  { %v4367_v52 = vpop.eup %4366  ;;  %v4213_v27 = vunpack.i.h.bf16 %v4211_v5  ;;  %v4212_v62 = vunpack.i.l.bf16 %v4211_v5  ;;  %v7007_v5 = vld [vmem:[#allocation11 + $0x230] sm:$0xff] }
 0x924   :  { %v4369_v55 = vpop.eup %4368  ;;  %1312 = vrot.lane.b32.xlu2 %v4367_v52, %s5626_s15  ;;  %v6989_v52 = vld [vmem:[#allocation11 + $0x278] sm:$0xff]  ;;  %10218 = vst [vmem:[#allocation106_spill] sm:$0xff] %v7007_v5 }
 0x925   :  { %1314 = vrot.lane.b32.xlu0 %v4369_v55, %s5626_s15  ;;  %v1330_v16 = vsel %vm1329_vm9, %v4212_v62, %v4213_v27  ;;  %10212 = vst [vmem:[#allocation100_spill] sm:$0xff] %v6989_v52  ;;  %v6992_v55 = vld [vmem:[#allocation11 + $0xf8] sm:$0xff]  ;;  %v7010_v27 = vld [vmem:[#allocation11 + $0xb0] sm:$0xff] }
 0x926   :  { %10213 = vst [vmem:[#allocation101_spill] sm:$0xff] %v6992_v55  ;;  %v7013_v62 = vld [vmem:[#allocation11 + $0x218] sm:$0xff] }
 0x927   :  { %10219 = vst [vmem:[#allocation107_spill] sm:$0xff] %v7010_v27 }
 0x928   :  { %10220 = vst [vmem:[#allocation108_spill] sm:$0xff] %v7013_v62 }
 0x97e   :  { %v1313_v31 = vpop.permute.xlu2 %1312 }
 0x997   :  { %v6947_v30 = vpop.permute.xlu0 %1314 }
 0x998   :  { %v1316_v10 = vsel %vm834_vm4, %v1313_v31, %v6947_v30  ;;  %v6995_v31 = vld [vmem:[#allocation11 + $0x260] sm:$0xff] }
 0x999   :  { %v1319_v47 = vmul.f32 %v1316_v10, %v1284_v34  ;;  %v6969_v34 = vld [vmem:[#allocation11 + $0x2c0] sm:$0xff]  ;;  %10214 = vst [vmem:[#allocation102_spill] sm:$0xff] %v6995_v31  ;;  %v7001_v10 = vld [vmem:[#allocation11 + $0x248] sm:$0xff] }
 0x99a   :  { %10216 = vst [vmem:[#allocation104_spill] sm:$0xff] %v7001_v10 }
 0x99b   :  { %1322 = vrot.lane.b32.xlu2 %v1319_v47, %s5627_s1  ;;  %v7004_v47 = vld [vmem:[#allocation11 + $0xc8] sm:$0xff] }
 0x99c   :  { %10217 = vst [vmem:[#allocation105_spill] sm:$0xff] %v7004_v47 }
 0x9f5   :  { %v6952_v1 = vpop.permute.xlu2 %1322 }
 0x9f6   :  { %v1332_v15 = vsel %vm834_vm4, %v6952_v1, %v1330_v16  ;;  %v7016_v16 = vld [vmem:[#allocation11 + $0x98] sm:$0xff] }
 0x9f7   :  { %1349 = vmatmul.f32.vlgmr.msra.gmra.mxu3 %v1332_v15  ;;  %1369 = vmatmul.f32.vlgmr.msra.gmra.mxu0 %v1332_v15  ;;  %10221 = vst [vmem:[#allocation109_spill] sm:$0xff] %v7016_v16  ;;  %v7019_v15 = vld [vmem:[#allocation11 + $0x200] sm:$0xff] }
 0x9f8   :  { %1657 = vmatpush.msra.mxu0 %v6957_v4  ;;  %1637 = vmatpush.msra.mxu3 %v6960_v2  ;;  %10222 = vst [vmem:[#allocation110_spill] sm:$0xff] %v7019_v15 }
 0x9fa   :  { %1658 = vmatpush.msra.mxu0 %v6963_v50  ;;  %1638 = vmatpush.msra.mxu3 %v6966_v19 }
 0x9fc   :  { %1659 = vmatpush.msra.mxu0 %v6969_v34  ;;  %1639 = vmatpush.msra.mxu3 %v6972_v0 }
 0x9fe   :  { %1660 = vmatpush.msra.mxu0 %v6975_v45  ;;  %1640 = vmatpush.msra.mxu3 %v6978_v33 }
 0x9ff   :  { %1513 = vmatmul.f32.vlgmr.msrb.gmra.mxu3 %v6763_v60  ;;  %1533 = vmatmul.f32.vlgmr.msrb.gmra.mxu0 %v6763_v60  ;;  %v6998_v60 = vld [vmem:[#allocation11 + $0xe0] sm:$0xff] }
 0xa00   :  { %1661 = vmatpush.msra.mxu0 %v6983_v44  ;;  %1641 = vmatpush.msra.mxu3 %v6986_v51  ;;  %10215 = vst [vmem:[#allocation103_spill] sm:$0xff] %v6998_v60 }
 0xa02   :  { %1662 = vmatpush.msra.mxu0 %v6989_v52  ;;  %1642 = vmatpush.msra.mxu3 %v6992_v55 }
 0xa04   :  { %1663 = vmatpush.msra.mxu0 %v6995_v31  ;;  %1643 = vmatpush.msra.mxu3 %v6998_v60 }
 0xa06   :  { %1664 = vmatpush.msra.mxu0 %v7001_v10  ;;  %1644 = vmatpush.msra.mxu3 %v7004_v47  ;;  %v7022_v47 = vld [vmem:[#allocation11 + $0x80] sm:$0xff] }
 0xa07   :  { %10223 = vst [vmem:[#allocation111_spill] sm:$0xff] %v7022_v47 }
 0xa08   :  { %1665 = vmatpush.msra.mxu0 %v7007_v5  ;;  %1645 = vmatpush.msra.mxu3 %v7010_v27  ;;  %v7025_v5 = vld [vmem:[#allocation11 + $0x1e8] sm:$0xff] }
 0xa09   :  { %10224 = vst [vmem:[#allocation112_spill] sm:$0xff] %v7025_v5  ;;  %v7028_v27 = vld [vmem:[#allocation11 + $0x68] sm:$0xff] }
 0xa0a   :  { %1666 = vmatpush.msra.mxu0 %v7013_v62  ;;  %1646 = vmatpush.msra.mxu3 %v7016_v16  ;;  %10225 = vst [vmem:[#allocation113_spill] sm:$0xff] %v7028_v27  ;;  %v7031_v62 = vld [vmem:[#allocation11 + $0x1d0] sm:$0xff] }
 0xa0b   :  { %10226 = vst [vmem:[#allocation114_spill] sm:$0xff] %v7031_v62  ;;  %v7034_v16 = vld [vmem:[#allocation11 + $0x50] sm:$0xff] }
 0xa0c   :  { %1667 = vmatpush.msra.mxu0 %v7019_v15  ;;  %1647 = vmatpush.msra.mxu3 %v7022_v47  ;;  %10227 = vst [vmem:[#allocation115_spill] sm:$0xff] %v7034_v16  ;;  %v7037_v15 = vld [vmem:[#allocation11 + $0x1b8] sm:$0xff] }
 0xa0d   :  { %10228 = vst [vmem:[#allocation116_spill] sm:$0xff] %v7037_v15  ;;  %v7040_v47 = vld [vmem:[#allocation11 + $0x38] sm:$0xff] }
 0xa0e   :  { %1668 = vmatpush.msra.mxu0 %v7025_v5  ;;  %1648 = vmatpush.msra.mxu3 %v7028_v27  ;;  %10229 = vst [vmem:[#allocation117_spill] sm:$0xff] %v7040_v47  ;;  %v7043_v5 = vld [vmem:[#allocation11 + $0x1a0] sm:$0xff] }
 0xa0f   :  { %10230 = vst [vmem:[#allocation118_spill] sm:$0xff] %v7043_v5  ;;  %v7046_v27 = vld [vmem:[#allocation11 + $0x20] sm:$0xff] }
 0xa10   :  { %1669 = vmatpush.msra.mxu0 %v7031_v62  ;;  %1649 = vmatpush.msra.mxu3 %v7034_v16  ;;  %10231 = vst [vmem:[#allocation119_spill] sm:$0xff] %v7046_v27  ;;  %v7049_v62 = vld [vmem:[#allocation11 + $0x188] sm:$0xff] }
 0xa11   :  { %10232 = vst [vmem:[#allocation120_spill] sm:$0xff] %v7049_v62  ;;  %v7052_v16 = vld [vmem:[#allocation11 + $0x8] sm:$0xff] }
 0xa12   :  { %1670 = vmatpush.msra.mxu0 %v7037_v15  ;;  %1650 = vmatpush.msra.mxu3 %v7040_v47  ;;  %10233 = vst [vmem:[#allocation121_spill] sm:$0xff] %v7052_v16  ;;  %v7055_v15 = vld [vmem:[#allocation14 + $0xf0] sm:$0xff]  ;;  %v7058_v47 = vld [vmem:[#allocation14 + $0xf8] sm:$0xff] }
 0xa13   :  { %10234 = vst [vmem:[#allocation122_spill] sm:$0xff] %v7055_v15 }
 0xa14   :  { %1671 = vmatpush.msra.mxu0 %v7043_v5  ;;  %1651 = vmatpush.msra.mxu3 %v7046_v27  ;;  %10235 = vst [vmem:[#allocation123_spill] sm:$0xff] %v7058_v47  ;;  %v7061_v5 = vld [vmem:[#allocation14 + $0xe0] sm:$0xff]  ;;  %v7064_v27 = vld [vmem:[#allocation14 + $0xe8] sm:$0xff] }
 0xa15   :  { %10236 = vst [vmem:[#allocation124_spill] sm:$0xff] %v7061_v5 }
 0xa16   :  { %1672 = vmatpush.msra.mxu0 %v7049_v62  ;;  %1652 = vmatpush.msra.mxu3 %v7052_v16  ;;  %10237 = vst [vmem:[#allocation125_spill] sm:$0xff] %v7064_v27  ;;  %v7067_v62 = vld [vmem:[#allocation14 + $0xd0] sm:$0xff]  ;;  %v7070_v16 = vld [vmem:[#allocation14 + $0xd8] sm:$0xff] }
 0xa17   :  { %10238 = vst [vmem:[#allocation126_spill] sm:$0xff] %v7067_v62 }
 0xa18   :  { %1772 = vmatpush.msrb.mxu3 %v7055_v15  ;;  %1792 = vmatpush.msrb.mxu0 %v7058_v47  ;;  %10239 = vst [vmem:[#allocation127_spill] sm:$0xff] %v7070_v16  ;;  %v7073_v15 = vld [vmem:[#allocation14 + $0xc0] sm:$0xff]  ;;  %v7076_v47 = vld [vmem:[#allocation14 + $0xc8] sm:$0xff] }
 0xa19   :  { %10240 = vst [vmem:[#allocation128_spill] sm:$0xff] %v7073_v15 }
 0xa1a   :  { %1773 = vmatpush.msrb.mxu3 %v7061_v5  ;;  %1793 = vmatpush.msrb.mxu0 %v7064_v27  ;;  %10241 = vst [vmem:[#allocation129_spill] sm:$0xff] %v7076_v47  ;;  %v7079_v5 = vld [vmem:[#allocation14 + $0xb0] sm:$0xff]  ;;  %v7082_v27 = vld [vmem:[#allocation14 + $0xb8] sm:$0xff] }
 0xa1b   :  { %10242 = vst [vmem:[#allocation130_spill] sm:$0xff] %v7079_v5 }
 0xa1c   :  { %1774 = vmatpush.msrb.mxu3 %v7067_v62  ;;  %1794 = vmatpush.msrb.mxu0 %v7070_v16  ;;  %10243 = vst [vmem:[#allocation131_spill] sm:$0xff] %v7082_v27  ;;  %v7085_v62 = vld [vmem:[#allocation14 + $0xa0] sm:$0xff]  ;;  %v7088_v16 = vld [vmem:[#allocation14 + $0xa8] sm:$0xff] }
 0xa1d   :  { %10244 = vst [vmem:[#allocation132_spill] sm:$0xff] %v7085_v62 }
 0xa1e   :  { %1775 = vmatpush.msrb.mxu3 %v7073_v15  ;;  %1795 = vmatpush.msrb.mxu0 %v7076_v47  ;;  %10245 = vst [vmem:[#allocation133_spill] sm:$0xff] %v7088_v16  ;;  %v7091_v15 = vld [vmem:[#allocation14 + $0x90] sm:$0xff]  ;;  %v7094_v47 = vld [vmem:[#allocation14 + $0x98] sm:$0xff] }
 0xa1f   :  { %10246 = vst [vmem:[#allocation134_spill] sm:$0xff] %v7091_v15 }
 0xa20   :  { %1776 = vmatpush.msrb.mxu3 %v7079_v5  ;;  %1796 = vmatpush.msrb.mxu0 %v7082_v27  ;;  %10247 = vst [vmem:[#allocation135_spill] sm:$0xff] %v7094_v47  ;;  %v7097_v5 = vld [vmem:[#allocation14 + $0x80] sm:$0xff]  ;;  %v7100_v27 = vld [vmem:[#allocation14 + $0x88] sm:$0xff] }
 0xa21   :  { %10248 = vst [vmem:[#allocation136_spill] sm:$0xff] %v7097_v5 }
 0xa22   :  { %1777 = vmatpush.msrb.mxu3 %v7085_v62  ;;  %1797 = vmatpush.msrb.mxu0 %v7088_v16  ;;  %10249 = vst [vmem:[#allocation137_spill] sm:$0xff] %v7100_v27  ;;  %v7103_v62 = vld [vmem:[#allocation14 + $0x70] sm:$0xff]  ;;  %v7106_v16 = vld [vmem:[#allocation14 + $0x78] sm:$0xff] }
 0xa23   :  { %10250 = vst [vmem:[#allocation138_spill] sm:$0xff] %v7103_v62 }
 0xa24   :  { %1778 = vmatpush.msrb.mxu3 %v7091_v15  ;;  %1798 = vmatpush.msrb.mxu0 %v7094_v47  ;;  %10251 = vst [vmem:[#allocation139_spill] sm:$0xff] %v7106_v16  ;;  %v7109_v15 = vld [vmem:[#allocation14 + $0x60] sm:$0xff]  ;;  %v7112_v47 = vld [vmem:[#allocation14 + $0x68] sm:$0xff] }
 0xa25   :  { %10252 = vst [vmem:[#allocation140_spill] sm:$0xff] %v7109_v15 }
 0xa26   :  { %1779 = vmatpush.msrb.mxu3 %v7097_v5  ;;  %1799 = vmatpush.msrb.mxu0 %v7100_v27  ;;  %10253 = vst [vmem:[#allocation141_spill] sm:$0xff] %v7112_v47  ;;  %v7115_v5 = vld [vmem:[#allocation14 + $0x50] sm:$0xff]  ;;  %v7118_v27 = vld [vmem:[#allocation14 + $0x58] sm:$0xff] }
 0xa27   :  { %10254 = vst [vmem:[#allocation142_spill] sm:$0xff] %v7115_v5 }
 0xa28   :  { %1780 = vmatpush.msrb.mxu3 %v7103_v62  ;;  %1800 = vmatpush.msrb.mxu0 %v7106_v16  ;;  %10255 = vst [vmem:[#allocation143_spill] sm:$0xff] %v7118_v27  ;;  %v7121_v62 = vld [vmem:[#allocation14 + $0x40] sm:$0xff]  ;;  %v7124_v16 = vld [vmem:[#allocation14 + $0x48] sm:$0xff] }
 0xa29   :  { %10256 = vst [vmem:[#allocation144_spill] sm:$0xff] %v7121_v62 }
 0xa2a   :  { %1781 = vmatpush.msrb.mxu3 %v7109_v15  ;;  %1801 = vmatpush.msrb.mxu0 %v7112_v47  ;;  %10257 = vst [vmem:[#allocation145_spill] sm:$0xff] %v7124_v16  ;;  %v7127_v15 = vld [vmem:[#allocation14 + $0x30] sm:$0xff]  ;;  %v7130_v47 = vld [vmem:[#allocation14 + $0x38] sm:$0xff] }
 0xa2b   :  { %10258 = vst [vmem:[#allocation146_spill] sm:$0xff] %v7127_v15 }
 0xa2c   :  { %1782 = vmatpush.msrb.mxu3 %v7115_v5  ;;  %1802 = vmatpush.msrb.mxu0 %v7118_v27  ;;  %10259 = vst [vmem:[#allocation147_spill] sm:$0xff] %v7130_v47  ;;  %v7133_v5 = vld [vmem:[#allocation14 + $0x20] sm:$0xff]  ;;  %v7136_v27 = vld [vmem:[#allocation14 + $0x28] sm:$0xff] }
 0xa2d   :  { %10260 = vst [vmem:[#allocation148_spill] sm:$0xff] %v7133_v5 }
 0xa2e   :  { %1783 = vmatpush.msrb.mxu3 %v7121_v62  ;;  %1803 = vmatpush.msrb.mxu0 %v7124_v16  ;;  %10261 = vst [vmem:[#allocation149_spill] sm:$0xff] %v7136_v27  ;;  %v7139_v62 = vld [vmem:[#allocation14 + $0x10] sm:$0xff]  ;;  %v7142_v16 = vld [vmem:[#allocation14 + $0x18] sm:$0xff] }
 0xa2f   :  { %10262 = vst [vmem:[#allocation150_spill] sm:$0xff] %v7139_v62 }
 0xa30   :  { %1784 = vmatpush.msrb.mxu3 %v7127_v15  ;;  %1804 = vmatpush.msrb.mxu0 %v7130_v47  ;;  %10263 = vst [vmem:[#allocation151_spill] sm:$0xff] %v7142_v16  ;;  %v7145_v15 = vld [vmem:[#allocation14] sm:$0xff]  ;;  %v7148_v47 = vld [vmem:[#allocation14 + $0x8] sm:$0xff] }
 0xa31   :  { %10264 = vst [vmem:[#allocation152_spill] sm:$0xff] %v7145_v15 }
 0xa32   :  { %1785 = vmatpush.msrb.mxu3 %v7133_v5  ;;  %1805 = vmatpush.msrb.mxu0 %v7136_v27  ;;  %10265 = vst [vmem:[#allocation153_spill] sm:$0xff] %v7148_v47  ;;  %v1494_v27 = vpop.f32.mrf.mxu2 }
 0xa34   :  { %1786 = vmatpush.msrb.mxu3 %v7139_v62  ;;  %1806 = vmatpush.msrb.mxu0 %v7142_v16  ;;  %v10266_v62 = vld [vmem:[#allocation29_spill] sm:$0xff] }
 0xa35   :  { %v280_v31 = vadd.f32 %v10266_v62, %v10133_v3  ;;  %v10267_v16 = vld [vmem:[#allocation61_spill] sm:$0xff] }
 0xa36   :  { %1787 = vmatpush.msrb.mxu3 %v7145_v15  ;;  %1807 = vmatpush.msrb.mxu0 %v7148_v47  ;;  %v362_v55 = vadd.f32 %v10267_v16, %v10135_v13 }
 0xa37   :  { %v1537_v51 = vadd.f32 %v1494_v27, %v280_v31 }
 0xa74   :  { %v1370_v5 = vpop.f32.mrf.mxu0 }
 0xa75   :  { %v1371_v10 = vadd.f32 %v1370_v5, %v6469_v26  ;;  %v7167_v26 = vld [vmem:[%s9616_s9] sm:$0xff] }
 0xa76   :  { %10268 = vst [vmem:[#allocation29_spill] sm:$0xff] %v7167_v26  ;;  %v1003_v5 = vadd.f32 %v6915_v54, %v7167_v26 }
 0xa77   :  { %1382 = vrot.lane.b32.xlu0 %v1371_v10, %s5628_s0 }
 0xa7a   :  { %v1350_v60 = vpop.f32.mrf.mxu3 }
 0xa7b   :  { %v1351_v52 = vadd.f32 %v1350_v60, %v6473_v43 }
 0xa7c   :  { %v1534_v15 = vpop.f32.mrf.mxu0 }
 0xa7d   :  { %v7158_v44 = vadd.f32 %v1534_v15, %v362_v55  ;;  %1386 = vrot.lane.b32.xlu1 %v1351_v52, %s5628_s0  ;;  %v1373_v43 = vmul.f32 0.5, %v1351_v52  ;;  %v1540_v55 = vmul.f32 0.5, %v1537_v51 }
 0xa7f   :  { %1553 = vrot.lane.b32.xlu2 %v7158_v44, %s5622_s8  ;;  %1557 = vrot.lane.b32.xlu0 %v1537_v51, %s5622_s8  ;;  %4370 = vtanh.f32 %v1373_v43 }
 0xa80   :  { %4372 = vtanh.f32 %v1540_v55 }
 0xa85   :  { %v4371_v60 = vpop.eup %4370 }
 0xa86   :  { %v4373_v16 = vpop.eup %4372  ;;  %v1375_v3 = vmul.f32 0.5, %v4371_v60  ;;  %v1377_v60 = vmul.f32 0.5, %v1371_v10 }
 0xa87   :  { %1010 = vrot.lane.b32.xlu0 %v1003_v5, %s5632_s19  ;;  %v1542_v54 = vmul.f32 0.5, %v4373_v16 }
 0xa88   :  { %v7174_v26 = vadd.f32 0.5, %v1375_v3 }
 0xa89   :  { %v1543_v51 = vadd.f32 0.5, %v1542_v54 }
 0xa8b   :  { %v1562_v3 = vmul.f32 %v1543_v51, %v6496_v42 }
 0xad9   :  { %v1554_v15 = vpop.permute.xlu2 %1553 }
 0xae9   :  { %v1383_v31 = vpop.permute.xlu0 %1382 }
 0xaef   :  { %v1387_v27 = vpop.permute.xlu1 %1386 }
 0xaf0   :  { %v1389_v62 = vsel %vm933_vm5, %v1383_v31, %v1387_v27 }
 0xaf1   :  { %4374 = vtanh.f32 %v1389_v62  ;;  %v1558_v13 = vpop.permute.xlu0 %1557 }
 0xaf2   :  { %v1560_v47 = vsel %vm543_vm0, %v1554_v15, %v1558_v13  ;;  %v1514_v13 = vpop.f32.mrf.mxu3 }
 0xaf3   :  { %4376 = vtanh.f32 %v1560_v47  ;;  %v10269_v47 = vld [vmem:[#allocation62_spill] sm:$0xff] }
 0xaf4   :  { %v321_v31 = vadd.f32 %v10269_v47, %v10137_v23  ;;  %v1005_v47 = vmul.f32 0.5, %v1003_v5 }
 0xaf6   :  { %v1538_v16 = vadd.f32 %v1514_v13, %v321_v31  ;;  %v1391_v13 = vmul.f32 %v7174_v26, %v6501_v53 }
 0xaf7   :  { %v4375_v52 = vpop.eup %4374 }
 0xaf8   :  { %v1393_v43 = vmul.f32 %v4375_v52, %v7174_v26 }
 0xaf9   :  { %v4377_v55 = vpop.eup %4376 }
 0xafa   :  { %1395 = vrot.lane.b32.xlu1 %v1393_v43, %s5629_s16  ;;  %v1564_v33 = vmul.f32 %v4377_v55, %v1543_v51  ;;  %v1011_v43 = vpop.permute.xlu0 %1010 }
 0xafb   :  { %v1013_v55 = vmul.f32 0.5, %v1011_v43 }
 0xafc   :  { %1566 = vrot.lane.b32.xlu2 %v1564_v33, %s5623_s10  ;;  %v1544_v33 = vmul.f32 0.5, %v1538_v16 }
 0xb02   :  { %1024 = vrot.lane.b32.xlu1 %v1003_v5, %s5633_s20 }
 0xb04   :  { %1017 = vrot.lane.b32.xlu2 %v1003_v5, %s5634_s21 }
 0xb56   :  { %v1567_v27 = vpop.permute.xlu2 %1566 }
 0xb57   :  { %v7184_v62 = vadd.f32 %v1567_v27, %v1562_v3 }
 0xb59   :  { %4378 = vtanh.f32 %v7184_v62 }
 0xb5a   :  { %4380 = vtanh.f32 %v1377_v60 }
 0xb5b   :  { %4382 = vtanh.f32 %v1544_v33 }
 0xb5c   :  { %4384 = vtanh.f32 %v1013_v55 }
 0xb5d   :  { %4386 = vtanh.f32 %v1005_v47 }
 0xb5f   :  { %v4379_v15 = vpop.eup %4378 }
 0xb60   :  { %v4381_v54 = vpop.eup %4380  ;;  %1575 = vrot.lane.b32.xlu2 %v4379_v15, %s5623_s10  ;;  %v1285_v15 = vmul.f32 0.5, %v6924_v7 }
 0xb61   :  { %v1379_v52 = vmul.f32 0.5, %v4381_v54  ;;  %v4383_v42 = vpop.eup %4382 }
 0xb62   :  { %v1546_v10 = vmul.f32 0.5, %v4383_v42  ;;  %v4385_v5 = vpop.eup %4384 }
 0xb63   :  { %v1380_v51 = vadd.f32 0.5, %v1379_v52  ;;  %v4387_v52 = vpop.eup %4386  ;;  %v1015_v53 = vmul.f32 0.5, %v4385_v5 }
 0xb64   :  { %v1547_v60 = vadd.f32 0.5, %v1546_v10 }
 0xb65   :  { %v1392_v3 = vmul.f32 %v1380_v51, %v6503_v14  ;;  %v1018_v14 = vpop.permute.xlu2 %1017  ;;  %v1016_v7 = vadd.f32 0.5, %v1015_v53 }
 0xb66   :  { %v1563_v54 = vmul.f32 %v1547_v60, %v6509_v40  ;;  %v1020_v42 = vmul.f32 0.5, %v1018_v14 }
 0xb68   :  { %v7199_v43 = vadd.f32 %v1567_v27, %v1563_v54 }
 0xb6c   :  { %v1396_v31 = vpop.permute.xlu1 %1395 }
 0xb6d   :  { %v7191_v16 = vadd.f32 %v1396_v31, %v1391_v13  ;;  %v7193_v33 = vadd.f32 %v1396_v31, %v1392_v3  ;;  %v1007_v3 = vmul.f32 0.5, %v4387_v52  ;;  %v1028_v31 = vmul.f32 0.0, %v1016_v7 }
 0xb6f   :  { %10270 = vst [vmem:[#allocation61_spill] sm:$0xff] %v7191_v16  ;;  %4388 = vtanh.f32 %v7191_v16  ;;  %v1008_v13 = vadd.f32 0.5, %v1007_v3  ;;  %v1548_v3 = vmul.f32 0.5, %v7158_v44 }
 0xb70   :  { %4390 = vtanh.f32 %v7193_v33 }
 0xb71   :  { %4392 = vtanh.f32 %v1285_v15 }
 0xb74   :  { %v1025_v55 = vpop.permute.xlu1 %1024 }
 0xb75   :  { %v4389_v47 = vpop.eup %4388  ;;  %4394 = vtanh.f32 %v1025_v55 }
 0xb76   :  { %v4391_v10 = vpop.eup %4390  ;;  %1404 = vrot.lane.b32.xlu0 %v4389_v47, %s5629_s16  ;;  %4396 = vtanh.f32 %v7199_v43 }
 0xb77   :  { %1406 = vrot.lane.b32.xlu1 %v4391_v10, %s5629_s16  ;;  %4398 = vtanh.f32 %v1020_v42  ;;  %v4393_v40 = vpop.eup %4392 }
 0xb78   :  { %v1287_v14 = vmul.f32 0.5, %v4393_v40 }
 0xb7a   :  { %v1288_v55 = vadd.f32 0.5, %v1287_v14 }
 0xb7b   :  { %v4395_v27 = vpop.eup %4394 }
 0xb7c   :  { %v1029_v15 = vmul.f32 %v4395_v27, %v1008_v13  ;;  %v4397_v5 = vpop.eup %4396  ;;  %v1320_v47 = vmul.f32 %v6947_v30, %v1288_v55 }
 0xb7d   :  { %v4399_v54 = vpop.eup %4398 }
 0xb7e   :  { %v7204_v16 = vadd.f32 %v1029_v15, %v1028_v31  ;;  %1577 = vrot.lane.b32.xlu0 %v4397_v5, %s5623_s10  ;;  %v1022_v52 = vmul.f32 0.5, %v4399_v54 }
 0xb80   :  { %4400 = vtanh.f32 %v7204_v16  ;;  %v1023_v53 = vadd.f32 0.5, %v1022_v52 }
 0xb81   :  { %4402 = vtanh.f32 %v1548_v3  ;;  %v7271_v3 = vld [vmem:[#allocation8 + $0x58] sm:$0xff] }
 0xb86   :  { %v4401_v42 = vpop.eup %4400  ;;  %1593 = vrot.lane.b32.xlu0 %v1320_v47, %s5627_s1 }
 0xb87   :  { %v1032_v10 = vmul.f32 %v4401_v42, %v1023_v53  ;;  %v4403_v7 = vpop.eup %4402  ;;  %v7223_v42 = vld [vmem:[#allocation8 + $0x178] sm:$0xff] }
 0xb88   :  { %v1550_v5 = vmul.f32 0.5, %v4403_v7  ;;  %v7275_v7 = vld [vmem:[#allocation8 + $0x40] sm:$0xff] }
 0xb89   :  { %1422 = vrot.lane.b32.xlu2 %v1032_v10, %s5629_s16  ;;  %v7227_v10 = vld [vmem:[#allocation8 + $0x160] sm:$0xff] }
 0xb8a   :  { %v1551_v54 = vadd.f32 0.5, %v1550_v5  ;;  %v10278_v5 = vld [vmem:[#allocation45_spill] sm:$0xff] }
 0xbba   :  { %v1576_v14 = vpop.permute.xlu2 %1575 }
 0xbe8   :  { %v1405_v40 = vpop.permute.xlu0 %1404 }
 0xbe9   :  { %v1407_v13 = vpop.permute.xlu1 %1406  ;;  %v1411_v27 = vmul.f32 %v1405_v40, %v7174_v26 }
 0xbea   :  { %v1408_v31 = vsel %vm953_vm6, %v1405_v40, %v1407_v13  ;;  %v7279_v40 = vld [vmem:[#allocation8 + $0x28] sm:$0xff]  ;;  %v7283_v13 = vld [vmem:[#allocation8 + $0x10] sm:$0xff] }
 0xbeb   :  { %v1412_v15 = vmul.f32 %v1408_v31, %v1380_v51  ;;  %v10276_v31 = vld [vmem:[#allocation44_spill] sm:$0xff] }
 0xbed   :  { %v7214_v30 = vpack.i.bf16 %v1412_v15, %v1411_v27  ;;  %v10275_v27 = vld [vmem:[#allocation51_spill] sm:$0xff]  ;;  %v10277_v15 = vld [vmem:[#allocation53_spill] sm:$0xff] }
 0xbef   :  { %4215 = vrot.lane.b32.xlu1 %v7214_v30, %s5630_s17 }
 0xbf0   :  { %v1578_v52 = vpop.permute.xlu0 %1577 }
 0xbf1   :  { %v1579_v44 = vsel %vm563_vm1, %v1576_v14, %v1578_v52  ;;  %v1583_v55 = vmul.f32 %v1578_v52, %v1551_v54  ;;  %v10279_v54 = vld [vmem:[#allocation55_spill] sm:$0xff]  ;;  %v10280_v14 = vld [vmem:[#allocation46_spill] sm:$0xff]  ;;  %v10281_v52 = vld [vmem:[#allocation57_spill] sm:$0xff] }
 0xbf2   :  { %v1582_v47 = vmul.f32 %v1579_v44, %v1547_v60  ;;  %v7231_v60 = vld [vmem:[#allocation8 + $0x148] sm:$0xff]  ;;  %v10282_v44 = vld [vmem:[#allocation48_spill] sm:$0xff] }
 0xbf4   :  { %v4219_v53 = vpack.i.bf16 %v1583_v55, %v1582_v47  ;;  %v10283_v55 = vld [vmem:[#allocation59_spill] sm:$0xff]  ;;  %v10284_v47 = vld [vmem:[#allocation50_spill] sm:$0xff] }
 0xbf7   :  { %4220 = vrot.lane.b32.xlu1 %v4219_v53, %s5624_s13  ;;  %v10285_v53 = vld [vmem:[#allocation60_spill] sm:$0xff] }
 0xbf8   :  { %v1594_v26 = vpop.permute.xlu0 %1593 }
 0xbf9   :  { %v1595_v51 = vsel %vm1154_vm7, %v6952_v1, %v1594_v26  ;;  %v7235_v1 = vld [vmem:[#allocation8 + $0x130] sm:$0xff] }
 0xbfa   :  { %1633 = vmatmul.f32.vlgmr.msrb.gmra.mxu2 %v1595_v51  ;;  %1673 = vmatmul.f32.vlgmr.msra.gmra.mxu0 %v1595_v51  ;;  %v10286_v26 = vld [vmem:[#allocation52_spill] sm:$0xff] }
 0xbfb   :  { %1916 = vmatpush.msrb.mxu2 %v6575_v58  ;;  %1956 = vmatpush.msra.mxu0 %v7223_v42  ;;  %v7239_v58 = vld [vmem:[#allocation8 + $0x118] sm:$0xff] }
 0xbfd   :  { %1917 = vmatpush.msrb.mxu2 %v6582_v59  ;;  %1957 = vmatpush.msra.mxu0 %v7227_v10  ;;  %v7243_v59 = vld [vmem:[#allocation8 + $0x100] sm:$0xff] }
 0xbff   :  { %1918 = vmatpush.msrb.mxu2 %v6589_v22  ;;  %1958 = vmatpush.msra.mxu0 %v7231_v60  ;;  %v7247_v22 = vld [vmem:[#allocation8 + $0xe8] sm:$0xff] }
 0xc01   :  { %1919 = vmatpush.msrb.mxu2 %v6594_v56  ;;  %1959 = vmatpush.msra.mxu0 %v7235_v1  ;;  %v7251_v56 = vld [vmem:[#allocation8 + $0xd0] sm:$0xff] }
 0xc02   :  { %1713 = vmatmul.f32.vlgmr.msra.gmra.mxu2 %v1595_v51  ;;  %v10287_v51 = vld [vmem:[#allocation54_spill] sm:$0xff] }
 0xc03   :  { %1920 = vmatpush.msrb.mxu2 %v6600_v6  ;;  %1960 = vmatpush.msra.mxu0 %v7239_v58  ;;  %v7255_v6 = vld [vmem:[#allocation8 + $0xb8] sm:$0xff] }
 0xc05   :  { %1921 = vmatpush.msrb.mxu2 %v6607_v39  ;;  %1961 = vmatpush.msra.mxu0 %v7243_v59  ;;  %v7259_v39 = vld [vmem:[#allocation8 + $0xa0] sm:$0xff] }
 0xc07   :  { %1922 = vmatpush.msrb.mxu2 %v6614_v9  ;;  %1962 = vmatpush.msra.mxu0 %v7247_v22  ;;  %v7263_v9 = vld [vmem:[#allocation8 + $0x88] sm:$0xff] }
 0xc09   :  { %1923 = vmatpush.msrb.mxu2 %v6621_v17  ;;  %1963 = vmatpush.msra.mxu0 %v7251_v56  ;;  %v7267_v17 = vld [vmem:[#allocation8 + $0x70] sm:$0xff] }
 0xc0b   :  { %1924 = vmatpush.msrb.mxu2 %v6628_v32  ;;  %1964 = vmatpush.msra.mxu0 %v7255_v6  ;;  %v10271_v32 = vld [vmem:[#allocation47_spill] sm:$0xff] }
 0xc0d   :  { %1925 = vmatpush.msrb.mxu2 %v6635_v25  ;;  %1965 = vmatpush.msra.mxu0 %v7259_v39  ;;  %v10272_v25 = vld [vmem:[#allocation42_spill] sm:$0xff] }
 0xc0f   :  { %1926 = vmatpush.msrb.mxu2 %v6642_v38  ;;  %1966 = vmatpush.msra.mxu0 %v7263_v9  ;;  %v10273_v38 = vld [vmem:[#allocation49_spill] sm:$0xff] }
 0xc11   :  { %1927 = vmatpush.msrb.mxu2 %v6649_v12  ;;  %1967 = vmatpush.msra.mxu0 %v7267_v17  ;;  %v10274_v12 = vld [vmem:[#allocation43_spill] sm:$0xff] }
 0xc13   :  { %1928 = vmatpush.msrb.mxu2 %v10271_v32  ;;  %1968 = vmatpush.msra.mxu0 %v7271_v3  ;;  %v10288_v32 = vld [vmem:[#allocation56_spill] sm:$0xff] }
 0xc15   :  { %1929 = vmatpush.msrb.mxu2 %v10272_v25  ;;  %1969 = vmatpush.msra.mxu0 %v7275_v7  ;;  %v10289_v25 = vld [vmem:[#allocation58_spill] sm:$0xff] }
 0xc17   :  { %1930 = vmatpush.msrb.mxu2 %v10273_v38  ;;  %1970 = vmatpush.msra.mxu0 %v7279_v40  ;;  %v10290_v38 = vld [vmem:[#allocation28_spill] sm:$0xff] }
 0xc19   :  { %1931 = vmatpush.msrb.mxu2 %v10274_v12  ;;  %1971 = vmatpush.msra.mxu0 %v7283_v13 }
 0xc1b   :  { %2056 = vmatpush.msra.mxu2 %v10275_v27 }
 0xc1d   :  { %2057 = vmatpush.msra.mxu2 %v10276_v31 }
 0xc1f   :  { %2058 = vmatpush.msra.mxu2 %v10277_v15  ;;  %v1423_v15 = vpop.permute.xlu2 %1422 }
 0xc21   :  { %2059 = vmatpush.msra.mxu2 %v10278_v5 }
 0xc23   :  { %2060 = vmatpush.msra.mxu2 %v10279_v54 }
 0xc25   :  { %2061 = vmatpush.msra.mxu2 %v10280_v14  ;;  %v10291_v14 = vld [vmem:[#allocation40_spill] sm:$0xff] }
 0xc27   :  { %2062 = vmatpush.msra.mxu2 %v10281_v52  ;;  %v10292_v52 = vld [vmem:[#allocation39_spill] sm:$0xff] }
 0xc29   :  { %2063 = vmatpush.msra.mxu2 %v10282_v44 }
 0xc2b   :  { %2064 = vmatpush.msra.mxu2 %v10283_v55 }
 0xc2d   :  { %2065 = vmatpush.msra.mxu2 %v10284_v47 }
 0xc2f   :  { %2066 = vmatpush.msra.mxu2 %v10285_v53 }
 0xc31   :  { %2067 = vmatpush.msra.mxu2 %v10286_v26  ;;  %v10293_v26 = vld [vmem:[#allocation41_spill] sm:$0xff] }
 0xc33   :  { %2068 = vmatpush.msra.mxu2 %v10287_v51  ;;  %v10294_v51 = vld [vmem:[#allocation76_spill] sm:$0xff] }
 0xc35   :  { %2069 = vmatpush.msra.mxu2 %v10288_v32  ;;  %v7315_v32 = vld [vmem:[#allocation8 + $0x170] sm:$0xff] }
 0xc37   :  { %2070 = vmatpush.msra.mxu2 %v10289_v25  ;;  %v10295_v25 = vld [vmem:[#allocation85_spill] sm:$0xff] }
 0xc39   :  { %2071 = vmatpush.msra.mxu2 %v10290_v38  ;;  %v7320_v38 = vld [vmem:[#allocation8 + $0x158] sm:$0xff] }
 0xc61   :  { %v4216_v12 = vpop.permute.xlu1 %4215 }
 0xc62   :  { %v4218_v27 = vunpack.i.h.bf16 %v4216_v12  ;;  %v4217_v31 = vunpack.i.l.bf16 %v4216_v12  ;;  %v10297_v12 = vld [vmem:[#allocation87_spill] sm:$0xff] }
 0xc64   :  { %v1419_v5 = vsel %vm965_vm8, %v4217_v31, %v4218_v27  ;;  %v10298_v27 = vld [vmem:[#allocation80_spill] sm:$0xff]  ;;  %v7325_v31 = vld [vmem:[#allocation8 + $0x140] sm:$0xff] }
 0xc65   :  { %v1425_v54 = vsel %vm953_vm6, %v1419_v5, %v1423_v15  ;;  %v10299_v15 = vld [vmem:[#allocation89_spill] sm:$0xff]  ;;  %v10300_v5 = vld [vmem:[#allocation83_spill] sm:$0xff] }
 0xc66   :  { %1442 = vmatmul.f32.vlgmr.msra.gmra.mxu1 %v1425_v54  ;;  %v7330_v54 = vld [vmem:[#allocation8 + $0x128] sm:$0xff] }
 0xc67   :  { %1677 = vmatpush.msra.mxu1 %v10291_v14  ;;  %v10301_v14 = vld [vmem:[#allocation37_spill] sm:$0xff] }
 0xc69   :  { %1678 = vmatpush.msra.mxu1 %v10292_v52  ;;  %v4221_v44 = vpop.permute.xlu1 %4220  ;;  %v10302_v52 = vld [vmem:[#allocation86_spill] sm:$0xff] }
 0xc6a   :  { %v4223_v55 = vunpack.i.h.bf16 %v4221_v44  ;;  %v4222_v47 = vunpack.i.l.bf16 %v4221_v44  ;;  %v7335_v44 = vld [vmem:[#allocation8 + $0x110] sm:$0xff] }
 0xc6b   :  { %1679 = vmatpush.msra.mxu1 %v6750_v49  ;;  %v10296_v49 = vld [vmem:[#allocation78_spill] sm:$0xff] }
 0xc6c   :  { %v7308_v53 = vsel %vm575_vm2, %v4222_v47, %v4223_v55  ;;  %v10303_v55 = vld [vmem:[#allocation75_spill] sm:$0xff]  ;;  %v10304_v47 = vld [vmem:[#allocation88_spill] sm:$0xff] }
 0xc6d   :  { %1680 = vmatpush.msra.mxu1 %v10293_v26  ;;  %1653 = vmatmul.f32.vlgmr.msra.gmra.mxu3 %v7308_v53  ;;  %v7340_v26 = vld [vmem:[#allocation8 + $0xf8] sm:$0xff] }
 0xc6e   :  { %1932 = vmatmul.f32.vlgmr.msrb.gmra.mxu2 %v7308_v53  ;;  %1613 = vmatmul.f32.vlgmr.msrb.gmra.mxu1 %v7308_v53 }
 0xc6f   :  { %1681 = vmatpush.msra.mxu1 %v10294_v51  ;;  %1936 = vmatpush.msra.mxu3 %v7315_v32  ;;  %v10305_v51 = vld [vmem:[#allocation90_spill] sm:$0xff] }
 0xc70   :  { %2136 = vmatpush.msrb.mxu2 %v10295_v25  ;;  %v10306_v25 = vld [vmem:[#allocation81_spill] sm:$0xff] }
 0xc71   :  { %1682 = vmatpush.msra.mxu1 %v10296_v49  ;;  %1937 = vmatpush.msra.mxu3 %v7320_v38  ;;  %v10307_v49 = vld [vmem:[#allocation82_spill] sm:$0xff] }
 0xc72   :  { %2137 = vmatpush.msrb.mxu2 %v10297_v12  ;;  %v10308_v12 = vld [vmem:[#allocation38_spill] sm:$0xff] }
 0xc73   :  { %1683 = vmatpush.msra.mxu1 %v10298_v27  ;;  %1938 = vmatpush.msra.mxu3 %v7325_v31  ;;  %v10309_v27 = vld [vmem:[#allocation91_spill] sm:$0xff] }
 0xc74   :  { %2138 = vmatpush.msrb.mxu2 %v10299_v15  ;;  %v10310_v15 = vld [vmem:[#allocation77_spill] sm:$0xff] }
 0xc75   :  { %1684 = vmatpush.msra.mxu1 %v10300_v5  ;;  %1939 = vmatpush.msra.mxu3 %v7330_v54  ;;  %v10311_v5 = vld [vmem:[#allocation93_spill] sm:$0xff] }
 0xc76   :  { %2139 = vmatpush.msrb.mxu2 %v10301_v14  ;;  %v10312_v14 = vld [vmem:[#allocation94_spill] sm:$0xff] }
 0xc77   :  { %1685 = vmatpush.msra.mxu1 %v10302_v52  ;;  %1940 = vmatpush.msra.mxu3 %v7335_v44  ;;  %v10313_v52 = vld [vmem:[#allocation79_spill] sm:$0xff] }
 0xc78   :  { %2140 = vmatpush.msrb.mxu2 %v10303_v55  ;;  %v10315_v55 = vld [vmem:[#allocation84_spill] sm:$0xff] }
 0xc79   :  { %1686 = vmatpush.msra.mxu1 %v10304_v47  ;;  %1941 = vmatpush.msra.mxu3 %v7340_v26  ;;  %v10316_v47 = vld [vmem:[#allocation96_spill] sm:$0xff] }
 0xc7a   :  { %2141 = vmatpush.msrb.mxu2 %v6810_v57  ;;  %v10314_v57 = vld [vmem:[#allocation95_spill] sm:$0xff] }
 0xc7b   :  { %1687 = vmatpush.msra.mxu1 %v10305_v51  ;;  %1942 = vmatpush.msra.mxu3 %v10306_v25  ;;  %v10318_v51 = vld [vmem:[#allocation97_spill] sm:$0xff]  ;;  %v7364_v25 = vld [vmem:[#allocation17 + $0x78] sm:$0xff] }
 0xc7c   :  { %2142 = vmatpush.msrb.mxu2 %v10307_v49  ;;  %v7401_v49 = vld [vmem:[#allocation17 + $0x28] sm:$0xff] }
 0xc7d   :  { %1688 = vmatpush.msra.mxu1 %v10308_v12  ;;  %1943 = vmatpush.msra.mxu3 %v6825_v37  ;;  %v10317_v37 = vld [vmem:[#allocation92_spill] sm:$0xff]  ;;  %10323 = vst [vmem:[#allocation49_spill] sm:$0xff] %v7401_v49  ;;  %v7404_v12 = vld [vmem:[#allocation17 + $0x20] sm:$0xff] }
 0xc7e   :  { %2143 = vmatpush.msrb.mxu2 %v10309_v27  ;;  %10324 = vst [vmem:[#allocation43_spill] sm:$0xff] %v7404_v12  ;;  %v7407_v27 = vld [vmem:[#allocation17 + $0x18] sm:$0xff] }
 0xc7f   :  { %1689 = vmatpush.msra.mxu1 %v10310_v15  ;;  %1944 = vmatpush.msra.mxu3 %v10311_v5  ;;  %10325 = vst [vmem:[#allocation51_spill] sm:$0xff] %v7407_v27  ;;  %v7410_v15 = vld [vmem:[#allocation17 + $0x10] sm:$0xff]  ;;  %v7413_v5 = vld [vmem:[#allocation17 + $0x8] sm:$0xff] }
 0xc80   :  { %2144 = vmatpush.msrb.mxu2 %v10312_v14  ;;  %10326 = vst [vmem:[#allocation44_spill] sm:$0xff] %v7410_v15  ;;  %v7416_v14 = vld [vmem:[#allocation17] sm:$0xff] }
 0xc81   :  { %1690 = vmatpush.msra.mxu1 %v10313_v52  ;;  %1945 = vmatpush.msra.mxu3 %v6841_v11  ;;  %v10319_v11 = vld [vmem:[#allocation98_spill] sm:$0xff]  ;;  %10327 = vst [vmem:[#allocation53_spill] sm:$0xff] %v7413_v5  ;;  %v7419_v52 = vld [vmem:[#allocation11 + $0x168] sm:$0xff] }
 0xc82   :  { %2145 = vmatpush.msrb.mxu2 %v10314_v57  ;;  %10328 = vst [vmem:[#allocation45_spill] sm:$0xff] %v7416_v14  ;;  %v7422_v57 = vld [vmem:[#allocation11 + $0x150] sm:$0xff] }
 0xc83   :  { %1691 = vmatpush.msra.mxu1 %v10315_v55  ;;  %1946 = vmatpush.msra.mxu3 %v6848_v61  ;;  %v7369_v61 = vld [vmem:[#allocation17 + $0x70] sm:$0xff]  ;;  %10329 = vst [vmem:[#allocation55_spill] sm:$0xff] %v7419_v52 }
 0xc84   :  { %2146 = vmatpush.msrb.mxu2 %v10316_v47  ;;  %10330 = vst [vmem:[#allocation46_spill] sm:$0xff] %v7422_v57  ;;  %v7425_v55 = vld [vmem:[#allocation11 + $0x138] sm:$0xff]  ;;  %v7428_v47 = vld [vmem:[#allocation11 + $0x120] sm:$0xff] }
 0xc85   :  { %1692 = vmatpush.msra.mxu1 %v10317_v37  ;;  %1947 = vmatpush.msra.mxu3 %v6855_v28  ;;  %v7374_v28 = vld [vmem:[#allocation17 + $0x68] sm:$0xff]  ;;  %10331 = vst [vmem:[#allocation57_spill] sm:$0xff] %v7425_v55  ;;  %v7431_v37 = vld [vmem:[#allocation11 + $0x108] sm:$0xff] }
 0xc86   :  { %1693 = vmatmul.f32.vlgmr.msra.gmra.mxu1 %v7308_v53  ;;  %2147 = vmatpush.msrb.mxu2 %v10318_v51  ;;  %10332 = vst [vmem:[#allocation48_spill] sm:$0xff] %v7428_v47  ;;  %v7434_v51 = vld [vmem:[#allocation11 + $0xf0] sm:$0xff] }
 0xc87   :  { %1948 = vmatpush.msra.mxu3 %v6862_v48  ;;  %1865 = vmatpush.msrb.mxu1 %v7364_v25  ;;  %v7379_v48 = vld [vmem:[#allocation17 + $0x60] sm:$0xff]  ;;  %10333 = vst [vmem:[#allocation59_spill] sm:$0xff] %v7431_v37 }
 0xc88   :  { %2148 = vmatpush.msrb.mxu2 %v10319_v11  ;;  %10334 = vst [vmem:[#allocation50_spill] sm:$0xff] %v7434_v51  ;;  %v7437_v11 = vld [vmem:[#allocation11 + $0xd8] sm:$0xff] }
 0xc89   :  { %1949 = vmatpush.msra.mxu3 %v6869_v63  ;;  %1866 = vmatpush.msrb.mxu1 %v7369_v61  ;;  %v7383_v63 = vld [vmem:[#allocation17 + $0x58] sm:$0xff]  ;;  %10335 = vst [vmem:[#allocation60_spill] sm:$0xff] %v7437_v11 }
 0xc8a   :  { %2149 = vmatpush.msrb.mxu2 %v6873_v24  ;;  %v7386_v24 = vld [vmem:[#allocation17 + $0x50] sm:$0xff] }
 0xc8b   :  { %1950 = vmatpush.msra.mxu3 %v6876_v20  ;;  %1867 = vmatpush.msrb.mxu1 %v7374_v28  ;;  %v7389_v20 = vld [vmem:[#allocation17 + $0x48] sm:$0xff] }
 0xc8c   :  { %2150 = vmatpush.msrb.mxu2 %v6880_v46  ;;  %v7392_v46 = vld [vmem:[#allocation17 + $0x40] sm:$0xff] }
 0xc8d   :  { %1951 = vmatpush.msra.mxu3 %v6883_v18  ;;  %1868 = vmatpush.msrb.mxu1 %v7379_v48  ;;  %10320 = vst [vmem:[#allocation62_spill] sm:$0xff] %v7392_v46  ;;  %v7395_v18 = vld [vmem:[#allocation17 + $0x38] sm:$0xff] }
 0xc8e   :  { %2151 = vmatpush.msrb.mxu2 %v6887_v35  ;;  %10321 = vst [vmem:[#allocation47_spill] sm:$0xff] %v7395_v18  ;;  %v7398_v35 = vld [vmem:[#allocation17 + $0x30] sm:$0xff] }
 0xc8f   :  { %1869 = vmatpush.msrb.mxu1 %v7383_v63  ;;  %10322 = vst [vmem:[#allocation42_spill] sm:$0xff] %v7398_v35 }
 0xc91   :  { %1870 = vmatpush.msrb.mxu1 %v7386_v24 }
 0xc93   :  { %1871 = vmatpush.msrb.mxu1 %v7389_v20 }
 0xc95   :  { %1872 = vmatpush.msrb.mxu1 %v7392_v46 }
 0xc97   :  { %1873 = vmatpush.msrb.mxu1 %v7395_v18 }
 0xc99   :  { %1874 = vmatpush.msrb.mxu1 %v7398_v35 }
 0xc9b   :  { %1875 = vmatpush.msrb.mxu1 %v7401_v49 }
 0xc9d   :  { %1876 = vmatpush.msrb.mxu1 %v7404_v12 }
 0xc9f   :  { %1877 = vmatpush.msrb.mxu1 %v7407_v27 }
 0xca1   :  { %1878 = vmatpush.msrb.mxu1 %v7410_v15  ;;  %v1634_v15 = vpop.f32.mrf.mxu2 }
 0xca3   :  { %1879 = vmatpush.msrb.mxu1 %v7413_v5 }
 0xca5   :  { %1880 = vmatpush.msrb.mxu1 %v7416_v14  ;;  %v1674_v14 = vpop.f32.mrf.mxu0 }
 0xca7   :  { %2036 = vmatpush.msra.mxu1 %v7419_v52 }
 0xca9   :  { %2037 = vmatpush.msra.mxu1 %v7422_v57  ;;  %v7440_v57 = vld [vmem:[#allocation11 + $0xc0] sm:$0xff]  ;;  %v1714_v12 = vpop.f32.mrf.mxu2 }
 0xcaa   :  { %10336 = vst [vmem:[#allocation52_spill] sm:$0xff] %v7440_v57 }
 0xcab   :  { %2038 = vmatpush.msra.mxu1 %v7425_v55  ;;  %v7443_v55 = vld [vmem:[#allocation11 + $0xa8] sm:$0xff] }
 0xcac   :  { %10337 = vst [vmem:[#allocation54_spill] sm:$0xff] %v7443_v55 }
 0xcad   :  { %2039 = vmatpush.msra.mxu1 %v7428_v47  ;;  %v7446_v47 = vld [vmem:[#allocation11 + $0x90] sm:$0xff] }
 0xcae   :  { %10338 = vst [vmem:[#allocation56_spill] sm:$0xff] %v7446_v47 }
 0xcaf   :  { %2040 = vmatpush.msra.mxu1 %v7431_v37  ;;  %v7449_v37 = vld [vmem:[#allocation11 + $0x78] sm:$0xff] }
 0xcb0   :  { %10339 = vst [vmem:[#allocation58_spill] sm:$0xff] %v7449_v37 }
 0xcb1   :  { %2041 = vmatpush.msra.mxu1 %v7434_v51  ;;  %v7452_v51 = vld [vmem:[#allocation11 + $0x60] sm:$0xff] }
 0xcb2   :  { %10340 = vst [vmem:[#allocation28_spill] sm:$0xff] %v7452_v51 }
 0xcb3   :  { %2042 = vmatpush.msra.mxu1 %v7437_v11  ;;  %v7455_v11 = vld [vmem:[#allocation11 + $0x48] sm:$0xff] }
 0xcb4   :  { %10341 = vst [vmem:[#allocation40_spill] sm:$0xff] %v7455_v11 }
 0xcb5   :  { %2043 = vmatpush.msra.mxu1 %v7440_v57  ;;  %v7458_v57 = vld [vmem:[#allocation11 + $0x30] sm:$0xff] }
 0xcb6   :  { %10342 = vst [vmem:[#allocation39_spill] sm:$0xff] %v7458_v57 }
 0xcb7   :  { %2044 = vmatpush.msra.mxu1 %v7443_v55  ;;  %v7461_v55 = vld [vmem:[#allocation11 + $0x18] sm:$0xff] }
 0xcb8   :  { %10343 = vst [vmem:[#allocation41_spill] sm:$0xff] %v7461_v55 }
 0xcb9   :  { %2045 = vmatpush.msra.mxu1 %v7446_v47  ;;  %v7464_v47 = vld [vmem:[#allocation11] sm:$0xff] }
 0xcba   :  { %10344 = vst [vmem:[#allocation76_spill] sm:$0xff] %v7464_v47 }
 0xcbb   :  { %2046 = vmatpush.msra.mxu1 %v7449_v37 }
 0xcbd   :  { %2047 = vmatpush.msra.mxu1 %v7452_v51 }
 0xcbf   :  { %2048 = vmatpush.msra.mxu1 %v7455_v11 }
 0xcc1   :  { %2049 = vmatpush.msra.mxu1 %v7458_v57 }
 0xcc3   :  { %2050 = vmatpush.msra.mxu1 %v7461_v55 }
 0xcc5   :  { %2051 = vmatpush.msra.mxu1 %v7464_v47 }
 0xce3   :  { %v7467_v52 = vpop.f32.mrf.mxu1 }
 0xceb   :  { %v1614_v27 = vpop.f32.mrf.mxu1 }
 0xcf0   :  { %v1654_v37 = vpop.f32.mrf.mxu3 }
 0xcf1   :  { %v1655_v51 = vadd.f32 %v6917_v8, %v1654_v37  ;;  %v1615_v8 = vadd.f32 %v6928_v21, %v1614_v27 }
 0xcf3   :  { %v1675_v5 = vadd.f32 %v1674_v14, %v1655_v51  ;;  %v1635_v14 = vadd.f32 %v1634_v15, %v1615_v8 }
 0xcf5   :  { %4404 = vtanh.f32 %v1675_v5  ;;  %v1717_v37 = vmul.f32 0.5, %v1635_v14 }
 0xcfb   :  { %v4405_v11 = vpop.eup %4404 }
 0xcfc   :  { %1735 = vrot.lane.b32.xlu2 %v4405_v11, %s5625_s14 }
 0xd03   :  { %v1694_v57 = vpop.f32.mrf.mxu1 }
 0xd04   :  { %v1695_v55 = vadd.f32 %v6921_v29, %v1694_v57 }
 0xd06   :  { %v7472_v49 = vadd.f32 %v1714_v12, %v1695_v55  ;;  %v1721_v12 = vmul.f32 0.5, %v1675_v5 }
 0xd08   :  { %4406 = vtanh.f32 %v7472_v49 }
 0xd09   :  { %4408 = vtanh.f32 %v1717_v37 }
 0xd0a   :  { %4410 = vtanh.f32 %v1721_v12 }
 0xd0e   :  { %v4407_v47 = vpop.eup %4406 }
 0xd0f   :  { %1737 = vrot.lane.b32.xlu0 %v4407_v47, %s5625_s14  ;;  %v4409_v51 = vpop.eup %4408 }
 0xd10   :  { %v1719_v35 = vmul.f32 0.5, %v4409_v51  ;;  %v4411_v55 = vpop.eup %4410 }
 0xd11   :  { %v1723_v21 = vmul.f32 0.5, %v4411_v55  ;;  %v10345_v55 = vld [vmem:[#allocation74_spill] sm:$0xff] }
 0xd12   :  { %v1720_v46 = vadd.f32 0.5, %v1719_v35 }
 0xd13   :  { %v1724_v27 = vadd.f32 0.5, %v1723_v21  ;;  %v10346_v21 = vld [vmem:[#allocation73_spill] sm:$0xff] }
 0xd14   :  { %v1731_v47 = vmul.f32 %v1720_v46, %v6939_v41 }
 0xd15   :  { %v1732_v15 = vmul.f32 %v1724_v27, %v6941_v36 }
 0xd56   :  { %v1736_v18 = vpop.permute.xlu2 %1735 }
 0xd81   :  { %v1738_v11 = vpop.permute.xlu0 %1737 }
 0xd82   :  { %v1739_v29 = vsel %vm816_vm3, %v1736_v18, %v1738_v11 }
 0xd83   :  { %v1741_v57 = vmul.f32 %v1739_v29, %v1720_v46 }
 0xd85   :  { %1743 = vrot.lane.b32.xlu1 %v1741_v57, %s5626_s15 }
 0xd8d   :  { %4225 = vrot.lane.b32.xlu1 %v7214_v30, %s5631_s2 }
 0xdf7   :  { %v1744_v8 = vpop.permute.xlu1 %1743 }
 0xdf8   :  { %v7483_v14 = vadd.f32 %v1744_v8, %v1731_v47  ;;  %v7485_v35 = vadd.f32 %v1744_v8, %v1732_v15  ;;  %v10355_v15 = vld [vmem:[#allocation107_spill] sm:$0xff]  ;;  %v10357_v47 = vld [vmem:[#allocation109_spill] sm:$0xff]  ;;  %v10358_v8 = vld [vmem:[#allocation110_spill] sm:$0xff] }
 0xdfa   :  { %4412 = vtanh.f32 %v7483_v14 }
 0xdfb   :  { %4414 = vtanh.f32 %v7485_v35 }
 0xdff   :  { %v4226_v46 = vpop.permute.xlu1 %4225 }
 0xe00   :  { %v4413_v18 = vpop.eup %4412  ;;  %v4228_v51 = vunpack.i.h.bf16 %v4226_v46  ;;  %v4227_v11 = vunpack.i.l.bf16 %v4226_v46  ;;  %v10364_v46 = vld [vmem:[#allocation116_spill] sm:$0xff] }
 0xe01   :  { %v4415_v30 = vpop.eup %4414  ;;  %1752 = vrot.lane.b32.xlu2 %v4413_v18, %s5626_s15  ;;  %v10359_v18 = vld [vmem:[#allocation111_spill] sm:$0xff] }
 0xe02   :  { %1754 = vrot.lane.b32.xlu0 %v4415_v30, %s5626_s15  ;;  %v1769_v29 = vsel %vm1329_vm9, %v4227_v11, %v4228_v51  ;;  %v10360_v30 = vld [vmem:[#allocation112_spill] sm:$0xff]  ;;  %v10365_v51 = vld [vmem:[#allocation117_spill] sm:$0xff]  ;;  %v10366_v11 = vld [vmem:[#allocation118_spill] sm:$0xff] }
 0xe5b   :  { %v1753_v5 = vpop.permute.xlu2 %1752 }
 0xe74   :  { %v7491_v37 = vpop.permute.xlu0 %1754 }
 0xe75   :  { %v1756_v41 = vsel %vm834_vm4, %v1753_v5, %v7491_v37  ;;  %v10361_v5 = vld [vmem:[#allocation113_spill] sm:$0xff] }
 0xe76   :  { %v1759_v36 = vmul.f32 %v1756_v41, %v1724_v27  ;;  %v10354_v27 = vld [vmem:[#allocation106_spill] sm:$0xff] }
 0xe77   :  { %v10362_v41 = vld [vmem:[#allocation114_spill] sm:$0xff] }
 0xe78   :  { %1762 = vrot.lane.b32.xlu2 %v1759_v36, %s5627_s1  ;;  %v10363_v36 = vld [vmem:[#allocation115_spill] sm:$0xff] }
 0xed2   :  { %v7497_v57 = vpop.permute.xlu2 %1762 }
 0xed3   :  { %v1771_v12 = vsel %vm834_vm4, %v7497_v57, %v1769_v29  ;;  %v10367_v29 = vld [vmem:[#allocation119_spill] sm:$0xff] }
 0xed4   :  { %1788 = vmatmul.f32.vlgmr.msrb.gmra.mxu3 %v1771_v12  ;;  %1808 = vmatmul.f32.vlgmr.msrb.gmra.mxu0 %v1771_v12  ;;  %v10368_v12 = vld [vmem:[#allocation120_spill] sm:$0xff] }
 0xed5   :  { %2096 = vmatpush.msrb.mxu0 %v6957_v4  ;;  %2076 = vmatpush.msrb.mxu3 %v6960_v2  ;;  %v10347_v4 = vld [vmem:[#allocation99_spill] sm:$0xff]  ;;  %v10348_v2 = vld [vmem:[#allocation100_spill] sm:$0xff] }
 0xed7   :  { %2097 = vmatpush.msrb.mxu0 %v6963_v50  ;;  %2077 = vmatpush.msrb.mxu3 %v6966_v19  ;;  %v10349_v50 = vld [vmem:[#allocation101_spill] sm:$0xff]  ;;  %v10350_v19 = vld [vmem:[#allocation102_spill] sm:$0xff] }
 0xed9   :  { %2098 = vmatpush.msrb.mxu0 %v6969_v34  ;;  %2078 = vmatpush.msrb.mxu3 %v6972_v0  ;;  %v10351_v34 = vld [vmem:[#allocation103_spill] sm:$0xff]  ;;  %v10352_v0 = vld [vmem:[#allocation104_spill] sm:$0xff] }
 0xedb   :  { %2099 = vmatpush.msrb.mxu0 %v6975_v45  ;;  %2079 = vmatpush.msrb.mxu3 %v10345_v55  ;;  %v10353_v45 = vld [vmem:[#allocation105_spill] sm:$0xff] }
 0xedc   :  { %1952 = vmatmul.f32.vlgmr.msra.gmra.mxu3 %v7308_v53  ;;  %1972 = vmatmul.f32.vlgmr.msra.gmra.mxu0 %v7308_v53  ;;  %v10356_v53 = vld [vmem:[#allocation108_spill] sm:$0xff]  ;;  %v10369_v55 = vld [vmem:[#allocation121_spill] sm:$0xff] }
 0xedd   :  { %2100 = vmatpush.msrb.mxu0 %v10346_v21  ;;  %2080 = vmatpush.msrb.mxu3 %v10347_v4  ;;  %v10370_v21 = vld [vmem:[#allocation122_spill] sm:$0xff]  ;;  %v10371_v4 = vld [vmem:[#allocation123_spill] sm:$0xff] }
 0xedf   :  { %2101 = vmatpush.msrb.mxu0 %v10348_v2  ;;  %2081 = vmatpush.msrb.mxu3 %v10349_v50  ;;  %v10372_v2 = vld [vmem:[#allocation124_spill] sm:$0xff]  ;;  %v10373_v50 = vld [vmem:[#allocation125_spill] sm:$0xff] }
 0xee1   :  { %2102 = vmatpush.msrb.mxu0 %v10350_v19  ;;  %2082 = vmatpush.msrb.mxu3 %v10351_v34  ;;  %v10374_v19 = vld [vmem:[#allocation126_spill] sm:$0xff]  ;;  %v10375_v34 = vld [vmem:[#allocation127_spill] sm:$0xff] }
 0xee3   :  { %2103 = vmatpush.msrb.mxu0 %v10352_v0  ;;  %2083 = vmatpush.msrb.mxu3 %v10353_v45  ;;  %v10376_v0 = vld [vmem:[#allocation128_spill] sm:$0xff]  ;;  %v10377_v45 = vld [vmem:[#allocation129_spill] sm:$0xff] }
 0xee5   :  { %2104 = vmatpush.msrb.mxu0 %v10354_v27  ;;  %2084 = vmatpush.msrb.mxu3 %v10355_v15  ;;  %v10378_v27 = vld [vmem:[#allocation130_spill] sm:$0xff]  ;;  %v10379_v15 = vld [vmem:[#allocation131_spill] sm:$0xff] }
 0xee7   :  { %2105 = vmatpush.msrb.mxu0 %v10356_v53  ;;  %2085 = vmatpush.msrb.mxu3 %v10357_v47  ;;  %v10380_v53 = vld [vmem:[#allocation132_spill] sm:$0xff]  ;;  %v10381_v47 = vld [vmem:[#allocation133_spill] sm:$0xff] }
 0xee9   :  { %2106 = vmatpush.msrb.mxu0 %v10358_v8  ;;  %2086 = vmatpush.msrb.mxu3 %v10359_v18  ;;  %v10382_v8 = vld [vmem:[#allocation134_spill] sm:$0xff]  ;;  %v10383_v18 = vld [vmem:[#allocation135_spill] sm:$0xff] }
 0xeeb   :  { %2107 = vmatpush.msrb.mxu0 %v10360_v30  ;;  %2087 = vmatpush.msrb.mxu3 %v10361_v5  ;;  %v10384_v30 = vld [vmem:[#allocation136_spill] sm:$0xff]  ;;  %v10385_v5 = vld [vmem:[#allocation137_spill] sm:$0xff] }
 0xeed   :  { %2108 = vmatpush.msrb.mxu0 %v10362_v41  ;;  %2088 = vmatpush.msrb.mxu3 %v10363_v36  ;;  %v10386_v41 = vld [vmem:[#allocation138_spill] sm:$0xff]  ;;  %v10387_v36 = vld [vmem:[#allocation139_spill] sm:$0xff] }
 0xeef   :  { %2109 = vmatpush.msrb.mxu0 %v10364_v46  ;;  %2089 = vmatpush.msrb.mxu3 %v10365_v51  ;;  %v10388_v46 = vld [vmem:[#allocation140_spill] sm:$0xff]  ;;  %v10389_v51 = vld [vmem:[#allocation141_spill] sm:$0xff] }
 0xef1   :  { %2110 = vmatpush.msrb.mxu0 %v10366_v11  ;;  %2090 = vmatpush.msrb.mxu3 %v10367_v29  ;;  %v10390_v11 = vld [vmem:[#allocation142_spill] sm:$0xff]  ;;  %v10391_v29 = vld [vmem:[#allocation143_spill] sm:$0xff] }
 0xef3   :  { %2111 = vmatpush.msrb.mxu0 %v10368_v12  ;;  %2091 = vmatpush.msrb.mxu3 %v10369_v55  ;;  %v10392_v12 = vld [vmem:[#allocation144_spill] sm:$0xff]  ;;  %v10393_v55 = vld [vmem:[#allocation145_spill] sm:$0xff] }
 0xef5   :  { %2211 = vmatpush.msra.mxu3 %v10370_v21  ;;  %2231 = vmatpush.msra.mxu0 %v10371_v4  ;;  %v10394_v21 = vld [vmem:[#allocation146_spill] sm:$0xff]  ;;  %v10395_v4 = vld [vmem:[#allocation147_spill] sm:$0xff] }
 0xef7   :  { %2212 = vmatpush.msra.mxu3 %v10372_v2  ;;  %2232 = vmatpush.msra.mxu0 %v10373_v50  ;;  %v10396_v2 = vld [vmem:[#allocation148_spill] sm:$0xff]  ;;  %v10397_v50 = vld [vmem:[#allocation149_spill] sm:$0xff] }
 0xef9   :  { %2213 = vmatpush.msra.mxu3 %v10374_v19  ;;  %2233 = vmatpush.msra.mxu0 %v10375_v34  ;;  %v10398_v19 = vld [vmem:[#allocation150_spill] sm:$0xff]  ;;  %v10399_v34 = vld [vmem:[#allocation151_spill] sm:$0xff] }
 0xefb   :  { %2214 = vmatpush.msra.mxu3 %v10376_v0  ;;  %2234 = vmatpush.msra.mxu0 %v10377_v45  ;;  %v10400_v0 = vld [vmem:[#allocation152_spill] sm:$0xff]  ;;  %v10401_v45 = vld [vmem:[#allocation153_spill] sm:$0xff] }
 0xefd   :  { %2215 = vmatpush.msra.mxu3 %v10378_v27  ;;  %2235 = vmatpush.msra.mxu0 %v10379_v15  ;;  %v7567_v15 = vld [vmem:[#allocation15 + $0x8] sm:$0xff] }
 0xeff   :  { %2216 = vmatpush.msra.mxu3 %v10380_v53  ;;  %2236 = vmatpush.msra.mxu0 %v10381_v47  ;;  %v1933_v47 = vpop.f32.mrf.mxu2 }
 0xf01   :  { %2217 = vmatpush.msra.mxu3 %v10382_v8  ;;  %2237 = vmatpush.msra.mxu0 %v10383_v18  ;;  %v10402_v18 = vld [vmem:[#allocation36_spill] sm:$0xff] }
 0xf03   :  { %2218 = vmatpush.msra.mxu3 %v10384_v30  ;;  %2238 = vmatpush.msra.mxu0 %v10385_v5  ;;  %v10403_v30 = vld [vmem:[#allocation30_spill] sm:$0xff] }
 0xf04   :  { %v283_v5 = vadd.f32 %v10403_v30, %v10402_v18 }
 0xf05   :  { %2219 = vmatpush.msra.mxu3 %v10386_v41  ;;  %2239 = vmatpush.msra.mxu0 %v10387_v36  ;;  %v10404_v41 = vld [vmem:[#allocation35_spill] sm:$0xff] }
 0xf06   :  { %v10405_v36 = vld [vmem:[#allocation63_spill] sm:$0xff] }
 0xf07   :  { %2220 = vmatpush.msra.mxu3 %v10388_v46  ;;  %2240 = vmatpush.msra.mxu0 %v10389_v51  ;;  %v365_v46 = vadd.f32 %v10405_v36, %v10404_v41  ;;  %v7575_v51 = vld [vmem:[#allocation15] sm:$0xff] }
 0xf09   :  { %2221 = vmatpush.msra.mxu3 %v10390_v11  ;;  %2241 = vmatpush.msra.mxu0 %v10391_v29 }
 0xf0b   :  { %2222 = vmatpush.msra.mxu3 %v10392_v12  ;;  %2242 = vmatpush.msra.mxu0 %v10393_v55  ;;  %v1976_v12 = vadd.f32 %v1933_v47, %v283_v5 }
 0xf0d   :  { %2223 = vmatpush.msra.mxu3 %v10394_v21  ;;  %2243 = vmatpush.msra.mxu0 %v10395_v4  ;;  %v10406_v21 = vld [vmem:[#allocation29_spill] sm:$0xff] }
 0xf0e   :  { %v1444_v4 = vadd.f32 %v7467_v52, %v10406_v21 }
 0xf0f   :  { %2224 = vmatpush.msra.mxu3 %v10396_v2  ;;  %2244 = vmatpush.msra.mxu0 %v10397_v50  ;;  %v1979_v50 = vmul.f32 0.5, %v1976_v12 }
 0xf11   :  { %2225 = vmatpush.msra.mxu3 %v10398_v19  ;;  %2245 = vmatpush.msra.mxu0 %v10399_v34 }
 0xf13   :  { %2226 = vmatpush.msra.mxu3 %v10400_v0  ;;  %2246 = vmatpush.msra.mxu0 %v10401_v45 }
 0xf51   :  { %v1809_v27 = vpop.f32.mrf.mxu0 }
 0xf52   :  { %v1810_v53 = vadd.f32 %v7567_v15, %v1809_v27 }
 0xf54   :  { %1821 = vrot.lane.b32.xlu0 %v1810_v53, %s5628_s0 }
 0xf57   :  { %v1789_v8 = vpop.f32.mrf.mxu3 }
 0xf58   :  { %v1790_v11 = vadd.f32 %v7575_v51, %v1789_v8 }
 0xf59   :  { %v1973_v29 = vpop.f32.mrf.mxu0 }
 0xf5a   :  { %v7578_v55 = vadd.f32 %v1973_v29, %v365_v46  ;;  %1825 = vrot.lane.b32.xlu1 %v1790_v11, %s5628_s0  ;;  %v1812_v2 = vmul.f32 0.5, %v1790_v11 }
 0xf5c   :  { %1992 = vrot.lane.b32.xlu2 %v7578_v55, %s5622_s8  ;;  %1996 = vrot.lane.b32.xlu0 %v1976_v12, %s5622_s8  ;;  %4416 = vtanh.f32 %v1812_v2 }
 0xf5d   :  { %4418 = vtanh.f32 %v1979_v50 }
 0xf5f   :  { %v1953_v2 = vpop.f32.mrf.mxu3 }
 0xf62   :  { %v4417_v34 = vpop.eup %4416 }
 0xf63   :  { %v4419_v27 = vpop.eup %4418  ;;  %v1814_v30 = vmul.f32 0.5, %v4417_v34 }
 0xf64   :  { %1451 = vrot.lane.b32.xlu0 %v1444_v4, %s5632_s19  ;;  %v1981_v52 = vmul.f32 0.5, %v4419_v27 }
 0xf65   :  { %v7589_v36 = vadd.f32 0.5, %v1814_v30 }
 0xf66   :  { %v1982_v11 = vadd.f32 0.5, %v1981_v52 }
 0xf68   :  { %v2001_v50 = vmul.f32 %v1982_v11, %v7184_v62 }
 0xfb6   :  { %v1993_v47 = vpop.permute.xlu2 %1992 }
 0xfc6   :  { %v1822_v19 = vpop.permute.xlu0 %1821 }
 0xfcc   :  { %v1826_v0 = vpop.permute.xlu1 %1825 }
 0xfcd   :  { %v1828_v45 = vsel %vm933_vm5, %v1822_v19, %v1826_v0  ;;  %v10407_v19 = vld [vmem:[#allocation64_spill] sm:$0xff]  ;;  %v1816_v0 = vmul.f32 0.5, %v1810_v53 }
 0xfce   :  { %4420 = vtanh.f32 %v1828_v45  ;;  %v1997_v8 = vpop.permute.xlu0 %1996  ;;  %v324_v34 = vadd.f32 %v10407_v19, %v10137_v23 }
 0xfcf   :  { %v1999_v5 = vsel %vm543_vm0, %v1993_v47, %v1997_v8 }
 0xfd0   :  { %4422 = vtanh.f32 %v1999_v5  ;;  %v1977_v47 = vadd.f32 %v1953_v2, %v324_v34  ;;  %v10408_v2 = vld [vmem:[#allocation61_spill] sm:$0xff] }
 0xfd2   :  { %v1983_v8 = vmul.f32 0.5, %v1977_v47 }
 0xfd4   :  { %v4421_v46 = vpop.eup %4420 }
 0xfd5   :  { %v1832_v29 = vmul.f32 %v4421_v46, %v7589_v36 }
 0xfd6   :  { %v4423_v12 = vpop.eup %4422  ;;  %v1452_v46 = vpop.permute.xlu0 %1451 }
 0xfd7   :  { %1834 = vrot.lane.b32.xlu1 %v1832_v29, %s5629_s16  ;;  %v2003_v21 = vmul.f32 %v4423_v12, %v1982_v11  ;;  %v1454_v29 = vmul.f32 0.5, %v1452_v46  ;;  %v1446_v12 = vmul.f32 0.5, %v1444_v4 }
 0xfd9   :  { %2005 = vrot.lane.b32.xlu2 %v2003_v21, %s5623_s10 }
 0xfdf   :  { %1465 = vrot.lane.b32.xlu1 %v1444_v4, %s5633_s20 }
 0xfe1   :  { %1458 = vrot.lane.b32.xlu2 %v1444_v4, %s5634_s21 }
0x1033   :  { %v2006_v45 = vpop.permute.xlu2 %2005 }
0x1034   :  { %v7599_v27 = vadd.f32 %v2006_v45, %v2001_v50  ;;  %v1830_v50 = vmul.f32 %v7589_v36, %v10408_v2 }
0x1036   :  { %4424 = vtanh.f32 %v7599_v27 }
0x1037   :  { %4426 = vtanh.f32 %v1816_v0 }
0x1038   :  { %4428 = vtanh.f32 %v1983_v8  ;;  %v1725_v8 = vmul.f32 0.5, %v7472_v49 }
0x1039   :  { %4430 = vtanh.f32 %v1454_v29 }
0x103a   :  { %4432 = vtanh.f32 %v1446_v12 }
0x103c   :  { %v4425_v30 = vpop.eup %4424 }
0x103d   :  { %v4427_v5 = vpop.eup %4426  ;;  %2014 = vrot.lane.b32.xlu2 %v4425_v30, %s5623_s10 }
0x103e   :  { %v1818_v52 = vmul.f32 0.5, %v4427_v5  ;;  %v4429_v62 = vpop.eup %4428 }
0x103f   :  { %v1985_v53 = vmul.f32 0.5, %v4429_v62  ;;  %v4431_v4 = vpop.eup %4430 }
0x1040   :  { %v1819_v11 = vadd.f32 0.5, %v1818_v52  ;;  %v4433_v5 = vpop.eup %4432  ;;  %v1456_v46 = vmul.f32 0.5, %v4431_v4 }
0x1041   :  { %v1986_v34 = vadd.f32 0.5, %v1985_v53 }
0x1042   :  { %v1831_v21 = vmul.f32 %v1819_v11, %v7193_v33  ;;  %v1459_v33 = vpop.permute.xlu2 %1458  ;;  %v1457_v49 = vadd.f32 0.5, %v1456_v46 }
0x1043   :  { %v2002_v30 = vmul.f32 %v1986_v34, %v7199_v43  ;;  %v1461_v62 = vmul.f32 0.5, %v1459_v33 }
0x1045   :  { %v7614_v52 = vadd.f32 %v2006_v45, %v2002_v30 }
0x1049   :  { %v1835_v19 = vpop.permute.xlu1 %1834 }
0x104a   :  { %v7606_v0 = vadd.f32 %v1835_v19, %v1830_v50  ;;  %v7608_v47 = vadd.f32 %v1835_v19, %v1831_v21  ;;  %v1448_v21 = vmul.f32 0.5, %v4433_v5  ;;  %v1469_v50 = vmul.f32 %v1457_v49, %v7204_v16 }
0x104b   :  { %v1987_v16 = vmul.f32 0.5, %v7578_v55 }
0x104c   :  { %4434 = vtanh.f32 %v7606_v0  ;;  %v1449_v2 = vadd.f32 0.5, %v1448_v21 }
0x104d   :  { %4436 = vtanh.f32 %v7608_v47 }
0x104e   :  { %4438 = vtanh.f32 %v1725_v8 }
0x1051   :  { %v1466_v29 = vpop.permute.xlu1 %1465 }
0x1052   :  { %v4435_v12 = vpop.eup %4434  ;;  %4440 = vtanh.f32 %v1466_v29 }
0x1053   :  { %v4437_v53 = vpop.eup %4436  ;;  %1843 = vrot.lane.b32.xlu0 %v4435_v12, %s5629_s16  ;;  %4442 = vtanh.f32 %v7614_v52 }
0x1054   :  { %1845 = vrot.lane.b32.xlu1 %v4437_v53, %s5629_s16  ;;  %4444 = vtanh.f32 %v1461_v62  ;;  %v4439_v43 = vpop.eup %4438 }
0x1055   :  { %v1727_v30 = vmul.f32 0.5, %v4439_v43 }
0x1057   :  { %v1728_v29 = vadd.f32 0.5, %v1727_v30 }
0x1058   :  { %v4441_v45 = vpop.eup %4440 }
0x1059   :  { %v1470_v19 = vmul.f32 %v4441_v45, %v1449_v2  ;;  %v4443_v8 = vpop.eup %4442  ;;  %v1760_v46 = vmul.f32 %v7491_v37, %v1728_v29 }
0x105a   :  { %v4445_v4 = vpop.eup %4444 }
0x105b   :  { %v7620_v33 = vadd.f32 %v1470_v19, %v1469_v50  ;;  %2016 = vrot.lane.b32.xlu0 %v4443_v8, %s5623_s10  ;;  %v1463_v5 = vmul.f32 0.5, %v4445_v4 }
0x105d   :  { %4446 = vtanh.f32 %v7620_v33  ;;  %v1464_v62 = vadd.f32 0.5, %v1463_v5 }
0x105e   :  { %4448 = vtanh.f32 %v1987_v16  ;;  %v7711_v16 = vld [vmem:[#allocation11 + $0x2a0] sm:$0xff] }
0x1063   :  { %v4447_v12 = vpop.eup %4446  ;;  %2032 = vrot.lane.b32.xlu0 %v1760_v46, %s5627_s1 }
0x1064   :  { %v1473_v53 = vmul.f32 %v4447_v12, %v1464_v62  ;;  %v4449_v21 = vpop.eup %4448  ;;  %v7638_v62 = vld [vmem:[#allocation8 + $0x168] sm:$0xff]  ;;  %v7642_v12 = vld [vmem:[#allocation8 + $0x150] sm:$0xff] }
0x1065   :  { %v1989_v19 = vmul.f32 0.5, %v4449_v21  ;;  %v7720_v21 = vld [vmem:[#allocation11 + $0x258] sm:$0xff] }
0x1066   :  { %1861 = vrot.lane.b32.xlu2 %v1473_v53, %s5629_s16  ;;  %v7670_v53 = vld [vmem:[#allocation8 + $0xa8] sm:$0xff] }
0x1067   :  { %v1990_v8 = vadd.f32 0.5, %v1989_v19  ;;  %v7738_v19 = vld [vmem:[#allocation11 + $0x1c8] sm:$0xff] }
0x1068   :  { %10411 = vst [vmem:[#allocation87_spill] sm:$0xff] %v7738_v19 }
0x1097   :  { %v2015_v4 = vpop.permute.xlu2 %2014 }
0x10c5   :  { %v1844_v49 = vpop.permute.xlu0 %1843 }
0x10c6   :  { %v1846_v43 = vpop.permute.xlu1 %1845  ;;  %v1850_v2 = vmul.f32 %v1844_v49, %v7589_v36 }
0x10c7   :  { %v1847_v45 = vsel %vm953_vm6, %v1844_v49, %v1846_v43  ;;  %v7723_v49 = vld [vmem:[#allocation11 + $0x240] sm:$0xff]  ;;  %v7726_v43 = vld [vmem:[#allocation11 + $0x228] sm:$0xff] }
0x10c8   :  { %v1851_v50 = vmul.f32 %v1847_v45, %v1819_v11  ;;  %v7732_v45 = vld [vmem:[#allocation11 + $0x1f8] sm:$0xff] }
0x10c9   :  { %10409 = vst [vmem:[#allocation85_spill] sm:$0xff] %v7732_v45 }
0x10ca   :  { %v7630_v37 = vpack.i.bf16 %v1851_v50, %v1850_v2  ;;  %v7729_v2 = vld [vmem:[#allocation11 + $0x210] sm:$0xff]  ;;  %v7735_v50 = vld [vmem:[#allocation11 + $0x1e0] sm:$0xff] }
0x10cb   :  { %10410 = vst [vmem:[#allocation78_spill] sm:$0xff] %v7735_v50 }
0x10cc   :  { %4230 = vrot.lane.b32.xlu1 %v7630_v37, %s5630_s17 }
0x10cd   :  { %v2017_v30 = vpop.permute.xlu0 %2016 }
0x10ce   :  { %v2018_v55 = vsel %vm563_vm1, %v2015_v4, %v2017_v30  ;;  %v2022_v5 = vmul.f32 %v2017_v30, %v1990_v8  ;;  %v7741_v8 = vld [vmem:[#allocation11 + $0x1b0] sm:$0xff]  ;;  %v7744_v4 = vld [vmem:[#allocation11 + $0x198] sm:$0xff]  ;;  %v7747_v30 = vld [vmem:[#allocation11 + $0x180] sm:$0xff] }
0x10cf   :  { %v2021_v29 = vmul.f32 %v2018_v55, %v1986_v34  ;;  %v7646_v34 = vld [vmem:[#allocation8 + $0x138] sm:$0xff]  ;;  %10412 = vst [vmem:[#allocation80_spill] sm:$0xff] %v7741_v8 }
0x10d0   :  { %10413 = vst [vmem:[#allocation89_spill] sm:$0xff] %v7744_v4 }
0x10d1   :  { %v4234_v46 = vpack.i.bf16 %v2022_v5, %v2021_v29  ;;  %10414 = vst [vmem:[#allocation83_spill] sm:$0xff] %v7747_v30 }
0x10d4   :  { %4235 = vrot.lane.b32.xlu1 %v4234_v46, %s5624_s13  ;;  %v1862_v46 = vpop.permute.xlu2 %1861 }
0x10d5   :  { %v2033_v36 = vpop.permute.xlu0 %2032 }
0x10d6   :  { %v2034_v11 = vsel %vm1154_vm7, %v7497_v57, %v2033_v36  ;;  %v7650_v57 = vld [vmem:[#allocation8 + $0x120] sm:$0xff] }
0x10d7   :  { %2072 = vmatmul.f32.vlgmr.msra.gmra.mxu2 %v2034_v11  ;;  %2112 = vmatmul.f32.vlgmr.msrb.gmra.mxu0 %v2034_v11 }
0x10d8   :  { %2355 = vmatpush.msra.mxu2 %v7638_v62  ;;  %2395 = vmatpush.msrb.mxu0 %v7223_v42  ;;  %v7654_v42 = vld [vmem:[#allocation8 + $0x108] sm:$0xff] }
0x10da   :  { %2356 = vmatpush.msra.mxu2 %v7642_v12  ;;  %2396 = vmatpush.msrb.mxu0 %v7227_v10  ;;  %v7658_v10 = vld [vmem:[#allocation8 + $0xf0] sm:$0xff] }
0x10dc   :  { %2357 = vmatpush.msra.mxu2 %v7646_v34  ;;  %2397 = vmatpush.msrb.mxu0 %v7231_v60  ;;  %v7662_v60 = vld [vmem:[#allocation8 + $0xd8] sm:$0xff] }
0x10de   :  { %2358 = vmatpush.msra.mxu2 %v7650_v57  ;;  %2398 = vmatpush.msrb.mxu0 %v7235_v1  ;;  %v7666_v1 = vld [vmem:[#allocation8 + $0xc0] sm:$0xff] }
0x10df   :  { %2152 = vmatmul.f32.vlgmr.msrb.gmra.mxu2 %v2034_v11 }
0x10e0   :  { %2359 = vmatpush.msra.mxu2 %v7654_v42  ;;  %2399 = vmatpush.msrb.mxu0 %v7239_v58  ;;  %v7674_v58 = vld [vmem:[#allocation8 + $0x90] sm:$0xff] }
0x10e2   :  { %2360 = vmatpush.msra.mxu2 %v7658_v10  ;;  %2400 = vmatpush.msrb.mxu0 %v7243_v59  ;;  %v7678_v59 = vld [vmem:[#allocation8 + $0x78] sm:$0xff] }
0x10e4   :  { %2361 = vmatpush.msra.mxu2 %v7662_v60  ;;  %2401 = vmatpush.msrb.mxu0 %v7247_v22  ;;  %v7682_v22 = vld [vmem:[#allocation8 + $0x60] sm:$0xff] }
0x10e6   :  { %2362 = vmatpush.msra.mxu2 %v7666_v1  ;;  %2402 = vmatpush.msrb.mxu0 %v7251_v56  ;;  %v7686_v56 = vld [vmem:[#allocation8 + $0x48] sm:$0xff] }
0x10e8   :  { %2363 = vmatpush.msra.mxu2 %v7670_v53  ;;  %2403 = vmatpush.msrb.mxu0 %v7255_v6  ;;  %v7690_v6 = vld [vmem:[#allocation8 + $0x30] sm:$0xff] }
0x10ea   :  { %2364 = vmatpush.msra.mxu2 %v7674_v58  ;;  %2404 = vmatpush.msrb.mxu0 %v7259_v39  ;;  %v7694_v39 = vld [vmem:[#allocation8 + $0x18] sm:$0xff] }
0x10ec   :  { %2365 = vmatpush.msra.mxu2 %v7678_v59  ;;  %2405 = vmatpush.msrb.mxu0 %v7263_v9  ;;  %v7698_v9 = vld [vmem:[#allocation8] sm:$0xff] }
0x10ee   :  { %2366 = vmatpush.msra.mxu2 %v7682_v22  ;;  %2406 = vmatpush.msrb.mxu0 %v7267_v17  ;;  %v7702_v17 = vld [vmem:[#allocation11 + $0x2e8] sm:$0xff] }
0x10f0   :  { %2367 = vmatpush.msra.mxu2 %v7686_v56  ;;  %2407 = vmatpush.msrb.mxu0 %v7271_v3  ;;  %v7705_v3 = vld [vmem:[#allocation11 + $0x2d0] sm:$0xff] }
0x10f2   :  { %2368 = vmatpush.msra.mxu2 %v7690_v6  ;;  %2408 = vmatpush.msrb.mxu0 %v7275_v7  ;;  %v7708_v7 = vld [vmem:[#allocation11 + $0x2b8] sm:$0xff] }
0x10f4   :  { %2369 = vmatpush.msra.mxu2 %v7694_v39  ;;  %2409 = vmatpush.msrb.mxu0 %v7279_v40  ;;  %v7714_v40 = vld [vmem:[#allocation11 + $0x288] sm:$0xff] }
0x10f6   :  { %2370 = vmatpush.msra.mxu2 %v7698_v9  ;;  %2410 = vmatpush.msrb.mxu0 %v7283_v13  ;;  %v7717_v13 = vld [vmem:[#allocation11 + $0x270] sm:$0xff] }
0x10f8   :  { %2495 = vmatpush.msrb.mxu2 %v7702_v17 }
0x10fa   :  { %2496 = vmatpush.msrb.mxu2 %v7705_v3 }
0x10fc   :  { %2497 = vmatpush.msrb.mxu2 %v7708_v7 }
0x10fe   :  { %2498 = vmatpush.msrb.mxu2 %v7711_v16 }
0x1100   :  { %2499 = vmatpush.msrb.mxu2 %v7714_v40 }
0x1102   :  { %2500 = vmatpush.msrb.mxu2 %v7717_v13 }
0x1104   :  { %2501 = vmatpush.msrb.mxu2 %v7720_v21 }
0x1106   :  { %2502 = vmatpush.msrb.mxu2 %v7723_v49 }
0x1108   :  { %2503 = vmatpush.msrb.mxu2 %v7726_v43 }
0x110a   :  { %2504 = vmatpush.msrb.mxu2 %v7729_v2 }
0x110c   :  { %2505 = vmatpush.msrb.mxu2 %v7732_v45  ;;  %v7758_v45 = vld [vmem:[#allocation11 + $0x148] sm:$0xff] }
0x110e   :  { %2506 = vmatpush.msrb.mxu2 %v7735_v50 }
0x1110   :  { %2507 = vmatpush.msrb.mxu2 %v7738_v19  ;;  %v7752_v19 = vld [vmem:[#allocation11 + $0x178] sm:$0xff] }
0x1112   :  { %2508 = vmatpush.msrb.mxu2 %v7741_v8  ;;  %v7755_v8 = vld [vmem:[#allocation11 + $0x160] sm:$0xff] }
0x1114   :  { %2509 = vmatpush.msrb.mxu2 %v7744_v4 }
0x1116   :  { %2510 = vmatpush.msrb.mxu2 %v7747_v30 }
0x113e   :  { %v4231_v55 = vpop.permute.xlu1 %4230 }
0x113f   :  { %v4233_v5 = vunpack.i.h.bf16 %v4231_v55  ;;  %v4232_v29 = vunpack.i.l.bf16 %v4231_v55 }
0x1141   :  { %v1858_v36 = vsel %vm965_vm8, %v4232_v29, %v4233_v5  ;;  %v7764_v5 = vld [vmem:[#allocation11 + $0x130] sm:$0xff]  ;;  %v7770_v29 = vld [vmem:[#allocation11 + $0x118] sm:$0xff] }
0x1142   :  { %v1864_v11 = vsel %vm953_vm6, %v1858_v36, %v1862_v46  ;;  %v7784_v46 = vld [vmem:[#allocation11 + $0xe8] sm:$0xff]  ;;  %v7791_v36 = vld [vmem:[#allocation11 + $0xd0] sm:$0xff] }
0x1143   :  { %1881 = vmatmul.f32.vlgmr.msrb.gmra.mxu1 %v1864_v11  ;;  %10417 = vst [vmem:[#allocation75_spill] sm:$0xff] %v7784_v46  ;;  %v7798_v11 = vld [vmem:[#allocation11 + $0xb8] sm:$0xff] }
0x1144   :  { %2116 = vmatpush.msrb.mxu1 %v7752_v19  ;;  %10419 = vst [vmem:[#allocation90_spill] sm:$0xff] %v7791_v36 }
0x1145   :  { %10421 = vst [vmem:[#allocation82_spill] sm:$0xff] %v7798_v11 }
0x1146   :  { %2117 = vmatpush.msrb.mxu1 %v7755_v8  ;;  %v4236_v4 = vpop.permute.xlu1 %4235 }
0x1147   :  { %v4238_v50 = vunpack.i.h.bf16 %v4236_v4  ;;  %v4237_v30 = vunpack.i.l.bf16 %v4236_v4  ;;  %v7774_v4 = vld [vmem:[#allocation11 + $0x2f8] sm:$0xff] }
0x1148   :  { %2118 = vmatpush.msrb.mxu1 %v7758_v45 }
0x1149   :  { %v7762_v55 = vsel %vm575_vm2, %v4237_v30, %v4238_v50  ;;  %v7777_v50 = vld [vmem:[#allocation11 + $0x100] sm:$0xff] }
0x114a   :  { %2119 = vmatpush.msrb.mxu1 %v7764_v5  ;;  %2092 = vmatmul.f32.vlgmr.msrb.gmra.mxu3 %v7762_v55  ;;  %10415 = vst [vmem:[#allocation37_spill] sm:$0xff] %v7777_v50  ;;  %v7781_v30 = vld [vmem:[#allocation11 + $0x2e0] sm:$0xff] }
0x114b   :  { %2371 = vmatmul.f32.vlgmr.msra.gmra.mxu2 %v7762_v55  ;;  %2052 = vmatmul.f32.vlgmr.msra.gmra.mxu1 %v7762_v55  ;;  %10416 = vst [vmem:[#allocation86_spill] sm:$0xff] %v7781_v30 }
0x114c   :  { %2120 = vmatpush.msrb.mxu1 %v7770_v29  ;;  %2375 = vmatpush.msrb.mxu3 %v7315_v32  ;;  %v7788_v32 = vld [vmem:[#allocation11 + $0x2c8] sm:$0xff] }
0x114d   :  { %2575 = vmatpush.msra.mxu2 %v7774_v4  ;;  %10418 = vst [vmem:[#allocation88_spill] sm:$0xff] %v7788_v32 }
0x114e   :  { %2121 = vmatpush.msrb.mxu1 %v7777_v50  ;;  %2376 = vmatpush.msrb.mxu3 %v7320_v38  ;;  %v7795_v38 = vld [vmem:[#allocation11 + $0x2b0] sm:$0xff] }
0x114f   :  { %2576 = vmatpush.msra.mxu2 %v7781_v30  ;;  %10420 = vst [vmem:[#allocation81_spill] sm:$0xff] %v7795_v38 }
0x1150   :  { %2122 = vmatpush.msrb.mxu1 %v7784_v46  ;;  %2377 = vmatpush.msrb.mxu3 %v7325_v31  ;;  %v7802_v31 = vld [vmem:[#allocation11 + $0x298] sm:$0xff] }
0x1151   :  { %2577 = vmatpush.msra.mxu2 %v7788_v32  ;;  %10422 = vst [vmem:[#allocation38_spill] sm:$0xff] %v7802_v31  ;;  %v7805_v32 = vld [vmem:[#allocation11 + $0xa0] sm:$0xff] }
0x1152   :  { %2123 = vmatpush.msrb.mxu1 %v7791_v36  ;;  %2378 = vmatpush.msrb.mxu3 %v7330_v54  ;;  %10423 = vst [vmem:[#allocation91_spill] sm:$0xff] %v7805_v32  ;;  %v7809_v54 = vld [vmem:[#allocation11 + $0x280] sm:$0xff] }
0x1153   :  { %2578 = vmatpush.msra.mxu2 %v7795_v38  ;;  %10424 = vst [vmem:[#allocation77_spill] sm:$0xff] %v7809_v54  ;;  %v7812_v38 = vld [vmem:[#allocation11 + $0x88] sm:$0xff] }
0x1154   :  { %2124 = vmatpush.msrb.mxu1 %v7798_v11  ;;  %2379 = vmatpush.msrb.mxu3 %v7335_v44  ;;  %10425 = vst [vmem:[#allocation93_spill] sm:$0xff] %v7812_v38  ;;  %v7815_v11 = vld [vmem:[#allocation8 + $0xe0] sm:$0xff]  ;;  %v7818_v44 = vld [vmem:[#allocation11 + $0x268] sm:$0xff] }
0x1155   :  { %2579 = vmatpush.msra.mxu2 %v7802_v31  ;;  %10426 = vst [vmem:[#allocation94_spill] sm:$0xff] %v7815_v11  ;;  %v7821_v31 = vld [vmem:[#allocation11 + $0x70] sm:$0xff] }
0x1156   :  { %2125 = vmatpush.msrb.mxu1 %v7805_v32  ;;  %2380 = vmatpush.msrb.mxu3 %v7340_v26  ;;  %10427 = vst [vmem:[#allocation79_spill] sm:$0xff] %v7818_v44  ;;  %v7824_v26 = vld [vmem:[#allocation8 + $0xc8] sm:$0xff] }
0x1157   :  { %2580 = vmatpush.msra.mxu2 %v7809_v54  ;;  %10428 = vst [vmem:[#allocation95_spill] sm:$0xff] %v7821_v31  ;;  %v7827_v54 = vld [vmem:[#allocation11 + $0x250] sm:$0xff] }
0x1158   :  { %2126 = vmatpush.msrb.mxu1 %v7812_v38  ;;  %2381 = vmatpush.msrb.mxu3 %v7815_v11  ;;  %10429 = vst [vmem:[#allocation84_spill] sm:$0xff] %v7824_v26  ;;  %v7830_v38 = vld [vmem:[#allocation11 + $0x58] sm:$0xff]  ;;  %v7833_v11 = vld [vmem:[#allocation8 + $0xb0] sm:$0xff] }
0x1159   :  { %2581 = vmatpush.msra.mxu2 %v7818_v44  ;;  %10430 = vst [vmem:[#allocation96_spill] sm:$0xff] %v7827_v54  ;;  %v7836_v44 = vld [vmem:[#allocation11 + $0x238] sm:$0xff] }
0x115a   :  { %2127 = vmatpush.msrb.mxu1 %v7821_v31  ;;  %2382 = vmatpush.msrb.mxu3 %v7824_v26  ;;  %10431 = vst [vmem:[#allocation92_spill] sm:$0xff] %v7830_v38  ;;  %v7839_v31 = vld [vmem:[#allocation11 + $0x40] sm:$0xff]  ;;  %v7842_v26 = vld [vmem:[#allocation8 + $0x98] sm:$0xff] }
0x115b   :  { %2582 = vmatpush.msra.mxu2 %v7827_v54  ;;  %10432 = vst [vmem:[#allocation97_spill] sm:$0xff] %v7833_v11  ;;  %v7845_v54 = vld [vmem:[#allocation11 + $0x220] sm:$0xff] }
0x115c   :  { %2128 = vmatpush.msrb.mxu1 %v7830_v38  ;;  %2383 = vmatpush.msrb.mxu3 %v7833_v11  ;;  %10433 = vst [vmem:[#allocation98_spill] sm:$0xff] %v7836_v44  ;;  %v7848_v38 = vld [vmem:[#allocation11 + $0x28] sm:$0xff]  ;;  %v7851_v11 = vld [vmem:[#allocation8 + $0x80] sm:$0xff] }
0x115d   :  { %2583 = vmatpush.msra.mxu2 %v7836_v44  ;;  %10434 = vst [vmem:[#allocation74_spill] sm:$0xff] %v7839_v31  ;;  %v7854_v44 = vld [vmem:[#allocation11 + $0x208] sm:$0xff] }
0x115e   :  { %2129 = vmatpush.msrb.mxu1 %v7839_v31  ;;  %10435 = vst [vmem:[#allocation73_spill] sm:$0xff] %v7842_v26  ;;  %2384 = vmatpush.msrb.mxu3 %v7842_v26  ;;  %v7857_v31 = vld [vmem:[#allocation11 + $0x10] sm:$0xff]  ;;  %v7860_v26 = vld [vmem:[#allocation8 + $0x68] sm:$0xff] }
0x115f   :  { %10436 = vst [vmem:[#allocation99_spill] sm:$0xff] %v7845_v54  ;;  %2584 = vmatpush.msra.mxu2 %v7845_v54  ;;  %v7864_v54 = vld [vmem:[#allocation11 + $0x1f0] sm:$0xff] }
0x1160   :  { %10437 = vst [vmem:[#allocation100_spill] sm:$0xff] %v7848_v38  ;;  %2130 = vmatpush.msrb.mxu1 %v7848_v38  ;;  %2385 = vmatpush.msrb.mxu3 %v7851_v11  ;;  %v7867_v38 = vld [vmem:[#allocation8 + $0x50] sm:$0xff] }
0x1161   :  { %10438 = vst [vmem:[#allocation101_spill] sm:$0xff] %v7851_v11  ;;  %2585 = vmatpush.msra.mxu2 %v7854_v44 }
0x1162   :  { %10439 = vst [vmem:[#allocation102_spill] sm:$0xff] %v7854_v44  ;;  %2131 = vmatpush.msrb.mxu1 %v7857_v31  ;;  %2386 = vmatpush.msrb.mxu3 %v7860_v26  ;;  %v7871_v44 = vld [vmem:[#allocation11 + $0x1d8] sm:$0xff] }
0x1163   :  { %10440 = vst [vmem:[#allocation103_spill] sm:$0xff] %v7857_v31  ;;  %2132 = vmatmul.f32.vlgmr.msrb.gmra.mxu1 %v7762_v55  ;;  %2586 = vmatpush.msra.mxu2 %v7864_v54  ;;  %v7874_v31 = vld [vmem:[#allocation8 + $0x38] sm:$0xff] }
0x1164   :  { %10441 = vst [vmem:[#allocation104_spill] sm:$0xff] %v7860_v26  ;;  %2387 = vmatpush.msrb.mxu3 %v7867_v38  ;;  %2304 = vmatpush.msra.mxu1 %v7364_v25  ;;  %v7878_v26 = vld [vmem:[#allocation11 + $0x1c0] sm:$0xff]  ;;  %v7885_v25 = vld [vmem:[#allocation11 + $0x1a8] sm:$0xff] }
0x1165   :  { %10442 = vst [vmem:[#allocation105_spill] sm:$0xff] %v7864_v54  ;;  %2587 = vmatpush.msra.mxu2 %v7871_v44  ;;  %v7881_v54 = vld [vmem:[#allocation8 + $0x20] sm:$0xff] }
0x1166   :  { %10443 = vst [vmem:[#allocation106_spill] sm:$0xff] %v7867_v38  ;;  %2388 = vmatpush.msrb.mxu3 %v7874_v31  ;;  %2305 = vmatpush.msra.mxu1 %v7369_v61  ;;  %v7892_v61 = vld [vmem:[#allocation11 + $0x190] sm:$0xff] }
0x1167   :  { %10444 = vst [vmem:[#allocation107_spill] sm:$0xff] %v7871_v44  ;;  %2588 = vmatpush.msra.mxu2 %v7878_v26  ;;  %v7888_v44 = vld [vmem:[#allocation8 + $0x8] sm:$0xff] }
0x1168   :  { %10445 = vst [vmem:[#allocation108_spill] sm:$0xff] %v7874_v31  ;;  %2389 = vmatpush.msrb.mxu3 %v7881_v54  ;;  %2306 = vmatpush.msra.mxu1 %v7374_v28  ;;  %v10451_v28 = vld [vmem:[#allocation62_spill] sm:$0xff]  ;;  %v10457_v31 = vld [vmem:[#allocation44_spill] sm:$0xff] }
0x1169   :  { %10446 = vst [vmem:[#allocation109_spill] sm:$0xff] %v7878_v26  ;;  %2589 = vmatpush.msra.mxu2 %v7885_v25  ;;  %v10454_v26 = vld [vmem:[#allocation49_spill] sm:$0xff] }
0x116a   :  { %10447 = vst [vmem:[#allocation110_spill] sm:$0xff] %v7881_v54  ;;  %2390 = vmatpush.msrb.mxu3 %v7888_v44  ;;  %2307 = vmatpush.msra.mxu1 %v7379_v48  ;;  %v10452_v54 = vld [vmem:[#allocation47_spill] sm:$0xff] }
0x116b   :  { %10448 = vst [vmem:[#allocation111_spill] sm:$0xff] %v7885_v25  ;;  %2590 = vmatpush.msra.mxu2 %v7892_v61  ;;  %v10453_v25 = vld [vmem:[#allocation42_spill] sm:$0xff]  ;;  %v10456_v48 = vld [vmem:[#allocation51_spill] sm:$0xff] }
0x116c   :  { %10449 = vst [vmem:[#allocation112_spill] sm:$0xff] %v7888_v44  ;;  %2308 = vmatpush.msra.mxu1 %v7383_v63  ;;  %v10455_v44 = vld [vmem:[#allocation43_spill] sm:$0xff]  ;;  %v10459_v63 = vld [vmem:[#allocation45_spill] sm:$0xff] }
0x116d   :  { %10450 = vst [vmem:[#allocation113_spill] sm:$0xff] %v7892_v61  ;;  %v10458_v61 = vld [vmem:[#allocation53_spill] sm:$0xff] }
0x116e   :  { %2309 = vmatpush.msra.mxu1 %v7386_v24  ;;  %v10460_v24 = vld [vmem:[#allocation55_spill] sm:$0xff] }
0x1170   :  { %2310 = vmatpush.msra.mxu1 %v7389_v20  ;;  %v10461_v20 = vld [vmem:[#allocation46_spill] sm:$0xff] }
0x1172   :  { %2311 = vmatpush.msra.mxu1 %v10451_v28  ;;  %v10462_v28 = vld [vmem:[#allocation57_spill] sm:$0xff] }
0x1174   :  { %2312 = vmatpush.msra.mxu1 %v10452_v54  ;;  %v10463_v54 = vld [vmem:[#allocation48_spill] sm:$0xff] }
0x1176   :  { %2313 = vmatpush.msra.mxu1 %v10453_v25  ;;  %v10464_v25 = vld [vmem:[#allocation59_spill] sm:$0xff] }
0x1178   :  { %2314 = vmatpush.msra.mxu1 %v10454_v26  ;;  %v10465_v26 = vld [vmem:[#allocation50_spill] sm:$0xff] }
0x117a   :  { %2315 = vmatpush.msra.mxu1 %v10455_v44  ;;  %v10466_v44 = vld [vmem:[#allocation60_spill] sm:$0xff] }
0x117c   :  { %2316 = vmatpush.msra.mxu1 %v10456_v48  ;;  %v10467_v48 = vld [vmem:[#allocation52_spill] sm:$0xff] }
0x117e   :  { %2317 = vmatpush.msra.mxu1 %v10457_v31  ;;  %v10468_v31 = vld [vmem:[#allocation54_spill] sm:$0xff] }
0x1180   :  { %2318 = vmatpush.msra.mxu1 %v10458_v61  ;;  %v10469_v61 = vld [vmem:[#allocation56_spill] sm:$0xff] }
0x1182   :  { %2319 = vmatpush.msra.mxu1 %v10459_v63  ;;  %v10470_v63 = vld [vmem:[#allocation58_spill] sm:$0xff] }
0x1184   :  { %2475 = vmatpush.msrb.mxu1 %v10460_v24  ;;  %v10471_v24 = vld [vmem:[#allocation28_spill] sm:$0xff] }
0x1186   :  { %2476 = vmatpush.msrb.mxu1 %v10461_v20  ;;  %v10472_v20 = vld [vmem:[#allocation40_spill] sm:$0xff] }
0x1188   :  { %2477 = vmatpush.msrb.mxu1 %v10462_v28  ;;  %v10473_v28 = vld [vmem:[#allocation39_spill] sm:$0xff] }
0x118a   :  { %2478 = vmatpush.msrb.mxu1 %v10463_v54  ;;  %v10474_v54 = vld [vmem:[#allocation41_spill] sm:$0xff] }
0x118c   :  { %2479 = vmatpush.msrb.mxu1 %v10464_v25  ;;  %v10475_v25 = vld [vmem:[#allocation76_spill] sm:$0xff] }
0x118e   :  { %2480 = vmatpush.msrb.mxu1 %v10465_v26 }
0x1190   :  { %2481 = vmatpush.msrb.mxu1 %v10466_v44 }
0x1192   :  { %2482 = vmatpush.msrb.mxu1 %v10467_v48  ;;  %v7925_v48 = vld [vmem:[#allocation12 + $0x8] sm:$0xff] }
0x1193   :  { %10476 = vst [vmem:[#allocation114_spill] sm:$0xff] %v7925_v48 }
0x1194   :  { %2483 = vmatpush.msrb.mxu1 %v10468_v31 }
0x1196   :  { %2484 = vmatpush.msrb.mxu1 %v10469_v61  ;;  %v2113_v61 = vpop.f32.mrf.mxu0 }
0x1198   :  { %2485 = vmatpush.msrb.mxu1 %v10470_v63 }
0x119a   :  { %2486 = vmatpush.msrb.mxu1 %v10471_v24  ;;  %v2073_v24 = vpop.f32.mrf.mxu2 }
0x119c   :  { %2487 = vmatpush.msrb.mxu1 %v10472_v20 }
0x119e   :  { %2488 = vmatpush.msrb.mxu1 %v10473_v28  ;;  %v7929_v28 = vld [vmem:[#allocation12 + $0x10] sm:$0xff] }
0x119f   :  { %10477 = vst [vmem:[#allocation115_spill] sm:$0xff] %v7929_v28 }
0x11a0   :  { %2489 = vmatpush.msrb.mxu1 %v10474_v54 }
0x11a2   :  { %2490 = vmatpush.msrb.mxu1 %v10475_v25  ;;  %v2153_v25 = vpop.f32.mrf.mxu2 }
0x11c0   :  { %v7923_v44 = vpop.f32.mrf.mxu1 }
0x11c8   :  { %v2053_v11 = vpop.f32.mrf.mxu1 }
0x11cd   :  { %v2093_v26 = vpop.f32.mrf.mxu3 }
0x11ce   :  { %v2094_v31 = vadd.f32 %v7925_v48, %v2093_v26  ;;  %v7936_v26 = vld [vmem:[#allocation12] sm:$0xff] }
0x11d0   :  { %v2114_v38 = vadd.f32 %v2113_v61, %v2094_v31  ;;  %v2054_v31 = vadd.f32 %v7936_v26, %v2053_v11 }
0x11d2   :  { %4450 = vtanh.f32 %v2114_v38  ;;  %v2074_v61 = vadd.f32 %v2073_v24, %v2054_v31 }
0x11d4   :  { %v2156_v48 = vmul.f32 0.5, %v2074_v61 }
0x11d8   :  { %v4451_v63 = vpop.eup %4450 }
0x11d9   :  { %2174 = vrot.lane.b32.xlu2 %v4451_v63, %s5625_s14 }
0x11e0   :  { %v2133_v20 = vpop.f32.mrf.mxu1 }
0x11e1   :  { %v2134_v54 = vadd.f32 %v7929_v28, %v2133_v20 }
0x11e3   :  { %v7932_v32 = vadd.f32 %v2153_v25, %v2134_v54 }
0x11e5   :  { %4452 = vtanh.f32 %v7932_v32 }
0x11e6   :  { %4454 = vtanh.f32 %v2156_v48 }
0x11eb   :  { %v4453_v36 = vpop.eup %4452 }
0x11ec   :  { %2176 = vrot.lane.b32.xlu0 %v4453_v36, %s5625_s14  ;;  %v4455_v63 = vpop.eup %4454  ;;  %v2160_v36 = vmul.f32 0.5, %v2114_v38 }
0x11ed   :  { %v2158_v46 = vmul.f32 0.5, %v4455_v63 }
0x11ee   :  { %4456 = vtanh.f32 %v2160_v36 }
0x11ef   :  { %v2159_v20 = vadd.f32 0.5, %v2158_v46 }
0x11f1   :  { %v2170_v31 = vmul.f32 %v2159_v20, %v7483_v14 }
0x11f4   :  { %v4457_v28 = vpop.eup %4456 }
0x11f5   :  { %v2162_v11 = vmul.f32 0.5, %v4457_v28 }
0x11f7   :  { %v2163_v24 = vadd.f32 0.5, %v2162_v11 }
0x11f9   :  { %v2171_v48 = vmul.f32 %v2163_v24, %v7485_v35 }
0x1233   :  { %v2175_v30 = vpop.permute.xlu2 %2174 }
0x125e   :  { %v2177_v50 = vpop.permute.xlu0 %2176 }
0x125f   :  { %v2178_v54 = vsel %vm816_vm3, %v2175_v30, %v2177_v50 }
0x1260   :  { %v2180_v25 = vmul.f32 %v2178_v54, %v2159_v20 }
0x1262   :  { %2182 = vrot.lane.b32.xlu1 %v2180_v25, %s5626_s15 }
0x126a   :  { %4240 = vrot.lane.b32.xlu1 %v7630_v37, %s5631_s2 }
0x12d4   :  { %v2183_v61 = vpop.permute.xlu1 %2182 }
0x12d5   :  { %v7945_v63 = vadd.f32 %v2183_v61, %v2170_v31  ;;  %v7947_v46 = vadd.f32 %v2183_v61, %v2171_v48  ;;  %v7963_v48 = vld [vmem:[#allocation11 + $0x2f0] sm:$0xff]  ;;  %v7972_v61 = vld [vmem:[#allocation11 + $0x158] sm:$0xff] }
0x12d6   :  { %v7966_v31 = vld [vmem:[#allocation11 + $0x170] sm:$0xff]  ;;  %10480 = vst [vmem:[#allocation118_spill] sm:$0xff] %v7972_v61 }
0x12d7   :  { %4458 = vtanh.f32 %v7945_v63  ;;  %10478 = vst [vmem:[#allocation116_spill] sm:$0xff] %v7966_v31 }
0x12d8   :  { %4460 = vtanh.f32 %v7947_v46 }
0x12dc   :  { %v4241_v28 = vpop.permute.xlu1 %4240 }
0x12dd   :  { %v4459_v50 = vpop.eup %4458  ;;  %v4243_v20 = vunpack.i.h.bf16 %v4241_v28  ;;  %v4242_v54 = vunpack.i.l.bf16 %v4241_v28  ;;  %v7992_v28 = vld [vmem:[#allocation11 + $0x110] sm:$0xff] }
0x12de   :  { %v4461_v37 = vpop.eup %4460  ;;  %2191 = vrot.lane.b32.xlu2 %v4459_v50, %s5626_s15  ;;  %v7975_v50 = vld [vmem:[#allocation11 + $0x2c0] sm:$0xff]  ;;  %10486 = vst [vmem:[#allocation124_spill] sm:$0xff] %v7992_v28 }
0x12df   :  { %2193 = vrot.lane.b32.xlu0 %v4461_v37, %s5626_s15  ;;  %v2208_v25 = vsel %vm1329_vm9, %v4242_v54, %v4243_v20  ;;  %10481 = vst [vmem:[#allocation119_spill] sm:$0xff] %v7975_v50  ;;  %v7978_v37 = vld [vmem:[#allocation11 + $0x140] sm:$0xff]  ;;  %v7995_v20 = vld [vmem:[#allocation11 + $0x278] sm:$0xff] }
0x12e0   :  { %10482 = vst [vmem:[#allocation120_spill] sm:$0xff] %v7978_v37  ;;  %v7998_v54 = vld [vmem:[#allocation11 + $0xf8] sm:$0xff] }
0x12e1   :  { %10487 = vst [vmem:[#allocation125_spill] sm:$0xff] %v7995_v20 }
0x12e2   :  { %10488 = vst [vmem:[#allocation126_spill] sm:$0xff] %v7998_v54 }
0x1338   :  { %v2192_v30 = vpop.permute.xlu2 %2191 }
0x1351   :  { %v7953_v38 = vpop.permute.xlu0 %2193 }
0x1352   :  { %v2195_v14 = vsel %vm834_vm4, %v2192_v30, %v7953_v38  ;;  %v7981_v30 = vld [vmem:[#allocation11 + $0x2a8] sm:$0xff] }
0x1353   :  { %v2198_v35 = vmul.f32 %v2195_v14, %v2163_v24  ;;  %v7969_v24 = vld [vmem:[#allocation11 + $0x2d8] sm:$0xff]  ;;  %10483 = vst [vmem:[#allocation121_spill] sm:$0xff] %v7981_v30  ;;  %v7984_v14 = vld [vmem:[#allocation11 + $0x128] sm:$0xff] }
0x1354   :  { %10479 = vst [vmem:[#allocation117_spill] sm:$0xff] %v7969_v24 }
0x1355   :  { %2201 = vrot.lane.b32.xlu2 %v2198_v35, %s5627_s1  ;;  %10484 = vst [vmem:[#allocation122_spill] sm:$0xff] %v7984_v14  ;;  %v7989_v35 = vld [vmem:[#allocation11 + $0x290] sm:$0xff] }
0x1356   :  { %10485 = vst [vmem:[#allocation123_spill] sm:$0xff] %v7989_v35 }
0x13af   :  { %v7959_v36 = vpop.permute.xlu2 %2201 }
0x13b0   :  { %v2210_v11 = vsel %vm834_vm4, %v7959_v36, %v2208_v25  ;;  %v8001_v25 = vld [vmem:[#allocation11 + $0x260] sm:$0xff] }
0x13b1   :  { %2227 = vmatmul.f32.vlgmr.msra.gmra.mxu3 %v2210_v11  ;;  %2247 = vmatmul.f32.vlgmr.msra.gmra.mxu0 %v2210_v11  ;;  %10489 = vst [vmem:[#allocation127_spill] sm:$0xff] %v8001_v25  ;;  %v8007_v11 = vld [vmem:[#allocation11 + $0x248] sm:$0xff] }
0x13b2   :  { %2535 = vmatpush.msra.mxu0 %v7963_v48  ;;  %2515 = vmatpush.msra.mxu3 %v7966_v31  ;;  %10491 = vst [vmem:[#allocation129_spill] sm:$0xff] %v8007_v11 }
0x13b4   :  { %2536 = vmatpush.msra.mxu0 %v7969_v24  ;;  %2516 = vmatpush.msra.mxu3 %v7972_v61 }
0x13b6   :  { %2537 = vmatpush.msra.mxu0 %v7975_v50  ;;  %2517 = vmatpush.msra.mxu3 %v7978_v37 }
0x13b8   :  { %2538 = vmatpush.msra.mxu0 %v7981_v30  ;;  %2518 = vmatpush.msra.mxu3 %v7984_v14 }
0x13b9   :  { %2391 = vmatmul.f32.vlgmr.msrb.gmra.mxu3 %v7762_v55  ;;  %2411 = vmatmul.f32.vlgmr.msrb.gmra.mxu0 %v7762_v55  ;;  %v8004_v55 = vld [vmem:[#allocation11 + $0xe0] sm:$0xff] }
0x13ba   :  { %2539 = vmatpush.msra.mxu0 %v7989_v35  ;;  %2519 = vmatpush.msra.mxu3 %v7992_v28  ;;  %10490 = vst [vmem:[#allocation128_spill] sm:$0xff] %v8004_v55  ;;  %v8010_v28 = vld [vmem:[#allocation11 + $0xc8] sm:$0xff] }
0x13bb   :  { %10492 = vst [vmem:[#allocation130_spill] sm:$0xff] %v8010_v28 }
0x13bc   :  { %2540 = vmatpush.msra.mxu0 %v7995_v20  ;;  %2520 = vmatpush.msra.mxu3 %v7998_v54  ;;  %v8013_v20 = vld [vmem:[#allocation11 + $0x230] sm:$0xff] }
0x13bd   :  { %10493 = vst [vmem:[#allocation131_spill] sm:$0xff] %v8013_v20  ;;  %v8016_v54 = vld [vmem:[#allocation11 + $0xb0] sm:$0xff] }
0x13be   :  { %2541 = vmatpush.msra.mxu0 %v8001_v25  ;;  %2521 = vmatpush.msra.mxu3 %v8004_v55  ;;  %10494 = vst [vmem:[#allocation132_spill] sm:$0xff] %v8016_v54  ;;  %v8019_v25 = vld [vmem:[#allocation11 + $0x218] sm:$0xff] }
0x13bf   :  { %10495 = vst [vmem:[#allocation133_spill] sm:$0xff] %v8019_v25  ;;  %v8022_v55 = vld [vmem:[#allocation11 + $0x98] sm:$0xff] }
0x13c0   :  { %2542 = vmatpush.msra.mxu0 %v8007_v11  ;;  %2522 = vmatpush.msra.mxu3 %v8010_v28  ;;  %10496 = vst [vmem:[#allocation134_spill] sm:$0xff] %v8022_v55  ;;  %v8025_v11 = vld [vmem:[#allocation11 + $0x200] sm:$0xff] }
0x13c1   :  { %10497 = vst [vmem:[#allocation135_spill] sm:$0xff] %v8025_v11  ;;  %v8028_v28 = vld [vmem:[#allocation11 + $0x80] sm:$0xff] }
0x13c2   :  { %2543 = vmatpush.msra.mxu0 %v8013_v20  ;;  %2523 = vmatpush.msra.mxu3 %v8016_v54  ;;  %10498 = vst [vmem:[#allocation136_spill] sm:$0xff] %v8028_v28  ;;  %v8031_v20 = vld [vmem:[#allocation11 + $0x1e8] sm:$0xff] }
0x13c3   :  { %10499 = vst [vmem:[#allocation137_spill] sm:$0xff] %v8031_v20  ;;  %v8034_v54 = vld [vmem:[#allocation11 + $0x68] sm:$0xff] }
0x13c4   :  { %2544 = vmatpush.msra.mxu0 %v8019_v25  ;;  %2524 = vmatpush.msra.mxu3 %v8022_v55  ;;  %10500 = vst [vmem:[#allocation138_spill] sm:$0xff] %v8034_v54  ;;  %v8037_v25 = vld [vmem:[#allocation11 + $0x1d0] sm:$0xff] }
0x13c5   :  { %10501 = vst [vmem:[#allocation139_spill] sm:$0xff] %v8037_v25  ;;  %v8040_v55 = vld [vmem:[#allocation11 + $0x50] sm:$0xff] }
0x13c6   :  { %2545 = vmatpush.msra.mxu0 %v8025_v11  ;;  %2525 = vmatpush.msra.mxu3 %v8028_v28  ;;  %10502 = vst [vmem:[#allocation140_spill] sm:$0xff] %v8040_v55  ;;  %v8043_v11 = vld [vmem:[#allocation11 + $0x1b8] sm:$0xff] }
0x13c7   :  { %10503 = vst [vmem:[#allocation141_spill] sm:$0xff] %v8043_v11  ;;  %v8046_v28 = vld [vmem:[#allocation11 + $0x38] sm:$0xff] }
0x13c8   :  { %2546 = vmatpush.msra.mxu0 %v8031_v20  ;;  %2526 = vmatpush.msra.mxu3 %v8034_v54  ;;  %10504 = vst [vmem:[#allocation142_spill] sm:$0xff] %v8046_v28  ;;  %v8049_v20 = vld [vmem:[#allocation11 + $0x1a0] sm:$0xff] }
0x13c9   :  { %10505 = vst [vmem:[#allocation143_spill] sm:$0xff] %v8049_v20  ;;  %v8052_v54 = vld [vmem:[#allocation11 + $0x20] sm:$0xff] }
0x13ca   :  { %2547 = vmatpush.msra.mxu0 %v8037_v25  ;;  %2527 = vmatpush.msra.mxu3 %v8040_v55  ;;  %10506 = vst [vmem:[#allocation144_spill] sm:$0xff] %v8052_v54  ;;  %v8055_v25 = vld [vmem:[#allocation11 + $0x188] sm:$0xff] }
0x13cb   :  { %10507 = vst [vmem:[#allocation145_spill] sm:$0xff] %v8055_v25  ;;  %v8058_v55 = vld [vmem:[#allocation11 + $0x8] sm:$0xff] }
0x13cc   :  { %2548 = vmatpush.msra.mxu0 %v8043_v11  ;;  %2528 = vmatpush.msra.mxu3 %v8046_v28  ;;  %10508 = vst [vmem:[#allocation146_spill] sm:$0xff] %v8058_v55  ;;  %v8061_v11 = vld [vmem:[#allocation14 + $0xf0] sm:$0xff]  ;;  %v8064_v28 = vld [vmem:[#allocation14 + $0xf8] sm:$0xff] }
0x13cd   :  { %10509 = vst [vmem:[#allocation147_spill] sm:$0xff] %v8061_v11 }
0x13ce   :  { %2549 = vmatpush.msra.mxu0 %v8049_v20  ;;  %2529 = vmatpush.msra.mxu3 %v8052_v54  ;;  %10510 = vst [vmem:[#allocation148_spill] sm:$0xff] %v8064_v28  ;;  %v8067_v20 = vld [vmem:[#allocation14 + $0xe0] sm:$0xff]  ;;  %v8070_v54 = vld [vmem:[#allocation14 + $0xe8] sm:$0xff] }
0x13cf   :  { %10511 = vst [vmem:[#allocation149_spill] sm:$0xff] %v8067_v20 }
0x13d0   :  { %2550 = vmatpush.msra.mxu0 %v8055_v25  ;;  %2530 = vmatpush.msra.mxu3 %v8058_v55  ;;  %10512 = vst [vmem:[#allocation150_spill] sm:$0xff] %v8070_v54  ;;  %v8073_v25 = vld [vmem:[#allocation14 + $0xd0] sm:$0xff]  ;;  %v8076_v55 = vld [vmem:[#allocation14 + $0xd8] sm:$0xff] }
0x13d1   :  { %10513 = vst [vmem:[#allocation151_spill] sm:$0xff] %v8073_v25 }
0x13d2   :  { %2650 = vmatpush.msrb.mxu3 %v8061_v11  ;;  %2670 = vmatpush.msrb.mxu0 %v8064_v28  ;;  %10514 = vst [vmem:[#allocation152_spill] sm:$0xff] %v8076_v55  ;;  %v8079_v11 = vld [vmem:[#allocation14 + $0xc0] sm:$0xff]  ;;  %v8082_v28 = vld [vmem:[#allocation14 + $0xc8] sm:$0xff] }
0x13d3   :  { %10515 = vst [vmem:[#allocation153_spill] sm:$0xff] %v8079_v11 }
0x13d4   :  { %2651 = vmatpush.msrb.mxu3 %v8067_v20  ;;  %2671 = vmatpush.msrb.mxu0 %v8070_v54  ;;  %10516 = vst [vmem:[#allocation30_spill] sm:$0xff] %v8082_v28  ;;  %v8085_v20 = vld [vmem:[#allocation14 + $0xb0] sm:$0xff]  ;;  %v8088_v54 = vld [vmem:[#allocation14 + $0xb8] sm:$0xff] }
0x13d5   :  { %10517 = vst [vmem:[#allocation63_spill] sm:$0xff] %v8085_v20 }
0x13d6   :  { %2652 = vmatpush.msrb.mxu3 %v8073_v25  ;;  %2672 = vmatpush.msrb.mxu0 %v8076_v55  ;;  %10518 = vst [vmem:[#allocation29_spill] sm:$0xff] %v8088_v54  ;;  %v8091_v25 = vld [vmem:[#allocation14 + $0xa0] sm:$0xff]  ;;  %v8094_v55 = vld [vmem:[#allocation14 + $0xa8] sm:$0xff] }
0x13d7   :  { %10519 = vst [vmem:[#allocation64_spill] sm:$0xff] %v8091_v25 }
0x13d8   :  { %2653 = vmatpush.msrb.mxu3 %v8079_v11  ;;  %2673 = vmatpush.msrb.mxu0 %v8082_v28  ;;  %10520 = vst [vmem:[#allocation61_spill] sm:$0xff] %v8094_v55  ;;  %v8097_v11 = vld [vmem:[#allocation14 + $0x90] sm:$0xff]  ;;  %v8100_v28 = vld [vmem:[#allocation14 + $0x98] sm:$0xff] }
0x13d9   :  { %10521 = vst [vmem:[#allocation62_spill] sm:$0xff] %v8097_v11 }
0x13da   :  { %2654 = vmatpush.msrb.mxu3 %v8085_v20  ;;  %2674 = vmatpush.msrb.mxu0 %v8088_v54  ;;  %10522 = vst [vmem:[#allocation47_spill] sm:$0xff] %v8100_v28  ;;  %v8103_v20 = vld [vmem:[#allocation14 + $0x80] sm:$0xff]  ;;  %v8106_v54 = vld [vmem:[#allocation14 + $0x88] sm:$0xff] }
0x13db   :  { %10523 = vst [vmem:[#allocation42_spill] sm:$0xff] %v8103_v20 }
0x13dc   :  { %2655 = vmatpush.msrb.mxu3 %v8091_v25  ;;  %2675 = vmatpush.msrb.mxu0 %v8094_v55  ;;  %10524 = vst [vmem:[#allocation49_spill] sm:$0xff] %v8106_v54  ;;  %v8109_v25 = vld [vmem:[#allocation14 + $0x70] sm:$0xff]  ;;  %v8112_v55 = vld [vmem:[#allocation14 + $0x78] sm:$0xff] }
0x13dd   :  { %10525 = vst [vmem:[#allocation43_spill] sm:$0xff] %v8109_v25 }
0x13de   :  { %2656 = vmatpush.msrb.mxu3 %v8097_v11  ;;  %2676 = vmatpush.msrb.mxu0 %v8100_v28  ;;  %10526 = vst [vmem:[#allocation51_spill] sm:$0xff] %v8112_v55  ;;  %v8115_v11 = vld [vmem:[#allocation14 + $0x60] sm:$0xff]  ;;  %v8118_v28 = vld [vmem:[#allocation14 + $0x68] sm:$0xff] }
0x13df   :  { %10527 = vst [vmem:[#allocation44_spill] sm:$0xff] %v8115_v11 }
0x13e0   :  { %2657 = vmatpush.msrb.mxu3 %v8103_v20  ;;  %2677 = vmatpush.msrb.mxu0 %v8106_v54  ;;  %10528 = vst [vmem:[#allocation53_spill] sm:$0xff] %v8118_v28  ;;  %v8121_v20 = vld [vmem:[#allocation14 + $0x50] sm:$0xff]  ;;  %v8124_v54 = vld [vmem:[#allocation14 + $0x58] sm:$0xff] }
0x13e1   :  { %10529 = vst [vmem:[#allocation45_spill] sm:$0xff] %v8121_v20 }
0x13e2   :  { %2658 = vmatpush.msrb.mxu3 %v8109_v25  ;;  %2678 = vmatpush.msrb.mxu0 %v8112_v55  ;;  %10530 = vst [vmem:[#allocation55_spill] sm:$0xff] %v8124_v54  ;;  %v8127_v25 = vld [vmem:[#allocation14 + $0x40] sm:$0xff]  ;;  %v8130_v55 = vld [vmem:[#allocation14 + $0x48] sm:$0xff] }
0x13e3   :  { %10531 = vst [vmem:[#allocation46_spill] sm:$0xff] %v8127_v25 }
0x13e4   :  { %2659 = vmatpush.msrb.mxu3 %v8115_v11  ;;  %2679 = vmatpush.msrb.mxu0 %v8118_v28  ;;  %10532 = vst [vmem:[#allocation57_spill] sm:$0xff] %v8130_v55  ;;  %v8133_v11 = vld [vmem:[#allocation14 + $0x30] sm:$0xff]  ;;  %v8136_v28 = vld [vmem:[#allocation14 + $0x38] sm:$0xff] }
0x13e5   :  { %10533 = vst [vmem:[#allocation48_spill] sm:$0xff] %v8133_v11 }
0x13e6   :  { %2660 = vmatpush.msrb.mxu3 %v8121_v20  ;;  %2680 = vmatpush.msrb.mxu0 %v8124_v54  ;;  %10534 = vst [vmem:[#allocation59_spill] sm:$0xff] %v8136_v28  ;;  %v8139_v20 = vld [vmem:[#allocation14 + $0x20] sm:$0xff]  ;;  %v8142_v54 = vld [vmem:[#allocation14 + $0x28] sm:$0xff] }
0x13e7   :  { %10535 = vst [vmem:[#allocation50_spill] sm:$0xff] %v8139_v20 }
0x13e8   :  { %2661 = vmatpush.msrb.mxu3 %v8127_v25  ;;  %2681 = vmatpush.msrb.mxu0 %v8130_v55  ;;  %10536 = vst [vmem:[#allocation60_spill] sm:$0xff] %v8142_v54  ;;  %v8145_v25 = vld [vmem:[#allocation14 + $0x10] sm:$0xff]  ;;  %v8148_v55 = vld [vmem:[#allocation14 + $0x18] sm:$0xff] }
0x13e9   :  { %10537 = vst [vmem:[#allocation52_spill] sm:$0xff] %v8145_v25 }
0x13ea   :  { %2662 = vmatpush.msrb.mxu3 %v8133_v11  ;;  %2682 = vmatpush.msrb.mxu0 %v8136_v28  ;;  %10538 = vst [vmem:[#allocation54_spill] sm:$0xff] %v8148_v55  ;;  %v8151_v11 = vld [vmem:[#allocation14] sm:$0xff]  ;;  %v8154_v28 = vld [vmem:[#allocation14 + $0x8] sm:$0xff] }
0x13eb   :  { %10539 = vst [vmem:[#allocation56_spill] sm:$0xff] %v8151_v11 }
0x13ec   :  { %2663 = vmatpush.msrb.mxu3 %v8139_v20  ;;  %2683 = vmatpush.msrb.mxu0 %v8142_v54  ;;  %10540 = vst [vmem:[#allocation58_spill] sm:$0xff] %v8154_v28  ;;  %v2372_v54 = vpop.f32.mrf.mxu2 }
0x13ee   :  { %2664 = vmatpush.msrb.mxu3 %v8145_v25  ;;  %2684 = vmatpush.msrb.mxu0 %v8148_v55  ;;  %v10541_v25 = vld [vmem:[#allocation31_spill] sm:$0xff]  ;;  %v10542_v55 = vld [vmem:[#allocation65_spill] sm:$0xff] }
0x13ef   :  { %v286_v30 = vadd.f32 %v10541_v25, %v10402_v18  ;;  %v368_v37 = vadd.f32 %v10542_v55, %v10404_v41 }
0x13f0   :  { %2665 = vmatpush.msrb.mxu3 %v8151_v11  ;;  %2685 = vmatpush.msrb.mxu0 %v8154_v28 }
0x13f1   :  { %v2415_v61 = vadd.f32 %v2372_v54, %v286_v30 }
0x142e   :  { %v2248_v20 = vpop.f32.mrf.mxu0 }
0x142f   :  { %v2249_v35 = vadd.f32 %v7567_v15, %v2248_v20  ;;  %v8173_v15 = vld [vmem:[%s9616_s9] sm:$0xff] }
0x1430   :  { %10543 = vst [vmem:[#allocation28_spill] sm:$0xff] %v8173_v15  ;;  %v1883_v20 = vadd.f32 %v8173_v15, %v7923_v44 }
0x1431   :  { %2260 = vrot.lane.b32.xlu0 %v2249_v35, %s5628_s0 }
0x1434   :  { %v2228_v14 = vpop.f32.mrf.mxu3 }
0x1435   :  { %v2229_v50 = vadd.f32 %v7575_v51, %v2228_v14 }
0x1436   :  { %v2412_v11 = vpop.f32.mrf.mxu0 }
0x1437   :  { %v8164_v24 = vadd.f32 %v2412_v11, %v368_v37  ;;  %2264 = vrot.lane.b32.xlu1 %v2229_v50, %s5628_s0  ;;  %v2251_v51 = vmul.f32 0.5, %v2229_v50  ;;  %v2418_v37 = vmul.f32 0.5, %v2415_v61 }
0x1439   :  { %2431 = vrot.lane.b32.xlu2 %v8164_v24, %s5622_s8  ;;  %2435 = vrot.lane.b32.xlu0 %v2415_v61, %s5622_s8  ;;  %4462 = vtanh.f32 %v2251_v51 }
0x143a   :  { %4464 = vtanh.f32 %v2418_v37 }
0x143f   :  { %v4463_v14 = vpop.eup %4462 }
0x1440   :  { %v4465_v55 = vpop.eup %4464  ;;  %v2253_v18 = vmul.f32 0.5, %v4463_v14  ;;  %v2255_v14 = vmul.f32 0.5, %v2249_v35 }
0x1441   :  { %1890 = vrot.lane.b32.xlu0 %v1883_v20, %s5632_s19  ;;  %v2420_v44 = vmul.f32 0.5, %v4465_v55 }
0x1442   :  { %v8180_v15 = vadd.f32 0.5, %v2253_v18  ;;  %v10544_v18 = vld [vmem:[#allocation66_spill] sm:$0xff] }
0x1443   :  { %v2421_v61 = vadd.f32 0.5, %v2420_v44 }
0x1493   :  { %v2432_v11 = vpop.permute.xlu2 %2431 }
0x14a3   :  { %v2261_v30 = vpop.permute.xlu0 %2260 }
0x14a9   :  { %v2265_v54 = vpop.permute.xlu1 %2264 }
0x14aa   :  { %v2267_v25 = vsel %vm933_vm5, %v2261_v30, %v2265_v54  ;;  %v2392_v30 = vpop.f32.mrf.mxu3 }
0x14ab   :  { %4466 = vtanh.f32 %v2267_v25  ;;  %v2436_v41 = vpop.permute.xlu0 %2435 }
0x14ac   :  { %v2438_v28 = vsel %vm543_vm0, %v2432_v11, %v2436_v41  ;;  %v2440_v41 = vmul.f32 %v2421_v61, %v7599_v27 }
0x14ad   :  { %4468 = vtanh.f32 %v2438_v28  ;;  %v327_v28 = vadd.f32 %v10544_v18, %v10137_v23  ;;  %v1885_v18 = vmul.f32 0.5, %v1883_v20 }
0x14af   :  { %v2416_v55 = vadd.f32 %v2392_v30, %v327_v28  ;;  %v2269_v30 = vmul.f32 %v8180_v15, %v7606_v0 }
0x14b1   :  { %v4467_v50 = vpop.eup %4466  ;;  %v2422_v11 = vmul.f32 0.5, %v2416_v55 }
0x14b2   :  { %v2271_v51 = vmul.f32 %v4467_v50, %v8180_v15 }
0x14b3   :  { %v4469_v37 = vpop.eup %4468 }
0x14b4   :  { %2273 = vrot.lane.b32.xlu1 %v2271_v51, %s5629_s16  ;;  %v2442_v31 = vmul.f32 %v4469_v37, %v2421_v61  ;;  %v1891_v51 = vpop.permute.xlu0 %1890 }
0x14b5   :  { %v1893_v37 = vmul.f32 0.5, %v1891_v51 }
0x14b6   :  { %2444 = vrot.lane.b32.xlu2 %v2442_v31, %s5623_s10 }
0x14bc   :  { %1904 = vrot.lane.b32.xlu1 %v1883_v20, %s5633_s20 }
0x14be   :  { %1897 = vrot.lane.b32.xlu2 %v1883_v20, %s5634_s21 }
0x1510   :  { %v2445_v54 = vpop.permute.xlu2 %2444 }
0x1511   :  { %v8190_v25 = vadd.f32 %v2445_v54, %v2440_v41 }
0x1513   :  { %4470 = vtanh.f32 %v8190_v25 }
0x1514   :  { %4472 = vtanh.f32 %v2255_v14 }
0x1515   :  { %4474 = vtanh.f32 %v2422_v11 }
0x1516   :  { %4476 = vtanh.f32 %v1893_v37 }
0x1517   :  { %4478 = vtanh.f32 %v1885_v18 }
0x1519   :  { %v4471_v31 = vpop.eup %4470 }
0x151a   :  { %v4473_v44 = vpop.eup %4472  ;;  %2453 = vrot.lane.b32.xlu2 %v4471_v31, %s5623_s10  ;;  %v2164_v31 = vmul.f32 0.5, %v7932_v32 }
0x151b   :  { %v2257_v50 = vmul.f32 0.5, %v4473_v44  ;;  %v4475_v27 = vpop.eup %4474 }
0x151c   :  { %v2424_v35 = vmul.f32 0.5, %v4475_v27  ;;  %v4477_v20 = vpop.eup %4476 }
0x151d   :  { %v2258_v61 = vadd.f32 0.5, %v2257_v50  ;;  %v4479_v50 = vpop.eup %4478  ;;  %v1895_v0 = vmul.f32 0.5, %v4477_v20 }
0x151e   :  { %v2425_v14 = vadd.f32 0.5, %v2424_v35 }
0x151f   :  { %v2270_v41 = vmul.f32 %v2258_v61, %v7608_v47  ;;  %v1898_v47 = vpop.permute.xlu2 %1897  ;;  %v1896_v32 = vadd.f32 0.5, %v1895_v0 }
0x1520   :  { %v2441_v44 = vmul.f32 %v2425_v14, %v7614_v52  ;;  %v1900_v27 = vmul.f32 0.5, %v1898_v47 }
0x1522   :  { %v8205_v51 = vadd.f32 %v2445_v54, %v2441_v44 }
0x1526   :  { %v2274_v28 = vpop.permute.xlu1 %2273 }
0x1527   :  { %v8197_v55 = vadd.f32 %v2274_v28, %v2269_v30  ;;  %v8199_v11 = vadd.f32 %v2274_v28, %v2270_v41  ;;  %v1887_v41 = vmul.f32 0.5, %v4479_v50  ;;  %v1908_v28 = vmul.f32 %v1896_v32, %v7620_v33 }
0x1528   :  { %v2426_v33 = vmul.f32 0.5, %v8164_v24 }
0x1529   :  { %4480 = vtanh.f32 %v8197_v55  ;;  %v1888_v30 = vadd.f32 0.5, %v1887_v41 }
0x152a   :  { %4482 = vtanh.f32 %v8199_v11 }
0x152b   :  { %4484 = vtanh.f32 %v2164_v31 }
0x152e   :  { %v1905_v37 = vpop.permute.xlu1 %1904 }
0x152f   :  { %v4481_v18 = vpop.eup %4480  ;;  %4486 = vtanh.f32 %v1905_v37 }
0x1530   :  { %v4483_v35 = vpop.eup %4482  ;;  %2282 = vrot.lane.b32.xlu0 %v4481_v18, %s5629_s16  ;;  %4488 = vtanh.f32 %v8205_v51 }
0x1531   :  { %2284 = vrot.lane.b32.xlu1 %v4483_v35, %s5629_s16  ;;  %4490 = vtanh.f32 %v1900_v27  ;;  %v4485_v52 = vpop.eup %4484 }
0x1532   :  { %v2166_v47 = vmul.f32 0.5, %v4485_v52 }
0x1534   :  { %v2167_v18 = vadd.f32 0.5, %v2166_v47 }
0x1535   :  { %v4487_v54 = vpop.eup %4486 }
0x1536   :  { %v1909_v31 = vmul.f32 %v4487_v54, %v1888_v30  ;;  %v4489_v20 = vpop.eup %4488  ;;  %v2199_v0 = vmul.f32 %v7953_v38, %v2167_v18 }
0x1537   :  { %v4491_v44 = vpop.eup %4490 }
0x1538   :  { %v8211_v37 = vadd.f32 %v1909_v31, %v1908_v28  ;;  %2455 = vrot.lane.b32.xlu0 %v4489_v20, %s5623_s10  ;;  %v1902_v50 = vmul.f32 0.5, %v4491_v44 }
0x153a   :  { %4492 = vtanh.f32 %v8211_v37  ;;  %v1903_v27 = vadd.f32 0.5, %v1902_v50 }
0x153b   :  { %4494 = vtanh.f32 %v2426_v33 }
0x1540   :  { %v4493_v35 = vpop.eup %4492  ;;  %2471 = vrot.lane.b32.xlu0 %v2199_v0, %s5627_s1 }
0x1541   :  { %v1912_v41 = vmul.f32 %v4493_v35, %v1903_v27  ;;  %v4495_v32 = vpop.eup %4494  ;;  %v8230_v35 = vld [vmem:[#allocation8 + $0x178] sm:$0xff] }
0x1542   :  { %v2428_v20 = vmul.f32 0.5, %v4495_v32 }
0x1543   :  { %2300 = vrot.lane.b32.xlu2 %v1912_v41, %s5629_s16  ;;  %v8234_v41 = vld [vmem:[#allocation8 + $0x160] sm:$0xff] }
0x1544   :  { %v2429_v44 = vadd.f32 0.5, %v2428_v20  ;;  %v8342_v20 = vld [vmem:[#allocation8 + $0x110] sm:$0xff] }
0x1574   :  { %v2454_v47 = vpop.permute.xlu2 %2453 }
0x15a2   :  { %v2283_v52 = vpop.permute.xlu0 %2282 }
0x15a3   :  { %v2285_v30 = vpop.permute.xlu1 %2284  ;;  %v2289_v54 = vmul.f32 %v2283_v52, %v8180_v15 }
0x15a4   :  { %v2286_v28 = vsel %vm953_vm6, %v2283_v52, %v2285_v30  ;;  %v10553_v52 = vld [vmem:[#allocation75_spill] sm:$0xff]  ;;  %v8332_v30 = vld [vmem:[#allocation8 + $0x140] sm:$0xff] }
0x15a5   :  { %v2290_v31 = vmul.f32 %v2286_v28, %v2258_v61  ;;  %v8337_v28 = vld [vmem:[#allocation8 + $0x128] sm:$0xff] }
0x15a7   :  { %v8221_v38 = vpack.i.bf16 %v2290_v31, %v2289_v54  ;;  %v10555_v54 = vld [vmem:[#allocation90_spill] sm:$0xff] }
0x15a8   :  { %v10557_v31 = vld [vmem:[#allocation82_spill] sm:$0xff] }
0x15a9   :  { %4245 = vrot.lane.b32.xlu1 %v8221_v38, %s5630_s17 }
0x15aa   :  { %v2456_v50 = vpop.permute.xlu0 %2455 }
0x15ab   :  { %v2457_v24 = vsel %vm563_vm1, %v2454_v47, %v2456_v50  ;;  %v2461_v18 = vmul.f32 %v2456_v50, %v2429_v44  ;;  %v10558_v44 = vld [vmem:[#allocation38_spill] sm:$0xff]  ;;  %v10559_v47 = vld [vmem:[#allocation91_spill] sm:$0xff]  ;;  %v8347_v50 = vld [vmem:[#allocation8 + $0xf8] sm:$0xff] }
0x15ac   :  { %v2460_v0 = vmul.f32 %v2457_v24, %v2425_v14  ;;  %v8238_v14 = vld [vmem:[#allocation8 + $0x148] sm:$0xff]  ;;  %v10560_v24 = vld [vmem:[#allocation77_spill] sm:$0xff] }
0x15ae   :  { %v4249_v27 = vpack.i.bf16 %v2461_v18, %v2460_v0  ;;  %v10561_v18 = vld [vmem:[#allocation93_spill] sm:$0xff]  ;;  %v10562_v0 = vld [vmem:[#allocation94_spill] sm:$0xff] }
0x15b1   :  { %4250 = vrot.lane.b32.xlu1 %v4249_v27, %s5624_s13  ;;  %v10563_v27 = vld [vmem:[#allocation79_spill] sm:$0xff] }
0x15b2   :  { %v2472_v15 = vpop.permute.xlu0 %2471 }
0x15b3   :  { %v2473_v61 = vsel %vm1154_vm7, %v7959_v36, %v2472_v15  ;;  %v8242_v36 = vld [vmem:[#allocation8 + $0x130] sm:$0xff] }
0x15b4   :  { %2511 = vmatmul.f32.vlgmr.msrb.gmra.mxu2 %v2473_v61  ;;  %2551 = vmatmul.f32.vlgmr.msra.gmra.mxu0 %v2473_v61  ;;  %v10564_v15 = vld [vmem:[#allocation95_spill] sm:$0xff] }
0x15b5   :  { %2794 = vmatpush.msrb.mxu2 %v7638_v62  ;;  %2834 = vmatpush.msra.mxu0 %v8230_v35  ;;  %v8246_v62 = vld [vmem:[#allocation8 + $0x118] sm:$0xff] }
0x15b7   :  { %2795 = vmatpush.msrb.mxu2 %v7642_v12  ;;  %2835 = vmatpush.msra.mxu0 %v8234_v41  ;;  %v8250_v12 = vld [vmem:[#allocation8 + $0x100] sm:$0xff] }
0x15b9   :  { %2796 = vmatpush.msrb.mxu2 %v7646_v34  ;;  %2836 = vmatpush.msra.mxu0 %v8238_v14  ;;  %v8254_v34 = vld [vmem:[#allocation8 + $0xe8] sm:$0xff] }
0x15bb   :  { %2797 = vmatpush.msrb.mxu2 %v7650_v57  ;;  %2837 = vmatpush.msra.mxu0 %v8242_v36  ;;  %v8258_v57 = vld [vmem:[#allocation8 + $0xd0] sm:$0xff] }
0x15bc   :  { %2591 = vmatmul.f32.vlgmr.msra.gmra.mxu2 %v2473_v61  ;;  %v10565_v61 = vld [vmem:[#allocation84_spill] sm:$0xff] }
0x15bd   :  { %2798 = vmatpush.msrb.mxu2 %v7654_v42  ;;  %2838 = vmatpush.msra.mxu0 %v8246_v62  ;;  %v8262_v42 = vld [vmem:[#allocation8 + $0xb8] sm:$0xff] }
0x15bf   :  { %2799 = vmatpush.msrb.mxu2 %v7658_v10  ;;  %2839 = vmatpush.msra.mxu0 %v8250_v12  ;;  %v8266_v10 = vld [vmem:[#allocation8 + $0xa0] sm:$0xff] }
0x15c1   :  { %2800 = vmatpush.msrb.mxu2 %v7662_v60  ;;  %2840 = vmatpush.msra.mxu0 %v8254_v34  ;;  %v8270_v60 = vld [vmem:[#allocation8 + $0x88] sm:$0xff] }
0x15c3   :  { %2801 = vmatpush.msrb.mxu2 %v7666_v1  ;;  %2841 = vmatpush.msra.mxu0 %v8258_v57  ;;  %v8274_v1 = vld [vmem:[#allocation8 + $0x70] sm:$0xff] }
0x15c5   :  { %2802 = vmatpush.msrb.mxu2 %v7670_v53  ;;  %2842 = vmatpush.msra.mxu0 %v8262_v42  ;;  %v8278_v53 = vld [vmem:[#allocation8 + $0x58] sm:$0xff] }
0x15c7   :  { %2803 = vmatpush.msrb.mxu2 %v7674_v58  ;;  %2843 = vmatpush.msra.mxu0 %v8266_v10  ;;  %v8282_v58 = vld [vmem:[#allocation8 + $0x40] sm:$0xff] }
0x15c9   :  { %2804 = vmatpush.msrb.mxu2 %v7678_v59  ;;  %2844 = vmatpush.msra.mxu0 %v8270_v60  ;;  %v8286_v59 = vld [vmem:[#allocation8 + $0x28] sm:$0xff] }
0x15cb   :  { %2805 = vmatpush.msrb.mxu2 %v7682_v22  ;;  %2845 = vmatpush.msra.mxu0 %v8274_v1  ;;  %v8290_v22 = vld [vmem:[#allocation8 + $0x10] sm:$0xff] }
0x15cd   :  { %2806 = vmatpush.msrb.mxu2 %v7686_v56  ;;  %2846 = vmatpush.msra.mxu0 %v8278_v53  ;;  %v10545_v56 = vld [vmem:[#allocation85_spill] sm:$0xff] }
0x15cf   :  { %2807 = vmatpush.msrb.mxu2 %v7690_v6  ;;  %2847 = vmatpush.msra.mxu0 %v8282_v58  ;;  %v10546_v6 = vld [vmem:[#allocation78_spill] sm:$0xff] }
0x15d1   :  { %2808 = vmatpush.msrb.mxu2 %v7694_v39  ;;  %2848 = vmatpush.msra.mxu0 %v8286_v59  ;;  %v10547_v39 = vld [vmem:[#allocation87_spill] sm:$0xff] }
0x15d3   :  { %2809 = vmatpush.msrb.mxu2 %v7698_v9  ;;  %2849 = vmatpush.msra.mxu0 %v8290_v22  ;;  %v10548_v9 = vld [vmem:[#allocation80_spill] sm:$0xff] }
0x15d5   :  { %2934 = vmatpush.msra.mxu2 %v7702_v17  ;;  %v10549_v17 = vld [vmem:[#allocation89_spill] sm:$0xff] }
0x15d7   :  { %2935 = vmatpush.msra.mxu2 %v7705_v3  ;;  %v10550_v3 = vld [vmem:[#allocation83_spill] sm:$0xff] }
0x15d9   :  { %2936 = vmatpush.msra.mxu2 %v7708_v7 }
0x15db   :  { %2937 = vmatpush.msra.mxu2 %v7711_v16 }
0x15dd   :  { %2938 = vmatpush.msra.mxu2 %v7714_v40 }
0x15df   :  { %2939 = vmatpush.msra.mxu2 %v7717_v13  ;;  %v2301_v13 = vpop.permute.xlu2 %2300 }
0x15e1   :  { %2940 = vmatpush.msra.mxu2 %v7720_v21 }
0x15e3   :  { %2941 = vmatpush.msra.mxu2 %v7723_v49 }
0x15e5   :  { %2942 = vmatpush.msra.mxu2 %v7726_v43 }
0x15e7   :  { %2943 = vmatpush.msra.mxu2 %v7729_v2 }
0x15e9   :  { %2944 = vmatpush.msra.mxu2 %v10545_v56  ;;  %v10566_v56 = vld [vmem:[#allocation96_spill] sm:$0xff] }
0x15eb   :  { %2945 = vmatpush.msra.mxu2 %v10546_v6  ;;  %v10567_v6 = vld [vmem:[#allocation92_spill] sm:$0xff] }
0x15ed   :  { %2946 = vmatpush.msra.mxu2 %v10547_v39  ;;  %v10568_v39 = vld [vmem:[#allocation97_spill] sm:$0xff] }
0x15ef   :  { %2947 = vmatpush.msra.mxu2 %v10548_v9  ;;  %v10569_v9 = vld [vmem:[#allocation98_spill] sm:$0xff] }
0x15f1   :  { %2948 = vmatpush.msra.mxu2 %v10549_v17  ;;  %v10570_v17 = vld [vmem:[#allocation74_spill] sm:$0xff] }
0x15f3   :  { %2949 = vmatpush.msra.mxu2 %v10550_v3  ;;  %v10571_v3 = vld [vmem:[#allocation73_spill] sm:$0xff] }
0x161b   :  { %v4246_v7 = vpop.permute.xlu1 %4245 }
0x161c   :  { %v4248_v16 = vunpack.i.h.bf16 %v4246_v7  ;;  %v4247_v40 = vunpack.i.l.bf16 %v4246_v7  ;;  %v10572_v7 = vld [vmem:[#allocation99_spill] sm:$0xff] }
0x161e   :  { %v2297_v21 = vsel %vm965_vm8, %v4247_v40, %v4248_v16  ;;  %v10573_v16 = vld [vmem:[#allocation100_spill] sm:$0xff]  ;;  %v10574_v40 = vld [vmem:[#allocation101_spill] sm:$0xff] }
0x161f   :  { %v2303_v49 = vsel %vm953_vm6, %v2297_v21, %v2301_v13  ;;  %v10575_v13 = vld [vmem:[#allocation102_spill] sm:$0xff]  ;;  %v10576_v21 = vld [vmem:[#allocation103_spill] sm:$0xff] }
0x1620   :  { %2320 = vmatmul.f32.vlgmr.msra.gmra.mxu1 %v2303_v49  ;;  %v10577_v49 = vld [vmem:[#allocation104_spill] sm:$0xff] }
0x1621   :  { %2555 = vmatpush.msra.mxu1 %v7752_v19  ;;  %v8322_v19 = vld [vmem:[#allocation8 + $0x170] sm:$0xff] }
0x1623   :  { %2556 = vmatpush.msra.mxu1 %v7755_v8  ;;  %v4251_v43 = vpop.permute.xlu1 %4250  ;;  %v8327_v8 = vld [vmem:[#allocation8 + $0x158] sm:$0xff] }
0x1624   :  { %v4253_v2 = vunpack.i.h.bf16 %v4251_v43  ;;  %v4252_v33 = vunpack.i.l.bf16 %v4251_v43  ;;  %v10578_v43 = vld [vmem:[#allocation105_spill] sm:$0xff] }
0x1625   :  { %2557 = vmatpush.msra.mxu1 %v7758_v45  ;;  %v10551_v45 = vld [vmem:[#allocation37_spill] sm:$0xff] }
0x1626   :  { %v8315_v32 = vsel %vm575_vm2, %v4252_v33, %v4253_v2  ;;  %v10579_v2 = vld [vmem:[#allocation106_spill] sm:$0xff] }
0x1627   :  { %2558 = vmatpush.msra.mxu1 %v7764_v5  ;;  %2531 = vmatmul.f32.vlgmr.msra.gmra.mxu3 %v8315_v32  ;;  %v10552_v5 = vld [vmem:[#allocation86_spill] sm:$0xff] }
0x1628   :  { %2810 = vmatmul.f32.vlgmr.msrb.gmra.mxu2 %v8315_v32  ;;  %2491 = vmatmul.f32.vlgmr.msrb.gmra.mxu1 %v8315_v32  ;;  %v8371_v33 = vld [vmem:[#allocation17 + $0x78] sm:$0xff] }
0x1629   :  { %2559 = vmatpush.msra.mxu1 %v7770_v29  ;;  %2814 = vmatpush.msra.mxu3 %v8322_v19  ;;  %v10554_v29 = vld [vmem:[#allocation88_spill] sm:$0xff] }
0x162a   :  { %3014 = vmatpush.msrb.mxu2 %v7774_v4  ;;  %v10556_v4 = vld [vmem:[#allocation81_spill] sm:$0xff] }
0x162b   :  { %2560 = vmatpush.msra.mxu1 %v10551_v45  ;;  %2815 = vmatpush.msra.mxu3 %v8327_v8  ;;  %v10580_v45 = vld [vmem:[#allocation107_spill] sm:$0xff] }
0x162c   :  { %3015 = vmatpush.msrb.mxu2 %v10552_v5  ;;  %v10581_v5 = vld [vmem:[#allocation108_spill] sm:$0xff] }
0x162d   :  { %2561 = vmatpush.msra.mxu1 %v10553_v52  ;;  %2816 = vmatpush.msra.mxu3 %v8332_v30  ;;  %v8376_v52 = vld [vmem:[#allocation17 + $0x70] sm:$0xff] }
0x162e   :  { %3016 = vmatpush.msrb.mxu2 %v10554_v29  ;;  %v10582_v29 = vld [vmem:[#allocation109_spill] sm:$0xff] }
0x162f   :  { %2562 = vmatpush.msra.mxu1 %v10555_v54  ;;  %2817 = vmatpush.msra.mxu3 %v8337_v28  ;;  %v10583_v54 = vld [vmem:[#allocation110_spill] sm:$0xff] }
0x1630   :  { %3017 = vmatpush.msrb.mxu2 %v10556_v4  ;;  %v8381_v4 = vld [vmem:[#allocation17 + $0x68] sm:$0xff] }
0x1631   :  { %2563 = vmatpush.msra.mxu1 %v10557_v31  ;;  %2818 = vmatpush.msra.mxu3 %v8342_v20  ;;  %v10584_v31 = vld [vmem:[#allocation111_spill] sm:$0xff] }
0x1632   :  { %3018 = vmatpush.msrb.mxu2 %v10558_v44  ;;  %v10585_v44 = vld [vmem:[#allocation112_spill] sm:$0xff] }
0x1633   :  { %2564 = vmatpush.msra.mxu1 %v10559_v47  ;;  %2819 = vmatpush.msra.mxu3 %v8347_v50  ;;  %v8386_v47 = vld [vmem:[#allocation17 + $0x60] sm:$0xff] }
0x1634   :  { %3019 = vmatpush.msrb.mxu2 %v10560_v24  ;;  %v10586_v24 = vld [vmem:[#allocation113_spill] sm:$0xff] }
0x1635   :  { %2565 = vmatpush.msra.mxu1 %v10561_v18  ;;  %2820 = vmatpush.msra.mxu3 %v10562_v0  ;;  %v8390_v18 = vld [vmem:[#allocation17 + $0x58] sm:$0xff]  ;;  %v8393_v0 = vld [vmem:[#allocation17 + $0x50] sm:$0xff] }
0x1636   :  { %3020 = vmatpush.msrb.mxu2 %v10563_v27  ;;  %v8396_v27 = vld [vmem:[#allocation17 + $0x48] sm:$0xff] }
0x1637   :  { %2566 = vmatpush.msra.mxu1 %v10564_v15  ;;  %2821 = vmatpush.msra.mxu3 %v10565_v61  ;;  %v8399_v15 = vld [vmem:[#allocation17 + $0x40] sm:$0xff]  ;;  %v8402_v61 = vld [vmem:[#allocation17 + $0x38] sm:$0xff] }
0x1638   :  { %3021 = vmatpush.msrb.mxu2 %v10566_v56  ;;  %v8405_v56 = vld [vmem:[#allocation17 + $0x30] sm:$0xff] }
0x1639   :  { %2567 = vmatpush.msra.mxu1 %v10567_v6  ;;  %2822 = vmatpush.msra.mxu3 %v10568_v39  ;;  %v8408_v6 = vld [vmem:[#allocation17 + $0x28] sm:$0xff]  ;;  %v8411_v39 = vld [vmem:[#allocation17 + $0x20] sm:$0xff] }
0x163a   :  { %3022 = vmatpush.msrb.mxu2 %v10569_v9  ;;  %v8414_v9 = vld [vmem:[#allocation17 + $0x18] sm:$0xff] }
0x163b   :  { %2568 = vmatpush.msra.mxu1 %v10570_v17  ;;  %2823 = vmatpush.msra.mxu3 %v10571_v3  ;;  %10587 = vst [vmem:[#allocation40_spill] sm:$0xff] %v8414_v9  ;;  %v8417_v17 = vld [vmem:[#allocation17 + $0x10] sm:$0xff]  ;;  %v8420_v3 = vld [vmem:[#allocation17 + $0x8] sm:$0xff] }
0x163c   :  { %3023 = vmatpush.msrb.mxu2 %v10572_v7  ;;  %10588 = vst [vmem:[#allocation39_spill] sm:$0xff] %v8417_v17  ;;  %v8423_v7 = vld [vmem:[#allocation17] sm:$0xff] }
0x163d   :  { %2569 = vmatpush.msra.mxu1 %v10573_v16  ;;  %2824 = vmatpush.msra.mxu3 %v10574_v40  ;;  %10589 = vst [vmem:[#allocation41_spill] sm:$0xff] %v8420_v3  ;;  %v8426_v16 = vld [vmem:[#allocation11 + $0x168] sm:$0xff]  ;;  %v8429_v40 = vld [vmem:[#allocation11 + $0x150] sm:$0xff] }
0x163e   :  { %3024 = vmatpush.msrb.mxu2 %v10575_v13  ;;  %10590 = vst [vmem:[#allocation76_spill] sm:$0xff] %v8423_v7  ;;  %v8432_v13 = vld [vmem:[#allocation11 + $0x138] sm:$0xff] }
0x163f   :  { %2570 = vmatpush.msra.mxu1 %v10576_v21  ;;  %2825 = vmatpush.msra.mxu3 %v10577_v49  ;;  %10591 = vst [vmem:[#allocation31_spill] sm:$0xff] %v8426_v16  ;;  %v8435_v21 = vld [vmem:[#allocation11 + $0x120] sm:$0xff]  ;;  %v8438_v49 = vld [vmem:[#allocation11 + $0x108] sm:$0xff] }
0x1640   :  { %2571 = vmatmul.f32.vlgmr.msra.gmra.mxu1 %v8315_v32  ;;  %3025 = vmatpush.msrb.mxu2 %v10578_v43  ;;  %10592 = vst [vmem:[#allocation65_spill] sm:$0xff] %v8429_v40  ;;  %v8441_v43 = vld [vmem:[#allocation11 + $0xf0] sm:$0xff] }
0x1641   :  { %2826 = vmatpush.msra.mxu3 %v10579_v2  ;;  %2743 = vmatpush.msrb.mxu1 %v8371_v33  ;;  %10593 = vst [vmem:[#allocation66_spill] sm:$0xff] %v8432_v13  ;;  %v8444_v2 = vld [vmem:[#allocation11 + $0xd8] sm:$0xff] }
0x1642   :  { %3026 = vmatpush.msrb.mxu2 %v10580_v45  ;;  %10594 = vst [vmem:[#allocation85_spill] sm:$0xff] %v8435_v21  ;;  %v8447_v45 = vld [vmem:[#allocation11 + $0xc0] sm:$0xff] }
0x1643   :  { %2827 = vmatpush.msra.mxu3 %v10581_v5  ;;  %2744 = vmatpush.msrb.mxu1 %v8376_v52  ;;  %10595 = vst [vmem:[#allocation78_spill] sm:$0xff] %v8438_v49  ;;  %v8450_v5 = vld [vmem:[#allocation11 + $0xa8] sm:$0xff] }
0x1644   :  { %3027 = vmatpush.msrb.mxu2 %v10582_v29  ;;  %10596 = vst [vmem:[#allocation87_spill] sm:$0xff] %v8441_v43  ;;  %v8453_v29 = vld [vmem:[#allocation11 + $0x90] sm:$0xff] }
0x1645   :  { %2828 = vmatpush.msra.mxu3 %v10583_v54  ;;  %2745 = vmatpush.msrb.mxu1 %v8381_v4  ;;  %10597 = vst [vmem:[#allocation80_spill] sm:$0xff] %v8444_v2  ;;  %v8456_v54 = vld [vmem:[#allocation11 + $0x78] sm:$0xff] }
0x1646   :  { %3028 = vmatpush.msrb.mxu2 %v10584_v31  ;;  %10598 = vst [vmem:[#allocation89_spill] sm:$0xff] %v8447_v45  ;;  %v8459_v31 = vld [vmem:[#allocation11 + $0x60] sm:$0xff] }
0x1647   :  { %2829 = vmatpush.msra.mxu3 %v10585_v44  ;;  %2746 = vmatpush.msrb.mxu1 %v8386_v47  ;;  %10599 = vst [vmem:[#allocation83_spill] sm:$0xff] %v8450_v5  ;;  %v8462_v44 = vld [vmem:[#allocation11 + $0x48] sm:$0xff] }
0x1648   :  { %3029 = vmatpush.msrb.mxu2 %v10586_v24  ;;  %10600 = vst [vmem:[#allocation37_spill] sm:$0xff] %v8453_v29  ;;  %v8465_v24 = vld [vmem:[#allocation11 + $0x30] sm:$0xff] }
0x1649   :  { %2747 = vmatpush.msrb.mxu1 %v8390_v18  ;;  %10601 = vst [vmem:[#allocation86_spill] sm:$0xff] %v8456_v54 }
0x164a   :  { %10602 = vst [vmem:[#allocation75_spill] sm:$0xff] %v8459_v31 }
0x164b   :  { %2748 = vmatpush.msrb.mxu1 %v8393_v0  ;;  %10603 = vst [vmem:[#allocation88_spill] sm:$0xff] %v8462_v44 }
0x164c   :  { %10604 = vst [vmem:[#allocation90_spill] sm:$0xff] %v8465_v24 }
0x164d   :  { %2749 = vmatpush.msrb.mxu1 %v8396_v27 }
0x164f   :  { %2750 = vmatpush.msrb.mxu1 %v8399_v15 }
0x1651   :  { %2751 = vmatpush.msrb.mxu1 %v8402_v61 }
0x1653   :  { %2752 = vmatpush.msrb.mxu1 %v8405_v56 }
0x1655   :  { %2753 = vmatpush.msrb.mxu1 %v8408_v6 }
0x1657   :  { %2754 = vmatpush.msrb.mxu1 %v8411_v39 }
0x1659   :  { %2755 = vmatpush.msrb.mxu1 %v8414_v9 }
0x165b   :  { %2756 = vmatpush.msrb.mxu1 %v8417_v17 }
0x165d   :  { %2757 = vmatpush.msrb.mxu1 %v8420_v3 }
0x165f   :  { %2758 = vmatpush.msrb.mxu1 %v8423_v7 }
0x1661   :  { %2914 = vmatpush.msra.mxu1 %v8426_v16 }
0x1663   :  { %2915 = vmatpush.msra.mxu1 %v8429_v40  ;;  %v10608_v40 = vld [vmem:[#allocation115_spill] sm:$0xff] }
0x1665   :  { %2916 = vmatpush.msra.mxu1 %v8432_v13 }
0x1667   :  { %2917 = vmatpush.msra.mxu1 %v8435_v21  ;;  %v2512_v21 = vpop.f32.mrf.mxu2 }
0x1669   :  { %2918 = vmatpush.msra.mxu1 %v8438_v49 }
0x166b   :  { %2919 = vmatpush.msra.mxu1 %v8441_v43  ;;  %v2552_v43 = vpop.f32.mrf.mxu0 }
0x166d   :  { %2920 = vmatpush.msra.mxu1 %v8444_v2 }
0x166f   :  { %2921 = vmatpush.msra.mxu1 %v8447_v45  ;;  %v2592_v16 = vpop.f32.mrf.mxu2 }
0x1671   :  { %2922 = vmatpush.msra.mxu1 %v8450_v5  ;;  %v8468_v5 = vld [vmem:[#allocation11 + $0x18] sm:$0xff] }
0x1672   :  { %10605 = vst [vmem:[#allocation81_spill] sm:$0xff] %v8468_v5 }
0x1673   :  { %2923 = vmatpush.msra.mxu1 %v8453_v29  ;;  %v8471_v29 = vld [vmem:[#allocation11] sm:$0xff] }
0x1674   :  { %10606 = vst [vmem:[#allocation82_spill] sm:$0xff] %v8471_v29 }
0x1675   :  { %2924 = vmatpush.msra.mxu1 %v8456_v54 }
0x1677   :  { %2925 = vmatpush.msra.mxu1 %v8459_v31  ;;  %v10607_v31 = vld [vmem:[#allocation114_spill] sm:$0xff] }
0x1679   :  { %2926 = vmatpush.msra.mxu1 %v8462_v44 }
0x167b   :  { %2927 = vmatpush.msra.mxu1 %v8465_v24 }
0x167d   :  { %2928 = vmatpush.msra.mxu1 %v8468_v5 }
0x167f   :  { %2929 = vmatpush.msra.mxu1 %v8471_v29 }
0x169d   :  { %v8474_v45 = vpop.f32.mrf.mxu1 }
0x16a5   :  { %v2492_v13 = vpop.f32.mrf.mxu1 }
0x16aa   :  { %v2532_v54 = vpop.f32.mrf.mxu3 }
0x16ab   :  { %v2533_v2 = vadd.f32 %v10607_v31, %v2532_v54  ;;  %v2493_v54 = vadd.f32 %v7936_v26, %v2492_v13 }
0x16ad   :  { %v2553_v49 = vadd.f32 %v2552_v43, %v2533_v2  ;;  %v2513_v43 = vadd.f32 %v2512_v21, %v2493_v54 }
0x16af   :  { %4496 = vtanh.f32 %v2553_v49  ;;  %v2595_v2 = vmul.f32 0.5, %v2513_v43 }
0x16b5   :  { %v4497_v44 = vpop.eup %4496 }
0x16b6   :  { %2613 = vrot.lane.b32.xlu2 %v4497_v44, %s5625_s14 }
0x16bd   :  { %v2572_v24 = vpop.f32.mrf.mxu1 }
0x16be   :  { %v2573_v5 = vadd.f32 %v10608_v40, %v2572_v24 }
0x16c0   :  { %v8479_v7 = vadd.f32 %v2592_v16, %v2573_v5  ;;  %v2599_v16 = vmul.f32 0.5, %v2553_v49 }
0x16c2   :  { %4498 = vtanh.f32 %v8479_v7 }
0x16c3   :  { %4500 = vtanh.f32 %v2595_v2 }
0x16c4   :  { %4502 = vtanh.f32 %v2599_v16 }
0x16c8   :  { %v4499_v29 = vpop.eup %4498 }
0x16c9   :  { %2615 = vrot.lane.b32.xlu0 %v4499_v29, %s5625_s14  ;;  %v4501_v31 = vpop.eup %4500 }
0x16ca   :  { %v2597_v3 = vmul.f32 0.5, %v4501_v31  ;;  %v4503_v5 = vpop.eup %4502 }
0x16cb   :  { %v2601_v26 = vmul.f32 0.5, %v4503_v5  ;;  %v10609_v5 = vld [vmem:[#allocation116_spill] sm:$0xff] }
0x16cc   :  { %v2598_v9 = vadd.f32 0.5, %v2597_v3 }
0x16cd   :  { %v2602_v13 = vadd.f32 0.5, %v2601_v26  ;;  %v10610_v26 = vld [vmem:[#allocation117_spill] sm:$0xff] }
0x16ce   :  { %v2609_v29 = vmul.f32 %v2598_v9, %v7945_v63 }
0x16cf   :  { %v2610_v21 = vmul.f32 %v2602_v13, %v7947_v46 }
0x1710   :  { %v2614_v17 = vpop.permute.xlu2 %2613 }
0x173b   :  { %v2616_v44 = vpop.permute.xlu0 %2615 }
0x173c   :  { %v2617_v40 = vsel %vm816_vm3, %v2614_v17, %v2616_v44 }
0x173d   :  { %v2619_v24 = vmul.f32 %v2617_v40, %v2598_v9 }
0x173f   :  { %2621 = vrot.lane.b32.xlu1 %v2619_v24, %s5626_s15 }
0x1747   :  { %4255 = vrot.lane.b32.xlu1 %v8221_v38, %s5631_s2 }
0x17b1   :  { %v2622_v54 = vpop.permute.xlu1 %2621 }
0x17b2   :  { %v8490_v43 = vadd.f32 %v2622_v54, %v2609_v29  ;;  %v8492_v3 = vadd.f32 %v2622_v54, %v2610_v21  ;;  %v10612_v21 = vld [vmem:[#allocation119_spill] sm:$0xff]  ;;  %v10613_v29 = vld [vmem:[#allocation120_spill] sm:$0xff]  ;;  %v10614_v54 = vld [vmem:[#allocation121_spill] sm:$0xff] }
0x17b4   :  { %4504 = vtanh.f32 %v8490_v43 }
0x17b5   :  { %4506 = vtanh.f32 %v8492_v3 }
0x17b9   :  { %v4256_v9 = vpop.permute.xlu1 %4255 }
0x17ba   :  { %v4505_v17 = vpop.eup %4504  ;;  %v4258_v31 = vunpack.i.h.bf16 %v4256_v9  ;;  %v4257_v44 = vunpack.i.l.bf16 %v4256_v9  ;;  %v10621_v9 = vld [vmem:[#allocation128_spill] sm:$0xff] }
0x17bb   :  { %v4507_v38 = vpop.eup %4506  ;;  %2630 = vrot.lane.b32.xlu2 %v4505_v17, %s5626_s15  ;;  %v10615_v17 = vld [vmem:[#allocation122_spill] sm:$0xff] }
0x17bc   :  { %2632 = vrot.lane.b32.xlu0 %v4507_v38, %s5626_s15  ;;  %v2647_v40 = vsel %vm1329_vm9, %v4257_v44, %v4258_v31  ;;  %v10616_v38 = vld [vmem:[#allocation123_spill] sm:$0xff]  ;;  %v10622_v31 = vld [vmem:[#allocation129_spill] sm:$0xff]  ;;  %v10623_v44 = vld [vmem:[#allocation130_spill] sm:$0xff] }
0x1815   :  { %v2631_v49 = vpop.permute.xlu2 %2630 }
0x182e   :  { %v8498_v2 = vpop.permute.xlu0 %2632 }
0x182f   :  { %v2634_v63 = vsel %vm834_vm4, %v2631_v49, %v8498_v2  ;;  %v10618_v49 = vld [vmem:[#allocation125_spill] sm:$0xff] }
0x1830   :  { %v2637_v46 = vmul.f32 %v2634_v63, %v2602_v13  ;;  %v10611_v13 = vld [vmem:[#allocation118_spill] sm:$0xff] }
0x1831   :  { %v10619_v63 = vld [vmem:[#allocation126_spill] sm:$0xff] }
0x1832   :  { %2640 = vrot.lane.b32.xlu2 %v2637_v46, %s5627_s1  ;;  %v10620_v46 = vld [vmem:[#allocation127_spill] sm:$0xff] }
0x188c   :  { %v8504_v24 = vpop.permute.xlu2 %2640 }
0x188d   :  { %v2649_v16 = vsel %vm834_vm4, %v8504_v24, %v2647_v40  ;;  %v10624_v40 = vld [vmem:[#allocation131_spill] sm:$0xff] }
0x188e   :  { %2666 = vmatmul.f32.vlgmr.msrb.gmra.mxu3 %v2649_v16  ;;  %2686 = vmatmul.f32.vlgmr.msrb.gmra.mxu0 %v2649_v16  ;;  %v10625_v16 = vld [vmem:[#allocation132_spill] sm:$0xff] }
0x188f   :  { %2974 = vmatpush.msrb.mxu0 %v7963_v48  ;;  %2954 = vmatpush.msrb.mxu3 %v10609_v5  ;;  %v10617_v48 = vld [vmem:[#allocation124_spill] sm:$0xff]  ;;  %v10627_v5 = vld [vmem:[#allocation134_spill] sm:$0xff] }
0x1891   :  { %2975 = vmatpush.msrb.mxu0 %v10610_v26  ;;  %2955 = vmatpush.msrb.mxu3 %v10611_v13  ;;  %v10628_v26 = vld [vmem:[#allocation135_spill] sm:$0xff]  ;;  %v10629_v13 = vld [vmem:[#allocation136_spill] sm:$0xff] }
0x1893   :  { %2976 = vmatpush.msrb.mxu0 %v10612_v21  ;;  %2956 = vmatpush.msrb.mxu3 %v10613_v29  ;;  %v10630_v21 = vld [vmem:[#allocation137_spill] sm:$0xff]  ;;  %v10631_v29 = vld [vmem:[#allocation138_spill] sm:$0xff] }
0x1895   :  { %2977 = vmatpush.msrb.mxu0 %v10614_v54  ;;  %2957 = vmatpush.msrb.mxu3 %v10615_v17  ;;  %v10632_v54 = vld [vmem:[#allocation139_spill] sm:$0xff]  ;;  %v10633_v17 = vld [vmem:[#allocation140_spill] sm:$0xff] }
0x1896   :  { %2830 = vmatmul.f32.vlgmr.msra.gmra.mxu3 %v8315_v32  ;;  %2850 = vmatmul.f32.vlgmr.msra.gmra.mxu0 %v8315_v32  ;;  %v10626_v32 = vld [vmem:[#allocation133_spill] sm:$0xff] }
0x1897   :  { %2978 = vmatpush.msrb.mxu0 %v10616_v38  ;;  %2958 = vmatpush.msrb.mxu3 %v10617_v48  ;;  %v10634_v38 = vld [vmem:[#allocation141_spill] sm:$0xff]  ;;  %v10635_v48 = vld [vmem:[#allocation142_spill] sm:$0xff] }
0x1899   :  { %2979 = vmatpush.msrb.mxu0 %v10618_v49  ;;  %2959 = vmatpush.msrb.mxu3 %v10619_v63  ;;  %v10636_v49 = vld [vmem:[#allocation143_spill] sm:$0xff]  ;;  %v10637_v63 = vld [vmem:[#allocation144_spill] sm:$0xff] }
0x189b   :  { %2980 = vmatpush.msrb.mxu0 %v10620_v46  ;;  %2960 = vmatpush.msrb.mxu3 %v10621_v9  ;;  %v10638_v46 = vld [vmem:[#allocation145_spill] sm:$0xff]  ;;  %v10639_v9 = vld [vmem:[#allocation146_spill] sm:$0xff] }
0x189d   :  { %2981 = vmatpush.msrb.mxu0 %v10622_v31  ;;  %2961 = vmatpush.msrb.mxu3 %v10623_v44  ;;  %v10640_v31 = vld [vmem:[#allocation147_spill] sm:$0xff]  ;;  %v10641_v44 = vld [vmem:[#allocation148_spill] sm:$0xff] }
0x189f   :  { %2982 = vmatpush.msrb.mxu0 %v10624_v40  ;;  %2962 = vmatpush.msrb.mxu3 %v10625_v16  ;;  %v10642_v40 = vld [vmem:[#allocation149_spill] sm:$0xff]  ;;  %v10643_v16 = vld [vmem:[#allocation150_spill] sm:$0xff] }
0x18a1   :  { %2983 = vmatpush.msrb.mxu0 %v10626_v32  ;;  %2963 = vmatpush.msrb.mxu3 %v10627_v5  ;;  %v10644_v32 = vld [vmem:[#allocation151_spill] sm:$0xff]  ;;  %v10645_v5 = vld [vmem:[#allocation152_spill] sm:$0xff] }
0x18a3   :  { %2984 = vmatpush.msrb.mxu0 %v10628_v26  ;;  %2964 = vmatpush.msrb.mxu3 %v10629_v13  ;;  %v10646_v26 = vld [vmem:[#allocation153_spill] sm:$0xff]  ;;  %v10647_v13 = vld [vmem:[#allocation30_spill] sm:$0xff] }
0x18a5   :  { %2985 = vmatpush.msrb.mxu0 %v10630_v21  ;;  %2965 = vmatpush.msrb.mxu3 %v10631_v29  ;;  %v10648_v21 = vld [vmem:[#allocation63_spill] sm:$0xff]  ;;  %v10649_v29 = vld [vmem:[#allocation29_spill] sm:$0xff] }
0x18a7   :  { %2986 = vmatpush.msrb.mxu0 %v10632_v54  ;;  %2966 = vmatpush.msrb.mxu3 %v10633_v17  ;;  %v10650_v54 = vld [vmem:[#allocation64_spill] sm:$0xff]  ;;  %v10651_v17 = vld [vmem:[#allocation61_spill] sm:$0xff] }
0x18a9   :  { %2987 = vmatpush.msrb.mxu0 %v10634_v38  ;;  %2967 = vmatpush.msrb.mxu3 %v10635_v48  ;;  %v10652_v38 = vld [vmem:[#allocation62_spill] sm:$0xff]  ;;  %v10653_v48 = vld [vmem:[#allocation47_spill] sm:$0xff] }
0x18ab   :  { %2988 = vmatpush.msrb.mxu0 %v10636_v49  ;;  %2968 = vmatpush.msrb.mxu3 %v10637_v63  ;;  %v10654_v49 = vld [vmem:[#allocation42_spill] sm:$0xff]  ;;  %v10655_v63 = vld [vmem:[#allocation49_spill] sm:$0xff] }
0x18ad   :  { %2989 = vmatpush.msrb.mxu0 %v10638_v46  ;;  %2969 = vmatpush.msrb.mxu3 %v10639_v9  ;;  %v10656_v46 = vld [vmem:[#allocation43_spill] sm:$0xff] }
0x18ae   :  { %v10657_v9 = vld [vmem:[#allocation51_spill] sm:$0xff] }
0x18af   :  { %3089 = vmatpush.msra.mxu3 %v10640_v31  ;;  %3109 = vmatpush.msra.mxu0 %v10641_v44  ;;  %v10658_v31 = vld [vmem:[#allocation44_spill] sm:$0xff]  ;;  %v10659_v44 = vld [vmem:[#allocation53_spill] sm:$0xff] }
0x18b1   :  { %3090 = vmatpush.msra.mxu3 %v10642_v40  ;;  %3110 = vmatpush.msra.mxu0 %v10643_v16  ;;  %v10660_v40 = vld [vmem:[#allocation45_spill] sm:$0xff]  ;;  %v10661_v16 = vld [vmem:[#allocation55_spill] sm:$0xff] }
0x18b3   :  { %3091 = vmatpush.msra.mxu3 %v10644_v32  ;;  %3111 = vmatpush.msra.mxu0 %v10645_v5  ;;  %v10662_v32 = vld [vmem:[#allocation46_spill] sm:$0xff]  ;;  %v10663_v5 = vld [vmem:[#allocation57_spill] sm:$0xff] }
0x18b5   :  { %3092 = vmatpush.msra.mxu3 %v10646_v26  ;;  %3112 = vmatpush.msra.mxu0 %v10647_v13  ;;  %v10664_v26 = vld [vmem:[#allocation48_spill] sm:$0xff]  ;;  %v10665_v13 = vld [vmem:[#allocation59_spill] sm:$0xff] }
0x18b7   :  { %3093 = vmatpush.msra.mxu3 %v10648_v21  ;;  %3113 = vmatpush.msra.mxu0 %v10649_v29  ;;  %v10666_v21 = vld [vmem:[#allocation50_spill] sm:$0xff]  ;;  %v10667_v29 = vld [vmem:[#allocation60_spill] sm:$0xff] }
0x18b9   :  { %3094 = vmatpush.msra.mxu3 %v10650_v54  ;;  %3114 = vmatpush.msra.mxu0 %v10651_v17  ;;  %v10668_v54 = vld [vmem:[#allocation52_spill] sm:$0xff]  ;;  %v10669_v17 = vld [vmem:[#allocation54_spill] sm:$0xff] }
0x18bb   :  { %3095 = vmatpush.msra.mxu3 %v10652_v38  ;;  %3115 = vmatpush.msra.mxu0 %v10653_v48  ;;  %v10670_v38 = vld [vmem:[#allocation56_spill] sm:$0xff]  ;;  %v10671_v48 = vld [vmem:[#allocation58_spill] sm:$0xff] }
0x18bd   :  { %3096 = vmatpush.msra.mxu3 %v10654_v49  ;;  %3116 = vmatpush.msra.mxu0 %v10655_v63  ;;  %v8574_v63 = vld [vmem:[#allocation15 + $0x8] sm:$0xff] }
0x18be   :  { %10672 = vst [vmem:[#allocation38_spill] sm:$0xff] %v8574_v63 }
0x18bf   :  { %3097 = vmatpush.msra.mxu3 %v10656_v46  ;;  %3117 = vmatpush.msra.mxu0 %v10657_v9  ;;  %v2811_v9 = vpop.f32.mrf.mxu2 }
0x18c1   :  { %3098 = vmatpush.msra.mxu3 %v10658_v31  ;;  %3118 = vmatpush.msra.mxu0 %v10659_v44  ;;  %v10673_v44 = vld [vmem:[#allocation36_spill] sm:$0xff] }
0x18c3   :  { %3099 = vmatpush.msra.mxu3 %v10660_v40  ;;  %3119 = vmatpush.msra.mxu0 %v10661_v16  ;;  %v10674_v40 = vld [vmem:[#allocation32_spill] sm:$0xff] }
0x18c4   :  { %v289_v16 = vadd.f32 %v10674_v40, %v10673_v44 }
0x18c5   :  { %3100 = vmatpush.msra.mxu3 %v10662_v32  ;;  %3120 = vmatpush.msra.mxu0 %v10663_v5  ;;  %v10675_v32 = vld [vmem:[#allocation35_spill] sm:$0xff] }
0x18c6   :  { %v10676_v5 = vld [vmem:[#allocation67_spill] sm:$0xff] }
0x18c7   :  { %3101 = vmatpush.msra.mxu3 %v10664_v26  ;;  %3121 = vmatpush.msra.mxu0 %v10665_v13  ;;  %v371_v26 = vadd.f32 %v10676_v5, %v10675_v32  ;;  %v8582_v13 = vld [vmem:[#allocation15] sm:$0xff] }
0x18c8   :  { %10677 = vst [vmem:[#allocation91_spill] sm:$0xff] %v8582_v13 }
0x18c9   :  { %3102 = vmatpush.msra.mxu3 %v10666_v21  ;;  %3122 = vmatpush.msra.mxu0 %v10667_v29 }
0x18cb   :  { %3103 = vmatpush.msra.mxu3 %v10668_v54  ;;  %3123 = vmatpush.msra.mxu0 %v10669_v17  ;;  %v2854_v54 = vadd.f32 %v2811_v9, %v289_v16 }
0x18cd   :  { %3104 = vmatpush.msra.mxu3 %v10670_v38  ;;  %3124 = vmatpush.msra.mxu0 %v10671_v48  ;;  %v10678_v38 = vld [vmem:[#allocation28_spill] sm:$0xff]  ;;  %v2857_v40 = vmul.f32 0.5, %v2854_v54 }
0x18ce   :  { %v2322_v48 = vadd.f32 %v10678_v38, %v8474_v45 }
0x190b   :  { %v2687_v49 = vpop.f32.mrf.mxu0 }
0x190c   :  { %v2688_v46 = vadd.f32 %v8574_v63, %v2687_v49 }
0x190e   :  { %2699 = vrot.lane.b32.xlu0 %v2688_v46, %s5628_s0 }
0x1911   :  { %v2667_v31 = vpop.f32.mrf.mxu3 }
0x1912   :  { %v2668_v21 = vadd.f32 %v8582_v13, %v2667_v31 }
0x1913   :  { %v2851_v29 = vpop.f32.mrf.mxu0 }
0x1914   :  { %v8585_v17 = vadd.f32 %v2851_v29, %v371_v26  ;;  %2703 = vrot.lane.b32.xlu1 %v2668_v21, %s5628_s0  ;;  %v2690_v49 = vmul.f32 0.5, %v2668_v21 }
0x1916   :  { %2870 = vrot.lane.b32.xlu2 %v8585_v17, %s5622_s8  ;;  %2874 = vrot.lane.b32.xlu0 %v2854_v54, %s5622_s8  ;;  %4508 = vtanh.f32 %v2690_v49 }
0x1917   :  { %4510 = vtanh.f32 %v2857_v40 }
0x191c   :  { %v4509_v9 = vpop.eup %4508 }
0x191d   :  { %v4511_v26 = vpop.eup %4510  ;;  %v2692_v32 = vmul.f32 0.5, %v4509_v9  ;;  %v2694_v9 = vmul.f32 0.5, %v2688_v46 }
0x191e   :  { %2329 = vrot.lane.b32.xlu0 %v2322_v48, %s5632_s19  ;;  %v2859_v45 = vmul.f32 0.5, %v4511_v26 }
0x191f   :  { %v8596_v38 = vadd.f32 0.5, %v2692_v32  ;;  %v10679_v32 = vld [vmem:[#allocation68_spill] sm:$0xff] }
0x1920   :  { %v2860_v54 = vadd.f32 0.5, %v2859_v45 }
0x1970   :  { %v2871_v29 = vpop.permute.xlu2 %2870 }
0x1980   :  { %v2700_v31 = vpop.permute.xlu0 %2699 }
0x1986   :  { %v2704_v16 = vpop.permute.xlu1 %2703 }
0x1987   :  { %v2706_v5 = vsel %vm933_vm5, %v2700_v31, %v2704_v16  ;;  %v2831_v31 = vpop.f32.mrf.mxu3 }
0x1988   :  { %4512 = vtanh.f32 %v2706_v5  ;;  %v2875_v13 = vpop.permute.xlu0 %2874 }
0x1989   :  { %v2877_v44 = vsel %vm543_vm0, %v2871_v29, %v2875_v13  ;;  %v330_v13 = vadd.f32 %v10679_v32, %v10137_v23  ;;  %v2324_v32 = vmul.f32 0.5, %v2322_v48 }
0x198a   :  { %4514 = vtanh.f32 %v2877_v44  ;;  %v2879_v44 = vmul.f32 %v2860_v54, %v8190_v25 }
0x198b   :  { %v2855_v26 = vadd.f32 %v2831_v31, %v330_v13  ;;  %v2708_v31 = vmul.f32 %v8596_v38, %v8197_v55 }
0x198d   :  { %v2861_v29 = vmul.f32 0.5, %v2855_v26 }
0x198e   :  { %v4513_v21 = vpop.eup %4512 }
0x198f   :  { %v2710_v49 = vmul.f32 %v4513_v21, %v8596_v38 }
0x1990   :  { %v4515_v40 = vpop.eup %4514 }
0x1991   :  { %2712 = vrot.lane.b32.xlu1 %v2710_v49, %s5629_s16  ;;  %v2881_v63 = vmul.f32 %v4515_v40, %v2860_v54  ;;  %v2330_v49 = vpop.permute.xlu0 %2329 }
0x1992   :  { %v2332_v40 = vmul.f32 0.5, %v2330_v49 }
0x1993   :  { %2883 = vrot.lane.b32.xlu2 %v2881_v63, %s5623_s10 }
0x1999   :  { %2343 = vrot.lane.b32.xlu1 %v2322_v48, %s5633_s20 }
0x199b   :  { %2336 = vrot.lane.b32.xlu2 %v2322_v48, %s5634_s21 }
0x19ed   :  { %v2884_v16 = vpop.permute.xlu2 %2883 }
0x19ee   :  { %v8606_v5 = vadd.f32 %v2884_v16, %v2879_v44 }
0x19f0   :  { %4516 = vtanh.f32 %v8606_v5 }
0x19f1   :  { %4518 = vtanh.f32 %v2694_v9 }
0x19f2   :  { %4520 = vtanh.f32 %v2861_v29 }
0x19f3   :  { %4522 = vtanh.f32 %v2332_v40 }
0x19f4   :  { %4524 = vtanh.f32 %v2324_v32 }
0x19f6   :  { %v4517_v63 = vpop.eup %4516 }
0x19f7   :  { %v4519_v45 = vpop.eup %4518  ;;  %2892 = vrot.lane.b32.xlu2 %v4517_v63, %s5623_s10  ;;  %v2603_v63 = vmul.f32 0.5, %v8479_v7 }
0x19f8   :  { %v2696_v21 = vmul.f32 0.5, %v4519_v45  ;;  %v4521_v25 = vpop.eup %4520 }
0x19f9   :  { %v2863_v46 = vmul.f32 0.5, %v4521_v25  ;;  %v4523_v48 = vpop.eup %4522 }
0x19fa   :  { %v2697_v54 = vadd.f32 0.5, %v2696_v21  ;;  %v4525_v21 = vpop.eup %4524  ;;  %v2334_v55 = vmul.f32 0.5, %v4523_v48 }
0x19fb   :  { %v2864_v9 = vadd.f32 0.5, %v2863_v46 }
0x19fc   :  { %v2709_v44 = vmul.f32 %v2697_v54, %v8199_v11  ;;  %v2337_v11 = vpop.permute.xlu2 %2336  ;;  %v2335_v7 = vadd.f32 0.5, %v2334_v55 }
0x19fd   :  { %v2880_v45 = vmul.f32 %v2864_v9, %v8205_v51  ;;  %v2339_v25 = vmul.f32 0.5, %v2337_v11 }
0x19ff   :  { %v8621_v49 = vadd.f32 %v2884_v16, %v2880_v45 }
0x1a03   :  { %v2713_v13 = vpop.permute.xlu1 %2712 }
0x1a04   :  { %v8613_v26 = vadd.f32 %v2713_v13, %v2708_v31  ;;  %v8615_v29 = vadd.f32 %v2713_v13, %v2709_v44  ;;  %v2326_v44 = vmul.f32 0.5, %v4525_v21  ;;  %v2347_v13 = vmul.f32 %v2335_v7, %v8211_v37 }
0x1a05   :  { %v2865_v37 = vmul.f32 0.5, %v8585_v17 }
0x1a06   :  { %4526 = vtanh.f32 %v8613_v26  ;;  %v2327_v31 = vadd.f32 0.5, %v2326_v44 }
0x1a07   :  { %4528 = vtanh.f32 %v8615_v29 }
0x1a08   :  { %4530 = vtanh.f32 %v2603_v63 }
0x1a0b   :  { %v2344_v40 = vpop.permute.xlu1 %2343 }
0x1a0c   :  { %v4527_v32 = vpop.eup %4526  ;;  %4532 = vtanh.f32 %v2344_v40 }
0x1a0d   :  { %v4529_v46 = vpop.eup %4528  ;;  %2721 = vrot.lane.b32.xlu0 %v4527_v32, %s5629_s16  ;;  %4534 = vtanh.f32 %v8621_v49 }
0x1a0e   :  { %2723 = vrot.lane.b32.xlu1 %v4529_v46, %s5629_s16  ;;  %4536 = vtanh.f32 %v2339_v25  ;;  %v4531_v51 = vpop.eup %4530 }
0x1a0f   :  { %v2605_v11 = vmul.f32 0.5, %v4531_v51 }
0x1a11   :  { %v2606_v32 = vadd.f32 0.5, %v2605_v11 }
0x1a12   :  { %v4533_v16 = vpop.eup %4532 }
0x1a13   :  { %v2348_v63 = vmul.f32 %v4533_v16, %v2327_v31  ;;  %v4535_v48 = vpop.eup %4534  ;;  %v2638_v55 = vmul.f32 %v8498_v2, %v2606_v32 }
0x1a14   :  { %v4537_v45 = vpop.eup %4536 }
0x1a15   :  { %v8627_v40 = vadd.f32 %v2348_v63, %v2347_v13  ;;  %2894 = vrot.lane.b32.xlu0 %v4535_v48, %s5623_s10  ;;  %v2341_v21 = vmul.f32 0.5, %v4537_v45 }
0x1a17   :  { %4538 = vtanh.f32 %v8627_v40  ;;  %v2342_v25 = vadd.f32 0.5, %v2341_v21 }
0x1a18   :  { %4540 = vtanh.f32 %v2865_v37  ;;  %v8677_v37 = vld [vmem:[#allocation8 + $0xa8] sm:$0xff] }
0x1a1d   :  { %v4539_v46 = vpop.eup %4538  ;;  %2910 = vrot.lane.b32.xlu0 %v2638_v55, %s5627_s1 }
0x1a1e   :  { %v2351_v44 = vmul.f32 %v4539_v46, %v2342_v25  ;;  %v4541_v7 = vpop.eup %4540  ;;  %v8645_v46 = vld [vmem:[#allocation8 + $0x168] sm:$0xff] }
0x1a1f   :  { %v2867_v48 = vmul.f32 0.5, %v4541_v7  ;;  %v8718_v7 = vld [vmem:[#allocation11 + $0x2a0] sm:$0xff] }
0x1a20   :  { %2739 = vrot.lane.b32.xlu2 %v2351_v44, %s5629_s16  ;;  %v8649_v44 = vld [vmem:[#allocation8 + $0x150] sm:$0xff] }
0x1a21   :  { %v2868_v45 = vadd.f32 0.5, %v2867_v48  ;;  %v8742_v48 = vld [vmem:[#allocation11 + $0x1e0] sm:$0xff] }
0x1a22   :  { %10682 = vst [vmem:[#allocation94_spill] sm:$0xff] %v8742_v48 }
0x1a51   :  { %v2893_v11 = vpop.permute.xlu2 %2892 }
0x1a7f   :  { %v2722_v51 = vpop.permute.xlu0 %2721 }
0x1a80   :  { %v2724_v31 = vpop.permute.xlu1 %2723  ;;  %v2728_v16 = vmul.f32 %v2722_v51, %v8596_v38 }
0x1a81   :  { %v2725_v13 = vsel %vm953_vm6, %v2722_v51, %v2724_v31  ;;  %v8727_v51 = vld [vmem:[#allocation11 + $0x258] sm:$0xff]  ;;  %v8730_v31 = vld [vmem:[#allocation11 + $0x240] sm:$0xff] }
0x1a82   :  { %v2729_v63 = vmul.f32 %v2725_v13, %v2697_v54  ;;  %v8736_v13 = vld [vmem:[#allocation11 + $0x210] sm:$0xff] }
0x1a83   :  { %10680 = vst [vmem:[#allocation77_spill] sm:$0xff] %v8736_v13 }
0x1a84   :  { %v8637_v2 = vpack.i.bf16 %v2729_v63, %v2728_v16  ;;  %v8733_v16 = vld [vmem:[#allocation11 + $0x228] sm:$0xff]  ;;  %v8739_v63 = vld [vmem:[#allocation11 + $0x1f8] sm:$0xff] }
0x1a85   :  { %10681 = vst [vmem:[#allocation93_spill] sm:$0xff] %v8739_v63 }
0x1a86   :  { %4260 = vrot.lane.b32.xlu1 %v8637_v2, %s5630_s17 }
0x1a87   :  { %v2895_v21 = vpop.permute.xlu0 %2894 }
0x1a88   :  { %v2896_v17 = vsel %vm563_vm1, %v2893_v11, %v2895_v21  ;;  %v2900_v32 = vmul.f32 %v2895_v21, %v2868_v45  ;;  %v8745_v45 = vld [vmem:[#allocation11 + $0x1c8] sm:$0xff]  ;;  %v8748_v11 = vld [vmem:[#allocation11 + $0x1b0] sm:$0xff]  ;;  %v8751_v21 = vld [vmem:[#allocation11 + $0x198] sm:$0xff] }
0x1a89   :  { %v2899_v55 = vmul.f32 %v2896_v17, %v2864_v9  ;;  %v8653_v9 = vld [vmem:[#allocation8 + $0x138] sm:$0xff]  ;;  %10683 = vst [vmem:[#allocation79_spill] sm:$0xff] %v8745_v45  ;;  %v8754_v17 = vld [vmem:[#allocation11 + $0x180] sm:$0xff] }
0x1a8a   :  { %10684 = vst [vmem:[#allocation95_spill] sm:$0xff] %v8748_v11 }
0x1a8b   :  { %v4264_v25 = vpack.i.bf16 %v2900_v32, %v2899_v55  ;;  %10685 = vst [vmem:[#allocation84_spill] sm:$0xff] %v8751_v21 }
0x1a8c   :  { %10686 = vst [vmem:[#allocation96_spill] sm:$0xff] %v8754_v17 }
0x1a8e   :  { %4265 = vrot.lane.b32.xlu1 %v4264_v25, %s5624_s13 }
0x1a8f   :  { %v2911_v38 = vpop.permute.xlu0 %2910 }
0x1a90   :  { %v2912_v54 = vsel %vm1154_vm7, %v8504_v24, %v2911_v38  ;;  %v8657_v24 = vld [vmem:[#allocation8 + $0x120] sm:$0xff]  ;;  %v2740_v38 = vpop.permute.xlu2 %2739 }
0x1a91   :  { %2950 = vmatmul.f32.vlgmr.msra.gmra.mxu2 %v2912_v54  ;;  %2990 = vmatmul.f32.vlgmr.msrb.gmra.mxu0 %v2912_v54 }
0x1a92   :  { %3233 = vmatpush.msra.mxu2 %v8645_v46  ;;  %3273 = vmatpush.msrb.mxu0 %v8230_v35  ;;  %v8661_v35 = vld [vmem:[#allocation8 + $0x108] sm:$0xff] }
0x1a94   :  { %3234 = vmatpush.msra.mxu2 %v8649_v44  ;;  %3274 = vmatpush.msrb.mxu0 %v8234_v41  ;;  %v8665_v41 = vld [vmem:[#allocation8 + $0xf0] sm:$0xff] }
0x1a96   :  { %3235 = vmatpush.msra.mxu2 %v8653_v9  ;;  %3275 = vmatpush.msrb.mxu0 %v8238_v14  ;;  %v8669_v14 = vld [vmem:[#allocation8 + $0xd8] sm:$0xff] }
0x1a98   :  { %3236 = vmatpush.msra.mxu2 %v8657_v24  ;;  %3276 = vmatpush.msrb.mxu0 %v8242_v36  ;;  %v8673_v36 = vld [vmem:[#allocation8 + $0xc0] sm:$0xff] }
0x1a99   :  { %3030 = vmatmul.f32.vlgmr.msrb.gmra.mxu2 %v2912_v54 }
0x1a9a   :  { %3237 = vmatpush.msra.mxu2 %v8661_v35  ;;  %3277 = vmatpush.msrb.mxu0 %v8246_v62  ;;  %v8681_v62 = vld [vmem:[#allocation8 + $0x90] sm:$0xff] }
0x1a9c   :  { %3238 = vmatpush.msra.mxu2 %v8665_v41  ;;  %3278 = vmatpush.msrb.mxu0 %v8250_v12  ;;  %v8685_v12 = vld [vmem:[#allocation8 + $0x78] sm:$0xff] }
0x1a9e   :  { %3239 = vmatpush.msra.mxu2 %v8669_v14  ;;  %3279 = vmatpush.msrb.mxu0 %v8254_v34  ;;  %v8689_v34 = vld [vmem:[#allocation8 + $0x60] sm:$0xff] }
0x1aa0   :  { %3240 = vmatpush.msra.mxu2 %v8673_v36  ;;  %3280 = vmatpush.msrb.mxu0 %v8258_v57  ;;  %v8693_v57 = vld [vmem:[#allocation8 + $0x48] sm:$0xff] }
0x1aa2   :  { %3241 = vmatpush.msra.mxu2 %v8677_v37  ;;  %3281 = vmatpush.msrb.mxu0 %v8262_v42  ;;  %v8697_v42 = vld [vmem:[#allocation8 + $0x30] sm:$0xff] }
0x1aa4   :  { %3242 = vmatpush.msra.mxu2 %v8681_v62  ;;  %3282 = vmatpush.msrb.mxu0 %v8266_v10  ;;  %v8701_v10 = vld [vmem:[#allocation8 + $0x18] sm:$0xff] }
0x1aa6   :  { %3243 = vmatpush.msra.mxu2 %v8685_v12  ;;  %3283 = vmatpush.msrb.mxu0 %v8270_v60  ;;  %v8705_v60 = vld [vmem:[#allocation8] sm:$0xff] }
0x1aa8   :  { %3244 = vmatpush.msra.mxu2 %v8689_v34  ;;  %3284 = vmatpush.msrb.mxu0 %v8274_v1  ;;  %v8709_v1 = vld [vmem:[#allocation11 + $0x2e8] sm:$0xff] }
0x1aaa   :  { %3245 = vmatpush.msra.mxu2 %v8693_v57  ;;  %3285 = vmatpush.msrb.mxu0 %v8278_v53  ;;  %v8712_v53 = vld [vmem:[#allocation11 + $0x2d0] sm:$0xff] }
0x1aac   :  { %3246 = vmatpush.msra.mxu2 %v8697_v42  ;;  %3286 = vmatpush.msrb.mxu0 %v8282_v58  ;;  %v8715_v58 = vld [vmem:[#allocation11 + $0x2b8] sm:$0xff] }
0x1aae   :  { %3247 = vmatpush.msra.mxu2 %v8701_v10  ;;  %3287 = vmatpush.msrb.mxu0 %v8286_v59  ;;  %v8721_v59 = vld [vmem:[#allocation11 + $0x288] sm:$0xff] }
0x1ab0   :  { %3248 = vmatpush.msra.mxu2 %v8705_v60  ;;  %3288 = vmatpush.msrb.mxu0 %v8290_v22  ;;  %v8724_v22 = vld [vmem:[#allocation11 + $0x270] sm:$0xff] }
0x1ab2   :  { %3373 = vmatpush.msrb.mxu2 %v8709_v1 }
0x1ab4   :  { %3374 = vmatpush.msrb.mxu2 %v8712_v53 }
0x1ab6   :  { %3375 = vmatpush.msrb.mxu2 %v8715_v58 }
0x1ab8   :  { %3376 = vmatpush.msrb.mxu2 %v8718_v7 }
0x1aba   :  { %3377 = vmatpush.msrb.mxu2 %v8721_v59 }
0x1abc   :  { %3378 = vmatpush.msrb.mxu2 %v8724_v22 }
0x1abe   :  { %3379 = vmatpush.msrb.mxu2 %v8727_v51 }
0x1ac0   :  { %3380 = vmatpush.msrb.mxu2 %v8730_v31 }
0x1ac2   :  { %3381 = vmatpush.msrb.mxu2 %v8733_v16 }
0x1ac4   :  { %3382 = vmatpush.msrb.mxu2 %v8736_v13  ;;  %v8765_v13 = vld [vmem:[#allocation11 + $0x148] sm:$0xff] }
0x1ac6   :  { %3383 = vmatpush.msrb.mxu2 %v8739_v63 }
0x1ac8   :  { %3384 = vmatpush.msrb.mxu2 %v8742_v48  ;;  %v8759_v48 = vld [vmem:[#allocation11 + $0x178] sm:$0xff] }
0x1aca   :  { %3385 = vmatpush.msrb.mxu2 %v8745_v45 }
0x1acc   :  { %3386 = vmatpush.msrb.mxu2 %v8748_v11  ;;  %v8762_v11 = vld [vmem:[#allocation11 + $0x160] sm:$0xff] }
0x1ace   :  { %3387 = vmatpush.msrb.mxu2 %v8751_v21 }
0x1ad0   :  { %3388 = vmatpush.msrb.mxu2 %v8754_v17 }
0x1af8   :  { %v4261_v32 = vpop.permute.xlu1 %4260 }
0x1af9   :  { %v4263_v55 = vunpack.i.h.bf16 %v4261_v32  ;;  %v4262_v25 = vunpack.i.l.bf16 %v4261_v32 }
0x1afb   :  { %v2736_v54 = vsel %vm965_vm8, %v4262_v25, %v4263_v55  ;;  %v8771_v55 = vld [vmem:[#allocation11 + $0x130] sm:$0xff]  ;;  %v8791_v25 = vld [vmem:[#allocation11 + $0xe8] sm:$0xff] }
0x1afc   :  { %v2742_v45 = vsel %vm953_vm6, %v2736_v54, %v2740_v38  ;;  %v8798_v38 = vld [vmem:[#allocation11 + $0xd0] sm:$0xff]  ;;  %v8805_v54 = vld [vmem:[#allocation11 + $0xb8] sm:$0xff] }
0x1afd   :  { %2759 = vmatmul.f32.vlgmr.msrb.gmra.mxu1 %v2742_v45  ;;  %v8777_v45 = vld [vmem:[#allocation11 + $0x118] sm:$0xff]  ;;  %10689 = vst [vmem:[#allocation98_spill] sm:$0xff] %v8805_v54 }
0x1afe   :  { %2994 = vmatpush.msrb.mxu1 %v8759_v48 }
0x1b00   :  { %2995 = vmatpush.msrb.mxu1 %v8762_v11  ;;  %v4266_v21 = vpop.permute.xlu1 %4265 }
0x1b01   :  { %v4268_v63 = vunpack.i.h.bf16 %v4266_v21  ;;  %v4267_v17 = vunpack.i.l.bf16 %v4266_v21  ;;  %v8781_v21 = vld [vmem:[#allocation11 + $0x2f8] sm:$0xff] }
0x1b02   :  { %2996 = vmatpush.msrb.mxu1 %v8765_v13 }
0x1b03   :  { %v8769_v32 = vsel %vm575_vm2, %v4267_v17, %v4268_v63  ;;  %v8784_v63 = vld [vmem:[#allocation11 + $0x100] sm:$0xff] }
0x1b04   :  { %2997 = vmatpush.msrb.mxu1 %v8771_v55  ;;  %2970 = vmatmul.f32.vlgmr.msrb.gmra.mxu3 %v8769_v32  ;;  %v8788_v17 = vld [vmem:[#allocation11 + $0x2e0] sm:$0xff] }
0x1b05   :  { %3249 = vmatmul.f32.vlgmr.msra.gmra.mxu2 %v8769_v32  ;;  %2930 = vmatmul.f32.vlgmr.msra.gmra.mxu1 %v8769_v32 }
0x1b06   :  { %2998 = vmatpush.msrb.mxu1 %v8777_v45  ;;  %3253 = vmatpush.msrb.mxu3 %v8322_v19  ;;  %v8795_v19 = vld [vmem:[#allocation11 + $0x2c8] sm:$0xff] }
0x1b07   :  { %3453 = vmatpush.msra.mxu2 %v8781_v21  ;;  %10687 = vst [vmem:[#allocation92_spill] sm:$0xff] %v8795_v19 }
0x1b08   :  { %2999 = vmatpush.msrb.mxu1 %v8784_v63  ;;  %3254 = vmatpush.msrb.mxu3 %v8327_v8  ;;  %v8802_v8 = vld [vmem:[#allocation11 + $0x2b0] sm:$0xff] }
0x1b09   :  { %3454 = vmatpush.msra.mxu2 %v8788_v17  ;;  %10688 = vst [vmem:[#allocation97_spill] sm:$0xff] %v8802_v8 }
0x1b0a   :  { %3000 = vmatpush.msrb.mxu1 %v8791_v25  ;;  %3255 = vmatpush.msrb.mxu3 %v8332_v30  ;;  %v8809_v30 = vld [vmem:[#allocation11 + $0x298] sm:$0xff] }
0x1b0b   :  { %3455 = vmatpush.msra.mxu2 %v8795_v19  ;;  %10690 = vst [vmem:[#allocation74_spill] sm:$0xff] %v8809_v30  ;;  %v8812_v19 = vld [vmem:[#allocation11 + $0xa0] sm:$0xff] }
0x1b0c   :  { %3001 = vmatpush.msrb.mxu1 %v8798_v38  ;;  %3256 = vmatpush.msrb.mxu3 %v8337_v28  ;;  %v8816_v28 = vld [vmem:[#allocation11 + $0x280] sm:$0xff] }
0x1b0d   :  { %3456 = vmatpush.msra.mxu2 %v8802_v8  ;;  %10691 = vst [vmem:[#allocation73_spill] sm:$0xff] %v8816_v28  ;;  %v8819_v8 = vld [vmem:[#allocation11 + $0x88] sm:$0xff] }
0x1b0e   :  { %3002 = vmatpush.msrb.mxu1 %v8805_v54  ;;  %3257 = vmatpush.msrb.mxu3 %v8342_v20  ;;  %10692 = vst [vmem:[#allocation99_spill] sm:$0xff] %v8819_v8  ;;  %v8822_v54 = vld [vmem:[#allocation8 + $0xe0] sm:$0xff]  ;;  %v8825_v20 = vld [vmem:[#allocation11 + $0x268] sm:$0xff] }
0x1b0f   :  { %3457 = vmatpush.msra.mxu2 %v8809_v30  ;;  %10693 = vst [vmem:[#allocation100_spill] sm:$0xff] %v8822_v54  ;;  %v8828_v30 = vld [vmem:[#allocation11 + $0x70] sm:$0xff] }
0x1b10   :  { %3003 = vmatpush.msrb.mxu1 %v8812_v19  ;;  %3258 = vmatpush.msrb.mxu3 %v8347_v50  ;;  %10694 = vst [vmem:[#allocation101_spill] sm:$0xff] %v8825_v20  ;;  %v8831_v50 = vld [vmem:[#allocation8 + $0xc8] sm:$0xff] }
0x1b11   :  { %3458 = vmatpush.msra.mxu2 %v8816_v28  ;;  %10695 = vst [vmem:[#allocation102_spill] sm:$0xff] %v8828_v30  ;;  %v8834_v28 = vld [vmem:[#allocation11 + $0x250] sm:$0xff] }
0x1b12   :  { %3004 = vmatpush.msrb.mxu1 %v8819_v8  ;;  %3259 = vmatpush.msrb.mxu3 %v8822_v54  ;;  %10696 = vst [vmem:[#allocation103_spill] sm:$0xff] %v8831_v50  ;;  %v8837_v8 = vld [vmem:[#allocation11 + $0x58] sm:$0xff]  ;;  %v8840_v54 = vld [vmem:[#allocation8 + $0xb0] sm:$0xff] }
0x1b13   :  { %3459 = vmatpush.msra.mxu2 %v8825_v20  ;;  %10697 = vst [vmem:[#allocation104_spill] sm:$0xff] %v8834_v28  ;;  %v8843_v20 = vld [vmem:[#allocation11 + $0x238] sm:$0xff] }
0x1b14   :  { %3005 = vmatpush.msrb.mxu1 %v8828_v30  ;;  %3260 = vmatpush.msrb.mxu3 %v8831_v50  ;;  %10698 = vst [vmem:[#allocation105_spill] sm:$0xff] %v8837_v8  ;;  %v8846_v30 = vld [vmem:[#allocation11 + $0x40] sm:$0xff]  ;;  %v8849_v50 = vld [vmem:[#allocation8 + $0x98] sm:$0xff] }
0x1b15   :  { %3460 = vmatpush.msra.mxu2 %v8834_v28  ;;  %10699 = vst [vmem:[#allocation106_spill] sm:$0xff] %v8840_v54  ;;  %v8852_v28 = vld [vmem:[#allocation11 + $0x220] sm:$0xff] }
0x1b16   :  { %3006 = vmatpush.msrb.mxu1 %v8837_v8  ;;  %3261 = vmatpush.msrb.mxu3 %v8840_v54  ;;  %10700 = vst [vmem:[#allocation107_spill] sm:$0xff] %v8843_v20  ;;  %v8855_v8 = vld [vmem:[#allocation11 + $0x28] sm:$0xff]  ;;  %v8858_v54 = vld [vmem:[#allocation8 + $0x80] sm:$0xff] }
0x1b17   :  { %3461 = vmatpush.msra.mxu2 %v8843_v20  ;;  %10701 = vst [vmem:[#allocation108_spill] sm:$0xff] %v8846_v30  ;;  %v8861_v20 = vld [vmem:[#allocation11 + $0x208] sm:$0xff] }
0x1b18   :  { %3007 = vmatpush.msrb.mxu1 %v8846_v30  ;;  %10702 = vst [vmem:[#allocation109_spill] sm:$0xff] %v8849_v50  ;;  %3262 = vmatpush.msrb.mxu3 %v8849_v50  ;;  %v8864_v30 = vld [vmem:[#allocation11 + $0x10] sm:$0xff]  ;;  %v8867_v50 = vld [vmem:[#allocation8 + $0x68] sm:$0xff] }
0x1b19   :  { %10703 = vst [vmem:[#allocation110_spill] sm:$0xff] %v8852_v28  ;;  %3462 = vmatpush.msra.mxu2 %v8852_v28  ;;  %v8871_v28 = vld [vmem:[#allocation11 + $0x1f0] sm:$0xff] }
0x1b1a   :  { %10704 = vst [vmem:[#allocation111_spill] sm:$0xff] %v8855_v8  ;;  %3008 = vmatpush.msrb.mxu1 %v8855_v8  ;;  %3263 = vmatpush.msrb.mxu3 %v8858_v54  ;;  %v8874_v8 = vld [vmem:[#allocation8 + $0x50] sm:$0xff] }
0x1b1b   :  { %10705 = vst [vmem:[#allocation112_spill] sm:$0xff] %v8858_v54  ;;  %3463 = vmatpush.msra.mxu2 %v8861_v20 }
0x1b1c   :  { %10706 = vst [vmem:[#allocation113_spill] sm:$0xff] %v8861_v20  ;;  %3009 = vmatpush.msrb.mxu1 %v8864_v30  ;;  %3264 = vmatpush.msrb.mxu3 %v8867_v50  ;;  %v8878_v20 = vld [vmem:[#allocation11 + $0x1d8] sm:$0xff] }
0x1b1d   :  { %10707 = vst [vmem:[#allocation114_spill] sm:$0xff] %v8864_v30  ;;  %3010 = vmatmul.f32.vlgmr.msrb.gmra.mxu1 %v8769_v32  ;;  %3464 = vmatpush.msra.mxu2 %v8871_v28  ;;  %v8881_v30 = vld [vmem:[#allocation8 + $0x38] sm:$0xff] }
0x1b1e   :  { %10708 = vst [vmem:[#allocation115_spill] sm:$0xff] %v8867_v50  ;;  %3265 = vmatpush.msrb.mxu3 %v8874_v8  ;;  %3182 = vmatpush.msra.mxu1 %v8371_v33  ;;  %v8885_v50 = vld [vmem:[#allocation11 + $0x1c0] sm:$0xff]  ;;  %v8892_v33 = vld [vmem:[#allocation11 + $0x1a8] sm:$0xff] }
0x1b1f   :  { %10709 = vst [vmem:[#allocation116_spill] sm:$0xff] %v8871_v28  ;;  %3465 = vmatpush.msra.mxu2 %v8878_v20  ;;  %v8888_v28 = vld [vmem:[#allocation8 + $0x20] sm:$0xff] }
0x1b20   :  { %10710 = vst [vmem:[#allocation117_spill] sm:$0xff] %v8874_v8  ;;  %3266 = vmatpush.msrb.mxu3 %v8881_v30  ;;  %3183 = vmatpush.msra.mxu1 %v8376_v52  ;;  %v8899_v52 = vld [vmem:[#allocation11 + $0x190] sm:$0xff] }
0x1b21   :  { %10711 = vst [vmem:[#allocation118_spill] sm:$0xff] %v8878_v20  ;;  %3466 = vmatpush.msra.mxu2 %v8885_v50  ;;  %v8895_v20 = vld [vmem:[#allocation8 + $0x8] sm:$0xff] }
0x1b22   :  { %10712 = vst [vmem:[#allocation119_spill] sm:$0xff] %v8881_v30  ;;  %3267 = vmatpush.msrb.mxu3 %v8888_v28  ;;  %3184 = vmatpush.msra.mxu1 %v8381_v4  ;;  %v10718_v4 = vld [vmem:[#allocation40_spill] sm:$0xff] }
0x1b23   :  { %10713 = vst [vmem:[#allocation120_spill] sm:$0xff] %v8885_v50  ;;  %3467 = vmatpush.msra.mxu2 %v8892_v33 }
0x1b24   :  { %10714 = vst [vmem:[#allocation121_spill] sm:$0xff] %v8888_v28  ;;  %3268 = vmatpush.msrb.mxu3 %v8895_v20  ;;  %3185 = vmatpush.msra.mxu1 %v8386_v47  ;;  %v10719_v47 = vld [vmem:[#allocation39_spill] sm:$0xff] }
0x1b25   :  { %10715 = vst [vmem:[#allocation122_spill] sm:$0xff] %v8892_v33  ;;  %3468 = vmatpush.msra.mxu2 %v8899_v52 }
0x1b26   :  { %10716 = vst [vmem:[#allocation123_spill] sm:$0xff] %v8895_v20  ;;  %3186 = vmatpush.msra.mxu1 %v8390_v18  ;;  %v10721_v18 = vld [vmem:[#allocation76_spill] sm:$0xff] }
0x1b27   :  { %10717 = vst [vmem:[#allocation124_spill] sm:$0xff] %v8899_v52  ;;  %v10720_v52 = vld [vmem:[#allocation41_spill] sm:$0xff] }
0x1b28   :  { %3187 = vmatpush.msra.mxu1 %v8393_v0  ;;  %v10722_v0 = vld [vmem:[#allocation31_spill] sm:$0xff] }
0x1b2a   :  { %3188 = vmatpush.msra.mxu1 %v8396_v27  ;;  %v10723_v27 = vld [vmem:[#allocation65_spill] sm:$0xff] }
0x1b2c   :  { %3189 = vmatpush.msra.mxu1 %v8399_v15  ;;  %v10724_v15 = vld [vmem:[#allocation66_spill] sm:$0xff] }
0x1b2e   :  { %3190 = vmatpush.msra.mxu1 %v8402_v61  ;;  %v10725_v61 = vld [vmem:[#allocation85_spill] sm:$0xff] }
0x1b30   :  { %3191 = vmatpush.msra.mxu1 %v8405_v56  ;;  %v10726_v56 = vld [vmem:[#allocation78_spill] sm:$0xff] }
0x1b32   :  { %3192 = vmatpush.msra.mxu1 %v8408_v6  ;;  %v10727_v6 = vld [vmem:[#allocation87_spill] sm:$0xff] }
0x1b34   :  { %3193 = vmatpush.msra.mxu1 %v8411_v39  ;;  %v10728_v39 = vld [vmem:[#allocation80_spill] sm:$0xff] }
0x1b36   :  { %3194 = vmatpush.msra.mxu1 %v10718_v4  ;;  %v10729_v4 = vld [vmem:[#allocation89_spill] sm:$0xff] }
0x1b38   :  { %3195 = vmatpush.msra.mxu1 %v10719_v47  ;;  %v10730_v47 = vld [vmem:[#allocation83_spill] sm:$0xff] }
0x1b3a   :  { %3196 = vmatpush.msra.mxu1 %v10720_v52  ;;  %v10731_v52 = vld [vmem:[#allocation37_spill] sm:$0xff] }
0x1b3c   :  { %3197 = vmatpush.msra.mxu1 %v10721_v18  ;;  %v10732_v18 = vld [vmem:[#allocation86_spill] sm:$0xff] }
0x1b3e   :  { %3353 = vmatpush.msrb.mxu1 %v10722_v0  ;;  %v10733_v0 = vld [vmem:[#allocation75_spill] sm:$0xff] }
0x1b40   :  { %3354 = vmatpush.msrb.mxu1 %v10723_v27  ;;  %v10734_v27 = vld [vmem:[#allocation88_spill] sm:$0xff] }
0x1b42   :  { %3355 = vmatpush.msrb.mxu1 %v10724_v15  ;;  %v10735_v15 = vld [vmem:[#allocation90_spill] sm:$0xff] }
0x1b44   :  { %3356 = vmatpush.msrb.mxu1 %v10725_v61  ;;  %v10736_v61 = vld [vmem:[#allocation81_spill] sm:$0xff] }
0x1b46   :  { %3357 = vmatpush.msrb.mxu1 %v10726_v56  ;;  %v10737_v56 = vld [vmem:[#allocation82_spill] sm:$0xff] }
0x1b48   :  { %3358 = vmatpush.msrb.mxu1 %v10727_v6 }
0x1b4a   :  { %3359 = vmatpush.msrb.mxu1 %v10728_v39 }
0x1b4c   :  { %3360 = vmatpush.msrb.mxu1 %v10729_v4  ;;  %v8932_v4 = vld [vmem:[#allocation12 + $0x8] sm:$0xff] }
0x1b4d   :  { %10738 = vst [vmem:[#allocation125_spill] sm:$0xff] %v8932_v4 }
0x1b4e   :  { %3361 = vmatpush.msrb.mxu1 %v10730_v47 }
0x1b50   :  { %3362 = vmatpush.msrb.mxu1 %v10731_v52  ;;  %v2991_v52 = vpop.f32.mrf.mxu0 }
0x1b52   :  { %3363 = vmatpush.msrb.mxu1 %v10732_v18 }
0x1b54   :  { %3364 = vmatpush.msrb.mxu1 %v10733_v0  ;;  %v2951_v0 = vpop.f32.mrf.mxu2 }
0x1b56   :  { %3365 = vmatpush.msrb.mxu1 %v10734_v27 }
0x1b58   :  { %3366 = vmatpush.msrb.mxu1 %v10735_v15  ;;  %v8936_v15 = vld [vmem:[#allocation12 + $0x10] sm:$0xff] }
0x1b59   :  { %10739 = vst [vmem:[#allocation126_spill] sm:$0xff] %v8936_v15 }
0x1b5a   :  { %3367 = vmatpush.msrb.mxu1 %v10736_v61 }
0x1b5c   :  { %3368 = vmatpush.msrb.mxu1 %v10737_v56  ;;  %v3031_v56 = vpop.f32.mrf.mxu2 }
0x1b7a   :  { %v8930_v39 = vpop.f32.mrf.mxu1 }
0x1b82   :  { %v2931_v33 = vpop.f32.mrf.mxu1 }
0x1b87   :  { %v2971_v6 = vpop.f32.mrf.mxu3 }
0x1b88   :  { %v2972_v47 = vadd.f32 %v8932_v4, %v2971_v6  ;;  %v8943_v6 = vld [vmem:[#allocation12] sm:$0xff] }
0x1b89   :  { %10740 = vst [vmem:[#allocation127_spill] sm:$0xff] %v8943_v6 }
0x1b8a   :  { %v2992_v20 = vadd.f32 %v2991_v52, %v2972_v47  ;;  %v2932_v47 = vadd.f32 %v8943_v6, %v2931_v33 }
0x1b8c   :  { %4542 = vtanh.f32 %v2992_v20  ;;  %v2952_v52 = vadd.f32 %v2951_v0, %v2932_v47 }
0x1b8e   :  { %v3034_v4 = vmul.f32 0.5, %v2952_v52 }
0x1b92   :  { %v4543_v18 = vpop.eup %4542 }
0x1b93   :  { %3052 = vrot.lane.b32.xlu2 %v4543_v18, %s5625_s14 }
0x1b9a   :  { %v3011_v27 = vpop.f32.mrf.mxu1 }
0x1b9b   :  { %v3012_v61 = vadd.f32 %v8936_v15, %v3011_v27 }
0x1b9d   :  { %v8939_v28 = vadd.f32 %v3031_v56, %v3012_v61 }
0x1b9f   :  { %4544 = vtanh.f32 %v8939_v28 }
0x1ba0   :  { %4546 = vtanh.f32 %v3034_v4 }
0x1ba5   :  { %v4545_v50 = vpop.eup %4544 }
0x1ba6   :  { %3054 = vrot.lane.b32.xlu0 %v4545_v50, %s5625_s14  ;;  %v4547_v18 = vpop.eup %4546  ;;  %v3038_v50 = vmul.f32 0.5, %v2992_v20 }
0x1ba7   :  { %v3036_v30 = vmul.f32 0.5, %v4547_v18 }
0x1ba8   :  { %4548 = vtanh.f32 %v3038_v50 }
0x1ba9   :  { %v3037_v27 = vadd.f32 0.5, %v3036_v30 }
0x1bab   :  { %v3048_v47 = vmul.f32 %v3037_v27, %v8490_v43 }
0x1bae   :  { %v4549_v15 = vpop.eup %4548 }
0x1baf   :  { %v3040_v33 = vmul.f32 0.5, %v4549_v15 }
0x1bb1   :  { %v3041_v0 = vadd.f32 0.5, %v3040_v33 }
0x1bb3   :  { %v3049_v4 = vmul.f32 %v3041_v0, %v8492_v3 }
0x1bed   :  { %v3053_v8 = vpop.permute.xlu2 %3052 }
0x1c18   :  { %v3055_v54 = vpop.permute.xlu0 %3054 }
0x1c19   :  { %v3056_v61 = vsel %vm816_vm3, %v3053_v8, %v3055_v54 }
0x1c1a   :  { %v3058_v56 = vmul.f32 %v3056_v61, %v3037_v27 }
0x1c1c   :  { %3060 = vrot.lane.b32.xlu1 %v3058_v56, %s5626_s15 }
0x1c24   :  { %4270 = vrot.lane.b32.xlu1 %v8637_v2, %s5631_s2 }
0x1c8e   :  { %v3061_v52 = vpop.permute.xlu1 %3060 }
0x1c8f   :  { %v8952_v18 = vadd.f32 %v3061_v52, %v3048_v47  ;;  %v8954_v30 = vadd.f32 %v3061_v52, %v3049_v4  ;;  %v8970_v4 = vld [vmem:[#allocation11 + $0x2f0] sm:$0xff]  ;;  %v8979_v52 = vld [vmem:[#allocation11 + $0x158] sm:$0xff] }
0x1c90   :  { %10743 = vst [vmem:[#allocation130_spill] sm:$0xff] %v8970_v4  ;;  %v8973_v47 = vld [vmem:[#allocation11 + $0x170] sm:$0xff] }
0x1c91   :  { %10741 = vst [vmem:[#allocation128_spill] sm:$0xff] %v8952_v18  ;;  %4550 = vtanh.f32 %v8952_v18 }
0x1c92   :  { %10742 = vst [vmem:[#allocation129_spill] sm:$0xff] %v8954_v30  ;;  %4552 = vtanh.f32 %v8954_v30 }
0x1c93   :  { %10744 = vst [vmem:[#allocation131_spill] sm:$0xff] %v8973_v47 }
0x1c94   :  { %10746 = vst [vmem:[#allocation133_spill] sm:$0xff] %v8979_v52 }
0x1c96   :  { %v4271_v15 = vpop.permute.xlu1 %4270 }
0x1c97   :  { %v4551_v8 = vpop.eup %4550  ;;  %v4273_v27 = vunpack.i.h.bf16 %v4271_v15  ;;  %v4272_v61 = vunpack.i.l.bf16 %v4271_v15  ;;  %v8999_v15 = vld [vmem:[#allocation11 + $0x110] sm:$0xff] }
0x1c98   :  { %v4553_v2 = vpop.eup %4552  ;;  %3069 = vrot.lane.b32.xlu2 %v4551_v8, %s5626_s15  ;;  %v8982_v8 = vld [vmem:[#allocation11 + $0x2c0] sm:$0xff]  ;;  %10752 = vst [vmem:[#allocation139_spill] sm:$0xff] %v8999_v15 }
0x1c99   :  { %3071 = vrot.lane.b32.xlu0 %v4553_v2, %s5626_s15  ;;  %v3086_v56 = vsel %vm1329_vm9, %v4272_v61, %v4273_v27  ;;  %10747 = vst [vmem:[#allocation134_spill] sm:$0xff] %v8982_v8  ;;  %v8985_v2 = vld [vmem:[#allocation11 + $0x140] sm:$0xff]  ;;  %v9002_v27 = vld [vmem:[#allocation11 + $0x278] sm:$0xff] }
0x1c9a   :  { %10748 = vst [vmem:[#allocation135_spill] sm:$0xff] %v8985_v2  ;;  %v9005_v61 = vld [vmem:[#allocation11 + $0xf8] sm:$0xff] }
0x1c9b   :  { %10753 = vst [vmem:[#allocation140_spill] sm:$0xff] %v9002_v27 }
0x1c9c   :  { %10754 = vst [vmem:[#allocation141_spill] sm:$0xff] %v9005_v61 }
0x1cf2   :  { %v3070_v54 = vpop.permute.xlu2 %3069 }
0x1d0b   :  { %v8960_v20 = vpop.permute.xlu0 %3071 }
0x1d0c   :  { %v3073_v43 = vsel %vm834_vm4, %v3070_v54, %v8960_v20  ;;  %v8988_v54 = vld [vmem:[#allocation11 + $0x2a8] sm:$0xff] }
0x1d0d   :  { %v3076_v3 = vmul.f32 %v3073_v43, %v3041_v0  ;;  %v8976_v0 = vld [vmem:[#allocation11 + $0x2d8] sm:$0xff]  ;;  %10749 = vst [vmem:[#allocation136_spill] sm:$0xff] %v8988_v54  ;;  %v8991_v43 = vld [vmem:[#allocation11 + $0x128] sm:$0xff] }
0x1d0e   :  { %10745 = vst [vmem:[#allocation132_spill] sm:$0xff] %v8976_v0 }
0x1d0f   :  { %3079 = vrot.lane.b32.xlu2 %v3076_v3, %s5627_s1  ;;  %10750 = vst [vmem:[#allocation137_spill] sm:$0xff] %v8991_v43  ;;  %v8996_v3 = vld [vmem:[#allocation11 + $0x290] sm:$0xff] }
0x1d10   :  { %10751 = vst [vmem:[#allocation138_spill] sm:$0xff] %v8996_v3 }
0x1d69   :  { %v8966_v50 = vpop.permute.xlu2 %3079 }
0x1d6a   :  { %v3088_v33 = vsel %vm834_vm4, %v8966_v50, %v3086_v56  ;;  %v9008_v56 = vld [vmem:[#allocation11 + $0x260] sm:$0xff] }
0x1d6b   :  { %3105 = vmatmul.f32.vlgmr.msra.gmra.mxu3 %v3088_v33  ;;  %3125 = vmatmul.f32.vlgmr.msra.gmra.mxu0 %v3088_v33  ;;  %10755 = vst [vmem:[#allocation142_spill] sm:$0xff] %v9008_v56  ;;  %v9014_v33 = vld [vmem:[#allocation11 + $0x248] sm:$0xff] }
0x1d6c   :  { %3413 = vmatpush.msra.mxu0 %v8970_v4  ;;  %3393 = vmatpush.msra.mxu3 %v8973_v47  ;;  %10757 = vst [vmem:[#allocation144_spill] sm:$0xff] %v9014_v33  ;;  %v10812_v47 = vld [vmem:[#allocation91_spill] sm:$0xff] }
0x1d6e   :  { %3414 = vmatpush.msra.mxu0 %v8976_v0  ;;  %3394 = vmatpush.msra.mxu3 %v8979_v52  ;;  %v10810_v52 = vld [vmem:[#allocation35_spill] sm:$0xff] }
0x1d70   :  { %3415 = vmatpush.msra.mxu0 %v8982_v8  ;;  %3395 = vmatpush.msra.mxu3 %v8985_v2  ;;  %v10809_v2 = vld [vmem:[#allocation33_spill] sm:$0xff] }
0x1d72   :  { %3416 = vmatpush.msra.mxu0 %v8988_v54  ;;  %3396 = vmatpush.msra.mxu3 %v8991_v43 }
0x1d73   :  { %3269 = vmatmul.f32.vlgmr.msrb.gmra.mxu3 %v8769_v32  ;;  %3289 = vmatmul.f32.vlgmr.msrb.gmra.mxu0 %v8769_v32  ;;  %v9011_v32 = vld [vmem:[#allocation11 + $0xe0] sm:$0xff] }
0x1d74   :  { %3417 = vmatpush.msra.mxu0 %v8996_v3  ;;  %3397 = vmatpush.msra.mxu3 %v8999_v15  ;;  %10756 = vst [vmem:[#allocation143_spill] sm:$0xff] %v9011_v32  ;;  %v9017_v15 = vld [vmem:[#allocation11 + $0xc8] sm:$0xff]  ;;  %v10807_v3 = vld [vmem:[#allocation38_spill] sm:$0xff] }
0x1d75   :  { %10758 = vst [vmem:[#allocation145_spill] sm:$0xff] %v9017_v15 }
0x1d76   :  { %3418 = vmatpush.msra.mxu0 %v9002_v27  ;;  %3398 = vmatpush.msra.mxu3 %v9005_v61  ;;  %v9020_v27 = vld [vmem:[#allocation11 + $0x230] sm:$0xff] }
0x1d77   :  { %10759 = vst [vmem:[#allocation146_spill] sm:$0xff] %v9020_v27  ;;  %v9023_v61 = vld [vmem:[#allocation11 + $0xb0] sm:$0xff] }
0x1d78   :  { %3419 = vmatpush.msra.mxu0 %v9008_v56  ;;  %3399 = vmatpush.msra.mxu3 %v9011_v32  ;;  %10760 = vst [vmem:[#allocation147_spill] sm:$0xff] %v9023_v61  ;;  %v9026_v56 = vld [vmem:[#allocation11 + $0x218] sm:$0xff] }
0x1d79   :  { %10761 = vst [vmem:[#allocation148_spill] sm:$0xff] %v9026_v56  ;;  %v9029_v32 = vld [vmem:[#allocation11 + $0x98] sm:$0xff] }
0x1d7a   :  { %3420 = vmatpush.msra.mxu0 %v9014_v33  ;;  %3400 = vmatpush.msra.mxu3 %v9017_v15  ;;  %10762 = vst [vmem:[#allocation149_spill] sm:$0xff] %v9029_v32  ;;  %v9032_v33 = vld [vmem:[#allocation11 + $0x200] sm:$0xff] }
0x1d7b   :  { %10763 = vst [vmem:[#allocation150_spill] sm:$0xff] %v9032_v33  ;;  %v9035_v15 = vld [vmem:[#allocation11 + $0x80] sm:$0xff] }
0x1d7c   :  { %3421 = vmatpush.msra.mxu0 %v9020_v27  ;;  %3401 = vmatpush.msra.mxu3 %v9023_v61  ;;  %10764 = vst [vmem:[#allocation151_spill] sm:$0xff] %v9035_v15  ;;  %v9038_v27 = vld [vmem:[#allocation11 + $0x1e8] sm:$0xff] }
0x1d7d   :  { %10765 = vst [vmem:[#allocation152_spill] sm:$0xff] %v9038_v27  ;;  %v9041_v61 = vld [vmem:[#allocation11 + $0x68] sm:$0xff] }
0x1d7e   :  { %3422 = vmatpush.msra.mxu0 %v9026_v56  ;;  %3402 = vmatpush.msra.mxu3 %v9029_v32  ;;  %10766 = vst [vmem:[#allocation153_spill] sm:$0xff] %v9041_v61  ;;  %v9044_v56 = vld [vmem:[#allocation11 + $0x1d0] sm:$0xff] }
0x1d7f   :  { %10767 = vst [vmem:[#allocation30_spill] sm:$0xff] %v9044_v56  ;;  %v9047_v32 = vld [vmem:[#allocation11 + $0x50] sm:$0xff] }
0x1d80   :  { %3423 = vmatpush.msra.mxu0 %v9032_v33  ;;  %3403 = vmatpush.msra.mxu3 %v9035_v15  ;;  %10768 = vst [vmem:[#allocation63_spill] sm:$0xff] %v9047_v32  ;;  %v9050_v33 = vld [vmem:[#allocation11 + $0x1b8] sm:$0xff] }
0x1d81   :  { %10769 = vst [vmem:[#allocation29_spill] sm:$0xff] %v9050_v33  ;;  %v9053_v15 = vld [vmem:[#allocation11 + $0x38] sm:$0xff] }
0x1d82   :  { %3424 = vmatpush.msra.mxu0 %v9038_v27  ;;  %3404 = vmatpush.msra.mxu3 %v9041_v61  ;;  %10770 = vst [vmem:[#allocation64_spill] sm:$0xff] %v9053_v15  ;;  %v9056_v27 = vld [vmem:[#allocation11 + $0x1a0] sm:$0xff] }
0x1d83   :  { %10771 = vst [vmem:[#allocation61_spill] sm:$0xff] %v9056_v27  ;;  %v9059_v61 = vld [vmem:[#allocation11 + $0x20] sm:$0xff] }
0x1d84   :  { %3425 = vmatpush.msra.mxu0 %v9044_v56  ;;  %3405 = vmatpush.msra.mxu3 %v9047_v32  ;;  %10772 = vst [vmem:[#allocation62_spill] sm:$0xff] %v9059_v61  ;;  %v9062_v56 = vld [vmem:[#allocation11 + $0x188] sm:$0xff] }
0x1d85   :  { %10773 = vst [vmem:[#allocation47_spill] sm:$0xff] %v9062_v56  ;;  %v9065_v32 = vld [vmem:[#allocation11 + $0x8] sm:$0xff] }
0x1d86   :  { %3426 = vmatpush.msra.mxu0 %v9050_v33  ;;  %3406 = vmatpush.msra.mxu3 %v9053_v15  ;;  %10774 = vst [vmem:[#allocation42_spill] sm:$0xff] %v9065_v32  ;;  %v9068_v33 = vld [vmem:[#allocation14 + $0xf0] sm:$0xff]  ;;  %v9071_v15 = vld [vmem:[#allocation14 + $0xf8] sm:$0xff] }
0x1d87   :  { %10775 = vst [vmem:[#allocation49_spill] sm:$0xff] %v9068_v33 }
0x1d88   :  { %3427 = vmatpush.msra.mxu0 %v9056_v27  ;;  %3407 = vmatpush.msra.mxu3 %v9059_v61  ;;  %10776 = vst [vmem:[#allocation43_spill] sm:$0xff] %v9071_v15  ;;  %v9074_v27 = vld [vmem:[#allocation14 + $0xe0] sm:$0xff]  ;;  %v9077_v61 = vld [vmem:[#allocation14 + $0xe8] sm:$0xff] }
0x1d89   :  { %10777 = vst [vmem:[#allocation51_spill] sm:$0xff] %v9074_v27 }
0x1d8a   :  { %3428 = vmatpush.msra.mxu0 %v9062_v56  ;;  %3408 = vmatpush.msra.mxu3 %v9065_v32  ;;  %10778 = vst [vmem:[#allocation44_spill] sm:$0xff] %v9077_v61  ;;  %v9080_v56 = vld [vmem:[#allocation14 + $0xd0] sm:$0xff]  ;;  %v9083_v32 = vld [vmem:[#allocation14 + $0xd8] sm:$0xff] }
0x1d8b   :  { %10779 = vst [vmem:[#allocation53_spill] sm:$0xff] %v9080_v56 }
0x1d8c   :  { %3528 = vmatpush.msrb.mxu3 %v9068_v33  ;;  %3548 = vmatpush.msrb.mxu0 %v9071_v15  ;;  %10780 = vst [vmem:[#allocation45_spill] sm:$0xff] %v9083_v32  ;;  %v9086_v33 = vld [vmem:[#allocation14 + $0xc0] sm:$0xff]  ;;  %v9089_v15 = vld [vmem:[#allocation14 + $0xc8] sm:$0xff] }
0x1d8d   :  { %10781 = vst [vmem:[#allocation55_spill] sm:$0xff] %v9086_v33 }
0x1d8e   :  { %3529 = vmatpush.msrb.mxu3 %v9074_v27  ;;  %3549 = vmatpush.msrb.mxu0 %v9077_v61  ;;  %10782 = vst [vmem:[#allocation46_spill] sm:$0xff] %v9089_v15  ;;  %v9092_v27 = vld [vmem:[#allocation14 + $0xb0] sm:$0xff]  ;;  %v9095_v61 = vld [vmem:[#allocation14 + $0xb8] sm:$0xff] }
0x1d8f   :  { %10783 = vst [vmem:[#allocation57_spill] sm:$0xff] %v9092_v27 }
0x1d90   :  { %3530 = vmatpush.msrb.mxu3 %v9080_v56  ;;  %3550 = vmatpush.msrb.mxu0 %v9083_v32  ;;  %10784 = vst [vmem:[#allocation48_spill] sm:$0xff] %v9095_v61  ;;  %v9098_v56 = vld [vmem:[#allocation14 + $0xa0] sm:$0xff]  ;;  %v9101_v32 = vld [vmem:[#allocation14 + $0xa8] sm:$0xff] }
0x1d91   :  { %10785 = vst [vmem:[#allocation59_spill] sm:$0xff] %v9098_v56 }
0x1d92   :  { %3531 = vmatpush.msrb.mxu3 %v9086_v33  ;;  %3551 = vmatpush.msrb.mxu0 %v9089_v15  ;;  %10786 = vst [vmem:[#allocation50_spill] sm:$0xff] %v9101_v32  ;;  %v9104_v33 = vld [vmem:[#allocation14 + $0x90] sm:$0xff]  ;;  %v9107_v15 = vld [vmem:[#allocation14 + $0x98] sm:$0xff] }
0x1d93   :  { %10787 = vst [vmem:[#allocation60_spill] sm:$0xff] %v9104_v33 }
0x1d94   :  { %3532 = vmatpush.msrb.mxu3 %v9092_v27  ;;  %3552 = vmatpush.msrb.mxu0 %v9095_v61  ;;  %10788 = vst [vmem:[#allocation52_spill] sm:$0xff] %v9107_v15  ;;  %v9110_v27 = vld [vmem:[#allocation14 + $0x80] sm:$0xff]  ;;  %v9113_v61 = vld [vmem:[#allocation14 + $0x88] sm:$0xff] }
0x1d95   :  { %10789 = vst [vmem:[#allocation54_spill] sm:$0xff] %v9110_v27 }
0x1d96   :  { %3533 = vmatpush.msrb.mxu3 %v9098_v56  ;;  %3553 = vmatpush.msrb.mxu0 %v9101_v32  ;;  %10790 = vst [vmem:[#allocation56_spill] sm:$0xff] %v9113_v61  ;;  %v9116_v56 = vld [vmem:[#allocation14 + $0x70] sm:$0xff]  ;;  %v9119_v32 = vld [vmem:[#allocation14 + $0x78] sm:$0xff] }
0x1d97   :  { %10791 = vst [vmem:[#allocation58_spill] sm:$0xff] %v9116_v56 }
0x1d98   :  { %3534 = vmatpush.msrb.mxu3 %v9104_v33  ;;  %3554 = vmatpush.msrb.mxu0 %v9107_v15  ;;  %10792 = vst [vmem:[#allocation32_spill] sm:$0xff] %v9119_v32  ;;  %v9122_v33 = vld [vmem:[#allocation14 + $0x60] sm:$0xff]  ;;  %v9125_v15 = vld [vmem:[#allocation14 + $0x68] sm:$0xff] }
0x1d99   :  { %10793 = vst [vmem:[#allocation67_spill] sm:$0xff] %v9122_v33 }
0x1d9a   :  { %3535 = vmatpush.msrb.mxu3 %v9110_v27  ;;  %3555 = vmatpush.msrb.mxu0 %v9113_v61  ;;  %10794 = vst [vmem:[#allocation28_spill] sm:$0xff] %v9125_v15  ;;  %v9128_v27 = vld [vmem:[#allocation14 + $0x50] sm:$0xff]  ;;  %v9131_v61 = vld [vmem:[#allocation14 + $0x58] sm:$0xff] }
0x1d9b   :  { %10795 = vst [vmem:[#allocation68_spill] sm:$0xff] %v9128_v27 }
0x1d9c   :  { %3536 = vmatpush.msrb.mxu3 %v9116_v56  ;;  %3556 = vmatpush.msrb.mxu0 %v9119_v32  ;;  %10796 = vst [vmem:[#allocation40_spill] sm:$0xff] %v9131_v61  ;;  %v9134_v56 = vld [vmem:[#allocation14 + $0x40] sm:$0xff]  ;;  %v9137_v32 = vld [vmem:[#allocation14 + $0x48] sm:$0xff] }
0x1d9d   :  { %10797 = vst [vmem:[#allocation39_spill] sm:$0xff] %v9134_v56 }
0x1d9e   :  { %3537 = vmatpush.msrb.mxu3 %v9122_v33  ;;  %3557 = vmatpush.msrb.mxu0 %v9125_v15  ;;  %10798 = vst [vmem:[#allocation41_spill] sm:$0xff] %v9137_v32  ;;  %v9140_v33 = vld [vmem:[#allocation14 + $0x30] sm:$0xff]  ;;  %v9143_v15 = vld [vmem:[#allocation14 + $0x38] sm:$0xff] }
0x1d9f   :  { %10799 = vst [vmem:[#allocation76_spill] sm:$0xff] %v9140_v33 }
0x1da0   :  { %3538 = vmatpush.msrb.mxu3 %v9128_v27  ;;  %3558 = vmatpush.msrb.mxu0 %v9131_v61  ;;  %10800 = vst [vmem:[#allocation31_spill] sm:$0xff] %v9143_v15  ;;  %v9146_v27 = vld [vmem:[#allocation14 + $0x20] sm:$0xff]  ;;  %v9149_v61 = vld [vmem:[#allocation14 + $0x28] sm:$0xff] }
0x1da1   :  { %10801 = vst [vmem:[#allocation65_spill] sm:$0xff] %v9146_v27 }
0x1da2   :  { %3539 = vmatpush.msrb.mxu3 %v9134_v56  ;;  %3559 = vmatpush.msrb.mxu0 %v9137_v32  ;;  %10802 = vst [vmem:[#allocation66_spill] sm:$0xff] %v9149_v61  ;;  %v9152_v56 = vld [vmem:[#allocation14 + $0x10] sm:$0xff]  ;;  %v9155_v32 = vld [vmem:[#allocation14 + $0x18] sm:$0xff] }
0x1da3   :  { %10803 = vst [vmem:[#allocation85_spill] sm:$0xff] %v9152_v56 }
0x1da4   :  { %3540 = vmatpush.msrb.mxu3 %v9140_v33  ;;  %3560 = vmatpush.msrb.mxu0 %v9143_v15  ;;  %10804 = vst [vmem:[#allocation78_spill] sm:$0xff] %v9155_v32  ;;  %v9158_v33 = vld [vmem:[#allocation14] sm:$0xff]  ;;  %v9161_v15 = vld [vmem:[#allocation14 + $0x8] sm:$0xff] }
0x1da5   :  { %10805 = vst [vmem:[#allocation87_spill] sm:$0xff] %v9158_v33 }
0x1da6   :  { %3541 = vmatpush.msrb.mxu3 %v9146_v27  ;;  %3561 = vmatpush.msrb.mxu0 %v9149_v61  ;;  %10806 = vst [vmem:[#allocation80_spill] sm:$0xff] %v9161_v15  ;;  %v3250_v61 = vpop.f32.mrf.mxu2 }
0x1da8   :  { %3542 = vmatpush.msrb.mxu3 %v9152_v56  ;;  %3562 = vmatpush.msrb.mxu0 %v9155_v32  ;;  %v10808_v56 = vld [vmem:[#allocation36_spill] sm:$0xff]  ;;  %v10811_v32 = vld [vmem:[#allocation69_spill] sm:$0xff] }
0x1da9   :  { %v292_v8 = vadd.f32 %v10809_v2, %v10808_v56  ;;  %v374_v0 = vadd.f32 %v10811_v32, %v10810_v52  ;;  %v9180_v2 = vld [vmem:[%s9616_s9] sm:$0xff] }
0x1daa   :  { %3543 = vmatpush.msrb.mxu3 %v9158_v33  ;;  %3563 = vmatpush.msrb.mxu0 %v9161_v15  ;;  %10813 = vst [vmem:[#allocation89_spill] sm:$0xff] %v9180_v2 }
0x1dab   :  { %v3293_v18 = vadd.f32 %v3250_v61, %v292_v8 }
0x1de8   :  { %v3126_v27 = vpop.f32.mrf.mxu0 }
0x1de9   :  { %v3127_v43 = vadd.f32 %v10807_v3, %v3126_v27  ;;  %v2761_v3 = vadd.f32 %v9180_v2, %v8930_v39 }
0x1deb   :  { %3138 = vrot.lane.b32.xlu0 %v3127_v43, %s5628_s0 }
0x1dee   :  { %v3106_v54 = vpop.f32.mrf.mxu3 }
0x1def   :  { %v3107_v4 = vadd.f32 %v10812_v47, %v3106_v54 }
0x1df0   :  { %v3290_v33 = vpop.f32.mrf.mxu0 }
0x1df1   :  { %v9171_v30 = vadd.f32 %v3290_v33, %v374_v0  ;;  %3142 = vrot.lane.b32.xlu1 %v3107_v4, %s5628_s0  ;;  %v3129_v47 = vmul.f32 0.5, %v3107_v4  ;;  %v3296_v0 = vmul.f32 0.5, %v3293_v18 }
0x1df3   :  { %3309 = vrot.lane.b32.xlu2 %v9171_v30, %s5622_s8  ;;  %3313 = vrot.lane.b32.xlu0 %v3293_v18, %s5622_s8  ;;  %4554 = vtanh.f32 %v3129_v47 }
0x1df4   :  { %4556 = vtanh.f32 %v3296_v0 }
0x1df9   :  { %v4555_v54 = vpop.eup %4554 }
0x1dfa   :  { %v4557_v32 = vpop.eup %4556  ;;  %v3131_v56 = vmul.f32 0.5, %v4555_v54  ;;  %v3133_v54 = vmul.f32 0.5, %v3127_v43 }
0x1dfb   :  { %2768 = vrot.lane.b32.xlu0 %v2761_v3, %s5632_s19  ;;  %v3298_v39 = vmul.f32 0.5, %v4557_v32 }
0x1dfc   :  { %v9187_v2 = vadd.f32 0.5, %v3131_v56 }
0x1dfd   :  { %v3299_v18 = vadd.f32 0.5, %v3298_v39 }
0x1e4d   :  { %v3310_v33 = vpop.permute.xlu2 %3309 }
0x1e5d   :  { %v3139_v8 = vpop.permute.xlu0 %3138 }
0x1e63   :  { %v3143_v27 = vpop.permute.xlu1 %3142 }
0x1e64   :  { %v3145_v61 = vsel %vm933_vm5, %v3139_v8, %v3143_v27  ;;  %v3270_v8 = vpop.f32.mrf.mxu3 }
0x1e65   :  { %4558 = vtanh.f32 %v3145_v61  ;;  %v3314_v52 = vpop.permute.xlu0 %3313 }
0x1e66   :  { %v3316_v15 = vsel %vm543_vm0, %v3310_v33, %v3314_v52  ;;  %v3318_v52 = vmul.f32 %v3299_v18, %v8606_v5 }
0x1e67   :  { %4560 = vtanh.f32 %v3316_v15  ;;  %v10814_v15 = vld [vmem:[#allocation70_spill] sm:$0xff] }
0x1e68   :  { %v333_v56 = vadd.f32 %v10814_v15, %v10137_v23  ;;  %v2763_v15 = vmul.f32 0.5, %v2761_v3 }
0x1e6a   :  { %v3294_v32 = vadd.f32 %v3270_v8, %v333_v56  ;;  %v3147_v8 = vmul.f32 %v9187_v2, %v8613_v26 }
0x1e6b   :  { %v4559_v4 = vpop.eup %4558 }
0x1e6c   :  { %v3149_v47 = vmul.f32 %v4559_v4, %v9187_v2  ;;  %v3300_v33 = vmul.f32 0.5, %v3294_v32 }
0x1e6d   :  { %v4561_v0 = vpop.eup %4560 }
0x1e6e   :  { %3151 = vrot.lane.b32.xlu1 %v3149_v47, %s5629_s16  ;;  %v3320_v6 = vmul.f32 %v4561_v0, %v3299_v18  ;;  %v2769_v47 = vpop.permute.xlu0 %2768 }
0x1e6f   :  { %v2771_v0 = vmul.f32 0.5, %v2769_v47 }
0x1e70   :  { %3322 = vrot.lane.b32.xlu2 %v3320_v6, %s5623_s10 }
0x1e76   :  { %2782 = vrot.lane.b32.xlu1 %v2761_v3, %s5633_s20 }
0x1e78   :  { %2775 = vrot.lane.b32.xlu2 %v2761_v3, %s5634_s21 }
0x1eca   :  { %v3323_v27 = vpop.permute.xlu2 %3322 }
0x1ecb   :  { %v9197_v61 = vadd.f32 %v3323_v27, %v3318_v52 }
0x1ecd   :  { %4562 = vtanh.f32 %v9197_v61 }
0x1ece   :  { %4564 = vtanh.f32 %v3133_v54 }
0x1ecf   :  { %4566 = vtanh.f32 %v3300_v33 }
0x1ed0   :  { %4568 = vtanh.f32 %v2771_v0 }
0x1ed1   :  { %4570 = vtanh.f32 %v2763_v15 }
0x1ed3   :  { %v4563_v6 = vpop.eup %4562 }
0x1ed4   :  { %v4565_v39 = vpop.eup %4564  ;;  %3331 = vrot.lane.b32.xlu2 %v4563_v6, %s5623_s10  ;;  %v3042_v6 = vmul.f32 0.5, %v8939_v28 }
0x1ed5   :  { %v3135_v4 = vmul.f32 0.5, %v4565_v39  ;;  %v4567_v5 = vpop.eup %4566 }
0x1ed6   :  { %v3302_v43 = vmul.f32 0.5, %v4567_v5  ;;  %v4569_v3 = vpop.eup %4568 }
0x1ed7   :  { %v3136_v18 = vadd.f32 0.5, %v3135_v4  ;;  %v4571_v4 = vpop.eup %4570  ;;  %v2773_v26 = vmul.f32 0.5, %v4569_v3 }
0x1ed8   :  { %v3303_v54 = vadd.f32 0.5, %v3302_v43 }
0x1ed9   :  { %v3148_v52 = vmul.f32 %v3136_v18, %v8615_v29  ;;  %v2776_v29 = vpop.permute.xlu2 %2775  ;;  %v2774_v28 = vadd.f32 0.5, %v2773_v26 }
0x1eda   :  { %v3319_v39 = vmul.f32 %v3303_v54, %v8621_v49  ;;  %v2778_v5 = vmul.f32 0.5, %v2776_v29 }
0x1edc   :  { %v9212_v47 = vadd.f32 %v3323_v27, %v3319_v39 }
0x1ee0   :  { %v3152_v56 = vpop.permute.xlu1 %3151 }
0x1ee1   :  { %v9204_v32 = vadd.f32 %v3152_v56, %v3147_v8  ;;  %v9206_v33 = vadd.f32 %v3152_v56, %v3148_v52  ;;  %v2765_v52 = vmul.f32 0.5, %v4571_v4  ;;  %v2786_v56 = vmul.f32 %v2774_v28, %v8627_v40 }
0x1ee2   :  { %v3304_v40 = vmul.f32 0.5, %v9171_v30 }
0x1ee3   :  { %4572 = vtanh.f32 %v9204_v32  ;;  %v2766_v8 = vadd.f32 0.5, %v2765_v52 }
0x1ee4   :  { %4574 = vtanh.f32 %v9206_v33 }
0x1ee5   :  { %4576 = vtanh.f32 %v3042_v6 }
0x1ee8   :  { %v2783_v0 = vpop.permute.xlu1 %2782 }
0x1ee9   :  { %v4573_v15 = vpop.eup %4572  ;;  %4578 = vtanh.f32 %v2783_v0 }
0x1eea   :  { %v4575_v43 = vpop.eup %4574  ;;  %3160 = vrot.lane.b32.xlu0 %v4573_v15, %s5629_s16  ;;  %4580 = vtanh.f32 %v9212_v47 }
0x1eeb   :  { %3162 = vrot.lane.b32.xlu1 %v4575_v43, %s5629_s16  ;;  %4582 = vtanh.f32 %v2778_v5  ;;  %v4577_v49 = vpop.eup %4576 }
0x1eec   :  { %v3044_v29 = vmul.f32 0.5, %v4577_v49 }
0x1eee   :  { %v3045_v15 = vadd.f32 0.5, %v3044_v29 }
0x1eef   :  { %v4579_v27 = vpop.eup %4578 }
0x1ef0   :  { %v2787_v6 = vmul.f32 %v4579_v27, %v2766_v8  ;;  %v4581_v3 = vpop.eup %4580  ;;  %v3077_v26 = vmul.f32 %v8960_v20, %v3045_v15 }
0x1ef1   :  { %v4583_v39 = vpop.eup %4582 }
0x1ef2   :  { %v9218_v0 = vadd.f32 %v2787_v6, %v2786_v56  ;;  %3333 = vrot.lane.b32.xlu0 %v4581_v3, %s5623_s10  ;;  %v2780_v4 = vmul.f32 0.5, %v4583_v39 }
0x1ef4   :  { %4584 = vtanh.f32 %v9218_v0  ;;  %v2781_v5 = vadd.f32 0.5, %v2780_v4 }
0x1ef5   :  { %4586 = vtanh.f32 %v3304_v40  ;;  %v5254_v40 = vld [vmem:[#allocation8 + $0x130] sm:$0xff] }
0x1efa   :  { %v4585_v43 = vpop.eup %4584  ;;  %3349 = vrot.lane.b32.xlu0 %v3077_v26, %s5627_s1 }
0x1efb   :  { %v2790_v52 = vmul.f32 %v4585_v43, %v2781_v5  ;;  %v4587_v28 = vpop.eup %4586  ;;  %v5251_v43 = vld [vmem:[#allocation8 + $0x178] sm:$0xff] }
0x1efc   :  { %v3306_v3 = vmul.f32 0.5, %v4587_v28 }
0x1efd   :  { %3178 = vrot.lane.b32.xlu2 %v2790_v52, %s5629_s16  ;;  %v5252_v52 = vld [vmem:[#allocation8 + $0x160] sm:$0xff] }
0x1efe   :  { %v3307_v39 = vadd.f32 0.5, %v3306_v3  ;;  %v10828_v3 = vld [vmem:[#allocation100_spill] sm:$0xff] }
0x1f2e   :  { %v3332_v29 = vpop.permute.xlu2 %3331 }
0x1f5c   :  { %v3161_v49 = vpop.permute.xlu0 %3160 }
0x1f5d   :  { %v3163_v8 = vpop.permute.xlu1 %3162  ;;  %v3167_v27 = vmul.f32 %v3161_v49, %v9187_v2 }
0x1f5e   :  { %v3164_v56 = vsel %vm953_vm6, %v3161_v49, %v3163_v8 }
0x1f5f   :  { %v3168_v6 = vmul.f32 %v3164_v56, %v3136_v18  ;;  %v10824_v56 = vld [vmem:[#allocation98_spill] sm:$0xff] }
0x1f61   :  { %v9228_v20 = vpack.i.bf16 %v3168_v6, %v3167_v27  ;;  %v5270_v27 = vld [vmem:[#allocation8 + $0x128] sm:$0xff] }
0x1f62   :  { %v10827_v6 = vld [vmem:[#allocation99_spill] sm:$0xff] }
0x1f63   :  { %4275 = vrot.lane.b32.xlu1 %v9228_v20, %s5630_s17 }
0x1f64   :  { %v3334_v4 = vpop.permute.xlu0 %3333 }
0x1f65   :  { %v3335_v30 = vsel %vm563_vm1, %v3332_v29, %v3334_v4  ;;  %v3339_v15 = vmul.f32 %v3334_v4, %v3307_v39  ;;  %v10830_v39 = vld [vmem:[#allocation102_spill] sm:$0xff]  ;;  %v10831_v29 = vld [vmem:[#allocation103_spill] sm:$0xff]  ;;  %v10832_v4 = vld [vmem:[#allocation104_spill] sm:$0xff] }
0x1f66   :  { %v3338_v26 = vmul.f32 %v3335_v30, %v3303_v54  ;;  %v5253_v54 = vld [vmem:[#allocation8 + $0x148] sm:$0xff]  ;;  %v10833_v30 = vld [vmem:[#allocation105_spill] sm:$0xff] }
0x1f68   :  { %v4279_v5 = vpack.i.bf16 %v3339_v15, %v3338_v26  ;;  %v10834_v15 = vld [vmem:[#allocation106_spill] sm:$0xff]  ;;  %v10836_v26 = vld [vmem:[#allocation108_spill] sm:$0xff] }
0x1f6b   :  { %4280 = vrot.lane.b32.xlu1 %v4279_v5, %s5624_s13  ;;  %v10837_v5 = vld [vmem:[#allocation109_spill] sm:$0xff] }
0x1f6c   :  { %v3350_v2 = vpop.permute.xlu0 %3349 }
0x1f6d   :  { %v3351_v18 = vsel %vm1154_vm7, %v8966_v50, %v3350_v2  ;;  %v5255_v50 = vld [vmem:[#allocation8 + $0x118] sm:$0xff]  ;;  %v10838_v2 = vld [vmem:[#allocation110_spill] sm:$0xff] }
0x1f6e   :  { %3389 = vmatmul.f32.vlgmr.msrb.gmra.mxu2 %v3351_v18  ;;  %3429 = vmatmul.f32.vlgmr.msra.gmra.mxu0 %v3351_v18 }
0x1f6f   :  { %3672 = vmatpush.msrb.mxu2 %v8645_v46  ;;  %3712 = vmatpush.msra.mxu0 %v5251_v43  ;;  %v5256_v46 = vld [vmem:[#allocation8 + $0x100] sm:$0xff]  ;;  %v10840_v43 = vld [vmem:[#allocation112_spill] sm:$0xff] }
0x1f71   :  { %3673 = vmatpush.msrb.mxu2 %v8649_v44  ;;  %3713 = vmatpush.msra.mxu0 %v5252_v52  ;;  %v5257_v44 = vld [vmem:[#allocation8 + $0xe8] sm:$0xff]  ;;  %v10841_v52 = vld [vmem:[#allocation113_spill] sm:$0xff] }
0x1f73   :  { %3674 = vmatpush.msrb.mxu2 %v8653_v9  ;;  %3714 = vmatpush.msra.mxu0 %v5253_v54  ;;  %v5258_v9 = vld [vmem:[#allocation8 + $0xd0] sm:$0xff]  ;;  %v10842_v54 = vld [vmem:[#allocation114_spill] sm:$0xff] }
0x1f75   :  { %3675 = vmatpush.msrb.mxu2 %v8657_v24  ;;  %3715 = vmatpush.msra.mxu0 %v5254_v40  ;;  %v5259_v24 = vld [vmem:[#allocation8 + $0xb8] sm:$0xff]  ;;  %v10843_v40 = vld [vmem:[#allocation115_spill] sm:$0xff] }
0x1f76   :  { %3469 = vmatmul.f32.vlgmr.msra.gmra.mxu2 %v3351_v18  ;;  %v10839_v18 = vld [vmem:[#allocation111_spill] sm:$0xff] }
0x1f77   :  { %3676 = vmatpush.msrb.mxu2 %v8661_v35  ;;  %3716 = vmatpush.msra.mxu0 %v5255_v50  ;;  %v5260_v35 = vld [vmem:[#allocation8 + $0xa0] sm:$0xff]  ;;  %v10844_v50 = vld [vmem:[#allocation116_spill] sm:$0xff] }
0x1f79   :  { %3677 = vmatpush.msrb.mxu2 %v8665_v41  ;;  %3717 = vmatpush.msra.mxu0 %v5256_v46  ;;  %v5261_v41 = vld [vmem:[#allocation8 + $0x88] sm:$0xff]  ;;  %v10845_v46 = vld [vmem:[#allocation117_spill] sm:$0xff] }
0x1f7b   :  { %3678 = vmatpush.msrb.mxu2 %v8669_v14  ;;  %3718 = vmatpush.msra.mxu0 %v5257_v44  ;;  %v5262_v14 = vld [vmem:[#allocation8 + $0x70] sm:$0xff]  ;;  %v9312_v44 = vld [vmem:[#allocation17 + $0x78] sm:$0xff] }
0x1f7d   :  { %3679 = vmatpush.msrb.mxu2 %v8673_v36  ;;  %3719 = vmatpush.msra.mxu0 %v5258_v9  ;;  %v5263_v36 = vld [vmem:[#allocation8 + $0x58] sm:$0xff]  ;;  %v10846_v9 = vld [vmem:[#allocation118_spill] sm:$0xff] }
0x1f7f   :  { %3680 = vmatpush.msrb.mxu2 %v8677_v37  ;;  %3720 = vmatpush.msra.mxu0 %v5259_v24  ;;  %v5264_v37 = vld [vmem:[#allocation8 + $0x40] sm:$0xff]  ;;  %v10847_v24 = vld [vmem:[#allocation119_spill] sm:$0xff] }
0x1f81   :  { %3681 = vmatpush.msrb.mxu2 %v8681_v62  ;;  %3721 = vmatpush.msra.mxu0 %v5260_v35  ;;  %v5265_v62 = vld [vmem:[#allocation8 + $0x28] sm:$0xff]  ;;  %v9317_v35 = vld [vmem:[#allocation17 + $0x70] sm:$0xff] }
0x1f83   :  { %3682 = vmatpush.msrb.mxu2 %v8685_v12  ;;  %3722 = vmatpush.msra.mxu0 %v5261_v41  ;;  %v5266_v12 = vld [vmem:[#allocation8 + $0x10] sm:$0xff] }
0x1f84   :  { %v10848_v41 = vld [vmem:[#allocation120_spill] sm:$0xff] }
0x1f85   :  { %3683 = vmatpush.msrb.mxu2 %v8689_v34  ;;  %3723 = vmatpush.msra.mxu0 %v5262_v14  ;;  %v10815_v34 = vld [vmem:[#allocation77_spill] sm:$0xff] }
0x1f86   :  { %v10849_v14 = vld [vmem:[#allocation121_spill] sm:$0xff] }
0x1f87   :  { %3684 = vmatpush.msrb.mxu2 %v8693_v57  ;;  %3724 = vmatpush.msra.mxu0 %v5263_v36  ;;  %v10816_v57 = vld [vmem:[#allocation93_spill] sm:$0xff]  ;;  %v9322_v36 = vld [vmem:[#allocation17 + $0x68] sm:$0xff] }
0x1f89   :  { %3685 = vmatpush.msrb.mxu2 %v8697_v42  ;;  %3725 = vmatpush.msra.mxu0 %v5264_v37  ;;  %v10817_v42 = vld [vmem:[#allocation94_spill] sm:$0xff] }
0x1f8a   :  { %v10850_v37 = vld [vmem:[#allocation122_spill] sm:$0xff] }
0x1f8b   :  { %3686 = vmatpush.msrb.mxu2 %v8701_v10  ;;  %3726 = vmatpush.msra.mxu0 %v5265_v62  ;;  %v10818_v10 = vld [vmem:[#allocation79_spill] sm:$0xff] }
0x1f8c   :  { %v10851_v62 = vld [vmem:[#allocation123_spill] sm:$0xff] }
0x1f8d   :  { %3687 = vmatpush.msrb.mxu2 %v8705_v60  ;;  %3727 = vmatpush.msra.mxu0 %v5266_v12  ;;  %v10819_v60 = vld [vmem:[#allocation95_spill] sm:$0xff] }
0x1f8e   :  { %v9327_v12 = vld [vmem:[#allocation17 + $0x60] sm:$0xff] }
0x1f8f   :  { %3812 = vmatpush.msra.mxu2 %v8709_v1  ;;  %v10820_v1 = vld [vmem:[#allocation84_spill] sm:$0xff] }
0x1f91   :  { %3813 = vmatpush.msra.mxu2 %v8712_v53  ;;  %v10821_v53 = vld [vmem:[#allocation96_spill] sm:$0xff] }
0x1f93   :  { %3814 = vmatpush.msra.mxu2 %v8715_v58 }
0x1f95   :  { %3815 = vmatpush.msra.mxu2 %v8718_v7 }
0x1f97   :  { %3816 = vmatpush.msra.mxu2 %v8721_v59 }
0x1f99   :  { %3817 = vmatpush.msra.mxu2 %v8724_v22  ;;  %v3179_v22 = vpop.permute.xlu2 %3178 }
0x1f9b   :  { %3818 = vmatpush.msra.mxu2 %v8727_v51 }
0x1f9d   :  { %3819 = vmatpush.msra.mxu2 %v8730_v31 }
0x1f9f   :  { %3820 = vmatpush.msra.mxu2 %v8733_v16 }
0x1fa1   :  { %3821 = vmatpush.msra.mxu2 %v10815_v34  ;;  %v10852_v34 = vld [vmem:[#allocation124_spill] sm:$0xff] }
0x1fa3   :  { %3822 = vmatpush.msra.mxu2 %v10816_v57  ;;  %v9331_v57 = vld [vmem:[#allocation17 + $0x58] sm:$0xff] }
0x1fa5   :  { %3823 = vmatpush.msra.mxu2 %v10817_v42  ;;  %v9334_v42 = vld [vmem:[#allocation17 + $0x50] sm:$0xff] }
0x1fa7   :  { %3824 = vmatpush.msra.mxu2 %v10818_v10  ;;  %v9337_v10 = vld [vmem:[#allocation17 + $0x48] sm:$0xff] }
0x1fa9   :  { %3825 = vmatpush.msra.mxu2 %v10819_v60  ;;  %v9340_v60 = vld [vmem:[#allocation17 + $0x40] sm:$0xff] }
0x1fab   :  { %3826 = vmatpush.msra.mxu2 %v10820_v1  ;;  %v9343_v1 = vld [vmem:[#allocation17 + $0x38] sm:$0xff] }
0x1fad   :  { %3827 = vmatpush.msra.mxu2 %v10821_v53  ;;  %v9346_v53 = vld [vmem:[#allocation17 + $0x30] sm:$0xff] }
0x1fd5   :  { %v4276_v58 = vpop.permute.xlu1 %4275 }
0x1fd6   :  { %v4278_v7 = vunpack.i.h.bf16 %v4276_v58  ;;  %v4277_v59 = vunpack.i.l.bf16 %v4276_v58  ;;  %v9349_v58 = vld [vmem:[#allocation17 + $0x28] sm:$0xff] }
0x1fd8   :  { %v3175_v51 = vsel %vm965_vm8, %v4277_v59, %v4278_v7  ;;  %v9352_v7 = vld [vmem:[#allocation17 + $0x20] sm:$0xff]  ;;  %v9355_v59 = vld [vmem:[#allocation17 + $0x18] sm:$0xff] }
0x1fd9   :  { %v3181_v31 = vsel %vm953_vm6, %v3175_v51, %v3179_v22  ;;  %v9358_v22 = vld [vmem:[#allocation17 + $0x10] sm:$0xff]  ;;  %v9361_v51 = vld [vmem:[#allocation17 + $0x8] sm:$0xff] }
0x1fda   :  { %3198 = vmatmul.f32.vlgmr.msra.gmra.mxu1 %v3181_v31  ;;  %v9364_v31 = vld [vmem:[#allocation17] sm:$0xff] }
0x1fdb   :  { %3433 = vmatpush.msra.mxu1 %v8759_v48  ;;  %v5267_v48 = vld [vmem:[#allocation8 + $0x170] sm:$0xff] }
0x1fdd   :  { %3434 = vmatpush.msra.mxu1 %v8762_v11  ;;  %v4281_v16 = vpop.permute.xlu1 %4280  ;;  %v5269_v11 = vld [vmem:[#allocation8 + $0x140] sm:$0xff] }
0x1fde   :  { %v4283_v28 = vunpack.i.h.bf16 %v4281_v16  ;;  %v4282_v49 = vunpack.i.l.bf16 %v4281_v16  ;;  %v5289_v16 = vld [vmem:[#allocation11 + $0x168] sm:$0xff] }
0x1fdf   :  { %3435 = vmatpush.msra.mxu1 %v8765_v13  ;;  %v5268_v13 = vld [vmem:[#allocation8 + $0x158] sm:$0xff] }
0x1fe0   :  { %v9274_v8 = vsel %vm575_vm2, %v4282_v49, %v4283_v28  ;;  %v5290_v28 = vld [vmem:[#allocation11 + $0x150] sm:$0xff]  ;;  %v5291_v49 = vld [vmem:[#allocation11 + $0x138] sm:$0xff] }
0x1fe1   :  { %3436 = vmatpush.msra.mxu1 %v8771_v55  ;;  %3409 = vmatmul.f32.vlgmr.msra.gmra.mxu3 %v9274_v8  ;;  %v10822_v55 = vld [vmem:[#allocation92_spill] sm:$0xff] }
0x1fe2   :  { %3688 = vmatmul.f32.vlgmr.msrb.gmra.mxu2 %v9274_v8  ;;  %3369 = vmatmul.f32.vlgmr.msrb.gmra.mxu1 %v9274_v8 }
0x1fe3   :  { %3437 = vmatpush.msra.mxu1 %v8777_v45  ;;  %3692 = vmatpush.msra.mxu3 %v5267_v48  ;;  %v10823_v45 = vld [vmem:[#allocation97_spill] sm:$0xff]  ;;  %v5292_v48 = vld [vmem:[#allocation11 + $0x120] sm:$0xff] }
0x1fe4   :  { %3892 = vmatpush.msrb.mxu2 %v8781_v21  ;;  %v5271_v21 = vld [vmem:[#allocation8 + $0x110] sm:$0xff] }
0x1fe5   :  { %3438 = vmatpush.msra.mxu1 %v8784_v63  ;;  %3693 = vmatpush.msra.mxu3 %v5268_v13  ;;  %v10825_v63 = vld [vmem:[#allocation74_spill] sm:$0xff]  ;;  %v5293_v13 = vld [vmem:[#allocation11 + $0x108] sm:$0xff] }
0x1fe6   :  { %3893 = vmatpush.msrb.mxu2 %v8788_v17  ;;  %v5272_v17 = vld [vmem:[#allocation8 + $0xf8] sm:$0xff] }
0x1fe7   :  { %3439 = vmatpush.msra.mxu1 %v8791_v25  ;;  %3694 = vmatpush.msra.mxu3 %v5269_v11  ;;  %v10826_v25 = vld [vmem:[#allocation73_spill] sm:$0xff]  ;;  %v5294_v11 = vld [vmem:[#allocation11 + $0xf0] sm:$0xff] }
0x1fe8   :  { %3894 = vmatpush.msrb.mxu2 %v10822_v55  ;;  %v5295_v55 = vld [vmem:[#allocation11 + $0xd8] sm:$0xff] }
0x1fe9   :  { %3440 = vmatpush.msra.mxu1 %v8798_v38  ;;  %3695 = vmatpush.msra.mxu3 %v5270_v27  ;;  %v10829_v38 = vld [vmem:[#allocation101_spill] sm:$0xff]  ;;  %v5296_v27 = vld [vmem:[#allocation11 + $0xc0] sm:$0xff] }
0x1fea   :  { %3895 = vmatpush.msrb.mxu2 %v10823_v45  ;;  %v5297_v45 = vld [vmem:[#allocation11 + $0xa8] sm:$0xff] }
0x1feb   :  { %3441 = vmatpush.msra.mxu1 %v10824_v56  ;;  %3696 = vmatpush.msra.mxu3 %v5271_v21  ;;  %v5298_v56 = vld [vmem:[#allocation11 + $0x90] sm:$0xff]  ;;  %v5299_v21 = vld [vmem:[#allocation11 + $0x78] sm:$0xff] }
0x1fec   :  { %3896 = vmatpush.msrb.mxu2 %v10825_v63  ;;  %v5300_v63 = vld [vmem:[#allocation11 + $0x60] sm:$0xff] }
0x1fed   :  { %3442 = vmatpush.msra.mxu1 %v8812_v19  ;;  %3697 = vmatpush.msra.mxu3 %v5272_v17  ;;  %v10835_v19 = vld [vmem:[#allocation107_spill] sm:$0xff] }
0x1fee   :  { %3897 = vmatpush.msrb.mxu2 %v10826_v25  ;;  %v5301_v17 = vld [vmem:[#allocation11 + $0x48] sm:$0xff]  ;;  %v5302_v25 = vld [vmem:[#allocation11 + $0x30] sm:$0xff] }
0x1fef   :  { %3443 = vmatpush.msra.mxu1 %v10827_v6  ;;  %3698 = vmatpush.msra.mxu3 %v10828_v3  ;;  %v5303_v6 = vld [vmem:[#allocation11 + $0x18] sm:$0xff]  ;;  %v5304_v3 = vld [vmem:[#allocation11] sm:$0xff] }
0x1ff0   :  { %3898 = vmatpush.msrb.mxu2 %v10829_v38 }
0x1ff1   :  { %3444 = vmatpush.msra.mxu1 %v10830_v39  ;;  %3699 = vmatpush.msra.mxu3 %v10831_v29  ;;  %v10853_v29 = vld [vmem:[#allocation125_spill] sm:$0xff] }
0x1ff2   :  { %3899 = vmatpush.msrb.mxu2 %v10832_v4 }
0x1ff3   :  { %3445 = vmatpush.msra.mxu1 %v10833_v30  ;;  %3700 = vmatpush.msra.mxu3 %v10834_v15  ;;  %v3430_v30 = vpop.f32.mrf.mxu0 }
0x1ff4   :  { %3900 = vmatpush.msrb.mxu2 %v10835_v19 }
0x1ff5   :  { %3446 = vmatpush.msra.mxu1 %v10836_v26  ;;  %3701 = vmatpush.msra.mxu3 %v10837_v5  ;;  %v3390_v26 = vpop.f32.mrf.mxu2 }
0x1ff6   :  { %3901 = vmatpush.msrb.mxu2 %v10838_v2 }
0x1ff7   :  { %3447 = vmatpush.msra.mxu1 %v10839_v18  ;;  %3702 = vmatpush.msra.mxu3 %v10840_v43  ;;  %v10854_v18 = vld [vmem:[#allocation126_spill] sm:$0xff] }
0x1ff8   :  { %3902 = vmatpush.msrb.mxu2 %v10841_v52 }
0x1ff9   :  { %3448 = vmatpush.msra.mxu1 %v10842_v54  ;;  %3703 = vmatpush.msra.mxu3 %v10843_v40 }
0x1ffa   :  { %3449 = vmatmul.f32.vlgmr.msra.gmra.mxu1 %v9274_v8  ;;  %3903 = vmatpush.msrb.mxu2 %v10844_v50  ;;  %v10855_v50 = vld [vmem:[#allocation127_spill] sm:$0xff] }
0x1ffb   :  { %3704 = vmatpush.msra.mxu3 %v10845_v46  ;;  %3621 = vmatpush.msrb.mxu1 %v9312_v44 }
0x1ffc   :  { %3904 = vmatpush.msrb.mxu2 %v10846_v9 }
0x1ffd   :  { %3705 = vmatpush.msra.mxu3 %v10847_v24  ;;  %3622 = vmatpush.msrb.mxu1 %v9317_v35  ;;  %v3470_v52 = vpop.f32.mrf.mxu2 }
0x1ffe   :  { %3905 = vmatpush.msrb.mxu2 %v10848_v41 }
0x1fff   :  { %3706 = vmatpush.msra.mxu3 %v10849_v14  ;;  %3623 = vmatpush.msrb.mxu1 %v9322_v36 }
0x2000   :  { %3906 = vmatpush.msrb.mxu2 %v10850_v37 }
0x2001   :  { %3707 = vmatpush.msra.mxu3 %v10851_v62  ;;  %3624 = vmatpush.msrb.mxu1 %v9327_v12 }
0x2002   :  { %3907 = vmatpush.msrb.mxu2 %v10852_v34 }
0x2003   :  { %3625 = vmatpush.msrb.mxu1 %v9331_v57 }
0x2005   :  { %3626 = vmatpush.msrb.mxu1 %v9334_v42 }
0x2007   :  { %3627 = vmatpush.msrb.mxu1 %v9337_v10 }
0x2009   :  { %3628 = vmatpush.msrb.mxu1 %v9340_v60 }
0x200b   :  { %3629 = vmatpush.msrb.mxu1 %v9343_v1 }
0x200d   :  { %3630 = vmatpush.msrb.mxu1 %v9346_v53 }
0x200f   :  { %3631 = vmatpush.msrb.mxu1 %v9349_v58 }
0x2011   :  { %3632 = vmatpush.msrb.mxu1 %v9352_v7 }
0x2013   :  { %3633 = vmatpush.msrb.mxu1 %v9355_v59 }
0x2015   :  { %3634 = vmatpush.msrb.mxu1 %v9358_v22 }
0x2017   :  { %3635 = vmatpush.msrb.mxu1 %v9361_v51 }
0x2019   :  { %3636 = vmatpush.msrb.mxu1 %v9364_v31 }
0x201b   :  { %3792 = vmatpush.msra.mxu1 %v5289_v16 }
0x201d   :  { %3793 = vmatpush.msra.mxu1 %v5290_v28 }
0x201f   :  { %3794 = vmatpush.msra.mxu1 %v5291_v49 }
0x2021   :  { %3795 = vmatpush.msra.mxu1 %v5292_v48 }
0x2023   :  { %3796 = vmatpush.msra.mxu1 %v5293_v13 }
0x2025   :  { %3797 = vmatpush.msra.mxu1 %v5294_v11 }
0x2027   :  { %3798 = vmatpush.msra.mxu1 %v5295_v55  ;;  %v10856_v55 = vld [vmem:[#allocation129_spill] sm:$0xff] }
0x2029   :  { %3799 = vmatpush.msra.mxu1 %v5296_v27 }
0x202b   :  { %3800 = vmatpush.msra.mxu1 %v5297_v45  ;;  %v10857_v45 = vld [vmem:[#allocation128_spill] sm:$0xff] }
0x202d   :  { %3801 = vmatpush.msra.mxu1 %v5298_v56 }
0x202f   :  { %3802 = vmatpush.msra.mxu1 %v5299_v21 }
0x2031   :  { %3803 = vmatpush.msra.mxu1 %v5300_v63 }
0x2033   :  { %3804 = vmatpush.msra.mxu1 %v5301_v17 }
0x2035   :  { %3805 = vmatpush.msra.mxu1 %v5302_v25 }
0x2037   :  { %3806 = vmatpush.msra.mxu1 %v5303_v6 }
0x2039   :  { %3807 = vmatpush.msra.mxu1 %v5304_v3 }
0x2057   :  { %v9367_v39 = vpop.f32.mrf.mxu1 }
0x205f   :  { %v3370_v5 = vpop.f32.mrf.mxu1 }
0x2060   :  { %v3371_v46 = vadd.f32 %v10855_v50, %v3370_v5  ;;  %v10863_v50 = vld [vmem:[#allocation135_spill] sm:$0xff] }
0x2062   :  { %v3391_v9 = vadd.f32 %v3390_v26, %v3371_v46  ;;  %v10864_v46 = vld [vmem:[#allocation136_spill] sm:$0xff] }
0x2064   :  { %v3410_v38 = vpop.f32.mrf.mxu3  ;;  %v3473_v24 = vmul.f32 0.5, %v3391_v9  ;;  %v10865_v9 = vld [vmem:[#allocation137_spill] sm:$0xff] }
0x2065   :  { %v3411_v4 = vadd.f32 %v10853_v29, %v3410_v38 }
0x2067   :  { %v3431_v15 = vadd.f32 %v3430_v30, %v3411_v4 }
0x2069   :  { %4588 = vtanh.f32 %v3431_v15  ;;  %v3477_v49 = vmul.f32 0.5, %v3431_v15 }
0x206f   :  { %v4589_v19 = vpop.eup %4588 }
0x2070   :  { %3491 = vrot.lane.b32.xlu2 %v4589_v19, %s5625_s14 }
0x2077   :  { %v3450_v2 = vpop.f32.mrf.mxu1 }
0x2078   :  { %v3451_v43 = vadd.f32 %v10854_v18, %v3450_v2  ;;  %v10858_v2 = vld [vmem:[#allocation130_spill] sm:$0xff]  ;;  %v10859_v18 = vld [vmem:[#allocation131_spill] sm:$0xff] }
0x207a   :  { %v9372_v54 = vadd.f32 %v3470_v52, %v3451_v43  ;;  %v10860_v43 = vld [vmem:[#allocation132_spill] sm:$0xff]  ;;  %v10861_v52 = vld [vmem:[#allocation133_spill] sm:$0xff] }
0x207c   :  { %4590 = vtanh.f32 %v9372_v54 }
0x207d   :  { %4592 = vtanh.f32 %v3473_v24  ;;  %v10866_v24 = vld [vmem:[#allocation138_spill] sm:$0xff] }
0x207e   :  { %4594 = vtanh.f32 %v3477_v49  ;;  %v10874_v49 = vld [vmem:[#allocation146_spill] sm:$0xff] }
0x2082   :  { %v4591_v40 = vpop.eup %4590 }
0x2083   :  { %3493 = vrot.lane.b32.xlu0 %v4591_v40, %s5625_s14  ;;  %v4593_v41 = vpop.eup %4592  ;;  %v10862_v40 = vld [vmem:[#allocation134_spill] sm:$0xff] }
0x2084   :  { %v3475_v14 = vmul.f32 0.5, %v4593_v41  ;;  %v4595_v48 = vpop.eup %4594  ;;  %v10867_v41 = vld [vmem:[#allocation139_spill] sm:$0xff] }
0x2085   :  { %v3479_v13 = vmul.f32 0.5, %v4595_v48  ;;  %v10875_v48 = vld [vmem:[#allocation147_spill] sm:$0xff] }
0x2086   :  { %v3476_v34 = vadd.f32 0.5, %v3475_v14  ;;  %v10868_v14 = vld [vmem:[#allocation140_spill] sm:$0xff] }
0x2087   :  { %v3480_v11 = vadd.f32 0.5, %v3479_v13  ;;  %v10877_v13 = vld [vmem:[#allocation149_spill] sm:$0xff] }
0x2088   :  { %v3487_v56 = vmul.f32 %v3476_v34, %v10857_v45  ;;  %v10881_v45 = vld [vmem:[#allocation153_spill] sm:$0xff] }
0x2089   :  { %v3488_v27 = vmul.f32 %v3480_v11, %v10856_v55  ;;  %v10879_v55 = vld [vmem:[#allocation151_spill] sm:$0xff] }
0x20ca   :  { %v3492_v37 = vpop.permute.xlu2 %3491 }
0x20f5   :  { %v3494_v62 = vpop.permute.xlu0 %3493 }
0x20f6   :  { %v3495_v16 = vsel %vm816_vm3, %v3492_v37, %v3494_v62  ;;  %v10869_v37 = vld [vmem:[#allocation141_spill] sm:$0xff]  ;;  %v10870_v62 = vld [vmem:[#allocation142_spill] sm:$0xff] }
0x20f7   :  { %v3497_v28 = vmul.f32 %v3495_v16, %v3476_v34  ;;  %v10871_v34 = vld [vmem:[#allocation143_spill] sm:$0xff]  ;;  %v10872_v16 = vld [vmem:[#allocation144_spill] sm:$0xff] }
0x20f9   :  { %3499 = vrot.lane.b32.xlu1 %v3497_v28, %s5626_s15  ;;  %v10873_v28 = vld [vmem:[#allocation145_spill] sm:$0xff] }
0x2101   :  { %4285 = vrot.lane.b32.xlu1 %v9228_v20, %s5631_s2 }
0x216b   :  { %v3500_v21 = vpop.permute.xlu1 %3499 }
0x216c   :  { %v9383_v63 = vadd.f32 %v3500_v21, %v3487_v56  ;;  %v9385_v17 = vadd.f32 %v3500_v21, %v3488_v27  ;;  %v10880_v27 = vld [vmem:[#allocation152_spill] sm:$0xff]  ;;  %v10882_v56 = vld [vmem:[#allocation30_spill] sm:$0xff]  ;;  %v10883_v21 = vld [vmem:[#allocation63_spill] sm:$0xff] }
0x216e   :  { %4596 = vtanh.f32 %v9383_v63 }
0x216f   :  { %4598 = vtanh.f32 %v9385_v17 }
0x2173   :  { %v4286_v4 = vpop.permute.xlu1 %4285 }
0x2174   :  { %v4597_v25 = vpop.eup %4596  ;;  %v4288_v30 = vunpack.i.h.bf16 %v4286_v4  ;;  %v4287_v15 = vunpack.i.l.bf16 %v4286_v4  ;;  %v10889_v4 = vld [vmem:[#allocation42_spill] sm:$0xff] }
0x2175   :  { %v4599_v20 = vpop.eup %4598  ;;  %3508 = vrot.lane.b32.xlu2 %v4597_v25, %s5626_s15  ;;  %v10884_v25 = vld [vmem:[#allocation29_spill] sm:$0xff] }
0x2176   :  { %3510 = vrot.lane.b32.xlu0 %v4599_v20, %s5626_s15  ;;  %v3525_v19 = vsel %vm1329_vm9, %v4287_v15, %v4288_v30  ;;  %v10885_v20 = vld [vmem:[#allocation64_spill] sm:$0xff]  ;;  %v10890_v30 = vld [vmem:[#allocation49_spill] sm:$0xff]  ;;  %v10891_v15 = vld [vmem:[#allocation43_spill] sm:$0xff] }
0x21cf   :  { %v3509_v6 = vpop.permute.xlu2 %3508 }
0x21e8   :  { %v9391_v3 = vpop.permute.xlu0 %3510 }
0x21e9   :  { %v3512_v38 = vsel %vm834_vm4, %v3509_v6, %v9391_v3  ;;  %v10886_v6 = vld [vmem:[#allocation61_spill] sm:$0xff] }
0x21ea   :  { %v3515_v29 = vmul.f32 %v3512_v38, %v3480_v11  ;;  %v10878_v11 = vld [vmem:[#allocation150_spill] sm:$0xff] }
0x21eb   :  { %v10887_v38 = vld [vmem:[#allocation62_spill] sm:$0xff] }
0x21ec   :  { %3518 = vrot.lane.b32.xlu2 %v3515_v29, %s5627_s1  ;;  %v10888_v29 = vld [vmem:[#allocation47_spill] sm:$0xff] }
0x2246   :  { %v9397_v26 = vpop.permute.xlu2 %3518 }
0x2247   :  { %v3527_v5 = vsel %vm834_vm4, %v9397_v26, %v3525_v19  ;;  %v10892_v19 = vld [vmem:[#allocation51_spill] sm:$0xff] }
0x2248   :  { %3544 = vmatmul.f32.vlgmr.msrb.gmra.mxu3 %v3527_v5  ;;  %3564 = vmatmul.f32.vlgmr.msrb.gmra.mxu0 %v3527_v5  ;;  %v10893_v5 = vld [vmem:[#allocation44_spill] sm:$0xff] }
0x2249   :  { %3852 = vmatpush.msrb.mxu0 %v10858_v2  ;;  %3832 = vmatpush.msrb.mxu3 %v10859_v18  ;;  %v10894_v2 = vld [vmem:[#allocation53_spill] sm:$0xff] }
0x224a   :  { %v10895_v18 = vld [vmem:[#allocation45_spill] sm:$0xff] }
0x224b   :  { %3853 = vmatpush.msrb.mxu0 %v10860_v43  ;;  %3833 = vmatpush.msrb.mxu3 %v10861_v52  ;;  %v10896_v43 = vld [vmem:[#allocation55_spill] sm:$0xff]  ;;  %v10897_v52 = vld [vmem:[#allocation46_spill] sm:$0xff] }
0x224d   :  { %3854 = vmatpush.msrb.mxu0 %v10862_v40  ;;  %3834 = vmatpush.msrb.mxu3 %v10863_v50  ;;  %v10898_v40 = vld [vmem:[#allocation57_spill] sm:$0xff]  ;;  %v10899_v50 = vld [vmem:[#allocation48_spill] sm:$0xff] }
0x224f   :  { %3855 = vmatpush.msrb.mxu0 %v10864_v46  ;;  %3835 = vmatpush.msrb.mxu3 %v10865_v9  ;;  %v10900_v46 = vld [vmem:[#allocation59_spill] sm:$0xff]  ;;  %v10901_v9 = vld [vmem:[#allocation50_spill] sm:$0xff] }
0x2250   :  { %3708 = vmatmul.f32.vlgmr.msra.gmra.mxu3 %v9274_v8  ;;  %3728 = vmatmul.f32.vlgmr.msra.gmra.mxu0 %v9274_v8  ;;  %v10876_v8 = vld [vmem:[#allocation148_spill] sm:$0xff] }
0x2251   :  { %3856 = vmatpush.msrb.mxu0 %v10866_v24  ;;  %3836 = vmatpush.msrb.mxu3 %v10867_v41  ;;  %v10902_v24 = vld [vmem:[#allocation60_spill] sm:$0xff] }
0x2252   :  { %v10903_v41 = vld [vmem:[#allocation52_spill] sm:$0xff] }
0x2253   :  { %3857 = vmatpush.msrb.mxu0 %v10868_v14  ;;  %3837 = vmatpush.msrb.mxu3 %v10869_v37  ;;  %v10904_v14 = vld [vmem:[#allocation54_spill] sm:$0xff]  ;;  %v10905_v37 = vld [vmem:[#allocation56_spill] sm:$0xff] }
0x2255   :  { %3858 = vmatpush.msrb.mxu0 %v10870_v62  ;;  %3838 = vmatpush.msrb.mxu3 %v10871_v34  ;;  %v10906_v62 = vld [vmem:[#allocation58_spill] sm:$0xff]  ;;  %v10907_v34 = vld [vmem:[#allocation32_spill] sm:$0xff] }
0x2257   :  { %3859 = vmatpush.msrb.mxu0 %v10872_v16  ;;  %3839 = vmatpush.msrb.mxu3 %v10873_v28  ;;  %v10908_v16 = vld [vmem:[#allocation67_spill] sm:$0xff]  ;;  %v10909_v28 = vld [vmem:[#allocation28_spill] sm:$0xff] }
0x2259   :  { %3860 = vmatpush.msrb.mxu0 %v10874_v49  ;;  %3840 = vmatpush.msrb.mxu3 %v10875_v48  ;;  %v10910_v49 = vld [vmem:[#allocation68_spill] sm:$0xff] }
0x225a   :  { %v10911_v48 = vld [vmem:[#allocation40_spill] sm:$0xff] }
0x225b   :  { %3861 = vmatpush.msrb.mxu0 %v10876_v8  ;;  %3841 = vmatpush.msrb.mxu3 %v10877_v13  ;;  %v10912_v8 = vld [vmem:[#allocation39_spill] sm:$0xff]  ;;  %v10913_v13 = vld [vmem:[#allocation41_spill] sm:$0xff] }
0x225d   :  { %3862 = vmatpush.msrb.mxu0 %v10878_v11  ;;  %3842 = vmatpush.msrb.mxu3 %v10879_v55  ;;  %v10914_v11 = vld [vmem:[#allocation76_spill] sm:$0xff]  ;;  %v10915_v55 = vld [vmem:[#allocation31_spill] sm:$0xff] }
0x225f   :  { %3863 = vmatpush.msrb.mxu0 %v10880_v27  ;;  %3843 = vmatpush.msrb.mxu3 %v10881_v45  ;;  %v10916_v27 = vld [vmem:[#allocation65_spill] sm:$0xff]  ;;  %v10917_v45 = vld [vmem:[#allocation66_spill] sm:$0xff] }
0x2261   :  { %3864 = vmatpush.msrb.mxu0 %v10882_v56  ;;  %3844 = vmatpush.msrb.mxu3 %v10883_v21  ;;  %v10918_v56 = vld [vmem:[#allocation85_spill] sm:$0xff]  ;;  %v10919_v21 = vld [vmem:[#allocation78_spill] sm:$0xff] }
0x2263   :  { %3865 = vmatpush.msrb.mxu0 %v10884_v25  ;;  %3845 = vmatpush.msrb.mxu3 %v10885_v20  ;;  %v10920_v25 = vld [vmem:[#allocation87_spill] sm:$0xff]  ;;  %v10921_v20 = vld [vmem:[#allocation80_spill] sm:$0xff] }
0x2265   :  { %3866 = vmatpush.msrb.mxu0 %v10886_v6  ;;  %3846 = vmatpush.msrb.mxu3 %v10887_v38  ;;  %v9467_v38 = vld [vmem:[#allocation15 + $0x8] sm:$0xff] }
0x2267   :  { %3867 = vmatpush.msrb.mxu0 %v10888_v29  ;;  %3847 = vmatpush.msrb.mxu3 %v10889_v4  ;;  %v3689_v4 = vpop.f32.mrf.mxu2 }
0x2269   :  { %3961 = vmatpush.msra.mxu3 %v10890_v30  ;;  %3981 = vmatpush.msra.mxu0 %v10891_v15  ;;  %v10922_v15 = vld [vmem:[#allocation36_spill] sm:$0xff] }
0x226b   :  { %3962 = vmatpush.msra.mxu3 %v10892_v19  ;;  %3982 = vmatpush.msra.mxu0 %v10893_v5  ;;  %v10923_v19 = vld [vmem:[#allocation34_spill] sm:$0xff] }
0x226c   :  { %v295_v5 = vadd.f32 %v10923_v19, %v10922_v15 }
0x226d   :  { %3963 = vmatpush.msra.mxu3 %v10894_v2  ;;  %3983 = vmatpush.msra.mxu0 %v10895_v18  ;;  %v10924_v2 = vld [vmem:[#allocation35_spill] sm:$0xff] }
0x226e   :  { %v10925_v18 = vld [vmem:[#allocation71_spill] sm:$0xff] }
0x226f   :  { %3964 = vmatpush.msra.mxu3 %v10896_v43  ;;  %3984 = vmatpush.msra.mxu0 %v10897_v52  ;;  %v377_v43 = vadd.f32 %v10925_v18, %v10924_v2  ;;  %v9475_v52 = vld [vmem:[#allocation15] sm:$0xff] }
0x2271   :  { %3965 = vmatpush.msra.mxu3 %v10898_v40  ;;  %3985 = vmatpush.msra.mxu0 %v10899_v50 }
0x2273   :  { %3966 = vmatpush.msra.mxu3 %v10900_v46  ;;  %3986 = vmatpush.msra.mxu0 %v10901_v9  ;;  %v3732_v46 = vadd.f32 %v3689_v4, %v295_v5  ;;  %v10927_v4 = vld [vmem:[#allocation72_spill] sm:$0xff] }
0x2275   :  { %3967 = vmatpush.msra.mxu3 %v10902_v24  ;;  %3987 = vmatpush.msra.mxu0 %v10903_v41  ;;  %v10926_v24 = vld [vmem:[#allocation89_spill] sm:$0xff] }
0x2276   :  { %v3200_v41 = vadd.f32 %v10926_v24, %v9367_v39 }
0x2277   :  { %3968 = vmatpush.msra.mxu3 %v10904_v14  ;;  %3988 = vmatpush.msra.mxu0 %v10905_v37  ;;  %v3735_v37 = vmul.f32 0.5, %v3732_v46 }
0x2279   :  { %3969 = vmatpush.msra.mxu3 %v10906_v62  ;;  %3989 = vmatpush.msra.mxu0 %v10907_v34 }
0x227b   :  { %3970 = vmatpush.msra.mxu3 %v10908_v16  ;;  %3990 = vmatpush.msra.mxu0 %v10909_v28 }
0x227d   :  { %3971 = vmatpush.msra.mxu3 %v10910_v49  ;;  %3991 = vmatpush.msra.mxu0 %v10911_v48 }
0x227f   :  { %3972 = vmatpush.msra.mxu3 %v10912_v8  ;;  %3992 = vmatpush.msra.mxu0 %v10913_v13 }
0x2281   :  { %3973 = vmatpush.msra.mxu3 %v10914_v11  ;;  %3993 = vmatpush.msra.mxu0 %v10915_v55 }
0x2283   :  { %3974 = vmatpush.msra.mxu3 %v10916_v27  ;;  %3994 = vmatpush.msra.mxu0 %v10917_v45 }
0x2285   :  { %3975 = vmatpush.msra.mxu3 %v10918_v56  ;;  %3995 = vmatpush.msra.mxu0 %v10919_v21 }
0x2287   :  { %3976 = vmatpush.msra.mxu3 %v10920_v25  ;;  %3996 = vmatpush.msra.mxu0 %v10921_v20 }
0x22c5   :  { %v3565_v6 = vpop.f32.mrf.mxu0 }
0x22c6   :  { %v3566_v29 = vadd.f32 %v9467_v38, %v3565_v6 }
0x22c8   :  { %3577 = vrot.lane.b32.xlu0 %v3566_v29, %s5628_s0  ;;  %v3572_v15 = vmul.f32 0.5, %v3566_v29 }
0x22cb   :  { %v3545_v30 = vpop.f32.mrf.mxu3 }
0x22cc   :  { %v3546_v40 = vadd.f32 %v9475_v52, %v3545_v30  ;;  %v336_v30 = vadd.f32 %v10927_v4, %v10137_v23 }
0x22cd   :  { %v3729_v50 = vpop.f32.mrf.mxu0 }
0x22ce   :  { %v9478_v9 = vadd.f32 %v3729_v50, %v377_v43  ;;  %3581 = vrot.lane.b32.xlu1 %v3546_v40, %s5628_s0  ;;  %v3568_v14 = vmul.f32 0.5, %v3546_v40 }
0x22d0   :  { %3748 = vrot.lane.b32.xlu2 %v9478_v9, %s5622_s8  ;;  %3752 = vrot.lane.b32.xlu0 %v3732_v46, %s5622_s8  ;;  %4600 = vtanh.f32 %v3568_v14 }
0x22d1   :  { %4602 = vtanh.f32 %v3735_v37  ;;  %v3202_v37 = vmul.f32 0.5, %v3200_v41 }
0x22d3   :  { %v3709_v20 = vpop.f32.mrf.mxu3 }
0x22d4   :  { %v3733_v2 = vadd.f32 %v3709_v20, %v336_v30 }
0x22d6   :  { %v4601_v34 = vpop.eup %4600  ;;  %v3739_v18 = vmul.f32 0.5, %v3733_v2 }
0x22d7   :  { %v4603_v49 = vpop.eup %4602  ;;  %v3570_v13 = vmul.f32 0.5, %v4601_v34 }
0x22d8   :  { %3207 = vrot.lane.b32.xlu0 %v3200_v41, %s5632_s19  ;;  %v3737_v39 = vmul.f32 0.5, %v4603_v49 }
0x22d9   :  { %v9489_v55 = vadd.f32 0.5, %v3570_v13 }
0x22da   :  { %v3738_v45 = vadd.f32 0.5, %v3737_v39 }
0x22db   :  { %v3586_v29 = vmul.f32 %v9489_v55, %v9204_v32 }
0x22dc   :  { %v3757_v6 = vmul.f32 %v3738_v45, %v9197_v61 }
0x232a   :  { %v3749_v48 = vpop.permute.xlu2 %3748 }
0x233a   :  { %v3578_v62 = vpop.permute.xlu0 %3577 }
0x2340   :  { %v3582_v16 = vpop.permute.xlu1 %3581 }
0x2341   :  { %v3584_v28 = vsel %vm933_vm5, %v3578_v62, %v3582_v16 }
0x2342   :  { %4604 = vtanh.f32 %v3584_v28  ;;  %v3753_v8 = vpop.permute.xlu0 %3752 }
0x2343   :  { %v3755_v11 = vsel %vm543_vm0, %v3749_v48, %v3753_v8  ;;  %v3481_v48 = vmul.f32 0.5, %v9372_v54 }
0x2344   :  { %4606 = vtanh.f32 %v3755_v11 }
0x2348   :  { %v4605_v27 = vpop.eup %4604 }
0x2349   :  { %v3588_v56 = vmul.f32 %v4605_v27, %v9489_v55 }
0x234a   :  { %v4607_v21 = vpop.eup %4606  ;;  %v3208_v46 = vpop.permute.xlu0 %3207 }
0x234b   :  { %3590 = vrot.lane.b32.xlu1 %v3588_v56, %s5629_s16  ;;  %v3759_v25 = vmul.f32 %v4607_v21, %v3738_v45  ;;  %v3210_v61 = vmul.f32 0.5, %v3208_v46 }
0x234d   :  { %3761 = vrot.lane.b32.xlu2 %v3759_v25, %s5623_s10 }
0x2353   :  { %3221 = vrot.lane.b32.xlu1 %v3200_v41, %s5633_s20 }
0x2355   :  { %3214 = vrot.lane.b32.xlu2 %v3200_v41, %s5634_s21 }
0x23a7   :  { %v3762_v19 = vpop.permute.xlu2 %3761 }
0x23a8   :  { %v3764_v5 = vadd.f32 %v3762_v19, %v3757_v6 }
0x23aa   :  { %4608 = vtanh.f32 %v3764_v5 }
0x23ab   :  { %4610 = vtanh.f32 %v3572_v15 }
0x23ac   :  { %4612 = vtanh.f32 %v3739_v18 }
0x23ad   :  { %4614 = vtanh.f32 %v3210_v61 }
0x23ae   :  { %4616 = vtanh.f32 %v3202_v37 }
0x23b0   :  { %v4609_v43 = vpop.eup %4608 }
0x23b1   :  { %v4611_v40 = vpop.eup %4610  ;;  %3770 = vrot.lane.b32.xlu2 %v4609_v43, %s5623_s10 }
0x23b2   :  { %v3574_v50 = vmul.f32 0.5, %v4611_v40  ;;  %v4613_v24 = vpop.eup %4612 }
0x23b3   :  { %v3741_v62 = vmul.f32 0.5, %v4613_v24  ;;  %v4615_v41 = vpop.eup %4614 }
0x23b4   :  { %v3575_v14 = vadd.f32 0.5, %v3574_v50  ;;  %v4617_v13 = vpop.eup %4616  ;;  %v3212_v32 = vmul.f32 0.5, %v4615_v41 }
0x23b5   :  { %v3742_v16 = vadd.f32 0.5, %v3741_v62  ;;  %v3204_v21 = vmul.f32 0.5, %v4617_v13 }
0x23b6   :  { %v3587_v23 = vmul.f32 %v3575_v14, %v9206_v33  ;;  %v3215_v33 = vpop.permute.xlu2 %3214  ;;  %v3213_v54 = vadd.f32 0.5, %v3212_v32 }
0x23b7   :  { %v3758_v8 = vmul.f32 %v3742_v16, %v9212_v47  ;;  %v3217_v39 = vmul.f32 0.5, %v3215_v33  ;;  %v3205_v47 = vadd.f32 0.5, %v3204_v21 }
0x23b8   :  { %v3225_v6 = vmul.f32 %v3213_v54, %v9218_v0  ;;  %v3743_v0 = vmul.f32 0.5, %v9478_v9  ;;  %v5308_v54 = vld [vmem:[#allocation11 + $0x160] sm:$0xff] }
0x23b9   :  { %v3765_v11 = vadd.f32 %v3762_v19, %v3758_v8 }
0x23bd   :  { %v3591_v34 = vpop.permute.xlu1 %3590 }
0x23be   :  { %v9503_v28 = vadd.f32 %v3591_v34, %v3586_v29  ;;  %v9505_v49 = vadd.f32 %v3591_v34, %v3587_v23 }
0x23c0   :  { %4618 = vtanh.f32 %v9503_v28 }
0x23c1   :  { %4620 = vtanh.f32 %v9505_v49 }
0x23c2   :  { %4622 = vtanh.f32 %v3481_v48 }
0x23c5   :  { %v3222_v27 = vpop.permute.xlu1 %3221 }
0x23c6   :  { %v4619_v45 = vpop.eup %4618  ;;  %4624 = vtanh.f32 %v3222_v27 }
0x23c7   :  { %v4621_v56 = vpop.eup %4620  ;;  %3599 = vrot.lane.b32.xlu0 %v4619_v45, %s5629_s16  ;;  %4626 = vtanh.f32 %v3765_v11 }
0x23c8   :  { %3601 = vrot.lane.b32.xlu1 %v4621_v56, %s5629_s16  ;;  %4628 = vtanh.f32 %v3217_v39  ;;  %v4623_v25 = vpop.eup %4622 }
0x23c9   :  { %v3483_v19 = vmul.f32 0.5, %v4623_v25 }
0x23cb   :  { %v3484_v18 = vadd.f32 0.5, %v3483_v19  ;;  %v5313_v19 = vld [vmem:[#allocation11 + $0xe8] sm:$0xff] }
0x23cc   :  { %v4625_v20 = vpop.eup %4624 }
0x23cd   :  { %v3226_v4 = vmul.f32 %v4625_v20, %v3205_v47  ;;  %v4627_v30 = vpop.eup %4626  ;;  %v3516_v43 = vmul.f32 %v9391_v3, %v3484_v18  ;;  %v5315_v18 = vld [vmem:[#allocation11 + $0xb8] sm:$0xff] }
0x23ce   :  { %v4629_v15 = vpop.eup %4628 }
0x23cf   :  { %v9514_v5 = vadd.f32 %v3226_v4, %v3225_v6  ;;  %3772 = vrot.lane.b32.xlu0 %v4627_v30, %s5623_s10  ;;  %v3219_v2 = vmul.f32 0.5, %v4629_v15  ;;  %v5310_v4 = vld [vmem:[#allocation11 + $0x130] sm:$0xff]  ;;  %v5311_v30 = vld [vmem:[#allocation11 + $0x118] sm:$0xff]  ;;  %v5312_v15 = vld [vmem:[#allocation11 + $0x100] sm:$0xff] }
0x23d1   :  { %4630 = vtanh.f32 %v9514_v5  ;;  %v3220_v40 = vadd.f32 0.5, %v3219_v2  ;;  %v5314_v2 = vld [vmem:[#allocation11 + $0xd0] sm:$0xff] }
0x23d2   :  { %4632 = vtanh.f32 %v3743_v0  ;;  %v5320_v0 = vld [vmem:[#allocation11 + $0x40] sm:$0xff] }
0x23d7   :  { %v4631_v50 = vpop.eup %4630  ;;  %3788 = vrot.lane.b32.xlu0 %v3516_v43, %s5627_s1  ;;  %v5316_v43 = vld [vmem:[#allocation11 + $0xa0] sm:$0xff] }
0x23d8   :  { %v3229_v46 = vmul.f32 %v4631_v50, %v3220_v40  ;;  %v4633_v24 = vpop.eup %4632  ;;  %v5317_v40 = vld [vmem:[#allocation11 + $0x88] sm:$0xff]  ;;  %v5318_v50 = vld [vmem:[#allocation11 + $0x70] sm:$0xff] }
0x23d9   :  { %v3745_v34 = vmul.f32 0.5, %v4633_v24  ;;  %v5321_v24 = vld [vmem:[#allocation11 + $0x28] sm:$0xff] }
0x23da   :  { %3617 = vrot.lane.b32.xlu2 %v3229_v46, %s5629_s16  ;;  %v5319_v46 = vld [vmem:[#allocation11 + $0x58] sm:$0xff] }
0x23db   :  { %v3746_v48 = vadd.f32 0.5, %v3745_v34 }
0x240b   :  { %v3771_v41 = vpop.permute.xlu2 %3770 }
0x2434   :  { %v3618_v45 = vpop.permute.xlu2 %3617 }
0x2439   :  { %v3600_v61 = vpop.permute.xlu0 %3599 }
0x243a   :  { %v3602_v37 = vpop.permute.xlu1 %3601  ;;  %v3606_v62 = vmul.f32 %v3600_v61, %v9489_v55 }
0x243b   :  { %v3603_v23 = vsel %vm953_vm6, %v3600_v61, %v3602_v37  ;;  %v5322_v61 = vld [vmem:[#allocation11 + $0x10] sm:$0xff] }
0x243c   :  { %v3607_v29 = vmul.f32 %v3603_v23, %v3575_v14 }
0x243e   :  { %v9524_v3 = vpack.i.bf16 %v3607_v29, %v3606_v62 }
0x2440   :  { %4290 = vrot.lane.b32.xlu1 %v9524_v3, %s5630_s17 }
0x2441   :  { %v3773_v8 = vpop.permute.xlu0 %3772 }
0x2442   :  { %v3774_v9 = vsel %vm563_vm1, %v3771_v41, %v3773_v8  ;;  %v3778_v33 = vmul.f32 %v3773_v8, %v3746_v48 }
0x2443   :  { %v3777_v13 = vmul.f32 %v3774_v9, %v3742_v16  ;;  %v5307_v16 = vld [vmem:[#allocation11 + $0x178] sm:$0xff] }
0x2445   :  { %v4294_v11 = vpack.i.bf16 %v3778_v33, %v3777_v13 }
0x2448   :  { %4295 = vrot.lane.b32.xlu1 %v4294_v11, %s5624_s13 }
0x2449   :  { %v3789_v55 = vpop.permute.xlu0 %3788 }
0x244a   :  { %v3790_v14 = vsel %vm1154_vm7, %v9397_v26, %v3789_v55  ;;  %v5309_v26 = vld [vmem:[#allocation11 + $0x148] sm:$0xff] }
0x244b   :  { %3828 = vmatmul.f32.vlgmr.msra.gmra.mxu2 %v3790_v14  ;;  %3868 = vmatmul.f32.vlgmr.msrb.gmra.mxu0 %v3790_v14 }
0x2453   :  { %3908 = vmatmul.f32.vlgmr.msrb.gmra.mxu2 %v3790_v14 }
0x24b2   :  { %v4291_v32 = vpop.permute.xlu1 %4290 }
0x24b3   :  { %v4293_v39 = vunpack.i.h.bf16 %v4291_v32  ;;  %v4292_v27 = vunpack.i.l.bf16 %v4291_v32 }
0x24b5   :  { %v3614_v56 = vsel %vm965_vm8, %v4292_v27, %v4293_v39 }
0x24b6   :  { %v3620_v21 = vsel %vm953_vm6, %v3614_v56, %v3618_v45 }
0x24b7   :  { %3637 = vmatmul.f32.vlgmr.msrb.gmra.mxu1 %v3620_v21 }
0x24b8   :  { %3872 = vmatpush.msrb.mxu1 %v5307_v16 }
0x24ba   :  { %3873 = vmatpush.msrb.mxu1 %v5308_v54  ;;  %v4296_v25 = vpop.permute.xlu1 %4295 }
0x24bb   :  { %v4298_v47 = vunpack.i.h.bf16 %v4296_v25  ;;  %v4297_v20 = vunpack.i.l.bf16 %v4296_v25 }
0x24bc   :  { %3874 = vmatpush.msrb.mxu1 %v5309_v26 }
0x24bd   :  { %v3785_v6 = vsel %vm575_vm2, %v4297_v20, %v4298_v47 }
0x24be   :  { %3875 = vmatpush.msrb.mxu1 %v5310_v4  ;;  %3848 = vmatmul.f32.vlgmr.msrb.gmra.mxu3 %v3785_v6 }
0x24bf   :  { %3808 = vmatmul.f32.vlgmr.msra.gmra.mxu1 %v3785_v6 }
0x24c0   :  { %3876 = vmatpush.msrb.mxu1 %v5311_v30 }
0x24c2   :  { %3877 = vmatpush.msrb.mxu1 %v5312_v15 }
0x24c4   :  { %3878 = vmatpush.msrb.mxu1 %v5313_v19 }
0x24c6   :  { %3879 = vmatpush.msrb.mxu1 %v5314_v2 }
0x24c8   :  { %3880 = vmatpush.msrb.mxu1 %v5315_v18  ;;  %v9573_v18 = vld [vmem:[%s9616_s9] sm:$0xff] }
0x24ca   :  { %3881 = vmatpush.msrb.mxu1 %v5316_v43 }
0x24cc   :  { %3882 = vmatpush.msrb.mxu1 %v5317_v40 }
0x24ce   :  { %3883 = vmatpush.msrb.mxu1 %v5318_v50 }
0x24d0   :  { %3884 = vmatpush.msrb.mxu1 %v5319_v46 }
0x24d2   :  { %3885 = vmatpush.msrb.mxu1 %v5320_v0 }
0x24d4   :  { %3886 = vmatpush.msrb.mxu1 %v5321_v24 }
0x24d6   :  { %3887 = vmatpush.msrb.mxu1 %v5322_v61 }
0x24d7   :  { %3888 = vmatmul.f32.vlgmr.msrb.gmra.mxu1 %v3785_v6 }
0x24d8   :  { %4054 = vmatpush.msra.mxu1 %v9312_v44 }
0x24da   :  { %4055 = vmatpush.msra.mxu1 %v9317_v35 }
0x24dc   :  { %4056 = vmatpush.msra.mxu1 %v9322_v36  ;;  %v5323_v36 = vld [vmem:[#allocation12 + $0x8] sm:$0xff] }
0x24de   :  { %4057 = vmatpush.msra.mxu1 %v9327_v12 }
0x24e0   :  { %4058 = vmatpush.msra.mxu1 %v9331_v57  ;;  %v3869_v57 = vpop.f32.mrf.mxu0 }
0x24e2   :  { %4059 = vmatpush.msra.mxu1 %v9334_v42 }
0x24e4   :  { %4060 = vmatpush.msra.mxu1 %v9337_v10 }
0x24e6   :  { %4061 = vmatpush.msra.mxu1 %v9340_v60  ;;  %v3829_v60 = vpop.f32.mrf.mxu2 }
0x24e8   :  { %4062 = vmatpush.msra.mxu1 %v9343_v1 }
0x24ea   :  { %4063 = vmatpush.msra.mxu1 %v9346_v53 }
0x24ec   :  { %4064 = vmatpush.msra.mxu1 %v9349_v58  ;;  %v5324_v58 = vld [vmem:[#allocation12 + $0x10] sm:$0xff] }
0x24ee   :  { %4065 = vmatpush.msra.mxu1 %v9352_v7 }
0x24f0   :  { %4066 = vmatpush.msra.mxu1 %v9355_v59  ;;  %v3909_v59 = vpop.f32.mrf.mxu2 }
0x24f2   :  { %4067 = vmatpush.msra.mxu1 %v9358_v22 }
0x24f4   :  { %4068 = vmatpush.msra.mxu1 %v9361_v51 }
0x24f6   :  { %4069 = vmatpush.msra.mxu1 %v9364_v31  ;;  %v5325_v31 = vld [vmem:[#allocation12] sm:$0xff] }
0x2534   :  { %v9551_v35 = vpop.f32.mrf.mxu1 }
0x2535   :  { %v3639_v43 = vadd.f32 %v9573_v18, %v9551_v35 }
0x253c   :  { %v3809_v1 = vpop.f32.mrf.mxu1 }
0x253d   :  { %v3810_v37 = vadd.f32 %v5325_v31, %v3809_v1 }
0x253f   :  { %v3830_v62 = vadd.f32 %v3829_v60, %v3810_v37 }
0x2541   :  { %v3849_v44 = vpop.f32.mrf.mxu3  ;;  %v3912_v23 = vmul.f32 0.5, %v3830_v62 }
0x2542   :  { %v3850_v12 = vadd.f32 %v5323_v36, %v3849_v44 }
0x2544   :  { %v3870_v42 = vadd.f32 %v3869_v57, %v3850_v12 }
0x2546   :  { %4634 = vtanh.f32 %v3870_v42  ;;  %v3916_v13 = vmul.f32 0.5, %v3870_v42  ;;  %v3641_v42 = vmul.f32 0.5, %v3639_v43 }
0x254c   :  { %v4635_v10 = vpop.eup %4634 }
0x254d   :  { %3926 = vrot.lane.b32.xlu2 %v4635_v10, %s5625_s14 }
0x2554   :  { %v3889_v53 = vpop.f32.mrf.mxu1 }
0x2555   :  { %v3890_v7 = vadd.f32 %v5324_v58, %v3889_v53 }
0x2557   :  { %v3910_v22 = vadd.f32 %v3909_v59, %v3890_v7 }
0x2559   :  { %4636 = vtanh.f32 %v3910_v22 }
0x255a   :  { %4638 = vtanh.f32 %v3912_v23 }
0x255b   :  { %4640 = vtanh.f32 %v3916_v13 }
0x255f   :  { %v4637_v51 = vpop.eup %4636 }
0x2560   :  { %3928 = vrot.lane.b32.xlu0 %v4637_v51, %s5625_s14  ;;  %v4639_v29 = vpop.eup %4638 }
0x2561   :  { %v3914_v34 = vmul.f32 0.5, %v4639_v29  ;;  %v4641_v11 = vpop.eup %4640 }
0x2562   :  { %v3918_v55 = vmul.f32 0.5, %v4641_v11 }
0x2563   :  { %v3915_v8 = vadd.f32 0.5, %v3914_v34 }
0x2564   :  { %v3919_v14 = vadd.f32 0.5, %v3918_v55 }
0x2565   :  { %v3922_v39 = vmul.f32 %v3915_v8, %v9383_v63 }
0x2566   :  { %v3923_v32 = vmul.f32 %v3919_v14, %v9385_v17 }
0x25a7   :  { %v3927_v48 = vpop.permute.xlu2 %3926 }
0x25d2   :  { %v3929_v41 = vpop.permute.xlu0 %3928 }
0x25d3   :  { %v3930_v9 = vsel %vm816_vm3, %v3927_v48, %v3929_v41 }
0x25d4   :  { %v3932_v33 = vmul.f32 %v3930_v9, %v3915_v8 }
0x25d6   :  { %3934 = vrot.lane.b32.xlu1 %v3932_v33, %s5626_s15 }
0x25de   :  { %4300 = vrot.lane.b32.xlu1 %v9524_v3, %s5631_s2 }
0x2648   :  { %v3935_v27 = vpop.permute.xlu1 %3934 }
0x2649   :  { %v3937_v45 = vadd.f32 %v3935_v27, %v3922_v39  ;;  %v3938_v56 = vadd.f32 %v3935_v27, %v3923_v32 }
0x264b   :  { %4642 = vtanh.f32 %v3937_v45 }
0x264c   :  { %4644 = vtanh.f32 %v3938_v56 }
0x2650   :  { %v4301_v17 = vpop.permute.xlu1 %4300 }
0x2651   :  { %v4643_v21 = vpop.eup %4642  ;;  %v4303_v63 = vunpack.i.h.bf16 %v4301_v17  ;;  %v4302_v20 = vunpack.i.l.bf16 %v4301_v17 }
0x2652   :  { %v4645_v16 = vpop.eup %4644  ;;  %3943 = vrot.lane.b32.xlu2 %v4643_v21, %s5626_s15 }
0x2653   :  { %3945 = vrot.lane.b32.xlu0 %v4645_v16, %s5626_s15  ;;  %v3958_v26 = vsel %vm1329_vm9, %v4302_v20, %v4303_v63 }
0x26ac   :  { %v3944_v3 = vpop.permute.xlu2 %3943 }
0x26c5   :  { %v3946_v54 = vpop.permute.xlu0 %3945 }
0x26c6   :  { %v3947_v25 = vsel %vm834_vm4, %v3944_v3, %v3946_v54 }
0x26c7   :  { %v3949_v47 = vmul.f32 %v3947_v25, %v3919_v14 }
0x26c9   :  { %3951 = vrot.lane.b32.xlu2 %v3949_v47, %s5627_s1 }
0x2723   :  { %v3952_v6 = vpop.permute.xlu2 %3951 }
0x2724   :  { %v3960_v4 = vsel %vm834_vm4, %v3952_v6, %v3958_v26  ;;  %v4117_v26 = vld [vmem:[#allocation18 + $0x78] sm:$0xff]  ;;  %v4116_v6 = vld [vmem:[#allocation18 + $0x70] sm:$0xff] }
0x2725   :  { %3977 = vmatmul.f32.vlgmr.msra.gmra.mxu3 %v3960_v4  ;;  %3997 = vmatmul.f32.vlgmr.msra.gmra.mxu0 %v3960_v4  ;;  %v4115_v4 = vld [vmem:[#allocation18 + $0x68] sm:$0xff] }
0x2726   :  { %4122 = vmatpush.msra.mxu2 %v4117_v26 }
0x2728   :  { %4123 = vmatpush.msra.mxu2 %v4116_v6 }
0x272a   :  { %4124 = vmatpush.msra.mxu2 %v4115_v4 }
0x27a2   :  { %v3998_v30 = vpop.f32.mrf.mxu0 }
0x27a3   :  { %v3999_v15 = vadd.f32 %v9467_v38, %v3998_v30  ;;  %v4114_v30 = vld [vmem:[#allocation18 + $0x60] sm:$0xff] }
0x27a4   :  { %4125 = vmatpush.msra.mxu2 %v4114_v30 }
0x27a5   :  { %4010 = vrot.lane.b32.xlu0 %v3999_v15, %s5628_s0  ;;  %v4005_v35 = vmul.f32 0.5, %v3999_v15  ;;  %v4113_v15 = vld [vmem:[#allocation18 + $0x58] sm:$0xff] }
0x27a6   :  { %4126 = vmatpush.msra.mxu2 %v4113_v15 }
0x27a8   :  { %v3978_v19 = vpop.f32.mrf.mxu3 }
0x27a9   :  { %v3979_v2 = vadd.f32 %v9475_v52, %v3978_v19  ;;  %v4112_v19 = vld [vmem:[#allocation18 + $0x50] sm:$0xff] }
0x27aa   :  { %4127 = vmatpush.msra.mxu2 %v4112_v19 }
0x27ab   :  { %4014 = vrot.lane.b32.xlu1 %v3979_v2, %s5628_s0  ;;  %v4001_v38 = vmul.f32 0.5, %v3979_v2  ;;  %v4111_v2 = vld [vmem:[#allocation18 + $0x48] sm:$0xff] }
0x27ac   :  { %4128 = vmatpush.msra.mxu2 %v4111_v2 }
0x27ad   :  { %3646 = vrot.lane.b32.xlu0 %v3639_v43, %s5632_s19  ;;  %4646 = vtanh.f32 %v4001_v38  ;;  %v4108_v38 = vld [vmem:[#allocation18 + $0x30] sm:$0xff] }
0x27b3   :  { %3660 = vrot.lane.b32.xlu1 %v3639_v43, %s5633_s20  ;;  %v4647_v40 = vpop.eup %4646 }
0x27b4   :  { %v4003_v0 = vmul.f32 0.5, %v4647_v40  ;;  %v4107_v40 = vld [vmem:[#allocation18 + $0x28] sm:$0xff] }
0x27b6   :  { %v4004_v24 = vadd.f32 0.5, %v4003_v0  ;;  %v4103_v0 = vld [vmem:[#allocation18 + $0x8] sm:$0xff] }
0x27b8   :  { %v4019_v22 = vmul.f32 %v4004_v24, %v9503_v28 }
0x2817   :  { %v4011_v50 = vpop.permute.xlu0 %4010 }
0x281d   :  { %v4015_v46 = vpop.permute.xlu1 %4014 }
0x281e   :  { %v4017_v52 = vsel %vm933_vm5, %v4011_v50, %v4015_v46  ;;  %v4106_v50 = vld [vmem:[#allocation18 + $0x20] sm:$0xff]  ;;  %v4105_v46 = vld [vmem:[#allocation18 + $0x18] sm:$0xff] }
0x281f   :  { %4648 = vtanh.f32 %v4017_v52  ;;  %v3647_v36 = vpop.permute.xlu0 %3646  ;;  %v4104_v52 = vld [vmem:[#allocation18 + $0x10] sm:$0xff] }
0x2820   :  { %4650 = vtanh.f32 %v4005_v35  ;;  %v3649_v12 = vmul.f32 0.5, %v3647_v36 }
0x2822   :  { %4652 = vtanh.f32 %v3649_v12 }
0x2823   :  { %4654 = vtanh.f32 %v3641_v42 }
0x2825   :  { %v4649_v61 = vpop.eup %4648  ;;  %v3661_v1 = vpop.permute.xlu1 %3660 }
0x2826   :  { %v4021_v44 = vmul.f32 %v4649_v61, %v4004_v24  ;;  %v4651_v57 = vpop.eup %4650  ;;  %4656 = vtanh.f32 %v3661_v1 }
0x2827   :  { %v4007_v10 = vmul.f32 0.5, %v4651_v57 }
0x2828   :  { %4023 = vrot.lane.b32.xlu2 %v4021_v44, %s5629_s16  ;;  %v4653_v53 = vpop.eup %4652 }
0x2829   :  { %v4008_v60 = vadd.f32 0.5, %v4007_v10  ;;  %v4655_v58 = vpop.eup %4654  ;;  %v3651_v7 = vmul.f32 0.5, %v4653_v53 }
0x282a   :  { %v3643_v31 = vmul.f32 0.5, %v4655_v58 }
0x282b   :  { %v4020_v59 = vmul.f32 %v4008_v60, %v9505_v49  ;;  %v3652_v23 = vadd.f32 0.5, %v3651_v7 }
0x282c   :  { %v4657_v29 = vpop.eup %4656  ;;  %v3644_v34 = vadd.f32 0.5, %v3643_v31 }
0x282d   :  { %v3664_v48 = vmul.f32 %v3652_v23, %v9514_v5 }
0x282e   :  { %v3665_v41 = vmul.f32 %v4657_v29, %v3644_v34  ;;  %v4309_v34 = vld [vmem:[%s9618_s11] ss:$0 sm:$0xff] }
0x2830   :  { %3653 = vrot.lane.b32.xlu2 %v3639_v43, %s5634_s21  ;;  %v9587_v49 = vadd.f32 %v3665_v41, %v3664_v48  ;;  %v4109_v43 = vld [vmem:[#allocation18 + $0x38] sm:$0xff] }
0x2882   :  { %v4024_v51 = vpop.permute.xlu2 %4023 }
0x2883   :  { %v4026_v37 = vadd.f32 %v4024_v51, %v4019_v22  ;;  %v4027_v62 = vadd.f32 %v4024_v51, %v4020_v59 }
0x2885   :  { %4658 = vtanh.f32 %v4026_v37 }
0x2886   :  { %4660 = vtanh.f32 %v4027_v62 }
0x288a   :  { %v3654_v8 = vpop.permute.xlu2 %3653 }
0x288b   :  { %v4659_v9 = vpop.eup %4658  ;;  %v3656_v33 = vmul.f32 0.5, %v3654_v8 }
0x288c   :  { %v4661_v13 = vpop.eup %4660  ;;  %4032 = vrot.lane.b32.xlu0 %v4659_v9, %s5629_s16 }
0x288d   :  { %4662 = vtanh.f32 %v3656_v33  ;;  %4034 = vrot.lane.b32.xlu1 %v4661_v13, %s5629_s16 }
0x288e   :  { %4664 = vtanh.f32 %v9587_v49 }
0x2893   :  { %v4663_v28 = vpop.eup %4662 }
0x2894   :  { %v3658_v11 = vmul.f32 0.5, %v4663_v28  ;;  %v4665_v14 = vpop.eup %4664 }
0x2896   :  { %v3659_v55 = vadd.f32 0.5, %v3658_v11 }
0x2898   :  { %v3668_v32 = vmul.f32 %v4665_v14, %v3659_v55 }
0x289a   :  { %4050 = vrot.lane.b32.xlu0 %v3668_v32, %s5629_s16 }
0x28fe   :  { %v4033_v5 = vpop.permute.xlu0 %4032 }
0x28ff   :  { %v4035_v39 = vpop.permute.xlu1 %4034  ;;  %v4039_v27 = vmul.f32 %v4033_v5, %v4004_v24  ;;  %v4102_v24 = vld [vmem:[#allocation18] sm:$0xff] }
0x2900   :  { %v4036_v45 = vsel %vm953_vm6, %v4033_v5, %v4035_v39 }
0x2901   :  { %v4040_v56 = vmul.f32 %v4036_v45, %v4008_v60 }
0x2903   :  { %v4304_v21 = vpack.i.bf16 %v4040_v56, %v4039_v27 }
0x2905   :  { %4305 = vrot.lane.b32.xlu2 %v4304_v21, %s5630_s17 }
0x290c   :  { %v4051_v25 = vpop.permute.xlu0 %4050 }
0x295f   :  { %v4306_v16 = vpop.permute.xlu2 %4305 }
0x2960   :  { %v4308_v3 = vunpack.i.h.bf16 %v4306_v16  ;;  %v4307_v54 = vunpack.i.l.bf16 %v4306_v16 }
0x2962   :  { %v4047_v47 = vsel %vm965_vm8, %v4307_v54, %v4308_v3 }
0x2963   :  { %v4053_v17 = vsel %vm953_vm6, %v4047_v47, %v4051_v25 }
0x2964   :  { %4070 = vmatmul.f32.vlgmr.msra.gmra.mxu1 %v4053_v17 }
0x29e1   :  { %v4071_v63 = vpop.f32.mrf.mxu1 }
0x29e2   :  { %v4072_v20 = vadd.f32 %v9573_v18, %v4071_v63  ;;  %v4110_v18 = vld [vmem:[#allocation18 + $0x40] sm:$0xff] }
0x29e3   :  { %4129 = vmatpush.msra.mxu2 %v4110_v18 }
0x29e4   :  { %4086 = vrot.lane.b32.xlu0 %v4072_v20, %s5634_s21  ;;  %4093 = vrot.lane.b32.xlu2 %v4072_v20, %s5633_s20  ;;  %v4074_v61 = vmul.f32 0.5, %v4072_v20 }
0x29e5   :  { %4079 = vrot.lane.b32.xlu1 %v4072_v20, %s5632_s19  ;;  %4130 = vmatpush.msra.mxu2 %v4109_v43 }
0x29e6   :  { %4666 = vtanh.f32 %v4074_v61 }
0x29e7   :  { %4131 = vmatpush.msra.mxu2 %v4108_v38 }
0x29e9   :  { %4132 = vmatpush.msra.mxu2 %v4107_v40 }
0x29eb   :  { %4133 = vmatpush.msra.mxu2 %v4106_v50 }
0x29ec   :  { %v4667_v57 = vpop.eup %4666 }
0x29ed   :  { %4134 = vmatpush.msra.mxu2 %v4105_v46  ;;  %v4076_v10 = vmul.f32 0.5, %v4667_v57 }
0x29ef   :  { %4135 = vmatpush.msra.mxu2 %v4104_v52  ;;  %v4077_v58 = vadd.f32 0.5, %v4076_v10 }
0x29f1   :  { %4136 = vmatpush.msra.mxu2 %v4103_v0 }
0x29f3   :  { %4137 = vmatpush.msra.mxu2 %v4102_v24 }
0x2a3e   :  { %v4094_v36 = vpop.permute.xlu2 %4093 }
0x2a56   :  { %v4087_v12 = vpop.permute.xlu0 %4086 }
0x2a57   :  { %v4080_v44 = vpop.permute.xlu1 %4079  ;;  %v4089_v42 = vmul.f32 0.5, %v4087_v12 }
0x2a58   :  { %v4082_v35 = vmul.f32 0.5, %v4080_v44 }
0x2a5a   :  { %4668 = vtanh.f32 %v4082_v35 }
0x2a5b   :  { %4670 = vtanh.f32 %v4094_v36 }
0x2a5c   :  { %4672 = vtanh.f32 %v4089_v42 }
0x2a60   :  { %v4669_v60 = vpop.eup %4668 }
0x2a61   :  { %v4084_v1 = vmul.f32 0.5, %v4669_v60  ;;  %v4671_v53 = vpop.eup %4670 }
0x2a62   :  { %v4098_v59 = vmul.f32 %v4671_v53, %v4077_v58  ;;  %v4673_v51 = vpop.eup %4672 }
0x2a63   :  { %v4085_v7 = vadd.f32 0.5, %v4084_v1  ;;  %v4091_v37 = vmul.f32 0.5, %v4673_v51 }
0x2a65   :  { %v4097_v22 = vmul.f32 %v4085_v7, %v9587_v49  ;;  %v4092_v62 = vadd.f32 0.5, %v4091_v37 }
0x2a67   :  { %v4099_v31 = vadd.f32 %v4098_v59, %v4097_v22 }
0x2a69   :  { %4674 = vtanh.f32 %v4099_v31 }
0x2a6f   :  { %v4675_v23 = vpop.eup %4674 }
0x2a70   :  { %v4101_v29 = vmul.f32 %v4675_v23, %v4092_v62 }
0x2a72   :  { %4138 = vmatmul.f32.vlgmr.msra.gmra.mxu2 %v4101_v29 }
0x2af5   :  { %v4139_v48 = vpop.f32.mrf.mxu2 }
0x2af6   :  { %v4140_v41 = vadd.f32 %v4309_v34, %v4139_v48 }
0x2af8   :  { %4142 = vst [vmem:[#allocation20] sm:$0xff] %v4140_v41 }
0x2af9   :  { %4153 = dma.vmem_to_hbm [thread:$0]  %s4149_s27, 128, %s4151_s29, [#allocation5]  }
0x2afa   :  { %5603 = dma.done.wait [#allocation5], 128  }
0x2afb   :  { %5604 = vsyncadd [#allocation5], 4294967168 }
0x2afc   :  { %4158 = vsyncpa [#allocation4], 1 }
0x2afd   :  { %4159 = vsyncpa [#allocation7], 1 }
0x2afe   :  { %4160 = vsyncpa [#allocation10], 1 }
0x2aff   :  { %4161 = vsyncpa [#allocation13], 1 }
0x2b00   :  { %4162 = vsyncpa [#allocation16], 1 }
0x2b01   :  { %4163 = vsyncpa [#allocation19], 1 }
0x2b02   :  { %4164 = vsyncpa [#allocation5], 1 }

</bundles_post_ra>
